<compile_context>
chip_gen: v6e
topology: v6e:2x2x1
jax: 0.10.0
libtpu: 0.0.40
codegen_flags: <defaults>
</compile_context>

<pallas_src>
import functools

import jax
import jax.numpy as jnp
from jax.experimental import pallas as pl
from jax.experimental.pallas import tpu as pltpu

# Hidden layer widths from the PyTorch module.
HIDDEN = (128, 256, 512, 1024, 2048)
LANES = 128


def _round_up(x, m):
    return (x + m - 1) // m * m


def decoder_kernel(alpha_ref, x_ref, *wb_and_out):
    """alpha_ref: SMEM (5,) PReLU slopes (f32).
    x_ref: VMEM (tile_b, input_size) bf16 batch tile.
    wb_and_out: w1(bf16), b1(f32), ..., w6(bf16), b6(f32), o_ref (all VMEM).
    The last layer's w/b/out are lane-padded to a multiple of 128."""
    *wb_refs, o_ref = wb_and_out
    h = x_ref[...]                                # bf16
    n_layers = len(wb_refs) // 2
    for i in range(n_layers):
        w = wb_refs[2 * i][...]                   # (in, out) bf16 — MXU-native
        b = wb_refs[2 * i + 1][...]               # (1, out) f32 — broadcasts over batch
        acc = jnp.dot(h, w, preferred_element_type=jnp.float32) + b
        if i < n_layers - 1:                      # PReLU after every layer but the last
            a = alpha_ref[i]                      # scalar slope (num_parameters=1)
            acc = jnp.where(acc > 0, acc, a * acc)
            h = acc.astype(jnp.bfloat16)          # bf16 into the next matmul
        else:
            h = acc
    o_ref[...] = h.astype(o_ref.dtype)


def make_decoder_params(input_size, output_size, key):
    """Deterministic parameter init mirroring the PyTorch module's shapes (f32)."""
    dims = (input_size,) + HIDDEN + (output_size,)
    weights, biases = [], []
    for i in range(len(dims) - 1):
        fan_in, fan_out = dims[i], dims[i + 1]
        key, wk, bk = jax.random.split(key, 3)
        bound = 1.0 / jnp.sqrt(fan_in)
        w = jax.random.uniform(wk, (fan_in, fan_out), jnp.float32, -bound, bound)
        b = jax.random.uniform(bk, (1, fan_out), jnp.float32, -bound, bound)
        weights.append(w)
        biases.append(b)
    # nn.PReLU() default: single parameter, init 0.25, one per activation (5 total).
    alphas = jnp.full((len(HIDDEN),), 0.25, dtype=jnp.float32)
    return alphas, weights, biases


def prepare_decoder_params(weights, biases, output_size):
    """ONE-TIME prep (outside jit): cast weights to bf16 and zero-pad the final
    layer's out-features to a multiple of 128 lanes (lane-dense output)."""
    out_padded = _round_up(output_size, LANES)
    weights_bf16 = [w.astype(jnp.bfloat16) for w in weights]
    biases_f32 = [b.astype(jnp.float32) for b in biases]
    pad = out_padded - output_size
    if pad:
        weights_bf16[-1] = jnp.pad(weights_bf16[-1], ((0, 0), (0, pad)))
        biases_f32[-1] = jnp.pad(biases_f32[-1], ((0, 0), (0, pad)))
    return weights_bf16, biases_f32, out_padded


def _pick_tile(B):
    """Small batches: one padded-to-8 tile. Larger batches: >=2 tiles (so v7x's
    two TensorCores both get work), capped at 512 rows (amortizes per-step
    overhead on v5e/v6e while staying well inside v7x's 64 MiB VMEM)."""
    if B < 128:
        return _round_up(B, 8)
    return min(512, _round_up((B + 1) // 2, 8))


@functools.partial(jax.jit, static_argnames=("output_size",))
def decoder_forward(x, alphas, weights_bf16, biases_f32, *, output_size):
    B, in_features = x.shape
    out_padded = weights_bf16[-1].shape[1]        # static (lane-padded) width

    tile_b = _pick_tile(B)
    padded_b = _round_up(B, tile_b)

    x = x.astype(jnp.bfloat16)                    # halve x DMA; matmul eats bf16
    if padded_b != B:
        x = jnp.pad(x, ((0, padded_b - B), (0, 0)))
    grid = (padded_b // tile_b,)

    wb = []
    for w, b in zip(weights_bf16, biases_f32):
        wb.append(w)
        wb.append(b)

    in_specs = [pl.BlockSpec(memory_space=pltpu.MemorySpace.SMEM)]            # alphas
    in_specs.append(pl.BlockSpec((tile_b, in_features), lambda i: (i, 0)))    # x tile
    # Weights/biases: whole-array VMEM (no blocking) -> resident across all tiles.
    in_specs += [pl.BlockSpec(memory_space=pltpu.MemorySpace.VMEM) for _ in wb]

    out = pl.pallas_call(
        decoder_kernel,
        out_shape=jax.ShapeDtypeStruct((padded_b, out_padded), jnp.float32),
        grid=grid,
        in_specs=in_specs,
        out_specs=pl.BlockSpec((tile_b, out_padded), lambda i: (i, 0)),
        compiler_params=pltpu.CompilerParams(
            dimension_semantics=("parallel",),
            vmem_limit_bytes=40 << 20,
        ),
    )(alphas, x, *wb)
    return out[:B, :output_size]


def decoder_reference(x, alphas, weights_bf16, biases):
    """Pure-JAX reference mirroring the kernel's bf16-activation / bf16-weight /
    f32-accumulate math (unpadded weights)."""
    h = x.astype(jnp.bfloat16)
    n = len(weights_bf16)
    for i, (w, b) in enumerate(zip(weights_bf16, biases)):
        h = jnp.dot(h, w, preferred_element_type=jnp.float32) + b.astype(jnp.float32)
        if i < n - 1:
            h = jnp.where(h > 0, h, alphas[i] * h).astype(jnp.bfloat16)
    return h


if __name__ == "__main__":
    batch = 8
    input_size = 32
    output_size = 64

    key = jax.random.PRNGKey(0)
    key, xk = jax.random.split(key)
    x = jax.random.normal(xk, (batch, input_size), dtype=jnp.float32)

    alphas, weights, biases = make_decoder_params(input_size, output_size, key)

    # One-time weight prep (bf16 cast + lane padding) — NOT inside the jitted call.
    weights_bf16_p, biases_f32_p, _ = prepare_decoder_params(weights, biases, output_size)
    weights_bf16_p = jax.block_until_ready(weights_bf16_p)

    out = decoder_forward(x, alphas, weights_bf16_p, biases_f32_p,
                          output_size=output_size)
    out = jax.block_until_ready(out)

    weights_bf16 = [w.astype(jnp.bfloat16) for w in weights]
    ref = decoder_reference(x, alphas, weights_bf16, biases)

    assert out.shape == (batch, output_size)
    assert jnp.allclose(out, ref, atol=2e-2, rtol=2e-2), "mismatch vs reference"

    print("KERNEL_OK")
</pallas_src>

<mosaic_0001>
module attributes {stable_mosaic.version = 11 : i64} {
  func.func @decoder_kernel(%arg0: i32, %arg1: memref<5xf32, #tpu.memory_space<smem>>, %arg2: memref<8x32xbf16, #tpu.memory_space<vmem>>, %arg3: memref<32x128xbf16, #tpu.memory_space<vmem>>, %arg4: memref<1x128xf32, #tpu.memory_space<vmem>>, %arg5: memref<128x256xbf16, #tpu.memory_space<vmem>>, %arg6: memref<1x256xf32, #tpu.memory_space<vmem>>, %arg7: memref<256x512xbf16, #tpu.memory_space<vmem>>, %arg8: memref<1x512xf32, #tpu.memory_space<vmem>>, %arg9: memref<512x1024xbf16, #tpu.memory_space<vmem>>, %arg10: memref<1x1024xf32, #tpu.memory_space<vmem>>, %arg11: memref<1024x2048xbf16, #tpu.memory_space<vmem>>, %arg12: memref<1x2048xf32, #tpu.memory_space<vmem>>, %arg13: memref<2048x128xbf16, #tpu.memory_space<vmem>>, %arg14: memref<1x128xf32, #tpu.memory_space<vmem>>, %arg15: memref<8x128xf32, #tpu.memory_space<vmem>>) attributes {dimension_semantics = [#tpu.dimension_semantics<parallel>], iteration_bounds = array<i64: 1>, scalar_prefetch = 0 : i64, scratch_operands = 0 : i64, tpu.core_type = #tpu.core_type<tc>, window_params = [{transform_indices = @transform_0, window_bounds = array<i64: 5>}, {transform_indices = @transform_1, window_bounds = array<i64: 8, 32>}, {pipeline_mode = #tpu.pipeline_mode<synchronous>, transform_indices = @transform_2, window_bounds = array<i64: 32, 128>}, {pipeline_mode = #tpu.pipeline_mode<synchronous>, transform_indices = @transform_3, window_bounds = array<i64: 1, 128>}, {pipeline_mode = #tpu.pipeline_mode<synchronous>, transform_indices = @transform_4, window_bounds = array<i64: 128, 256>}, {pipeline_mode = #tpu.pipeline_mode<synchronous>, transform_indices = @transform_5, window_bounds = array<i64: 1, 256>}, {pipeline_mode = #tpu.pipeline_mode<synchronous>, transform_indices = @transform_6, window_bounds = array<i64: 256, 512>}, {pipeline_mode = #tpu.pipeline_mode<synchronous>, transform_indices = @transform_7, window_bounds = array<i64: 1, 512>}, {pipeline_mode = #tpu.pipeline_mode<synchronous>, transform_indices = @transform_8, window_bounds = array<i64: 512, 1024>}, {pipeline_mode = #tpu.pipeline_mode<synchronous>, transform_indices = @transform_9, window_bounds = array<i64: 1, 1024>}, {pipeline_mode = #tpu.pipeline_mode<synchronous>, transform_indices = @transform_10, window_bounds = array<i64: 1024, 2048>}, {pipeline_mode = #tpu.pipeline_mode<synchronous>, transform_indices = @transform_11, window_bounds = array<i64: 1, 2048>}, {pipeline_mode = #tpu.pipeline_mode<synchronous>, transform_indices = @transform_12, window_bounds = array<i64: 2048, 128>}, {pipeline_mode = #tpu.pipeline_mode<synchronous>, transform_indices = @transform_13, window_bounds = array<i64: 1, 128>}, {transform_indices = @transform_14, window_bounds = array<i64: 8, 128>}]} {
    %c0 = arith.constant 0 : index
    %c0_0 = arith.constant 0 : index
    %0 = vector.load %arg2[%c0, %c0_0] : memref<8x32xbf16, #tpu.memory_space<vmem>>, vector<8x32xbf16>
    %c0_1 = arith.constant 0 : index
    %c0_2 = arith.constant 0 : index
    %1 = vector.load %arg3[%c0_1, %c0_2] : memref<32x128xbf16, #tpu.memory_space<vmem>>, vector<32x128xbf16>
    %c0_3 = arith.constant 0 : index
    %c0_4 = arith.constant 0 : index
    %2 = vector.load %arg4[%c0_3, %c0_4] : memref<1x128xf32, #tpu.memory_space<vmem>>, vector<1x128xf32>
    %cst = arith.constant dense<0.000000e+00> : vector<8x128xf32>
    %3 = tpu.matmul %0, %1, %cst {dimension_numbers = #tpu.dot_dimension_numbers<[1], [0], [0], [1], [0, 0, 1, 1], [], []>} : vector<8x32xbf16>, vector<32x128xbf16>, vector<8x128xf32> -> vector<8x128xf32>
    %4 = vector.broadcast %2 : vector<1x128xf32> to vector<8x128xf32>
    %5 = arith.addf %3, %4 : vector<8x128xf32>
    %c0_5 = arith.constant 0 : index
    %6 = memref.load %arg1[%c0_5] : memref<5xf32, #tpu.memory_space<smem>>
    %cst_6 = arith.constant 0.000000e+00 : f32
    %7 = vector.broadcast %cst_6 : f32 to vector<8x128xf32>
    %8 = arith.cmpf ogt, %5, %7 : vector<8x128xf32>
    %9 = vector.broadcast %6 : f32 to vector<8x128xf32>
    %10 = arith.mulf %9, %5 : vector<8x128xf32>
    %11 = arith.select %8, %5, %10 : vector<8x128xi1>, vector<8x128xf32>
    %12 = arith.truncf %11 : vector<8x128xf32> to vector<8x128xbf16>
    %c0_7 = arith.constant 0 : index
    %c0_8 = arith.constant 0 : index
    %13 = vector.load %arg5[%c0_7, %c0_8] : memref<128x256xbf16, #tpu.memory_space<vmem>>, vector<128x256xbf16>
    %c0_9 = arith.constant 0 : index
    %c0_10 = arith.constant 0 : index
    %14 = vector.load %arg6[%c0_9, %c0_10] : memref<1x256xf32, #tpu.memory_space<vmem>>, vector<1x256xf32>
    %cst_11 = arith.constant dense<0.000000e+00> : vector<8x256xf32>
    %15 = tpu.matmul %12, %13, %cst_11 {dimension_numbers = #tpu.dot_dimension_numbers<[1], [0], [0], [1], [0, 0, 1, 1], [], []>} : vector<8x128xbf16>, vector<128x256xbf16>, vector<8x256xf32> -> vector<8x256xf32>
    %16 = vector.broadcast %14 : vector<1x256xf32> to vector<8x256xf32>
    %17 = arith.addf %15, %16 : vector<8x256xf32>
    %c1 = arith.constant 1 : index
    %18 = memref.load %arg1[%c1] : memref<5xf32, #tpu.memory_space<smem>>
    %cst_12 = arith.constant 0.000000e+00 : f32
    %19 = vector.broadcast %cst_12 : f32 to vector<8x256xf32>
    %20 = arith.cmpf ogt, %17, %19 : vector<8x256xf32>
    %21 = vector.broadcast %18 : f32 to vector<8x256xf32>
    %22 = arith.mulf %21, %17 : vector<8x256xf32>
    %23 = arith.select %20, %17, %22 : vector<8x256xi1>, vector<8x256xf32>
    %24 = arith.truncf %23 : vector<8x256xf32> to vector<8x256xbf16>
    %c0_13 = arith.constant 0 : index
    %c0_14 = arith.constant 0 : index
    %25 = vector.load %arg7[%c0_13, %c0_14] : memref<256x512xbf16, #tpu.memory_space<vmem>>, vector<256x512xbf16>
    %c0_15 = arith.constant 0 : index
    %c0_16 = arith.constant 0 : index
    %26 = vector.load %arg8[%c0_15, %c0_16] : memref<1x512xf32, #tpu.memory_space<vmem>>, vector<1x512xf32>
    %cst_17 = arith.constant dense<0.000000e+00> : vector<8x512xf32>
    %27 = tpu.matmul %24, %25, %cst_17 {dimension_numbers = #tpu.dot_dimension_numbers<[1], [0], [0], [1], [0, 0, 1, 1], [], []>} : vector<8x256xbf16>, vector<256x512xbf16>, vector<8x512xf32> -> vector<8x512xf32>
    %28 = vector.broadcast %26 : vector<1x512xf32> to vector<8x512xf32>
    %29 = arith.addf %27, %28 : vector<8x512xf32>
    %c2 = arith.constant 2 : index
    %30 = memref.load %arg1[%c2] : memref<5xf32, #tpu.memory_space<smem>>
    %cst_18 = arith.constant 0.000000e+00 : f32
    %31 = vector.broadcast %cst_18 : f32 to vector<8x512xf32>
    %32 = arith.cmpf ogt, %29, %31 : vector<8x512xf32>
    %33 = vector.broadcast %30 : f32 to vector<8x512xf32>
    %34 = arith.mulf %33, %29 : vector<8x512xf32>
    %35 = arith.select %32, %29, %34 : vector<8x512xi1>, vector<8x512xf32>
    %36 = arith.truncf %35 : vector<8x512xf32> to vector<8x512xbf16>
    %c0_19 = arith.constant 0 : index
    %c0_20 = arith.constant 0 : index
    %37 = vector.load %arg9[%c0_19, %c0_20] : memref<512x1024xbf16, #tpu.memory_space<vmem>>, vector<512x1024xbf16>
    %c0_21 = arith.constant 0 : index
    %c0_22 = arith.constant 0 : index
    %38 = vector.load %arg10[%c0_21, %c0_22] : memref<1x1024xf32, #tpu.memory_space<vmem>>, vector<1x1024xf32>
    %cst_23 = arith.constant dense<0.000000e+00> : vector<8x1024xf32>
    %39 = tpu.matmul %36, %37, %cst_23 {dimension_numbers = #tpu.dot_dimension_numbers<[1], [0], [0], [1], [0, 0, 1, 1], [], []>} : vector<8x512xbf16>, vector<512x1024xbf16>, vector<8x1024xf32> -> vector<8x1024xf32>
    %40 = vector.broadcast %38 : vector<1x1024xf32> to vector<8x1024xf32>
    %41 = arith.addf %39, %40 : vector<8x1024xf32>
    %c3 = arith.constant 3 : index
    %42 = memref.load %arg1[%c3] : memref<5xf32, #tpu.memory_space<smem>>
    %cst_24 = arith.constant 0.000000e+00 : f32
    %43 = vector.broadcast %cst_24 : f32 to vector<8x1024xf32>
    %44 = arith.cmpf ogt, %41, %43 : vector<8x1024xf32>
    %45 = vector.broadcast %42 : f32 to vector<8x1024xf32>
    %46 = arith.mulf %45, %41 : vector<8x1024xf32>
    %47 = arith.select %44, %41, %46 : vector<8x1024xi1>, vector<8x1024xf32>
    %48 = arith.truncf %47 : vector<8x1024xf32> to vector<8x1024xbf16>
    %c0_25 = arith.constant 0 : index
    %c0_26 = arith.constant 0 : index
    %49 = vector.load %arg11[%c0_25, %c0_26] : memref<1024x2048xbf16, #tpu.memory_space<vmem>>, vector<1024x2048xbf16>
    %c0_27 = arith.constant 0 : index
    %c0_28 = arith.constant 0 : index
    %50 = vector.load %arg12[%c0_27, %c0_28] : memref<1x2048xf32, #tpu.memory_space<vmem>>, vector<1x2048xf32>
    %cst_29 = arith.constant dense<0.000000e+00> : vector<8x2048xf32>
    %51 = tpu.matmul %48, %49, %cst_29 {dimension_numbers = #tpu.dot_dimension_numbers<[1], [0], [0], [1], [0, 0, 1, 1], [], []>} : vector<8x1024xbf16>, vector<1024x2048xbf16>, vector<8x2048xf32> -> vector<8x2048xf32>
    %52 = vector.broadcast %50 : vector<1x2048xf32> to vector<8x2048xf32>
    %53 = arith.addf %51, %52 : vector<8x2048xf32>
    %c4 = arith.constant 4 : index
    %54 = memref.load %arg1[%c4] : memref<5xf32, #tpu.memory_space<smem>>
    %cst_30 = arith.constant 0.000000e+00 : f32
    %55 = vector.broadcast %cst_30 : f32 to vector<8x2048xf32>
    %56 = arith.cmpf ogt, %53, %55 : vector<8x2048xf32>
    %57 = vector.broadcast %54 : f32 to vector<8x2048xf32>
    %58 = arith.mulf %57, %53 : vector<8x2048xf32>
    %59 = arith.select %56, %53, %58 : vector<8x2048xi1>, vector<8x2048xf32>
    %60 = arith.truncf %59 : vector<8x2048xf32> to vector<8x2048xbf16>
    %c0_31 = arith.constant 0 : index
    %c0_32 = arith.constant 0 : index
    %61 = vector.load %arg13[%c0_31, %c0_32] : memref<2048x128xbf16, #tpu.memory_space<vmem>>, vector<2048x128xbf16>
    %c0_33 = arith.constant 0 : index
    %c0_34 = arith.constant 0 : index
    %62 = vector.load %arg14[%c0_33, %c0_34] : memref<1x128xf32, #tpu.memory_space<vmem>>, vector<1x128xf32>
    %cst_35 = arith.constant dense<0.000000e+00> : vector<8x128xf32>
    %63 = tpu.matmul %60, %61, %cst_35 {dimension_numbers = #tpu.dot_dimension_numbers<[1], [0], [0], [1], [0, 0, 1, 1], [], []>} : vector<8x2048xbf16>, vector<2048x128xbf16>, vector<8x128xf32> -> vector<8x128xf32>
    %64 = vector.broadcast %62 : vector<1x128xf32> to vector<8x128xf32>
    %65 = arith.addf %63, %64 : vector<8x128xf32>
    %c0_36 = arith.constant 0 : index
    %c0_37 = arith.constant 0 : index
    %66 = vector.load %arg15[%c0_36, %c0_37] : memref<8x128xf32, #tpu.memory_space<vmem>>, vector<8x128xf32>
    tpu.vector_store %arg15[%c0_36, %c0_37], %65 {strides = array<i32>} : memref<8x128xf32, #tpu.memory_space<vmem>>, vector<8x128xf32>,
    return
  }
  func.func @transform_0(%arg0: i32) -> i32 {
    %c0_i32 = arith.constant 0 : i32
    %c0_i32_0 = arith.constant 0 : i32
    return %c0_i32 : i32
  }
  func.func @transform_1(%arg0: i32) -> (i32, i32) {
    %c0_i32 = arith.constant 0 : i32
    %c0_i32_0 = arith.constant 0 : i32
    return %arg0, %c0_i32 : i32, i32
  }
  func.func @transform_2(%arg0: i32) -> (i32, i32) {
    %c0_i32 = arith.constant 0 : i32
    %c0_i32_0 = arith.constant 0 : i32
    %c0_i32_1 = arith.constant 0 : i32
    return %c0_i32, %c0_i32_0 : i32, i32
  }
  func.func @transform_3(%arg0: i32) -> (i32, i32) {
    %c0_i32 = arith.constant 0 : i32
    %c0_i32_0 = arith.constant 0 : i32
    %c0_i32_1 = arith.constant 0 : i32
    return %c0_i32, %c0_i32_0 : i32, i32
  }
  func.func @transform_4(%arg0: i32) -> (i32, i32) {
    %c0_i32 = arith.constant 0 : i32
    %c0_i32_0 = arith.constant 0 : i32
    %c0_i32_1 = arith.constant 0 : i32
    return %c0_i32, %c0_i32_0 : i32, i32
  }
  func.func @transform_5(%arg0: i32) -> (i32, i32) {
    %c0_i32 = arith.constant 0 : i32
    %c0_i32_0 = arith.constant 0 : i32
    %c0_i32_1 = arith.constant 0 : i32
    return %c0_i32, %c0_i32_0 : i32, i32
  }
  func.func @transform_6(%arg0: i32) -> (i32, i32) {
    %c0_i32 = arith.constant 0 : i32
    %c0_i32_0 = arith.constant 0 : i32
    %c0_i32_1 = arith.constant 0 : i32
    return %c0_i32, %c0_i32_0 : i32, i32
  }
  func.func @transform_7(%arg0: i32) -> (i32, i32) {
    %c0_i32 = arith.constant 0 : i32
    %c0_i32_0 = arith.constant 0 : i32
    %c0_i32_1 = arith.constant 0 : i32
    return %c0_i32, %c0_i32_0 : i32, i32
  }
  func.func @transform_8(%arg0: i32) -> (i32, i32) {
    %c0_i32 = arith.constant 0 : i32
    %c0_i32_0 = arith.constant 0 : i32
    %c0_i32_1 = arith.constant 0 : i32
    return %c0_i32, %c0_i32_0 : i32, i32
  }
  func.func @transform_9(%arg0: i32) -> (i32, i32) {
    %c0_i32 = arith.constant 0 : i32
    %c0_i32_0 = arith.constant 0 : i32
    %c0_i32_1 = arith.constant 0 : i32
    return %c0_i32, %c0_i32_0 : i32, i32
  }
  func.func @transform_10(%arg0: i32) -> (i32, i32) {
    %c0_i32 = arith.constant 0 : i32
    %c0_i32_0 = arith.constant 0 : i32
    %c0_i32_1 = arith.constant 0 : i32
    return %c0_i32, %c0_i32_0 : i32, i32
  }
  func.func @transform_11(%arg0: i32) -> (i32, i32) {
    %c0_i32 = arith.constant 0 : i32
    %c0_i32_0 = arith.constant 0 : i32
    %c0_i32_1 = arith.constant 0 : i32
    return %c0_i32, %c0_i32_0 : i32, i32
  }
  func.func @transform_12(%arg0: i32) -> (i32, i32) {
    %c0_i32 = arith.constant 0 : i32
    %c0_i32_0 = arith.constant 0 : i32
    %c0_i32_1 = arith.constant 0 : i32
    return %c0_i32, %c0_i32_0 : i32, i32
  }
  func.func @transform_13(%arg0: i32) -> (i32, i32) {
    %c0_i32 = arith.constant 0 : i32
    %c0_i32_0 = arith.constant 0 : i32
    %c0_i32_1 = arith.constant 0 : i32
    return %c0_i32, %c0_i32_0 : i32, i32
  }
  func.func @transform_14(%arg0: i32) -> (i32, i32) {
    %c0_i32 = arith.constant 0 : i32
    %c0_i32_0 = arith.constant 0 : i32
    return %arg0, %c0_i32 : i32, i32
  }
}

</mosaic_0001>

<bundles_post_ra>
// kernel: decoder_forward.1
= control target key start
LH: loop header
LB: loop body
LE: loop exit
PB: predicated region body
PF: predicated region fallthrough
CT: control target
= control target key end

     0   :  { %19 = vsyncpa [#allocation5], 0  ;;  %s14676_s0 = inlined_call_operand.hbm [shape: f32[5], index: 0, kind: input, shape index: {}]   ;;  %s14677_s1 = inlined_call_operand.vmem [shape: bf16[8,32], index: 1, kind: input, shape index: {}]   ;;  %s14678_s2 = inlined_call_operand.hbm [shape: bf16[32,128], index: 2, kind: input, shape index: {}]   ;;  %s14679_s3 = inlined_call_operand.hbm [shape: f32[1,128], index: 3, kind: input, shape index: {}]   ;;  %s14680_s4 = inlined_call_operand.hbm [shape: bf16[128,256], index: 4, kind: input, shape index: {}]   ;;  %s14681_s5 = inlined_call_operand.hbm [shape: f32[1,256], index: 5, kind: input, shape index: {}]   ;;  %s14682_s6 = inlined_call_operand.hbm [shape: bf16[256,512], index: 6, kind: input, shape index: {}]   ;;  %s14683_s7 = inlined_call_operand.hbm [shape: f32[1,512], index: 7, kind: input, shape index: {}]   ;;  %s14684_s8 = inlined_call_operand.hbm [shape: bf16[512,1024], index: 8, kind: input, shape index: {}]   ;;  %s14685_s9 = inlined_call_operand.hbm [shape: f32[1,1024], index: 9, kind: input, shape index: {}]   ;;  %s14686_s10 = inlined_call_operand.hbm [shape: bf16[1024,2048], index: 10, kind: input, shape index: {}]   ;;  %s14687_s11 = inlined_call_operand.hbm [shape: f32[1,2048], index: 11, kind: input, shape index: {}]   ;;  %s14688_s12 = inlined_call_operand.hbm [shape: bf16[2048,128], index: 12, kind: input, shape index: {}]   ;;  %s14689_s13 = inlined_call_operand.hbm [shape: f32[1,128], index: 13, kind: input, shape index: {}]   ;;  %s14690_s14 = inlined_call_operand.hbm [shape: f32[8,128], index: 14, kind: output, shape index: {}]  }
   0x1   :  { %20 = vsyncpa [#allocation3], 0 }
   0x2   :  { %21 = vsyncpa [#allocation8], 0 }
   0x3   :  { %22 = vsyncpa [#allocation11], 0 }
   0x4   :  { %23 = vsyncpa [#allocation14], 0 }
   0x5   :  { %24 = vsyncpa [#allocation17], 0 }
   0x6   :  { %25 = vsyncpa [#allocation20], 0 }
   0x7   :  { %26 = vsyncpa [#allocation23], 0 }
   0x8   :  { %27 = vsyncpa [#allocation4], 0  ;;  %s14120_s29 = smov [#allocation7]   ;;  %s14121_s15 = smov [#allocation10]  }
   0x9   :  { %s56_s30 = sshll.u32 %s14120_s29, 4  ;;  %s78_s16 = sshll.u32 %s14121_s15, 4  ;;  %s57_s30 = int_to_ptr.vmem [resolvable:$true] %s56_s30  ;;  %s79_s16 = int_to_ptr.vmem [resolvable:$true] %s78_s16 }
   0xa   :  { %s13842_s17 = scalar_lea.vmem %s57_s30, 16  ;;  %s13846_s18 = scalar_lea.vmem %s57_s30, 32 }
   0xb   :  { %p13843_p0 = scmp.ne.s32.totalorder %s57_s30, %s13842_s17  ;;  %p13847_p1 = scmp.lt.s32.totalorder %s57_s30, %s57_s30 }
   0xc   :  { %p13848_p2 = scmp.lt.s32.totalorder %s13846_s18, %s13842_s17 }
   0xe   :  { %p13849_p3 = por %p13848_p2, %p13847_p1 }
  0x10   :  { %p13850_p4 = pnand %p13849_p3, %p13843_p0 }
  0x12   :  { %13853 = shalt.err (!%p13850_p4)
}
  0x13   :  { %59 = dma.hbm_to_vmem [thread:$0]  %s14679_s3, 16, %s57_s30, [#allocation8]  }
  0x14   :  { %s13862_s21 = scalar_lea.vmem %s79_s16, 32  ;;  %p13867_p6 = scmp.lt.s32.totalorder %s79_s16, %s79_s16 }
  0x15   :  { %p13863_p5 = scmp.ne.s32.totalorder %s79_s16, %s13862_s21  ;;  %p13868_p7 = scmp.lt.s32.totalorder %s13862_s21, %s13862_s21 }
  0x17   :  { %p13869_p8 = por %p13868_p7, %p13867_p6 }
  0x19   :  { %p13870_p9 = pnand %p13869_p8, %p13863_p5 }
  0x1b   :  { %13873 = shalt.err (!%p13870_p9)
}
  0x1c   :  { %81 = dma.hbm_to_vmem [thread:$0]  %s14681_s5, 32, %s79_s16, [#allocation11]  }
  0x1d   :  { %s14122_s24 = smov [#allocation13]   ;;  %s14123_s26 = smov [#allocation16]  }
  0x1e   :  { %s100_s25 = sshll.u32 %s14122_s24, 4  ;;  %s122_s27 = sshll.u32 %s14123_s26, 4  ;;  %s101_s25 = int_to_ptr.vmem [resolvable:$true] %s100_s25  ;;  %s123_s27 = int_to_ptr.vmem [resolvable:$true] %s122_s27 }
  0x1f   :  { %s13882_s28 = scalar_lea.vmem %s101_s25, 64  ;;  %p13887_p11 = scmp.lt.s32.totalorder %s101_s25, %s101_s25 }
  0x20   :  { %p13883_p10 = scmp.ne.s32.totalorder %s101_s25, %s13882_s28  ;;  %p13888_p12 = scmp.lt.s32.totalorder %s13882_s28, %s13882_s28 }
  0x22   :  { %p13889_p13 = por %p13888_p12, %p13887_p11 }
  0x24   :  { %p13890_p0 = pnand %p13889_p13, %p13883_p10 }
  0x26   :  { %13893 = shalt.err (!%p13890_p0)
}
  0x27   :  { %103 = dma.hbm_to_vmem [thread:$0]  %s14683_s7, 64, %s101_s25, [#allocation14]  }
  0x28   :  { %s13902_s30 = scalar_lea.vmem %s123_s27, 128  ;;  %p13907_p2 = scmp.lt.s32.totalorder %s123_s27, %s123_s27 }
  0x29   :  { %p13903_p1 = scmp.ne.s32.totalorder %s123_s27, %s13902_s30  ;;  %p13908_p3 = scmp.lt.s32.totalorder %s13902_s30, %s13902_s30 }
  0x2b   :  { %p13909_p4 = por %p13908_p3, %p13907_p2 }
  0x2d   :  { %p13910_p5 = pnand %p13909_p4, %p13903_p1 }
  0x2f   :  { %13913 = shalt.err (!%p13910_p5)
}
  0x30   :  { %125 = dma.hbm_to_vmem [thread:$0]  %s14685_s9, 128, %s123_s27, [#allocation17]  }
  0x31   :  { %s14124_s16 = smov [#allocation19]   ;;  %s14125_s18 = smov [#allocation6]  }
  0x32   :  { %s144_s17 = sshll.u32 %s14124_s16, 4  ;;  %s43_s19 = sshll.u32 %s14125_s18, 4  ;;  %s145_s17 = int_to_ptr.vmem [resolvable:$true] %s144_s17  ;;  %s44_s19 = int_to_ptr.vmem [resolvable:$true] %s43_s19 }
  0x33   :  { %s13922_s20 = scalar_lea.vmem %s145_s17, 256  ;;  %p13927_p7 = scmp.lt.s32.totalorder %s145_s17, %s145_s17 }
  0x34   :  { %p13923_p6 = scmp.ne.s32.totalorder %s145_s17, %s13922_s20  ;;  %p13928_p8 = scmp.lt.s32.totalorder %s13922_s20, %s13922_s20 }
  0x36   :  { %p13929_p9 = por %p13928_p8, %p13927_p7 }
  0x38   :  { %p13930_p10 = pnand %p13929_p9, %p13923_p6 }
  0x3a   :  { %13933 = shalt.err (!%p13930_p10)
}
  0x3b   :  { %147 = dma.hbm_to_vmem [thread:$0]  %s14687_s11, 256, %s145_s17, [#allocation20]  }
  0x3c   :  { %s14126_s22 = smov [#allocation2]   ;;  %s13950_s9 = scalar_lea.vmem %s44_s19, 256 }
  0x3d   :  { %35 = dma.hbm_to_smem %s14676_s0, 16, %s14126_s22, [#allocation5]  }
  0x3e   :  { %p13951_p11 = scmp.ne.s32.totalorder %s44_s19, %s13950_s9  ;;  %p13955_p12 = scmp.lt.s32.totalorder %s44_s19, %s44_s19 }
  0x3f   :  { %p13956_p13 = scmp.lt.s32.totalorder %s13950_s9, %s13950_s9 }
  0x41   :  { %p13957_p0 = por %p13956_p13, %p13955_p12 }
  0x43   :  { %p13958_p1 = pnand %p13957_p0, %p13951_p11 }
  0x45   :  { %13961 = shalt.err (!%p13958_p1)
}
  0x46   :  { %s14127_s25 = smov 64   ;;  %s14128_s26 = smov 4  }
  0x47   :  { %49 = dma.hbm_to_vmem [thread:$0]  %s14678_s2, 256, %s44_s19, [#allocation3], %s14127_s25, %s14127_s25, %s14128_s26  }
  0x48   :  { %s14129_s28 = smov [#allocation9]  }
  0x49   :  { %s65_s3 = sshll.u32 %s14129_s28, 4  ;;  %s66_s3 = int_to_ptr.vmem [resolvable:$true] %s65_s3 }
  0x4a   :  { %s13970_s0 = scalar_lea.vmem %s66_s3, 2048  ;;  %p13975_p3 = scmp.lt.s32.totalorder %s66_s3, %s66_s3 }
  0x4b   :  { %p13971_p2 = scmp.ne.s32.totalorder %s66_s3, %s13970_s0  ;;  %p13976_p4 = scmp.lt.s32.totalorder %s13970_s0, %s13970_s0 }
  0x4d   :  { %p13977_p5 = por %p13976_p4, %p13975_p3 }
  0x4f   :  { %p13978_p6 = pnand %p13977_p5, %p13971_p2 }
  0x51   :  { %13981 = shalt.err (!%p13978_p6)
}
  0x52   :  { %s14130_s29 = smov 128   ;;  %s14131_s30 = smov 8  }
  0x53   :  { %71 = dma.hbm_to_vmem [thread:$0]  %s14680_s4, 2048, %s66_s3, [#allocation8], %s14130_s29, %s14130_s29, %s14131_s30  }
  0x54   :  { %s14132_s16 = smov [#allocation12]  }
  0x55   :  { %s87_s17 = sshll.u32 %s14132_s16, 4  ;;  %s88_s17 = int_to_ptr.vmem [resolvable:$true] %s87_s17 }
  0x56   :  { %s13990_s2 = scalar_lea.vmem %s88_s17, 8192  ;;  %p13995_p8 = scmp.lt.s32.totalorder %s88_s17, %s88_s17 }
  0x57   :  { %p13991_p7 = scmp.ne.s32.totalorder %s88_s17, %s13990_s2  ;;  %p13996_p9 = scmp.lt.s32.totalorder %s13990_s2, %s13990_s2 }
  0x59   :  { %p13997_p10 = por %p13996_p9, %p13995_p8 }
  0x5b   :  { %p13998_p11 = pnand %p13997_p10, %p13991_p7 }
  0x5d   :  { %14001 = shalt.err (!%p13998_p11)
}
  0x5e   :  { %s14133_s18 = smov 256   ;;  %s14134_s19 = smov 16  }
  0x5f   :  { %93 = dma.hbm_to_vmem [thread:$0]  %s14682_s6, 8192, %s88_s17, [#allocation11], %s14133_s18, %s14133_s18, %s14134_s19  }
  0x60   :  { %s14135_s21 = smov [#allocation15]  }
  0x61   :  { %s109_s22 = sshll.u32 %s14135_s21, 4  ;;  %s110_s22 = int_to_ptr.vmem [resolvable:$true] %s109_s22 }
  0x62   :  { %s14010_s4 = scalar_lea.vmem %s110_s22, 32768  ;;  %p14015_p13 = scmp.lt.s32.totalorder %s110_s22, %s110_s22 }
  0x63   :  { %p14011_p12 = scmp.ne.s32.totalorder %s110_s22, %s14010_s4  ;;  %p14016_p0 = scmp.lt.s32.totalorder %s14010_s4, %s14010_s4 }
  0x65   :  { %p14017_p1 = por %p14016_p0, %p14015_p13 }
  0x67   :  { %p14018_p2 = pnand %p14017_p1, %p14011_p12 }
  0x69   :  { %14021 = shalt.err (!%p14018_p2)
}
  0x6a   :  { %s14136_s23 = smov 512   ;;  %s14137_s24 = smov 32  }
  0x6b   :  { %115 = dma.hbm_to_vmem [thread:$0]  %s14684_s8, 32768, %s110_s22, [#allocation14], %s14136_s23, %s14136_s23, %s14137_s24  }
  0x6c   :  { %s14138_s11 = smov [#allocation18]   ;;  %s14139_s6 = smov [#allocation21]  }
  0x6d   :  { %s131_s28 = sshll.u32 %s14138_s11, 4  ;;  %s153_s3 = sshll.u32 %s14139_s6, 4  ;;  %s132_s28 = int_to_ptr.vmem [resolvable:$true] %s131_s28  ;;  %s154_s3 = int_to_ptr.vmem [resolvable:$true] %s153_s3 }
  0x6e   :  { %s14030_s0 = scalar_lea.vmem %s132_s28, 131072  ;;  %p14035_p4 = scmp.lt.s32.totalorder %s132_s28, %s132_s28 }
  0x6f   :  { %p14031_p3 = scmp.ne.s32.totalorder %s132_s28, %s14030_s0  ;;  %p14036_p5 = scmp.lt.s32.totalorder %s14030_s0, %s14030_s0 }
  0x71   :  { %p14037_p6 = por %p14036_p5, %p14035_p4 }
  0x73   :  { %p14038_p7 = pnand %p14037_p6, %p14031_p3 }
  0x75   :  { %14041 = shalt.err (!%p14038_p7)
}
  0x76   :  { %s14140_s29 = smov 1024   ;;  %s14050_s8 = scalar_lea.vmem %s154_s3, 16384 }
  0x77   :  { %137 = dma.hbm_to_vmem [thread:$0]  %s14686_s10, 131072, %s132_s28, [#allocation17], %s14140_s29, %s14140_s29, %s14127_s25  }
  0x78   :  { %p14051_p8 = scmp.ne.s32.totalorder %s154_s3, %s14050_s8  ;;  %p14055_p9 = scmp.lt.s32.totalorder %s154_s3, %s154_s3 }
  0x79   :  { %p14056_p10 = scmp.lt.s32.totalorder %s14050_s8, %s14050_s8 }
  0x7b   :  { %p14057_p11 = por %p14056_p10, %p14055_p9 }
  0x7d   :  { %p14058_p12 = pnand %p14057_p11, %p14051_p8 }
  0x7f   :  { %14061 = shalt.err (!%p14058_p12)
}
  0x80   :  { %159 = dma.hbm_to_vmem [thread:$0]  %s14688_s12, 16384, %s154_s3, [#allocation20], %s14127_s25, %s14127_s25, %s14128_s26  }
  0x81   :  { %s14141_s17 = smov [#allocation22]  }
  0x82   :  { %s166_s2 = sshll.u32 %s14141_s17, 4  ;;  %s167_s2 = int_to_ptr.vmem [resolvable:$true] %s166_s2 }
  0x83   :  { %s14070_s18 = scalar_lea.vmem %s167_s2, 16  ;;  %s14074_s10 = scalar_lea.vmem %s167_s2, 32 }
  0x84   :  { %p14071_p13 = scmp.ne.s32.totalorder %s167_s2, %s14070_s18  ;;  %p14075_p0 = scmp.lt.s32.totalorder %s167_s2, %s167_s2 }
  0x85   :  { %p14076_p1 = scmp.lt.s32.totalorder %s14074_s10, %s14070_s18 }
  0x87   :  { %p14077_p2 = por %p14076_p1, %p14075_p0 }
  0x89   :  { %p14078_p3 = pnand %p14077_p2, %p14071_p13 }
  0x8b   :  { %14081 = shalt.err (!%p14078_p3)
}
  0x8c   :  { %169 = dma.hbm_to_vmem [thread:$0]  %s14689_s13, 16, %s167_s2, [#allocation23]  }
  0x8d   :  { %14102 = dma.done.wait [#allocation5], 16  }
  0x8e   :  { %14103 = vsyncadd [#allocation5], 4294967280 }
  0x8f   :  { %14104 = dma.done.wait [#allocation3], 256  }
  0x90   :  { %14105 = vsyncadd [#allocation3], 4294967040 }
  0x91   :  { %14106 = dma.done.wait [#allocation8], 2064  }
  0x92   :  { %14107 = vsyncadd [#allocation8], 4294965232 }
  0x93   :  { %14108 = dma.done.wait [#allocation11], 8224  }
  0x94   :  { %14109 = vsyncadd [#allocation11], 4294959072 }
  0x95   :  { %14110 = dma.done.wait [#allocation14], 32832  }
  0x96   :  { %14111 = vsyncadd [#allocation14], 4294934464 }
  0x97   :  { %14112 = dma.done.wait [#allocation17], 131200  }
  0x98   :  { %14113 = vsyncadd [#allocation17], 4294836096 }
  0x99   :  { %14114 = dma.done.wait [#allocation20], 16640  }
  0x9a   :  { %14115 = vsyncadd [#allocation20], 4294950656 }
  0x9b   :  { %14116 = dma.done.wait [#allocation23], 16  }
  0x9c   :  { %14117 = vsyncadd [#allocation23], 4294967280 }
  0x9d   :  { %209 = sfence }
  0x9e   :  { %v13580_v0 = vld [vmem:[#allocation6 + $0x8] sm:$0xff]   ;;  %v14142_v1 = vmov 0.0   ;;  %v13581_v2 = vld [vmem:[#allocation6] sm:$0xff]   ;;  %vm14143_vm0 = vmmov 0   ;;  %vm235_vm1 = vcmask 261120   ;;  %v14144_v20 = vmov 0  }
  0x9f   :  { %13546 = vmatprep.subr.bf16.mxu0 %v14142_v1  ;;  %13550 = vmatprep.mubr.msk.bf16.mxu0 %vm14143_vm0, %v14142_v1  ;;  %v13582_v3 = vld [vmem:[#allocation9 + $0x74] ss:$8 sps:$4 sm:$0xff]   ;;  %v13584_v4 = vld [vmem:[#allocation9 + $0x70] ss:$8 sps:$4 sm:$0xff]   ;;  %v13585_v5 = vld [vmem:[#allocation9 + $0x64] ss:$8 sps:$4 sm:$0xff]  }
  0xa0   :  { %13547 = vmatpush3.bf16.msra.mxu0 %v13580_v0  ;;  %v211_v6 = vld [vmem:[%s14677_s1] sm:$0xf]  ;;  %393 = vmatprep.subr.bf16.mxu1 %v13582_v3  ;;  %v13587_v7 = vld [vmem:[#allocation9 + $0x60] ss:$8 sps:$4 sm:$0xff]   ;;  %v13588_v8 = vld [vmem:[#allocation9 + $0x54] ss:$8 sps:$4 sm:$0xff]  }
  0xa1   :  { %13548 = vmatprep.subr.bf16.mxu0 %v14142_v1  ;;  %394 = vmatpush1.bf16.msra.mxu1 %v13584_v4  ;;  %v13590_v9 = vld [vmem:[#allocation9 + $0x50] ss:$8 sps:$4 sm:$0xff]   ;;  %v13591_v10 = vld [vmem:[#allocation9 + $0x44] ss:$8 sps:$4 sm:$0xff]   ;;  %v13593_v11 = vld [vmem:[#allocation9 + $0x40] ss:$8 sps:$4 sm:$0xff]  }
  0xa2   :  { %395 = vmatprep.subr.bf16.mxu1 %v13585_v5  ;;  %v13594_v12 = vld [vmem:[#allocation9 + $0x34] ss:$8 sps:$4 sm:$0xff]   ;;  %v13596_v13 = vld [vmem:[#allocation9 + $0x30] ss:$8 sps:$4 sm:$0xff]   ;;  %v13597_v14 = vld [vmem:[#allocation9 + $0x24] ss:$8 sps:$4 sm:$0xff]   ;;  %425 = vmatprep.mubr.bf16.mxu1 %v14144_v20 }
  0xa3   :  { %v13599_v15 = vld [vmem:[#allocation9 + $0x20] ss:$8 sps:$4 sm:$0xff]   ;;  %v13600_v16 = vld [vmem:[#allocation9 + $0x14] ss:$8 sps:$4 sm:$0xff]   ;;  %v13602_v17 = vld [vmem:[#allocation9 + $0x10] ss:$8 sps:$4 sm:$0xff]  }
  0xa4   :  { %13549 = vmatpush3.bf16.msra.mxu0 %v13581_v2  ;;  %v13603_v18 = vld [vmem:[#allocation9 + $0x4] ss:$8 sps:$4 sm:$0xff]   ;;  %v13605_v19 = vld [vmem:[#allocation9] ss:$8 sps:$4 sm:$0xff]   ;;  %s279_s1 = sld [smem:[#allocation2]]  ;;  %s14145_s22 = smov [#allocation24]  }
  0xa5   :  { %396 = vmatpush1.bf16.msra.mxu1 %v13587_v7  ;;  %v13606_v21 = vld [vmem:[#allocation12 + $0xe0] ss:$16 sps:$4 sm:$0xff]   ;;  %v13608_v22 = vld [vmem:[#allocation12 + $0xe4] ss:$16 sps:$4 sm:$0xff]   ;;  %v13611_v23 = vld [vmem:[#allocation12 + $0xec] ss:$16 sps:$4 sm:$0xff]  }
  0xa6   :  { %397 = vmatprep.subr.bf16.mxu1 %v13588_v8  ;;  %v13614_v24 = vld [vmem:[#allocation12 + $0xc4] ss:$16 sps:$4 sm:$0xff]   ;;  %850 = vmatprep.subr.bf16.mxu0 %v13608_v22  ;;  %v13612_v25 = vld [vmem:[#allocation12 + $0xc0] ss:$16 sps:$4 sm:$0xff]   ;;  %v11870_v50 = vld [vmem:[#allocation7] ss:$0 sm:$0xff] }
  0xa7   :  { %13551 = vmatmul.mubr.msk.bf16.vlgmr.msra.gmra.mxu0 %vm235_vm1, %v211_v6  ;;  %v13620_v26 = vld [vmem:[#allocation12 + $0xa4] ss:$16 sps:$4 sm:$0xff]   ;;  %v13618_v27 = vld [vmem:[#allocation12 + $0xa0] ss:$16 sps:$4 sm:$0xff]   ;;  %v13609_v58 = vld [vmem:[#allocation12 + $0xe8] ss:$16 sps:$4 sm:$0xff]  }
  0xa8   :  { %851 = vmatpush1.bf16.msra.mxu0 %v13606_v21  ;;  %v13626_v28 = vld [vmem:[#allocation12 + $0x84] ss:$16 sps:$4 sm:$0xff]   ;;  %v13624_v29 = vld [vmem:[#allocation12 + $0x80] ss:$16 sps:$4 sm:$0xff]   ;;  %v13617_v61 = vld [vmem:[#allocation12 + $0xcc] ss:$16 sps:$4 sm:$0xff]  }
  0xa9   :  { %398 = vmatpush1.bf16.msra.mxu1 %v13590_v9  ;;  %852 = vmatprep.subr.bf16.mxu0 %v13614_v24  ;;  %v13632_v30 = vld [vmem:[#allocation12 + $0x64] ss:$16 sps:$4 sm:$0xff]   ;;  %v13630_v31 = vld [vmem:[#allocation12 + $0x60] ss:$16 sps:$4 sm:$0xff]   ;;  %v13615_v62 = vld [vmem:[#allocation12 + $0xc8] ss:$16 sps:$4 sm:$0xff]  }
  0xaa   :  { %399 = vmatprep.subr.bf16.mxu1 %v13591_v10  ;;  %v13638_v32 = vld [vmem:[#allocation12 + $0x44] ss:$16 sps:$4 sm:$0xff]   ;;  %v13636_v33 = vld [vmem:[#allocation12 + $0x40] ss:$16 sps:$4 sm:$0xff]   ;;  %v281_v52 = vstv %s279_s1  ;;  %v13623_v63 = vld [vmem:[#allocation12 + $0xac] ss:$16 sps:$4 sm:$0xff]  }
  0xab   :  { %v13644_v34 = vld [vmem:[#allocation12 + $0x24] ss:$16 sps:$4 sm:$0xff]   ;;  %v13642_v35 = vld [vmem:[#allocation12 + $0x20] ss:$16 sps:$4 sm:$0xff]   ;;  %v13621_v0 = vld [vmem:[#allocation12 + $0xa8] ss:$16 sps:$4 sm:$0xff]  }
  0xac   :  { %853 = vmatpush1.bf16.msra.mxu0 %v13612_v25  ;;  %v13650_v36 = vld [vmem:[#allocation12 + $0x4] ss:$16 sps:$4 sm:$0xff]   ;;  %v13648_v37 = vld [vmem:[#allocation12] ss:$16 sps:$4 sm:$0xff]   ;;  %v13629_v1 = vld [vmem:[#allocation12 + $0x8c] ss:$16 sps:$4 sm:$0xff]  }
  0xad   :  { %400 = vmatpush1.bf16.msra.mxu1 %v13593_v11  ;;  %854 = vmatprep.subr.bf16.mxu0 %v13620_v26  ;;  %v13656_v38 = vld [vmem:[#allocation12 + $0x1e4] ss:$16 sps:$4 sm:$0xff]   ;;  %v13654_v39 = vld [vmem:[#allocation12 + $0x1e0] ss:$16 sps:$4 sm:$0xff]   ;;  %v13627_v2 = vld [vmem:[#allocation12 + $0x88] ss:$16 sps:$4 sm:$0xff]  }
  0xae   :  { %401 = vmatprep.subr.bf16.mxu1 %v13594_v12  ;;  %v13662_v40 = vld [vmem:[#allocation12 + $0x1c4] ss:$16 sps:$4 sm:$0xff]   ;;  %v13660_v41 = vld [vmem:[#allocation12 + $0x1c0] ss:$16 sps:$4 sm:$0xff]   ;;  %v13635_v3 = vld [vmem:[#allocation12 + $0x6c] ss:$16 sps:$4 sm:$0xff]  }
  0xaf   :  { %v13668_v42 = vld [vmem:[#allocation12 + $0x1a4] ss:$16 sps:$4 sm:$0xff]   ;;  %v13666_v43 = vld [vmem:[#allocation12 + $0x1a0] ss:$16 sps:$4 sm:$0xff]   ;;  %v13633_v4 = vld [vmem:[#allocation12 + $0x68] ss:$16 sps:$4 sm:$0xff]  }
  0xb0   :  { %855 = vmatpush1.bf16.msra.mxu0 %v13618_v27  ;;  %v13674_v44 = vld [vmem:[#allocation12 + $0x184] ss:$16 sps:$4 sm:$0xff]   ;;  %v13672_v45 = vld [vmem:[#allocation12 + $0x180] ss:$16 sps:$4 sm:$0xff]   ;;  %v13641_v5 = vld [vmem:[#allocation12 + $0x4c] ss:$16 sps:$4 sm:$0xff]  }
  0xb1   :  { %402 = vmatpush1.bf16.msra.mxu1 %v13596_v13  ;;  %856 = vmatprep.subr.bf16.mxu0 %v13626_v28  ;;  %v13680_v46 = vld [vmem:[#allocation12 + $0x164] ss:$16 sps:$4 sm:$0xff]   ;;  %v13678_v47 = vld [vmem:[#allocation12 + $0x160] ss:$16 sps:$4 sm:$0xff]   ;;  %v13639_v6 = vld [vmem:[#allocation12 + $0x48] ss:$16 sps:$4 sm:$0xff]  }
  0xb2   :  { %403 = vmatprep.subr.bf16.mxu1 %v13597_v14  ;;  %v13686_v48 = vld [vmem:[#allocation12 + $0x144] ss:$16 sps:$4 sm:$0xff]   ;;  %v13684_v49 = vld [vmem:[#allocation12 + $0x140] ss:$16 sps:$4 sm:$0xff]   ;;  %v13647_v7 = vld [vmem:[#allocation12 + $0x2c] ss:$16 sps:$4 sm:$0xff]  }
  0xb3   :  { %v13645_v8 = vld [vmem:[#allocation12 + $0x28] ss:$16 sps:$4 sm:$0xff]   ;;  %v13653_v9 = vld [vmem:[#allocation12 + $0xc] ss:$16 sps:$4 sm:$0xff]   ;;  %v13690_v25 = vld [vmem:[#allocation12 + $0x120] ss:$16 sps:$4 sm:$0xff]  }
  0xb4   :  { %857 = vmatpush1.bf16.msra.mxu0 %v13624_v29  ;;  %v13651_v10 = vld [vmem:[#allocation12 + $0x8] ss:$16 sps:$4 sm:$0xff]   ;;  %v13659_v11 = vld [vmem:[#allocation12 + $0x1ec] ss:$16 sps:$4 sm:$0xff]   ;;  %v13698_v27 = vld [vmem:[#allocation12 + $0x104] ss:$16 sps:$4 sm:$0xff]  }
  0xb5   :  { %404 = vmatpush1.bf16.msra.mxu1 %v13599_v15  ;;  %858 = vmatprep.subr.bf16.mxu0 %v13632_v30  ;;  %v13657_v12 = vld [vmem:[#allocation12 + $0x1e8] ss:$16 sps:$4 sm:$0xff]   ;;  %v13665_v13 = vld [vmem:[#allocation12 + $0x1cc] ss:$16 sps:$4 sm:$0xff]   ;;  %v13696_v29 = vld [vmem:[#allocation12 + $0x100] ss:$16 sps:$4 sm:$0xff]  }
  0xb6   :  { %405 = vmatprep.subr.bf16.mxu1 %v13600_v16  ;;  %v13663_v14 = vld [vmem:[#allocation12 + $0x1c8] ss:$16 sps:$4 sm:$0xff]   ;;  %v13671_v15 = vld [vmem:[#allocation12 + $0x1ac] ss:$16 sps:$4 sm:$0xff]   ;;  %s11890_s25 = sld [smem:[#allocation2 + $0x1]]  ;;  %s11854_s4 = sshll.u32 %s14145_s22, 4  ;;  %s11855_s4 = int_to_ptr.vmem [resolvable:$true] %s11854_s4 }
  0xb7   :  { %v13669_v16 = vld [vmem:[#allocation12 + $0x1a8] ss:$16 sps:$4 sm:$0xff]   ;;  %v13689_v21 = vld [vmem:[#allocation12 + $0x14c] ss:$16 sps:$4 sm:$0xff]   ;;  %s11955_s26 = sld [smem:[#allocation2 + $0x2]]  ;;  %s14082_s23 = scalar_lea.vmem %s11855_s4, 128 }
  0xb8   :  { %859 = vmatpush1.bf16.msra.mxu0 %v13630_v31  ;;  %v13681_v20 = vld [vmem:[#allocation12 + $0x168] ss:$16 sps:$4 sm:$0xff]   ;;  %v13695_v24 = vld [vmem:[#allocation12 + $0x12c] ss:$16 sps:$4 sm:$0xff]   ;;  %s14314_s7 = sld [smem:[#allocation2 + $0x3]]  ;;  %p14083_p4 = scmp.ne.s32.totalorder %s11855_s4, %s14082_s23 }
  0xb9   :  { %406 = vmatpush1.bf16.msra.mxu1 %v13602_v17  ;;  %860 = vmatprep.subr.bf16.mxu0 %v13638_v32  ;;  %v13677_v17 = vld [vmem:[#allocation12 + $0x18c] ss:$16 sps:$4 sm:$0xff]   ;;  %v13687_v22 = vld [vmem:[#allocation12 + $0x148] ss:$16 sps:$4 sm:$0xff]   ;;  %s13237_s21 = sld [smem:[#allocation2 + $0x4]]  ;;  %p14087_p5 = scmp.lt.s32.totalorder %s11855_s4, %s11855_s4 }
  0xba   :  { %407 = vmatprep.subr.bf16.mxu1 %v13603_v18  ;;  %v13675_v18 = vld [vmem:[#allocation12 + $0x188] ss:$16 sps:$4 sm:$0xff]   ;;  %v13701_v28 = vld [vmem:[#allocation12 + $0x10c] ss:$16 sps:$4 sm:$0xff]   ;;  %p14088_p6 = scmp.lt.s32.totalorder %s14082_s23, %s14082_s23 }
  0xbb   :  { %v13693_v26 = vld [vmem:[#allocation12 + $0x128] ss:$16 sps:$4 sm:$0xff]  }
  0xbc   :  { %861 = vmatpush1.bf16.msra.mxu0 %v13636_v33  ;;  %v13699_v30 = vld [vmem:[#allocation12 + $0x108] ss:$16 sps:$4 sm:$0xff]   ;;  %p14089_p7 = por %p14088_p6, %p14087_p5 }
  0xbd   :  { %408 = vmatpush1.bf16.msra.mxu1 %v13605_v19  ;;  %862 = vmatprep.subr.bf16.mxu0 %v13644_v34  ;;  %v13683_v19 = vld [vmem:[#allocation12 + $0x16c] ss:$16 sps:$4 sm:$0xff]   ;;  %v1006_v31 = vld [vmem:[#allocation15 + $0x1c0] sm:$0xff] }
  0xbe   :  { %891 = vmatprep.subr.bf16.mxu1 %v13611_v23  ;;  %v13692_v23 = vld [vmem:[#allocation12 + $0x124] ss:$16 sps:$4 sm:$0xff]   ;;  %p14090_p8 = pnand %p14089_p7, %p14083_p4 }
  0xbf   :  { %v1010_v32 = vld [vmem:[#allocation15 + $0x1e0] sm:$0xff] }
  0xc0   :  { %863 = vmatpush1.bf16.msra.mxu0 %v13642_v35  ;;  %v1134_v33 = vld [vmem:[#allocation15 + $0x5c0] sm:$0xff]  ;;  %v12012_v34 = vcombine.low %v1006_v31, %v1010_v32  ;;  %v12013_v35 = vcombine.high %v1006_v31, %v1010_v32 }
  0xc1   :  { %864 = vmatprep.subr.bf16.mxu0 %v13650_v36  ;;  %v1138_v36 = vld [vmem:[#allocation15 + $0x5e0] sm:$0xff] }
  0xc4   :  { %865 = vmatpush1.bf16.msra.mxu0 %v13648_v37  ;;  %v12140_v37 = vcombine.low %v1134_v33, %v1138_v36 }
  0xc5   :  { %866 = vmatprep.subr.bf16.mxu0 %v13656_v38  ;;  %v12141_v38 = vcombine.high %v1134_v33, %v1138_v36  ;;  %v958_v33 = vld [vmem:[#allocation15 + $0x40] sm:$0xff] }
  0xc6   :  { %v1090_v36 = vld [vmem:[#allocation15 + $0x460] sm:$0xff] }
  0xc8   :  { %867 = vmatpush2.bf16.msra.mxu0 %v13654_v39  ;;  %v303_v39 = vlaneseq }
  0xc9   :  { %868 = vmatprep.subr.bf16.mxu0 %v13662_v40 }
  0xca   :  { %v14270_v40 = vshrl.u32 %v303_v39, 7 }
  0xcc   :  { %869 = vmatpush2.bf16.msra.mxu0 %v13660_v41  ;;  %v14273_v41 = vsub.s32 0, %v14270_v40 }
  0xcd   :  { %870 = vmatprep.subr.bf16.mxu0 %v13668_v42  ;;  %v301_v42 = vld [vmem:[#allocation10] sm:$0x3] }
  0xd0   :  { %871 = vmatpush2.bf16.msra.mxu0 %v13666_v43  ;;  %v14276_v43 = vsub.s32 1, %v14270_v40 }
  0xd1   :  { %872 = vmatprep.subr.bf16.mxu0 %v13674_v44  ;;  %v306_v44 = vrot.slane %v301_v42, %v14273_v41 }
  0xd4   :  { %873 = vmatpush2.bf16.msra.mxu0 %v13672_v45  ;;  %v310_v45 = vrot.slane %v301_v42, %v14276_v43 }
  0xd5   :  { %874 = vmatprep.subr.bf16.mxu0 %v13680_v46 }
  0xd8   :  { %875 = vmatpush2.bf16.msra.mxu0 %v13678_v47  ;;  %v437_v47 = vstv %s11890_s25 }
  0xd9   :  { %876 = vmatprep.subr.bf16.mxu0 %v13686_v48 }
  0xdc   :  { %877 = vmatpush2.bf16.msra.mxu0 %v13684_v49 }
  0xdd   :  { %878 = vmatprep.subr.bf16.mxu0 %v13692_v23 }
  0xe0   :  { %879 = vmatpush2.bf16.msra.mxu0 %v13690_v25  ;;  %v966_v25 = vld [vmem:[#allocation15 + $0x80] sm:$0xff] }
  0xe1   :  { %880 = vmatprep.subr.bf16.mxu0 %v13698_v27  ;;  %v1094_v27 = vld [vmem:[#allocation15 + $0x480] sm:$0xff] }
  0xe4   :  { %881 = vmatpush2.bf16.msra.mxu0 %v13696_v29 }
  0xe5   :  { %2528 = vmatprep.subr.bf16.mxu0 %v12013_v35  ;;  %v1086_v35 = vld [vmem:[#allocation15 + $0x440] sm:$0xff] }
  0xe6   :  { %v12093_v42 = vcombine.high %v1086_v35, %v1090_v36 }
 0x167   :  { %v273_v51 = vpop.f32.mrf.mxu0 }
 0x168   :  { %v274_v53 = vadd.f32 %v11870_v50, %v273_v51 }
 0x169   :  { %v13552_v54 = vpop.f32.mrf.mxu0 }
 0x16a   :  { %vm280_vm2 = vcmp.gt.f32.partialorder %v274_v53, 0.0  ;;  %v282_v55 = vmul.f32 %v281_v52, %v274_v53  ;;  %v998_v54 = vld [vmem:[#allocation15 + $0x180] sm:$0xff] }
 0x16b   :  { %v276_v56 = vpop.f32.mrf.mxu0 }
 0x16c   :  { %v283_v57 = vsel %vm280_vm2, %v274_v53, %v282_v55 }
 0x16d   :  { %v13553_v59 = vpop.f32.mrf.mxu0  ;;  %v284_v60 = vpack.c.bf16 %v283_v57, %v283_v57  ;;  %v1002_v57 = vld [vmem:[#allocation15 + $0x1a0] sm:$0xff] }
 0x16e   :  { %v1130_v59 = vld [vmem:[#allocation15 + $0x5a0] sm:$0xff] }
 0x16f   :  { %426 = vmatmul.mubr.bf16.vlgmr.msra.gmra.mxu1 %v284_v60 }
 0x170   :  { %892 = vmatpush1.bf16.msra.mxu1 %v13609_v58  ;;  %v1126_v58 = vld [vmem:[#allocation15 + $0x580] sm:$0xff] }
 0x171   :  { %893 = vmatprep.subr.bf16.mxu1 %v13617_v61 }
 0x174   :  { %894 = vmatpush1.bf16.msra.mxu1 %v13615_v62 }
 0x175   :  { %895 = vmatprep.subr.bf16.mxu1 %v13623_v63  ;;  %v12005_v63 = vcombine.high %v998_v54, %v1002_v57 }
 0x178   :  { %896 = vmatpush1.bf16.msra.mxu1 %v13621_v0  ;;  %v12133_v0 = vcombine.high %v1126_v58, %v1130_v59 }
 0x179   :  { %897 = vmatprep.subr.bf16.mxu1 %v13629_v1  ;;  %v990_v1 = vld [vmem:[#allocation15 + $0x140] sm:$0xff] }
 0x17c   :  { %898 = vmatpush1.bf16.msra.mxu1 %v13627_v2  ;;  %v994_v2 = vld [vmem:[#allocation15 + $0x160] sm:$0xff] }
 0x17d   :  { %899 = vmatprep.subr.bf16.mxu1 %v13635_v3  ;;  %v1118_v3 = vld [vmem:[#allocation15 + $0x540] sm:$0xff] }
 0x180   :  { %900 = vmatpush1.bf16.msra.mxu1 %v13633_v4  ;;  %v1122_v4 = vld [vmem:[#allocation15 + $0x560] sm:$0xff] }
 0x181   :  { %901 = vmatprep.subr.bf16.mxu1 %v13641_v5  ;;  %v12004_v5 = vcombine.low %v998_v54, %v1002_v57  ;;  %v1198_v54 = vld [vmem:[#allocation15 + $0x7c0] sm:$0xff] }
 0x184   :  { %902 = vmatpush1.bf16.msra.mxu1 %v13639_v6  ;;  %v12132_v6 = vcombine.low %v1126_v58, %v1130_v59 }
 0x185   :  { %903 = vmatprep.subr.bf16.mxu1 %v13647_v7  ;;  %v11997_v7 = vcombine.high %v990_v1, %v994_v2 }
 0x188   :  { %904 = vmatpush1.bf16.msra.mxu1 %v13645_v8  ;;  %v12125_v8 = vcombine.high %v1118_v3, %v1122_v4 }
 0x189   :  { %905 = vmatprep.subr.bf16.mxu1 %v13653_v9  ;;  %v982_v9 = vld [vmem:[#allocation15 + $0x100] sm:$0xff] }
 0x18c   :  { %906 = vmatpush1.bf16.msra.mxu1 %v13651_v10  ;;  %v986_v10 = vld [vmem:[#allocation15 + $0x120] sm:$0xff] }
 0x18d   :  { %907 = vmatprep.subr.bf16.mxu1 %v13659_v11  ;;  %v1110_v11 = vld [vmem:[#allocation15 + $0x500] sm:$0xff] }
 0x190   :  { %908 = vmatpush2.bf16.msra.mxu1 %v13657_v12  ;;  %v1114_v12 = vld [vmem:[#allocation15 + $0x520] sm:$0xff] }
 0x191   :  { %909 = vmatprep.subr.bf16.mxu1 %v13665_v13  ;;  %v11996_v13 = vcombine.low %v990_v1, %v994_v2 }
 0x194   :  { %910 = vmatpush2.bf16.msra.mxu1 %v13663_v14  ;;  %v12124_v14 = vcombine.low %v1118_v3, %v1122_v4  ;;  %v1054_v4 = vld [vmem:[#allocation15 + $0x340] sm:$0xff] }
 0x195   :  { %911 = vmatprep.subr.bf16.mxu1 %v13671_v15  ;;  %v11989_v15 = vcombine.high %v982_v9, %v986_v10 }
 0x198   :  { %912 = vmatpush2.bf16.msra.mxu1 %v13669_v16  ;;  %v12117_v16 = vcombine.high %v1110_v11, %v1114_v12 }
 0x199   :  { %913 = vmatprep.subr.bf16.mxu1 %v13677_v17  ;;  %v974_v17 = vld [vmem:[#allocation15 + $0xc0] sm:$0xff] }
 0x19c   :  { %914 = vmatpush2.bf16.msra.mxu1 %v13675_v18  ;;  %v978_v18 = vld [vmem:[#allocation15 + $0xe0] sm:$0xff] }
 0x19d   :  { %915 = vmatprep.subr.bf16.mxu1 %v13683_v19  ;;  %v1102_v19 = vld [vmem:[#allocation15 + $0x4c0] sm:$0xff]  ;;  %v11981_v23 = vcombine.high %v974_v17, %v978_v18  ;;  %v11980_v29 = vcombine.low %v974_v17, %v978_v18 }
 0x1a0   :  { %916 = vmatpush2.bf16.msra.mxu1 %v13681_v20  ;;  %v1106_v20 = vld [vmem:[#allocation15 + $0x4e0] sm:$0xff] }
 0x1a1   :  { %917 = vmatprep.subr.bf16.mxu1 %v13689_v21  ;;  %v11988_v21 = vcombine.low %v982_v9, %v986_v10 }
 0x1a4   :  { %918 = vmatpush2.bf16.msra.mxu1 %v13687_v22  ;;  %v12116_v22 = vcombine.low %v1110_v11, %v1114_v12  ;;  %v1046_v12 = vld [vmem:[#allocation15 + $0x300] sm:$0xff] }
 0x1a5   :  { %919 = vmatprep.subr.bf16.mxu1 %v13695_v24  ;;  %v12109_v24 = vcombine.high %v1102_v19, %v1106_v20 }
 0x1a8   :  { %920 = vmatpush2.bf16.msra.mxu1 %v13693_v26  ;;  %v970_v26 = vld [vmem:[#allocation15 + $0xa0] sm:$0xff] }
 0x1a9   :  { %921 = vmatprep.subr.bf16.mxu1 %v13701_v28  ;;  %v1098_v28 = vld [vmem:[#allocation15 + $0x4a0] sm:$0xff]  ;;  %v11973_v31 = vcombine.high %v966_v25, %v970_v26 }
 0x1aa   :  { %v12101_v32 = vcombine.high %v1094_v27, %v1098_v28 }
 0x1ac   :  { %922 = vmatpush2.bf16.msra.mxu1 %v13699_v30  ;;  %v12108_v30 = vcombine.low %v1102_v19, %v1106_v20  ;;  %v1038_v20 = vld [vmem:[#allocation15 + $0x2c0] sm:$0xff] }
 0x1ad   :  { %2569 = vmatprep.subr.bf16.mxu1 %v12141_v38  ;;  %v12100_v38 = vcombine.low %v1094_v27, %v1098_v28  ;;  %v1030_v28 = vld [vmem:[#allocation15 + $0x280] sm:$0xff] }
 0x22f   :  { %v427_v46 = vpop.f32.mrf.mxu1 }
 0x230   :  { %v428_v48 = vadd.f32 %v427_v46, %v306_v44  ;;  %v950_v44 = vld [vmem:[#allocation15] sm:$0xff] }
 0x231   :  { %v429_v49 = vpop.f32.mrf.mxu1  ;;  %v1078_v46 = vld [vmem:[#allocation15 + $0x400] sm:$0xff] }
 0x232   :  { %vm435_vm3 = vcmp.gt.f32.partialorder %v428_v48, 0.0  ;;  %v438_v50 = vmul.f32 %v437_v47, %v428_v48  ;;  %v430_v51 = vadd.f32 %v429_v49, %v310_v45  ;;  %v954_v45 = vld [vmem:[#allocation15 + $0x20] sm:$0xff]  ;;  %v12092_v49 = vcombine.low %v1086_v35, %v1090_v36 }
 0x233   :  { %v431_v52 = vpop.f32.mrf.mxu1 }
 0x234   :  { %vm436_vm4 = vcmp.gt.f32.partialorder %v430_v51, 0.0  ;;  %v439_v53 = vmul.f32 %v437_v47, %v430_v51  ;;  %v440_v55 = vsel %vm435_vm3, %v428_v48, %v438_v50  ;;  %v1082_v47 = vld [vmem:[#allocation15 + $0x420] sm:$0xff]  ;;  %v11957_v50 = vcombine.high %v950_v44, %v954_v45 }
 0x235   :  { %v432_v56 = vpop.f32.mrf.mxu1  ;;  %v442_v62 = vpack.c.bf16 %v440_v55, %v440_v55  ;;  %v1070_v52 = vld [vmem:[#allocation15 + $0x3c0] sm:$0xff]  ;;  %v12084_v57 = vcombine.low %v1078_v46, %v1082_v47 }
 0x236   :  { %v441_v60 = vsel %vm436_vm4, %v430_v51, %v439_v53  ;;  %v12085_v51 = vcombine.high %v1078_v46, %v1082_v47  ;;  %v1074_v53 = vld [vmem:[#allocation15 + $0x3e0] sm:$0xff]  ;;  %v11956_v56 = vcombine.low %v950_v44, %v954_v45 }
 0x237   :  { %v443_v61 = vpack.c.bf16 %v441_v60, %v441_v60  ;;  %v1202_v55 = vld [vmem:[#allocation15 + $0x7e0] sm:$0xff]  ;;  %v12077_v58 = vcombine.high %v1070_v52, %v1074_v53 }
 0x238   :  { %v12205_v59 = vcombine.high %v1198_v54, %v1202_v55  ;;  %v1062_v60 = vld [vmem:[#allocation15 + $0x380] sm:$0xff]  ;;  %v12204_v1 = vcombine.low %v1198_v54, %v1202_v55 }
 0x239   :  { %882 = vmatprep.mubr.bf16.mxu0 %v443_v61  ;;  %923 = vmatprep.mubr.bf16.mxu1 %v443_v61  ;;  %v1066_v61 = vld [vmem:[#allocation15 + $0x3a0] sm:$0xff] }
 0x23a   :  { %883 = vmatmul.mubr.bf16.vlgmr.msra.gmra.mxu0 %v442_v62  ;;  %924 = vmatmul.mubr.bf16.vlgmr.msra.gmra.mxu1 %v442_v62  ;;  %v1190_v62 = vld [vmem:[#allocation15 + $0x780] sm:$0xff]  ;;  %v12069_v2 = vcombine.high %v1062_v60, %v1066_v61 }
 0x23b   :  { %2529 = vmatpush1.bf16.msra.mxu0 %v12012_v34  ;;  %2570 = vmatpush1.bf16.msra.mxu1 %v12140_v37  ;;  %v962_v34 = vld [vmem:[#allocation15 + $0x60] sm:$0xff]  ;;  %v11972_v37 = vcombine.low %v966_v25, %v970_v26 }
 0x23c   :  { %2530 = vmatprep.subr.bf16.mxu0 %v12005_v63  ;;  %2571 = vmatprep.subr.bf16.mxu1 %v12133_v0  ;;  %v11965_v39 = vcombine.high %v958_v33, %v962_v34  ;;  %v11964_v48 = vcombine.low %v958_v33, %v962_v34  ;;  %v1194_v63 = vld [vmem:[#allocation15 + $0x7a0] sm:$0xff]  ;;  %v12076_v0 = vcombine.low %v1070_v52, %v1074_v53 }
 0x23d   :  { %v12197_v3 = vcombine.high %v1190_v62, %v1194_v63  ;;  %v12196_v9 = vcombine.low %v1190_v62, %v1194_v63  ;;  %v1154_v45 = vld [vmem:[#allocation15 + $0x660] sm:$0xff] }
 0x23e   :  { %v1146_v53 = vld [vmem:[#allocation15 + $0x620] sm:$0xff] }
 0x23f   :  { %2531 = vmatpush1.bf16.msra.mxu0 %v12004_v5  ;;  %2572 = vmatpush1.bf16.msra.mxu1 %v12132_v6  ;;  %v1058_v5 = vld [vmem:[#allocation15 + $0x360] sm:$0xff] }
 0x240   :  { %2532 = vmatprep.subr.bf16.mxu0 %v11997_v7  ;;  %2573 = vmatprep.subr.bf16.mxu1 %v12125_v8  ;;  %v1182_v6 = vld [vmem:[#allocation15 + $0x740] sm:$0xff]  ;;  %v12068_v8 = vcombine.low %v1062_v60, %v1066_v61  ;;  %v12061_v10 = vcombine.high %v1054_v4, %v1058_v5  ;;  %v1139_v61 = vld [vmem:[#allocation15 + $0x5e8] sm:$0xff] }
 0x241   :  { %v1186_v7 = vld [vmem:[#allocation15 + $0x760] sm:$0xff] }
 0x242   :  { %v12189_v11 = vcombine.high %v1182_v6, %v1186_v7  ;;  %v12188_v17 = vcombine.low %v1182_v6, %v1186_v7  ;;  %v937_v7 = vstv %s11955_s26 }
 0x243   :  { %2533 = vmatpush1.bf16.msra.mxu0 %v11996_v13  ;;  %2574 = vmatpush1.bf16.msra.mxu1 %v12124_v14  ;;  %v1050_v13 = vld [vmem:[#allocation15 + $0x320] sm:$0xff] }
 0x244   :  { %2534 = vmatprep.subr.bf16.mxu0 %v11989_v15  ;;  %2575 = vmatprep.subr.bf16.mxu1 %v12117_v16  ;;  %v1174_v14 = vld [vmem:[#allocation15 + $0x700] sm:$0xff]  ;;  %v12060_v16 = vcombine.low %v1054_v4, %v1058_v5  ;;  %v12053_v18 = vcombine.high %v1046_v12, %v1050_v13 }
 0x245   :  { %v1178_v15 = vld [vmem:[#allocation15 + $0x720] sm:$0xff] }
 0x246   :  { %v12181_v19 = vcombine.high %v1174_v14, %v1178_v15  ;;  %v12180_v25 = vcombine.low %v1174_v14, %v1178_v15 }
 0x247   :  { %2535 = vmatpush1.bf16.msra.mxu0 %v11988_v21  ;;  %2576 = vmatpush1.bf16.msra.mxu1 %v12116_v22  ;;  %v1042_v21 = vld [vmem:[#allocation15 + $0x2e0] sm:$0xff] }
 0x248   :  { %2536 = vmatprep.subr.bf16.mxu0 %v11981_v23  ;;  %2577 = vmatprep.subr.bf16.mxu1 %v12109_v24  ;;  %v1166_v22 = vld [vmem:[#allocation15 + $0x6c0] sm:$0xff]  ;;  %v12052_v24 = vcombine.low %v1046_v12, %v1050_v13  ;;  %v12045_v26 = vcombine.high %v1038_v20, %v1042_v21 }
 0x249   :  { %v1170_v23 = vld [vmem:[#allocation15 + $0x6e0] sm:$0xff] }
 0x24a   :  { %v12173_v27 = vcombine.high %v1166_v22, %v1170_v23  ;;  %v12172_v33 = vcombine.low %v1166_v22, %v1170_v23 }
 0x24b   :  { %2537 = vmatpush1.bf16.msra.mxu0 %v11980_v29  ;;  %2578 = vmatpush1.bf16.msra.mxu1 %v12108_v30  ;;  %v1034_v29 = vld [vmem:[#allocation15 + $0x2a0] sm:$0xff] }
 0x24c   :  { %2538 = vmatprep.subr.bf16.mxu0 %v11973_v31  ;;  %2579 = vmatprep.subr.bf16.mxu1 %v12101_v32  ;;  %v1158_v30 = vld [vmem:[#allocation15 + $0x680] sm:$0xff]  ;;  %v12044_v32 = vcombine.low %v1038_v20, %v1042_v21  ;;  %v12037_v34 = vcombine.high %v1030_v28, %v1034_v29  ;;  %v12036_v36 = vcombine.low %v1030_v28, %v1034_v29  ;;  %v999_v28 = vld [vmem:[#allocation15 + $0x188] sm:$0xff] }
 0x24d   :  { %v1162_v31 = vld [vmem:[#allocation15 + $0x6a0] sm:$0xff]  ;;  %v1003_v29 = vld [vmem:[#allocation15 + $0x1a8] sm:$0xff] }
 0x24e   :  { %v12165_v35 = vcombine.high %v1158_v30, %v1162_v31 }
 0x24f   :  { %2539 = vmatpush1.bf16.msra.mxu0 %v11972_v37  ;;  %2580 = vmatpush1.bf16.msra.mxu1 %v12100_v38  ;;  %v12164_v37 = vcombine.low %v1158_v30, %v1162_v31  ;;  %v1022_v38 = vld [vmem:[#allocation15 + $0x240] sm:$0xff] }
 0x250   :  { %2540 = vmatprep.subr.bf16.mxu0 %v11965_v39  ;;  %2581 = vmatprep.subr.bf16.mxu1 %v12093_v42  ;;  %v1026_v39 = vld [vmem:[#allocation15 + $0x260] sm:$0xff] }
 0x251   :  { %v1150_v42 = vld [vmem:[#allocation15 + $0x640] sm:$0xff]  ;;  %v12029_v44 = vcombine.high %v1022_v38, %v1026_v39  ;;  %v12028_v46 = vcombine.low %v1022_v38, %v1026_v39  ;;  %v991_v38 = vld [vmem:[#allocation15 + $0x148] sm:$0xff] }
 0x252   :  { %v12156_v47 = vcombine.low %v1150_v42, %v1154_v45  ;;  %v995_v39 = vld [vmem:[#allocation15 + $0x168] sm:$0xff] }
 0x253   :  { %2541 = vmatpush1.bf16.msra.mxu0 %v11964_v48  ;;  %2582 = vmatpush1.bf16.msra.mxu1 %v12092_v49  ;;  %v12157_v48 = vcombine.high %v1150_v42, %v1154_v45  ;;  %v1014_v49 = vld [vmem:[#allocation15 + $0x200] sm:$0xff]  ;;  %v1123_v45 = vld [vmem:[#allocation15 + $0x568] sm:$0xff] }
 0x254   :  { %2542 = vmatprep.subr.bf16.mxu0 %v11957_v50  ;;  %2583 = vmatprep.subr.bf16.mxu1 %v12085_v51  ;;  %v1018_v50 = vld [vmem:[#allocation15 + $0x220] sm:$0xff] }
 0x255   :  { %v1142_v51 = vld [vmem:[#allocation15 + $0x600] sm:$0xff]  ;;  %v12021_v52 = vcombine.high %v1014_v49, %v1018_v50  ;;  %v12020_v54 = vcombine.low %v1014_v49, %v1018_v50  ;;  %v983_v50 = vld [vmem:[#allocation15 + $0x108] sm:$0xff] }
 0x256   :  { %v12148_v55 = vcombine.low %v1142_v51, %v1146_v53 }
 0x257   :  { %2543 = vmatpush1.bf16.msra.mxu0 %v11956_v56  ;;  %2584 = vmatpush1.bf16.msra.mxu1 %v12084_v57  ;;  %v12149_v56 = vcombine.high %v1142_v51, %v1146_v53  ;;  %v1007_v57 = vld [vmem:[#allocation15 + $0x1c8] sm:$0xff] }
 0x258   :  { %2544 = vmatprep.subr.bf16.mxu0 %v12077_v58  ;;  %2585 = vmatprep.subr.bf16.mxu1 %v12205_v59  ;;  %v1011_v58 = vld [vmem:[#allocation15 + $0x1e8] sm:$0xff] }
 0x259   :  { %v1135_v59 = vld [vmem:[#allocation15 + $0x5c8] sm:$0xff]  ;;  %v12015_v60 = vcombine.high %v1007_v57, %v1011_v58  ;;  %v12014_v62 = vcombine.low %v1007_v57, %v1011_v58 }
 0x25a   :  { %v12142_v63 = vcombine.low %v1135_v59, %v1139_v61  ;;  %v987_v51 = vld [vmem:[#allocation15 + $0x128] sm:$0xff] }
 0x25b   :  { %2545 = vmatpush2.bf16.msra.mxu0 %v12076_v0  ;;  %2586 = vmatpush2.bf16.msra.mxu1 %v12204_v1  ;;  %v12143_v0 = vcombine.high %v1135_v59, %v1139_v61  ;;  %v14281_v1 = vsub.s32 2, %v14270_v40  ;;  %v1115_v53 = vld [vmem:[#allocation15 + $0x528] sm:$0xff] }
 0x25c   :  { %2546 = vmatprep.subr.bf16.mxu0 %v12069_v2  ;;  %2587 = vmatprep.subr.bf16.mxu1 %v12197_v3  ;;  %v508_v2 = vld [vmem:[#allocation13] sm:$0xf]  ;;  %v14284_v3 = vsub.s32 3, %v14270_v40  ;;  %v975_v58 = vld [vmem:[#allocation15 + $0xc8] sm:$0xff] }
 0x25d   :  { %v513_v4 = vrot.slane %v508_v2, %v14273_v41  ;;  %v521_v5 = vrot.slane %v508_v2, %v14281_v1  ;;  %v979_v59 = vld [vmem:[#allocation15 + $0xe8] sm:$0xff] }
 0x25e   :  { %v1107_v61 = vld [vmem:[#allocation15 + $0x4e8] sm:$0xff] }
 0x25f   :  { %2547 = vmatpush2.bf16.msra.mxu0 %v12068_v8  ;;  %2588 = vmatpush2.bf16.msra.mxu1 %v12196_v9  ;;  %v517_v9 = vrot.slane %v508_v2, %v14276_v43 }
 0x260   :  { %2548 = vmatprep.subr.bf16.mxu0 %v12061_v10  ;;  %2589 = vmatprep.subr.bf16.mxu1 %v12189_v11  ;;  %v525_v10 = vrot.slane %v508_v2, %v14284_v3 }
 0x263   :  { %2549 = vmatpush2.bf16.msra.mxu0 %v12060_v16  ;;  %2590 = vmatpush2.bf16.msra.mxu1 %v12188_v17 }
 0x264   :  { %2550 = vmatprep.subr.bf16.mxu0 %v12053_v18  ;;  %2591 = vmatprep.subr.bf16.mxu1 %v12181_v19 }
 0x267   :  { %2551 = vmatpush2.bf16.msra.mxu0 %v12052_v24  ;;  %2592 = vmatpush2.bf16.msra.mxu1 %v12180_v25 }
 0x268   :  { %2552 = vmatprep.subr.bf16.mxu0 %v12045_v26  ;;  %2593 = vmatprep.subr.bf16.mxu1 %v12173_v27 }
 0x26b   :  { %2553 = vmatpush2.bf16.msra.mxu0 %v12044_v32  ;;  %2594 = vmatpush2.bf16.msra.mxu1 %v12172_v33  ;;  %v1127_v32 = vld [vmem:[#allocation15 + $0x588] sm:$0xff] }
 0x26c   :  { %2554 = vmatprep.subr.bf16.mxu0 %v12037_v34  ;;  %2595 = vmatprep.subr.bf16.mxu1 %v12165_v35  ;;  %v1131_v33 = vld [vmem:[#allocation15 + $0x5a8] sm:$0xff] }
 0x26d   :  { %v12135_v42 = vcombine.high %v1127_v32, %v1131_v33 }
 0x26f   :  { %2555 = vmatpush2.bf16.msra.mxu0 %v12036_v36  ;;  %2596 = vmatpush2.bf16.msra.mxu1 %v12164_v37  ;;  %v12007_v37 = vcombine.high %v999_v28, %v1003_v29 }
 0x270   :  { %2556 = vmatprep.subr.bf16.mxu0 %v12029_v44  ;;  %2597 = vmatprep.subr.bf16.mxu1 %v12157_v48  ;;  %v1119_v44 = vld [vmem:[#allocation15 + $0x548] sm:$0xff]  ;;  %v11999_v48 = vcombine.high %v991_v38, %v995_v39 }
 0x271   :  { %v12127_v49 = vcombine.high %v1119_v44, %v1123_v45 }
 0x273   :  { %2557 = vmatpush2.bf16.msra.mxu0 %v12028_v46  ;;  %2598 = vmatpush2.bf16.msra.mxu1 %v12156_v47  ;;  %v12006_v46 = vcombine.low %v999_v28, %v1003_v29  ;;  %v12134_v47 = vcombine.low %v1127_v32, %v1131_v33  ;;  %v1071_v28 = vld [vmem:[#allocation15 + $0x3c8] sm:$0xff] }
 0x274   :  { %2558 = vmatprep.subr.bf16.mxu0 %v12021_v52  ;;  %2599 = vmatprep.subr.bf16.mxu1 %v12149_v56  ;;  %v1111_v52 = vld [vmem:[#allocation15 + $0x508] sm:$0xff]  ;;  %v11991_v56 = vcombine.high %v983_v50, %v987_v51 }
 0x275   :  { %v12119_v57 = vcombine.high %v1111_v52, %v1115_v53  ;;  %v1075_v29 = vld [vmem:[#allocation15 + $0x3e8] sm:$0xff] }
 0x276   :  { %v1203_v32 = vld [vmem:[#allocation15 + $0x7e8] sm:$0xff] }
 0x277   :  { %2559 = vmatpush2.bf16.msra.mxu0 %v12020_v54  ;;  %2600 = vmatpush2.bf16.msra.mxu1 %v12148_v55  ;;  %v11998_v54 = vcombine.low %v991_v38, %v995_v39  ;;  %v12126_v55 = vcombine.low %v1119_v44, %v1123_v45  ;;  %v12079_v38 = vcombine.high %v1071_v28, %v1075_v29  ;;  %v1067_v44 = vld [vmem:[#allocation15 + $0x3a8] sm:$0xff] }
 0x278   :  { %2610 = vmatprep.subr.bf16.mxu0 %v12015_v60  ;;  %2651 = vmatprep.subr.bf16.mxu1 %v12143_v0  ;;  %v1103_v60 = vld [vmem:[#allocation15 + $0x4c8] sm:$0xff]  ;;  %v11983_v0 = vcombine.high %v975_v58, %v979_v59 }
 0x279   :  { %v12111_v2 = vcombine.high %v1103_v60, %v1107_v61  ;;  %v1191_v45 = vld [vmem:[#allocation15 + $0x788] sm:$0xff] }
 0x2fa   :  { %v884_v6 = vpop.f32.mrf.mxu0  ;;  %v925_v8 = vpop.f32.mrf.mxu1 }
 0x2fb   :  { %v885_v11 = vadd.f32 %v884_v6, %v513_v4  ;;  %v926_v12 = vadd.f32 %v925_v8, %v521_v5  ;;  %v967_v4 = vld [vmem:[#allocation15 + $0x88] sm:$0xff]  ;;  %v11982_v8 = vcombine.low %v975_v58, %v979_v59 }
 0x2fc   :  { %v886_v13 = vpop.f32.mrf.mxu0  ;;  %v927_v14 = vpop.f32.mrf.mxu1  ;;  %v971_v5 = vld [vmem:[#allocation15 + $0xa8] sm:$0xff] }
 0x2fd   :  { %v938_v15 = vmul.f32 %v937_v7, %v885_v11  ;;  %vm933_vm5 = vcmp.gt.f32.partialorder %v885_v11, 0.0  ;;  %v940_v16 = vmul.f32 %v937_v7, %v926_v12  ;;  %v887_v17 = vadd.f32 %v886_v13, %v517_v9  ;;  %v1095_v6 = vld [vmem:[#allocation15 + $0x488] sm:$0xff] }
 0x2fe   :  { %v928_v18 = vadd.f32 %v927_v14, %v525_v10  ;;  %v888_v19 = vpop.f32.mrf.mxu0  ;;  %v929_v20 = vpop.f32.mrf.mxu1  ;;  %vm935_vm6 = vcmp.gt.f32.partialorder %v926_v12, 0.0  ;;  %v12110_v9 = vcombine.low %v1103_v60, %v1107_v61  ;;  %v11975_v10 = vcombine.high %v967_v4, %v971_v5  ;;  %v963_v13 = vld [vmem:[#allocation15 + $0x68] sm:$0xff] }
 0x2ff   :  { %vm934_vm7 = vcmp.gt.f32.partialorder %v887_v17, 0.0  ;;  %v939_v21 = vmul.f32 %v937_v7, %v887_v17  ;;  %v942_v24 = vsel %vm933_vm5, %v885_v11, %v938_v15  ;;  %v944_v26 = vsel %vm935_vm6, %v926_v12, %v940_v16  ;;  %v959_v12 = vld [vmem:[#allocation15 + $0x48] sm:$0xff] }
 0x300   :  { %v889_v22 = vpop.f32.mrf.mxu0  ;;  %v930_v23 = vpop.f32.mrf.mxu1  ;;  %vm936_vm8 = vcmp.gt.f32.partialorder %v928_v18, 0.0  ;;  %v941_v25 = vmul.f32 %v937_v7, %v928_v18  ;;  %v14292_v34 = vpack.c.bf16 %v942_v24, %v942_v24  ;;  %v14296_v36 = vpack.c.bf16 %v944_v26, %v944_v26  ;;  %v1099_v7 = vld [vmem:[#allocation15 + $0x4a8] sm:$0xff] }
 0x301   :  { %v943_v27 = vsel %vm934_vm7, %v887_v17, %v939_v21  ;;  %v12103_v11 = vcombine.high %v1095_v6, %v1099_v7  ;;  %v1087_v14 = vld [vmem:[#allocation15 + $0x448] sm:$0xff]  ;;  %v11974_v16 = vcombine.low %v967_v4, %v971_v5  ;;  %v12102_v17 = vcombine.low %v1095_v6, %v1099_v7 }
 0x302   :  { %v14290_v30 = vpack.c.bf16 %v943_v27, %v943_v27  ;;  %v945_v31 = vsel %vm936_vm8, %v928_v18, %v941_v25  ;;  %v1091_v15 = vld [vmem:[#allocation15 + $0x468] sm:$0xff]  ;;  %v11967_v18 = vcombine.high %v959_v12, %v963_v13  ;;  %v11966_v24 = vcombine.low %v959_v12, %v963_v13 }
 0x303   :  { %v14294_v35 = vpack.c.bf16 %v945_v31, %v945_v31  ;;  %v12095_v19 = vcombine.high %v1087_v14, %v1091_v15  ;;  %v951_v20 = vld [vmem:[#allocation15 + $0x8] sm:$0xff]  ;;  %v12094_v25 = vcombine.low %v1087_v14, %v1091_v15 }
 0x304   :  { %2560 = vmatprep.mubr.bf16.mxu0 %v14290_v30  ;;  %v955_v21 = vld [vmem:[#allocation15 + $0x28] sm:$0xff] }
 0x305   :  { %2601 = vmatprep.mubr.bf16.mxu1 %v14294_v35  ;;  %2561 = vmatmul.mubr.bf16.vlgmr.msra.gmra.mxu0 %v14292_v34  ;;  %v1079_v22 = vld [vmem:[#allocation15 + $0x408] sm:$0xff]  ;;  %v11959_v26 = vcombine.high %v951_v20, %v955_v21  ;;  %v11958_v33 = vcombine.low %v951_v20, %v955_v21 }
 0x306   :  { %2602 = vmatmul.mubr.bf16.vlgmr.msra.gmra.mxu1 %v14296_v36  ;;  %2611 = vmatpush1.bf16.msra.mxu0 %v12014_v62  ;;  %v11990_v62 = vcombine.low %v983_v50, %v987_v51  ;;  %v1083_v23 = vld [vmem:[#allocation15 + $0x428] sm:$0xff] }
 0x307   :  { %2652 = vmatpush1.bf16.msra.mxu1 %v12142_v63  ;;  %2642 = vmatprep.mubr.bf16.mxu0 %v14290_v30  ;;  %v12118_v63 = vcombine.low %v1111_v52, %v1115_v53  ;;  %v12087_v27 = vcombine.high %v1079_v22, %v1083_v23  ;;  %v1199_v31 = vld [vmem:[#allocation15 + $0x7c8] sm:$0xff] }
 0x308   :  { %2683 = vmatprep.mubr.bf16.mxu1 %v14294_v35  ;;  %2612 = vmatprep.subr.bf16.mxu0 %v12007_v37  ;;  %v12086_v37 = vcombine.low %v1079_v22, %v1083_v23  ;;  %v12207_v39 = vcombine.high %v1199_v31, %v1203_v32  ;;  %v1055_v51 = vld [vmem:[#allocation15 + $0x348] sm:$0xff] }
 0x309   :  { %2653 = vmatprep.subr.bf16.mxu1 %v12135_v42  ;;  %v1063_v42 = vld [vmem:[#allocation15 + $0x388] sm:$0xff] }
 0x30a   :  { %2613 = vmatpush1.bf16.msra.mxu0 %v12006_v46  ;;  %v1195_v46 = vld [vmem:[#allocation15 + $0x7a8] sm:$0xff] }
 0x30b   :  { %2654 = vmatpush1.bf16.msra.mxu1 %v12134_v47  ;;  %2614 = vmatprep.subr.bf16.mxu0 %v11999_v48  ;;  %v12078_v47 = vcombine.low %v1071_v28, %v1075_v29  ;;  %v12206_v48 = vcombine.low %v1199_v31, %v1203_v32  ;;  %v12199_v50 = vcombine.high %v1191_v45, %v1195_v46  ;;  %v1059_v52 = vld [vmem:[#allocation15 + $0x368] sm:$0xff] }
 0x30c   :  { %2655 = vmatprep.subr.bf16.mxu1 %v12127_v49  ;;  %v12071_v49 = vcombine.high %v1063_v42, %v1067_v44  ;;  %v1183_v53 = vld [vmem:[#allocation15 + $0x748] sm:$0xff] }
 0x30d   :  { %v1047_v59 = vld [vmem:[#allocation15 + $0x308] sm:$0xff] }
 0x30e   :  { %2615 = vmatpush1.bf16.msra.mxu0 %v11998_v54  ;;  %v1187_v54 = vld [vmem:[#allocation15 + $0x768] sm:$0xff] }
 0x30f   :  { %2656 = vmatpush1.bf16.msra.mxu1 %v12126_v55  ;;  %2616 = vmatprep.subr.bf16.mxu0 %v11991_v56  ;;  %v12070_v55 = vcombine.low %v1063_v42, %v1067_v44  ;;  %v12198_v56 = vcombine.low %v1191_v45, %v1195_v46  ;;  %v12191_v58 = vcombine.high %v1183_v53, %v1187_v54  ;;  %v1051_v60 = vld [vmem:[#allocation15 + $0x328] sm:$0xff]  ;;  %v1008_v44 = vld [vmem:[#allocation15 + $0x1d0] sm:$0xff] }
 0x310   :  { %2657 = vmatprep.subr.bf16.mxu1 %v12119_v57  ;;  %v12063_v57 = vcombine.high %v1055_v51, %v1059_v52  ;;  %v1175_v61 = vld [vmem:[#allocation15 + $0x708] sm:$0xff]  ;;  %v1012_v45 = vld [vmem:[#allocation15 + $0x1f0] sm:$0xff] }
 0x311   :  { %v1039_v5 = vld [vmem:[#allocation15 + $0x2c8] sm:$0xff]  ;;  %v1136_v46 = vld [vmem:[#allocation15 + $0x5d0] sm:$0xff] }
 0x312   :  { %2617 = vmatpush1.bf16.msra.mxu0 %v11990_v62  ;;  %v1179_v62 = vld [vmem:[#allocation15 + $0x728] sm:$0xff] }
 0x313   :  { %2658 = vmatpush1.bf16.msra.mxu1 %v12118_v63  ;;  %2618 = vmatprep.subr.bf16.mxu0 %v11983_v0  ;;  %v12062_v63 = vcombine.low %v1055_v51, %v1059_v52  ;;  %v12190_v0 = vcombine.low %v1183_v53, %v1187_v54  ;;  %v12183_v4 = vcombine.high %v1175_v61, %v1179_v62  ;;  %v1043_v6 = vld [vmem:[#allocation15 + $0x2e8] sm:$0xff]  ;;  %v1000_v52 = vld [vmem:[#allocation15 + $0x190] sm:$0xff] }
 0x314   :  { %2659 = vmatprep.subr.bf16.mxu1 %v12111_v2  ;;  %v12055_v2 = vcombine.high %v1047_v59, %v1051_v60  ;;  %v1167_v7 = vld [vmem:[#allocation15 + $0x6c8] sm:$0xff]  ;;  %v1004_v53 = vld [vmem:[#allocation15 + $0x1b0] sm:$0xff]  ;;  %v12016_v54 = vcombine.low %v1008_v44, %v1012_v45 }
 0x315   :  { %v1031_v13 = vld [vmem:[#allocation15 + $0x288] sm:$0xff] }
 0x316   :  { %2619 = vmatpush1.bf16.msra.mxu0 %v11982_v8  ;;  %v1171_v8 = vld [vmem:[#allocation15 + $0x6e8] sm:$0xff] }
 0x317   :  { %2660 = vmatpush1.bf16.msra.mxu1 %v12110_v9  ;;  %2620 = vmatprep.subr.bf16.mxu0 %v11975_v10  ;;  %v12054_v9 = vcombine.low %v1047_v59, %v1051_v60  ;;  %v12182_v10 = vcombine.low %v1175_v61, %v1179_v62  ;;  %v12175_v12 = vcombine.high %v1167_v7, %v1171_v8  ;;  %v1035_v14 = vld [vmem:[#allocation15 + $0x2a8] sm:$0xff]  ;;  %v992_v59 = vld [vmem:[#allocation15 + $0x150] sm:$0xff] }
 0x318   :  { %2661 = vmatprep.subr.bf16.mxu1 %v12103_v11  ;;  %v12047_v11 = vcombine.high %v1039_v5, %v1043_v6  ;;  %v1159_v15 = vld [vmem:[#allocation15 + $0x688] sm:$0xff]  ;;  %v996_v60 = vld [vmem:[#allocation15 + $0x170] sm:$0xff] }
 0x319   :  { %v1023_v21 = vld [vmem:[#allocation15 + $0x248] sm:$0xff]  ;;  %v1120_v62 = vld [vmem:[#allocation15 + $0x550] sm:$0xff] }
 0x31a   :  { %2621 = vmatpush1.bf16.msra.mxu0 %v11974_v16  ;;  %v1163_v16 = vld [vmem:[#allocation15 + $0x6a8] sm:$0xff] }
 0x31b   :  { %2662 = vmatpush1.bf16.msra.mxu1 %v12102_v17  ;;  %2622 = vmatprep.subr.bf16.mxu0 %v11967_v18  ;;  %v12046_v17 = vcombine.low %v1039_v5, %v1043_v6  ;;  %v12174_v18 = vcombine.low %v1167_v7, %v1171_v8  ;;  %v12167_v20 = vcombine.high %v1159_v15, %v1163_v16  ;;  %v1027_v22 = vld [vmem:[#allocation15 + $0x268] sm:$0xff]  ;;  %v984_v6 = vld [vmem:[#allocation15 + $0x110] sm:$0xff] }
 0x31c   :  { %2663 = vmatprep.subr.bf16.mxu1 %v12095_v19  ;;  %v12039_v19 = vcombine.high %v1031_v13, %v1035_v14  ;;  %v1151_v23 = vld [vmem:[#allocation15 + $0x648] sm:$0xff]  ;;  %v988_v7 = vld [vmem:[#allocation15 + $0x130] sm:$0xff] }
 0x31d   :  { %v1015_v29 = vld [vmem:[#allocation15 + $0x208] sm:$0xff]  ;;  %v1112_v8 = vld [vmem:[#allocation15 + $0x510] sm:$0xff] }
 0x31e   :  { %2623 = vmatpush1.bf16.msra.mxu0 %v11966_v24  ;;  %v1155_v24 = vld [vmem:[#allocation15 + $0x668] sm:$0xff] }
 0x31f   :  { %2664 = vmatpush1.bf16.msra.mxu1 %v12094_v25  ;;  %2624 = vmatprep.subr.bf16.mxu0 %v11959_v26  ;;  %v12038_v25 = vcombine.low %v1031_v13, %v1035_v14  ;;  %v12166_v26 = vcombine.low %v1159_v15, %v1163_v16  ;;  %v12159_v28 = vcombine.high %v1151_v23, %v1155_v24  ;;  %v1019_v31 = vld [vmem:[#allocation15 + $0x228] sm:$0xff]  ;;  %v976_v14 = vld [vmem:[#allocation15 + $0xd0] sm:$0xff] }
 0x320   :  { %2665 = vmatprep.subr.bf16.mxu1 %v12087_v27  ;;  %v12031_v27 = vcombine.high %v1023_v21, %v1027_v22  ;;  %v1143_v32 = vld [vmem:[#allocation15 + $0x608] sm:$0xff]  ;;  %v980_v15 = vld [vmem:[#allocation15 + $0xf0] sm:$0xff] }
 0x321   :  { %v1104_v16 = vld [vmem:[#allocation15 + $0x4d0] sm:$0xff] }
 0x322   :  { %2625 = vmatpush1.bf16.msra.mxu0 %v11958_v33  ;;  %v1147_v33 = vld [vmem:[#allocation15 + $0x628] sm:$0xff] }
 0x323   :  { %2666 = vmatpush1.bf16.msra.mxu1 %v12086_v37  ;;  %2626 = vmatprep.subr.bf16.mxu0 %v12079_v38  ;;  %v12030_v37 = vcombine.low %v1023_v21, %v1027_v22  ;;  %v12158_v38 = vcombine.low %v1151_v23, %v1155_v24  ;;  %v12151_v42 = vcombine.high %v1143_v32, %v1147_v33  ;;  %v968_v22 = vld [vmem:[#allocation15 + $0x90] sm:$0xff] }
 0x324   :  { %2667 = vmatprep.subr.bf16.mxu1 %v12207_v39  ;;  %v12023_v39 = vcombine.high %v1015_v29, %v1019_v31  ;;  %v972_v23 = vld [vmem:[#allocation15 + $0xb0] sm:$0xff] }
 0x325   :  { %v1096_v24 = vld [vmem:[#allocation15 + $0x490] sm:$0xff] }
 0x326   :  { %2627 = vmatpush2.bf16.msra.mxu0 %v12078_v47  ;;  %v1140_v47 = vld [vmem:[#allocation15 + $0x5f0] sm:$0xff] }
 0x327   :  { %2668 = vmatpush2.bf16.msra.mxu1 %v12206_v48  ;;  %2628 = vmatprep.subr.bf16.mxu0 %v12071_v49  ;;  %v12022_v48 = vcombine.low %v1015_v29, %v1019_v31  ;;  %v12150_v49 = vcombine.low %v1143_v32, %v1147_v33  ;;  %v12145_v51 = vcombine.high %v1136_v46, %v1140_v47  ;;  %v960_v31 = vld [vmem:[#allocation15 + $0x50] sm:$0xff] }
 0x328   :  { %2669 = vmatprep.subr.bf16.mxu1 %v12199_v50  ;;  %v12017_v50 = vcombine.high %v1008_v44, %v1012_v45  ;;  %v964_v32 = vld [vmem:[#allocation15 + $0x70] sm:$0xff] }
 0x329   :  { %v1088_v33 = vld [vmem:[#allocation15 + $0x450] sm:$0xff] }
 0x32a   :  { %2629 = vmatpush2.bf16.msra.mxu0 %v12070_v55  ;;  %v1128_v55 = vld [vmem:[#allocation15 + $0x590] sm:$0xff] }
 0x32b   :  { %2670 = vmatpush2.bf16.msra.mxu1 %v12198_v56  ;;  %2630 = vmatprep.subr.bf16.mxu0 %v12063_v57  ;;  %v1132_v56 = vld [vmem:[#allocation15 + $0x5b0] sm:$0xff]  ;;  %v12144_v57 = vcombine.low %v1136_v46, %v1140_v47 }
 0x32c   :  { %2671 = vmatprep.subr.bf16.mxu1 %v12191_v58  ;;  %v12009_v58 = vcombine.high %v1000_v52, %v1004_v53  ;;  %v12137_v61 = vcombine.high %v1128_v55, %v1132_v56  ;;  %v952_v45 = vld [vmem:[#allocation15 + $0x10] sm:$0xff] }
 0x32d   :  { %v956_v46 = vld [vmem:[#allocation15 + $0x30] sm:$0xff] }
 0x32e   :  { %2631 = vmatpush2.bf16.msra.mxu0 %v12062_v63  ;;  %v1124_v63 = vld [vmem:[#allocation15 + $0x570] sm:$0xff] }
 0x32f   :  { %2672 = vmatpush2.bf16.msra.mxu1 %v12190_v0  ;;  %2632 = vmatprep.subr.bf16.mxu0 %v12055_v2  ;;  %v12008_v0 = vcombine.low %v1000_v52, %v1004_v53  ;;  %v12136_v2 = vcombine.low %v1128_v55, %v1132_v56  ;;  %v12129_v5 = vcombine.high %v1120_v62, %v1124_v63  ;;  %v1080_v47 = vld [vmem:[#allocation15 + $0x410] sm:$0xff] }
 0x330   :  { %2673 = vmatprep.subr.bf16.mxu1 %v12183_v4  ;;  %v12001_v4 = vcombine.high %v992_v59, %v996_v60  ;;  %v1072_v53 = vld [vmem:[#allocation15 + $0x3d0] sm:$0xff] }
 0x331   :  { %v1200_v55 = vld [vmem:[#allocation15 + $0x7d0] sm:$0xff] }
 0x332   :  { %2633 = vmatpush2.bf16.msra.mxu0 %v12054_v9  ;;  %v1116_v9 = vld [vmem:[#allocation15 + $0x530] sm:$0xff] }
 0x333   :  { %2674 = vmatpush2.bf16.msra.mxu1 %v12182_v10  ;;  %2634 = vmatprep.subr.bf16.mxu0 %v12047_v11  ;;  %v12000_v10 = vcombine.low %v992_v59, %v996_v60  ;;  %v12128_v11 = vcombine.low %v1120_v62, %v1124_v63  ;;  %v12121_v13 = vcombine.high %v1112_v8, %v1116_v9  ;;  %v1204_v56 = vld [vmem:[#allocation15 + $0x7f0] sm:$0xff] }
 0x334   :  { %2675 = vmatprep.subr.bf16.mxu1 %v12175_v12  ;;  %v11993_v12 = vcombine.high %v984_v6, %v988_v7  ;;  %v12209_v60 = vcombine.high %v1200_v55, %v1204_v56  ;;  %v1068_v62 = vld [vmem:[#allocation15 + $0x3b0] sm:$0xff] }
 0x335   :  { %v1192_v63 = vld [vmem:[#allocation15 + $0x790] sm:$0xff] }
 0x336   :  { %2635 = vmatpush2.bf16.msra.mxu0 %v12046_v17  ;;  %v1108_v17 = vld [vmem:[#allocation15 + $0x4f0] sm:$0xff] }
 0x337   :  { %2676 = vmatpush2.bf16.msra.mxu1 %v12174_v18  ;;  %2636 = vmatprep.subr.bf16.mxu0 %v12039_v19  ;;  %v11992_v18 = vcombine.low %v984_v6, %v988_v7  ;;  %v12120_v19 = vcombine.low %v1112_v8, %v1116_v9  ;;  %v12113_v21 = vcombine.high %v1104_v16, %v1108_v17  ;;  %v1056_v7 = vld [vmem:[#allocation15 + $0x350] sm:$0xff] }
 0x338   :  { %2677 = vmatprep.subr.bf16.mxu1 %v12167_v20  ;;  %v11985_v20 = vcombine.high %v976_v14, %v980_v15  ;;  %v1060_v8 = vld [vmem:[#allocation15 + $0x370] sm:$0xff] }
 0x339   :  { %v1184_v9 = vld [vmem:[#allocation15 + $0x750] sm:$0xff] }
 0x33a   :  { %2637 = vmatpush2.bf16.msra.mxu0 %v12038_v25  ;;  %v1100_v25 = vld [vmem:[#allocation15 + $0x4b0] sm:$0xff] }
 0x33b   :  { %2678 = vmatpush2.bf16.msra.mxu1 %v12166_v26  ;;  %2638 = vmatprep.subr.bf16.mxu0 %v12031_v27  ;;  %v11984_v26 = vcombine.low %v976_v14, %v980_v15  ;;  %v12112_v27 = vcombine.low %v1104_v16, %v1108_v17  ;;  %v12105_v29 = vcombine.high %v1096_v24, %v1100_v25  ;;  %v1048_v15 = vld [vmem:[#allocation15 + $0x310] sm:$0xff] }
 0x33c   :  { %2679 = vmatprep.subr.bf16.mxu1 %v12159_v28  ;;  %v11977_v28 = vcombine.high %v968_v22, %v972_v23  ;;  %v1052_v16 = vld [vmem:[#allocation15 + $0x330] sm:$0xff] }
 0x33d   :  { %v1176_v17 = vld [vmem:[#allocation15 + $0x710] sm:$0xff] }
 0x33e   :  { %2639 = vmatpush2.bf16.msra.mxu0 %v12030_v37  ;;  %v1092_v37 = vld [vmem:[#allocation15 + $0x470] sm:$0xff] }
 0x33f   :  { %2680 = vmatpush2.bf16.msra.mxu1 %v12158_v38  ;;  %2640 = vmatprep.subr.bf16.mxu0 %v12023_v39  ;;  %v11976_v38 = vcombine.low %v968_v22, %v972_v23  ;;  %v12104_v39 = vcombine.low %v1096_v24, %v1100_v25  ;;  %v12097_v44 = vcombine.high %v1088_v33, %v1092_v37  ;;  %v1040_v23 = vld [vmem:[#allocation15 + $0x2d0] sm:$0xff] }
 0x340   :  { %2681 = vmatprep.subr.bf16.mxu1 %v12151_v42  ;;  %v11969_v42 = vcombine.high %v960_v31, %v964_v32  ;;  %v1044_v24 = vld [vmem:[#allocation15 + $0x2f0] sm:$0xff] }
 0x341   :  { %v1168_v25 = vld [vmem:[#allocation15 + $0x6d0] sm:$0xff] }
 0x342   :  { %2641 = vmatpush2.bf16.msra.mxu0 %v12022_v48  ;;  %v1084_v48 = vld [vmem:[#allocation15 + $0x430] sm:$0xff] }
 0x343   :  { %2682 = vmatpush2.bf16.msra.mxu1 %v12150_v49  ;;  %2692 = vmatprep.subr.bf16.mxu0 %v12017_v50  ;;  %v11968_v49 = vcombine.low %v960_v31, %v964_v32  ;;  %v12096_v50 = vcombine.low %v1088_v33, %v1092_v37  ;;  %v12089_v52 = vcombine.high %v1080_v47, %v1084_v48  ;;  %v1032_v32 = vld [vmem:[#allocation15 + $0x290] sm:$0xff] }
 0x344   :  { %2733 = vmatprep.subr.bf16.mxu1 %v12145_v51  ;;  %v11961_v51 = vcombine.high %v952_v45, %v956_v46  ;;  %v1036_v33 = vld [vmem:[#allocation15 + $0x2b0] sm:$0xff] }
 0x345   :  { %2643 = vmatmul.mubr.bf16.vlgmr.msra.gmra.mxu0 %v14292_v34  ;;  %v1160_v37 = vld [vmem:[#allocation15 + $0x690] sm:$0xff] }
 0x346   :  { %2684 = vmatmul.mubr.bf16.vlgmr.msra.gmra.mxu1 %v14296_v36  ;;  %2693 = vmatpush1.bf16.msra.mxu0 %v12016_v54  ;;  %v1076_v54 = vld [vmem:[#allocation15 + $0x3f0] sm:$0xff] }
 0x347   :  { %2724 = vmatprep.mubr.bf16.mxu0 %v14290_v30  ;;  %2734 = vmatpush1.bf16.msra.mxu1 %v12144_v57  ;;  %v11960_v57 = vcombine.low %v952_v45, %v956_v46  ;;  %v12081_v59 = vcombine.high %v1072_v53, %v1076_v54  ;;  %v1024_v46 = vld [vmem:[#allocation15 + $0x250] sm:$0xff] }
 0x348   :  { %2765 = vmatprep.mubr.bf16.mxu1 %v14294_v35  ;;  %2694 = vmatprep.subr.bf16.mxu0 %v12009_v58  ;;  %v12088_v58 = vcombine.low %v1080_v47, %v1084_v48  ;;  %v1028_v47 = vld [vmem:[#allocation15 + $0x270] sm:$0xff] }
 0x349   :  { %2735 = vmatprep.subr.bf16.mxu1 %v12137_v61  ;;  %v1064_v61 = vld [vmem:[#allocation15 + $0x390] sm:$0xff] }
 0x34a   :  { %2695 = vmatpush1.bf16.msra.mxu0 %v12008_v0  ;;  %v1196_v0 = vld [vmem:[#allocation15 + $0x7b0] sm:$0xff] }
 0x34b   :  { %2736 = vmatpush1.bf16.msra.mxu1 %v12136_v2  ;;  %2696 = vmatprep.subr.bf16.mxu0 %v12001_v4  ;;  %v12080_v2 = vcombine.low %v1072_v53, %v1076_v54  ;;  %v12208_v4 = vcombine.low %v1200_v55, %v1204_v56  ;;  %v12201_v6 = vcombine.high %v1192_v63, %v1196_v0  ;;  %v1152_v48 = vld [vmem:[#allocation15 + $0x650] sm:$0xff] }
 0x34c   :  { %2737 = vmatprep.subr.bf16.mxu1 %v12129_v5  ;;  %v12073_v5 = vcombine.high %v1064_v61, %v1068_v62  ;;  %v1016_v54 = vld [vmem:[#allocation15 + $0x210] sm:$0xff] }
 0x34d   :  { %v1020_v55 = vld [vmem:[#allocation15 + $0x230] sm:$0xff] }
 0x34e   :  { %2697 = vmatpush1.bf16.msra.mxu0 %v12000_v10  ;;  %v1188_v10 = vld [vmem:[#allocation15 + $0x770] sm:$0xff] }
 0x34f   :  { %2738 = vmatpush1.bf16.msra.mxu1 %v12128_v11  ;;  %2698 = vmatprep.subr.bf16.mxu0 %v11993_v12  ;;  %v12072_v11 = vcombine.low %v1064_v61, %v1068_v62  ;;  %v12200_v12 = vcombine.low %v1192_v63, %v1196_v0  ;;  %v12193_v14 = vcombine.high %v1184_v9, %v1188_v10  ;;  %v1144_v56 = vld [vmem:[#allocation15 + $0x610] sm:$0xff]  ;;  %v1009_v62 = vld [vmem:[#allocation15 + $0x1d8] sm:$0xff] }
 0x350   :  { %2739 = vmatprep.subr.bf16.mxu1 %v12121_v13  ;;  %v12065_v13 = vcombine.high %v1056_v7, %v1060_v8  ;;  %v1013_v63 = vld [vmem:[#allocation15 + $0x1f8] sm:$0xff] }
 0x351   :  { %v1137_v0 = vld [vmem:[#allocation15 + $0x5d8] sm:$0xff] }
 0x352   :  { %2699 = vmatpush1.bf16.msra.mxu0 %v11992_v18  ;;  %v1180_v18 = vld [vmem:[#allocation15 + $0x730] sm:$0xff] }
 0x353   :  { %2740 = vmatpush1.bf16.msra.mxu1 %v12120_v19  ;;  %2700 = vmatprep.subr.bf16.mxu0 %v11985_v20  ;;  %v12064_v19 = vcombine.low %v1056_v7, %v1060_v8  ;;  %v12192_v20 = vcombine.low %v1184_v9, %v1188_v10  ;;  %v12185_v22 = vcombine.high %v1176_v17, %v1180_v18  ;;  %v1001_v8 = vld [vmem:[#allocation15 + $0x198] sm:$0xff] }
 0x354   :  { %2741 = vmatprep.subr.bf16.mxu1 %v12113_v21  ;;  %v12057_v21 = vcombine.high %v1048_v15, %v1052_v16  ;;  %v1005_v9 = vld [vmem:[#allocation15 + $0x1b8] sm:$0xff]  ;;  %v12018_v10 = vcombine.low %v1009_v62, %v1013_v63 }
 0x356   :  { %2701 = vmatpush1.bf16.msra.mxu0 %v11984_v26  ;;  %v1172_v26 = vld [vmem:[#allocation15 + $0x6f0] sm:$0xff] }
 0x357   :  { %2742 = vmatpush1.bf16.msra.mxu1 %v12112_v27  ;;  %2702 = vmatprep.subr.bf16.mxu0 %v11977_v28  ;;  %v12056_v27 = vcombine.low %v1048_v15, %v1052_v16  ;;  %v12184_v28 = vcombine.low %v1176_v17, %v1180_v18  ;;  %v12177_v31 = vcombine.high %v1168_v25, %v1172_v26  ;;  %v993_v15 = vld [vmem:[#allocation15 + $0x158] sm:$0xff] }
 0x358   :  { %2743 = vmatprep.subr.bf16.mxu1 %v12105_v29  ;;  %v12049_v29 = vcombine.high %v1040_v23, %v1044_v24  ;;  %v997_v16 = vld [vmem:[#allocation15 + $0x178] sm:$0xff] }
 0x359   :  { %v1121_v18 = vld [vmem:[#allocation15 + $0x558] sm:$0xff] }
 0x35a   :  { %2703 = vmatpush1.bf16.msra.mxu0 %v11976_v38  ;;  %v1164_v38 = vld [vmem:[#allocation15 + $0x6b0] sm:$0xff] }
 0x35b   :  { %2744 = vmatpush1.bf16.msra.mxu1 %v12104_v39  ;;  %2704 = vmatprep.subr.bf16.mxu0 %v11969_v42  ;;  %v12048_v39 = vcombine.low %v1040_v23, %v1044_v24  ;;  %v12176_v42 = vcombine.low %v1168_v25, %v1172_v26  ;;  %v12169_v45 = vcombine.high %v1160_v37, %v1164_v38  ;;  %v985_v24 = vld [vmem:[#allocation15 + $0x118] sm:$0xff] }
 0x35c   :  { %2745 = vmatprep.subr.bf16.mxu1 %v12097_v44  ;;  %v12041_v44 = vcombine.high %v1032_v32, %v1036_v33  ;;  %v989_v25 = vld [vmem:[#allocation15 + $0x138] sm:$0xff] }
 0x35d   :  { %v1113_v26 = vld [vmem:[#allocation15 + $0x518] sm:$0xff] }
 0x35e   :  { %2705 = vmatpush1.bf16.msra.mxu0 %v11968_v49  ;;  %v1156_v49 = vld [vmem:[#allocation15 + $0x670] sm:$0xff] }
 0x35f   :  { %2746 = vmatpush1.bf16.msra.mxu1 %v12096_v50  ;;  %2706 = vmatprep.subr.bf16.mxu0 %v11961_v51  ;;  %v12040_v50 = vcombine.low %v1032_v32, %v1036_v33  ;;  %v12168_v51 = vcombine.low %v1160_v37, %v1164_v38  ;;  %v12161_v53 = vcombine.high %v1152_v48, %v1156_v49  ;;  %v977_v32 = vld [vmem:[#allocation15 + $0xd8] sm:$0xff] }
 0x360   :  { %2747 = vmatprep.subr.bf16.mxu1 %v12089_v52  ;;  %v12033_v52 = vcombine.high %v1024_v46, %v1028_v47  ;;  %v981_v33 = vld [vmem:[#allocation15 + $0xf8] sm:$0xff] }
 0x361   :  { %v1105_v37 = vld [vmem:[#allocation15 + $0x4d8] sm:$0xff] }
 0x362   :  { %2707 = vmatpush1.bf16.msra.mxu0 %v11960_v57  ;;  %v1148_v57 = vld [vmem:[#allocation15 + $0x630] sm:$0xff]  ;;  %v1109_v38 = vld [vmem:[#allocation15 + $0x4f8] sm:$0xff] }
 0x363   :  { %2748 = vmatpush1.bf16.msra.mxu1 %v12088_v58  ;;  %2708 = vmatprep.subr.bf16.mxu0 %v12081_v59  ;;  %v12032_v58 = vcombine.low %v1024_v46, %v1028_v47  ;;  %v12160_v59 = vcombine.low %v1152_v48, %v1156_v49  ;;  %v12153_v61 = vcombine.high %v1144_v56, %v1148_v57  ;;  %v973_v46 = vld [vmem:[#allocation15 + $0xb8] sm:$0xff] }
 0x364   :  { %2749 = vmatprep.subr.bf16.mxu1 %v12209_v60  ;;  %v12025_v60 = vcombine.high %v1016_v54, %v1020_v55  ;;  %v1097_v47 = vld [vmem:[#allocation15 + $0x498] sm:$0xff]  ;;  %v11986_v49 = vcombine.low %v977_v32, %v981_v33 }
 0x365   :  { %v1101_v48 = vld [vmem:[#allocation15 + $0x4b8] sm:$0xff] }
 0x366   :  { %2709 = vmatpush2.bf16.msra.mxu0 %v12080_v2  ;;  %v1141_v2 = vld [vmem:[#allocation15 + $0x5f8] sm:$0xff] }
 0x367   :  { %2750 = vmatpush2.bf16.msra.mxu1 %v12208_v4  ;;  %2710 = vmatprep.subr.bf16.mxu0 %v12073_v5  ;;  %v12024_v4 = vcombine.low %v1016_v54, %v1020_v55  ;;  %v12152_v5 = vcombine.low %v1144_v56, %v1148_v57  ;;  %v12147_v7 = vcombine.high %v1137_v0, %v1141_v2  ;;  %v965_v54 = vld [vmem:[#allocation15 + $0x78] sm:$0xff] }
 0x368   :  { %2751 = vmatprep.subr.bf16.mxu1 %v12201_v6  ;;  %v12019_v6 = vcombine.high %v1009_v62, %v1013_v63  ;;  %v1089_v55 = vld [vmem:[#allocation15 + $0x458] sm:$0xff] }
 0x369   :  { %v1093_v56 = vld [vmem:[#allocation15 + $0x478] sm:$0xff] }
 0x36a   :  { %2711 = vmatpush2.bf16.msra.mxu0 %v12072_v11  ;;  %v1129_v11 = vld [vmem:[#allocation15 + $0x598] sm:$0xff] }
 0x36b   :  { %2752 = vmatpush2.bf16.msra.mxu1 %v12200_v12  ;;  %2712 = vmatprep.subr.bf16.mxu0 %v12065_v13  ;;  %v1133_v12 = vld [vmem:[#allocation15 + $0x5b8] sm:$0xff]  ;;  %v12146_v13 = vcombine.low %v1137_v0, %v1141_v2 }
 0x36c   :  { %2753 = vmatprep.subr.bf16.mxu1 %v12193_v14  ;;  %v12011_v14 = vcombine.high %v1001_v8, %v1005_v9  ;;  %v12139_v17 = vcombine.high %v1129_v11, %v1133_v12  ;;  %v957_v62 = vld [vmem:[#allocation15 + $0x38] sm:$0xff] }
 0x36d   :  { %v1081_v63 = vld [vmem:[#allocation15 + $0x418] sm:$0xff] }
 0x36e   :  { %2713 = vmatpush2.bf16.msra.mxu0 %v12064_v19  ;;  %v1125_v19 = vld [vmem:[#allocation15 + $0x578] sm:$0xff] }
 0x36f   :  { %2754 = vmatpush2.bf16.msra.mxu1 %v12192_v20  ;;  %2714 = vmatprep.subr.bf16.mxu0 %v12057_v21  ;;  %v12010_v20 = vcombine.low %v1001_v8, %v1005_v9  ;;  %v12138_v21 = vcombine.low %v1129_v11, %v1133_v12  ;;  %v12131_v23 = vcombine.high %v1121_v18, %v1125_v19  ;;  %v1085_v0 = vld [vmem:[#allocation15 + $0x438] sm:$0xff] }
 0x370   :  { %2755 = vmatprep.subr.bf16.mxu1 %v12185_v22  ;;  %v12003_v22 = vcombine.high %v993_v15, %v997_v16  ;;  %v1077_v8 = vld [vmem:[#allocation15 + $0x3f8] sm:$0xff]  ;;  %v12090_v12 = vcombine.low %v1081_v63, %v1085_v0 }
 0x371   :  { %v1201_v9 = vld [vmem:[#allocation15 + $0x7d8] sm:$0xff] }
 0x372   :  { %2715 = vmatpush2.bf16.msra.mxu0 %v12056_v27  ;;  %v1117_v27 = vld [vmem:[#allocation15 + $0x538] sm:$0xff] }
 0x373   :  { %2756 = vmatpush2.bf16.msra.mxu1 %v12184_v28  ;;  %2716 = vmatprep.subr.bf16.mxu0 %v12049_v29  ;;  %v12002_v28 = vcombine.low %v993_v15, %v997_v16  ;;  %v12130_v29 = vcombine.low %v1121_v18, %v1125_v19  ;;  %v1065_v15 = vld [vmem:[#allocation15 + $0x398] sm:$0xff] }
 0x374   :  { %2757 = vmatprep.subr.bf16.mxu1 %v12177_v31  ;;  %v11995_v31 = vcombine.high %v985_v24, %v989_v25  ;;  %v1069_v16 = vld [vmem:[#allocation15 + $0x3b8] sm:$0xff] }
 0x375   :  { %v1197_v18 = vld [vmem:[#allocation15 + $0x7b8] sm:$0xff] }
 0x376   :  { %2717 = vmatpush2.bf16.msra.mxu0 %v12048_v39  ;;  %v12122_v39 = vcombine.low %v1113_v26, %v1117_v27 }
 0x377   :  { %2758 = vmatpush2.bf16.msra.mxu1 %v12176_v42  ;;  %2718 = vmatprep.subr.bf16.mxu0 %v12041_v44  ;;  %v11987_v42 = vcombine.high %v977_v32, %v981_v33  ;;  %v12115_v44 = vcombine.high %v1105_v37, %v1109_v38  ;;  %v1053_v32 = vld [vmem:[#allocation15 + $0x338] sm:$0xff] }
 0x378   :  { %2759 = vmatprep.subr.bf16.mxu1 %v12169_v45  ;;  %v969_v45 = vld [vmem:[#allocation15 + $0x98] sm:$0xff] }
 0x379   :  { %v11978_v57 = vcombine.low %v969_v45, %v973_v46  ;;  %v1177_v33 = vld [vmem:[#allocation15 + $0x718] sm:$0xff] }
 0x37a   :  { %2719 = vmatpush2.bf16.msra.mxu0 %v12040_v50  ;;  %v12114_v50 = vcombine.low %v1105_v37, %v1109_v38  ;;  %v1181_v37 = vld [vmem:[#allocation15 + $0x738] sm:$0xff] }
 0x37b   :  { %2760 = vmatpush2.bf16.msra.mxu1 %v12168_v51  ;;  %2720 = vmatprep.subr.bf16.mxu0 %v12033_v52  ;;  %v11979_v51 = vcombine.high %v969_v45, %v973_v46  ;;  %v12107_v52 = vcombine.high %v1097_v47, %v1101_v48  ;;  %v1045_v45 = vld [vmem:[#allocation15 + $0x2f8] sm:$0xff] }
 0x37c   :  { %2761 = vmatprep.subr.bf16.mxu1 %v12161_v53  ;;  %v961_v53 = vld [vmem:[#allocation15 + $0x58] sm:$0xff] }
 0x37d   :  { %v11970_v2 = vcombine.low %v961_v53, %v965_v54  ;;  %v1169_v46 = vld [vmem:[#allocation15 + $0x6d8] sm:$0xff] }
 0x37e   :  { %2721 = vmatpush2.bf16.msra.mxu0 %v12032_v58  ;;  %v12106_v58 = vcombine.low %v1097_v47, %v1101_v48  ;;  %v1173_v47 = vld [vmem:[#allocation15 + $0x6f8] sm:$0xff] }
 0x37f   :  { %2762 = vmatpush2.bf16.msra.mxu1 %v12160_v59  ;;  %2722 = vmatprep.subr.bf16.mxu0 %v12025_v60  ;;  %v11971_v59 = vcombine.high %v961_v53, %v965_v54  ;;  %v12099_v60 = vcombine.high %v1089_v55, %v1093_v56  ;;  %v1037_v53 = vld [vmem:[#allocation15 + $0x2b8] sm:$0xff] }
 0x380   :  { %2763 = vmatprep.subr.bf16.mxu1 %v12153_v61  ;;  %v953_v61 = vld [vmem:[#allocation15 + $0x18] sm:$0xff] }
 0x381   :  { %v11962_v11 = vcombine.low %v953_v61, %v957_v62  ;;  %v1161_v54 = vld [vmem:[#allocation15 + $0x698] sm:$0xff] }
 0x382   :  { %2723 = vmatpush2.bf16.msra.mxu0 %v12024_v4  ;;  %v12098_v4 = vcombine.low %v1089_v55, %v1093_v56  ;;  %v1165_v55 = vld [vmem:[#allocation15 + $0x6b8] sm:$0xff] }
 0x383   :  { %2764 = vmatpush2.bf16.msra.mxu1 %v12152_v5  ;;  %2774 = vmatprep.subr.bf16.mxu0 %v12019_v6  ;;  %v11963_v5 = vcombine.high %v953_v61, %v957_v62  ;;  %v12091_v6 = vcombine.high %v1081_v63, %v1085_v0  ;;  %v1029_v61 = vld [vmem:[#allocation15 + $0x278] sm:$0xff] }
 0x384   :  { %2815 = vmatprep.subr.bf16.mxu1 %v12147_v7  ;;  %v1073_v7 = vld [vmem:[#allocation15 + $0x3d8] sm:$0xff] }
 0x385   :  { %2725 = vmatmul.mubr.bf16.vlgmr.msra.gmra.mxu0 %v14292_v34  ;;  %v12082_v19 = vcombine.low %v1073_v7, %v1077_v8  ;;  %v1153_v62 = vld [vmem:[#allocation15 + $0x658] sm:$0xff] }
 0x386   :  { %2766 = vmatmul.mubr.bf16.vlgmr.msra.gmra.mxu1 %v14296_v36  ;;  %2775 = vmatpush1.bf16.msra.mxu0 %v12018_v10  ;;  %v1205_v10 = vld [vmem:[#allocation15 + $0x7f8] sm:$0xff] }
 0x387   :  { %2806 = vmatprep.mubr.bf16.mxu0 %v14290_v30  ;;  %2816 = vmatpush1.bf16.msra.mxu1 %v12146_v13  ;;  %v12123_v30 = vcombine.high %v1113_v26, %v1117_v27  ;;  %v12083_v13 = vcombine.high %v1073_v7, %v1077_v8  ;;  %v1189_v26 = vld [vmem:[#allocation15 + $0x778] sm:$0xff]  ;;  %v12074_v27 = vcombine.low %v1065_v15, %v1069_v16 }
 0x388   :  { %2847 = vmatprep.mubr.bf16.mxu1 %v14294_v35  ;;  %2776 = vmatprep.subr.bf16.mxu0 %v12011_v14  ;;  %v11994_v35 = vcombine.low %v985_v24, %v989_v25  ;;  %v12211_v14 = vcombine.high %v1201_v9, %v1205_v10  ;;  %v1061_v24 = vld [vmem:[#allocation15 + $0x378] sm:$0xff] }
 0x389   :  { %2817 = vmatprep.subr.bf16.mxu1 %v12139_v17  ;;  %v1193_v17 = vld [vmem:[#allocation15 + $0x798] sm:$0xff] }
 0x38a   :  { %2777 = vmatpush1.bf16.msra.mxu0 %v12010_v20  ;;  %v12210_v20 = vcombine.low %v1201_v9, %v1205_v10  ;;  %v1185_v25 = vld [vmem:[#allocation15 + $0x758] sm:$0xff] }
 0x38b   :  { %2818 = vmatpush1.bf16.msra.mxu1 %v12138_v21  ;;  %2778 = vmatprep.subr.bf16.mxu0 %v12003_v22  ;;  %v12075_v21 = vcombine.high %v1065_v15, %v1069_v16  ;;  %v12203_v22 = vcombine.high %v1193_v17, %v1197_v18  ;;  %v1157_v63 = vld [vmem:[#allocation15 + $0x678] sm:$0xff]  ;;  %v3010_v15 = vld [vmem:[#allocation18 + $0x3c0] sm:$0xff] }
 0x38c   :  { %2819 = vmatprep.subr.bf16.mxu1 %v12131_v23  ;;  %v1057_v23 = vld [vmem:[#allocation15 + $0x358] sm:$0xff]  ;;  %v3258_v16 = vld [vmem:[#allocation18 + $0xb80] sm:$0xff] }
 0x38d   :  { %v12066_v38 = vcombine.low %v1057_v23, %v1061_v24  ;;  %v1021_v7 = vld [vmem:[#allocation15 + $0x238] sm:$0xff] }
 0x38e   :  { %2779 = vmatpush1.bf16.msra.mxu0 %v12002_v28  ;;  %v12202_v28 = vcombine.low %v1193_v17, %v1197_v18  ;;  %v1145_v8 = vld [vmem:[#allocation15 + $0x618] sm:$0xff]  ;;  %v3266_v17 = vld [vmem:[#allocation18 + $0xbc0] sm:$0xff] }
 0x38f   :  { %2820 = vmatpush1.bf16.msra.mxu1 %v12130_v29  ;;  %2780 = vmatprep.subr.bf16.mxu0 %v11995_v31  ;;  %v12067_v29 = vcombine.high %v1057_v23, %v1061_v24  ;;  %v12195_v31 = vcombine.high %v1185_v25, %v1189_v26  ;;  %v1149_v9 = vld [vmem:[#allocation15 + $0x638] sm:$0xff]  ;;  %v12582_v23 = vcombine.high %v3258_v16, %v3266_v17  ;;  %v3242_v24 = vld [vmem:[#allocation18 + $0xb00] sm:$0xff] }
 0x390   :  { %2821 = vmatprep.subr.bf16.mxu1 %v12123_v30  ;;  %v1049_v30 = vld [vmem:[#allocation15 + $0x318] sm:$0xff] }
 0x391   :  { %v12058_v48 = vcombine.low %v1049_v30, %v1053_v32 }
 0x392   :  { %2781 = vmatpush1.bf16.msra.mxu0 %v11994_v35  ;;  %v12194_v35 = vcombine.low %v1185_v25, %v1189_v26  ;;  %v3250_v25 = vld [vmem:[#allocation18 + $0xb40] sm:$0xff] }
 0x393   :  { %2822 = vmatpush1.bf16.msra.mxu1 %v12122_v39  ;;  %2782 = vmatprep.subr.bf16.mxu0 %v11987_v42  ;;  %v12059_v39 = vcombine.high %v1049_v30, %v1053_v32  ;;  %v12187_v42 = vcombine.high %v1177_v33, %v1181_v37  ;;  %v2970_v30 = vld [vmem:[#allocation18 + $0x280] sm:$0xff] }
 0x394   :  { %2823 = vmatprep.subr.bf16.mxu1 %v12115_v44  ;;  %v1041_v44 = vld [vmem:[#allocation15 + $0x2d8] sm:$0xff]  ;;  %v2978_v32 = vld [vmem:[#allocation18 + $0x2c0] sm:$0xff] }
 0x395   :  { %v12050_v56 = vcombine.low %v1041_v44, %v1045_v45 }
 0x396   :  { %2783 = vmatpush1.bf16.msra.mxu0 %v11986_v49  ;;  %v12186_v49 = vcombine.low %v1177_v33, %v1181_v37  ;;  %v12566_v33 = vcombine.high %v3242_v24, %v3250_v25 }
 0x397   :  { %2824 = vmatpush1.bf16.msra.mxu1 %v12114_v50  ;;  %2784 = vmatprep.subr.bf16.mxu0 %v11979_v51  ;;  %v12051_v50 = vcombine.high %v1041_v44, %v1045_v45  ;;  %v12179_v51 = vcombine.high %v1169_v46, %v1173_v47  ;;  %v12294_v45 = vcombine.high %v2970_v30, %v2978_v32 }
 0x398   :  { %2825 = vmatprep.subr.bf16.mxu1 %v12107_v52  ;;  %v1033_v52 = vld [vmem:[#allocation15 + $0x298] sm:$0xff] }
 0x399   :  { %v12042_v0 = vcombine.low %v1033_v52, %v1037_v53 }
 0x39a   :  { %2785 = vmatpush1.bf16.msra.mxu0 %v11978_v57  ;;  %v12178_v57 = vcombine.low %v1169_v46, %v1173_v47  ;;  %v12565_v46 = vcombine.low %v3242_v24, %v3250_v25 }
 0x39b   :  { %2826 = vmatpush1.bf16.msra.mxu1 %v12106_v58  ;;  %2786 = vmatprep.subr.bf16.mxu0 %v11971_v59  ;;  %v12043_v58 = vcombine.high %v1033_v52, %v1037_v53  ;;  %v12171_v59 = vcombine.high %v1161_v54, %v1165_v55  ;;  %v3210_v52 = vld [vmem:[#allocation18 + $0xa00] sm:$0xff] }
 0x39c   :  { %2827 = vmatprep.subr.bf16.mxu1 %v12099_v60  ;;  %v1025_v60 = vld [vmem:[#allocation15 + $0x258] sm:$0xff]  ;;  %v3218_v53 = vld [vmem:[#allocation18 + $0xa40] sm:$0xff] }
 0x39d   :  { %v12034_v10 = vcombine.low %v1025_v60, %v1029_v61 }
 0x39e   :  { %2787 = vmatpush1.bf16.msra.mxu0 %v11970_v2  ;;  %v12170_v2 = vcombine.low %v1161_v54, %v1165_v55  ;;  %v12293_v55 = vcombine.low %v2970_v30, %v2978_v32  ;;  %v3154_v30 = vld [vmem:[#allocation18 + $0x840] sm:$0xff] }
 0x39f   :  { %2828 = vmatpush1.bf16.msra.mxu1 %v12098_v4  ;;  %2788 = vmatprep.subr.bf16.mxu0 %v11963_v5  ;;  %v12035_v4 = vcombine.high %v1025_v60, %v1029_v61  ;;  %v12163_v5 = vcombine.high %v1153_v62, %v1157_v63 }
 0x3a0   :  { %2829 = vmatprep.subr.bf16.mxu1 %v12091_v6  ;;  %v1017_v6 = vld [vmem:[#allocation15 + $0x218] sm:$0xff] }
 0x3a1   :  { %v12026_v18 = vcombine.low %v1017_v6, %v1021_v7 }
 0x3a2   :  { %2789 = vmatpush1.bf16.msra.mxu0 %v11962_v11  ;;  %v12162_v11 = vcombine.low %v1153_v62, %v1157_v63  ;;  %v2938_v62 = vld [vmem:[#allocation18 + $0x180] sm:$0xff] }
 0x3a3   :  { %2830 = vmatpush1.bf16.msra.mxu1 %v12090_v12  ;;  %2790 = vmatprep.subr.bf16.mxu0 %v12083_v13  ;;  %v12027_v12 = vcombine.high %v1017_v6, %v1021_v7  ;;  %v12155_v13 = vcombine.high %v1145_v8, %v1149_v9  ;;  %v2946_v63 = vld [vmem:[#allocation18 + $0x1c0] sm:$0xff] }
 0x3a4   :  { %2831 = vmatprep.subr.bf16.mxu1 %v12211_v14  ;;  %v3002_v14 = vld [vmem:[#allocation18 + $0x380] sm:$0xff] }
 0x3a5   :  { %v12325_v26 = vcombine.low %v3002_v14, %v3010_v15 }
 0x3a6   :  { %2791 = vmatpush2.bf16.msra.mxu0 %v12082_v19  ;;  %v12154_v19 = vcombine.low %v1145_v8, %v1149_v9  ;;  %v12262_v8 = vcombine.high %v2938_v62, %v2946_v63  ;;  %v12533_v9 = vcombine.low %v3210_v52, %v3218_v53 }
 0x3a7   :  { %2832 = vmatpush2.bf16.msra.mxu1 %v12210_v20  ;;  %2792 = vmatprep.subr.bf16.mxu0 %v12075_v21  ;;  %v12326_v20 = vcombine.high %v3002_v14, %v3010_v15  ;;  %v2986_v21 = vld [vmem:[#allocation18 + $0x300] sm:$0xff]  ;;  %v12261_v15 = vcombine.low %v2938_v62, %v2946_v63 }
 0x3a8   :  { %2833 = vmatprep.subr.bf16.mxu1 %v12203_v22  ;;  %v2994_v22 = vld [vmem:[#allocation18 + $0x340] sm:$0xff] }
 0x3a9   :  { %v3186_v14 = vld [vmem:[#allocation18 + $0x940] sm:$0xff] }
 0x3aa   :  { %2793 = vmatpush2.bf16.msra.mxu0 %v12074_v27  ;;  %v14312_v27 = vld [vmem:[#allocation16] sm:$0xff] }
 0x3ab   :  { %2834 = vmatpush2.bf16.msra.mxu1 %v12202_v28  ;;  %2794 = vmatprep.subr.bf16.mxu0 %v12067_v29  ;;  %v12310_v28 = vcombine.high %v2986_v21, %v2994_v22  ;;  %v12581_v29 = vcombine.low %v3258_v16, %v3266_v17 }
 0x3ac   :  { %2835 = vmatprep.subr.bf16.mxu1 %v12195_v31  ;;  %v1215_v31 = vrot.slane %v14312_v27, %v14276_v43 }
 0x3ae   :  { %2795 = vmatpush2.bf16.msra.mxu0 %v12066_v38  ;;  %v3226_v38 = vld [vmem:[#allocation18 + $0xa80] sm:$0xff] }
 0x3af   :  { %2836 = vmatpush2.bf16.msra.mxu1 %v12194_v35  ;;  %2796 = vmatprep.subr.bf16.mxu0 %v12059_v39  ;;  %v3234_v35 = vld [vmem:[#allocation18 + $0xac0] sm:$0xff] }
 0x3b0   :  { %2837 = vmatprep.subr.bf16.mxu1 %v12187_v42  ;;  %v12309_v42 = vcombine.low %v2986_v21, %v2994_v22  ;;  %v3162_v21 = vld [vmem:[#allocation18 + $0x880] sm:$0xff] }
 0x3b1   :  { %v3170_v22 = vld [vmem:[#allocation18 + $0x8c0] sm:$0xff] }
 0x3b2   :  { %2797 = vmatpush2.bf16.msra.mxu0 %v12058_v48 }
 0x3b3   :  { %2838 = vmatpush2.bf16.msra.mxu1 %v12186_v49  ;;  %2798 = vmatprep.subr.bf16.mxu0 %v12051_v50  ;;  %v2954_v49 = vld [vmem:[#allocation18 + $0x200] sm:$0xff]  ;;  %v12550_v50 = vcombine.high %v3226_v38, %v3234_v35 }
 0x3b4   :  { %2839 = vmatprep.subr.bf16.mxu1 %v12179_v51 }
 0x3b6   :  { %2799 = vmatpush2.bf16.msra.mxu0 %v12050_v56  ;;  %v14325_v56 = vstv %s14314_s7 }
 0x3b7   :  { %2840 = vmatpush2.bf16.msra.mxu1 %v12178_v57  ;;  %2800 = vmatprep.subr.bf16.mxu0 %v12043_v58 }
 0x3b8   :  { %2841 = vmatprep.subr.bf16.mxu1 %v12171_v59  ;;  %v12549_v59 = vcombine.low %v3226_v38, %v3234_v35  ;;  %v12485_v38 = vcombine.low %v3162_v21, %v3170_v22  ;;  %v3130_v35 = vld [vmem:[#allocation18 + $0x780] sm:$0xff] }
 0x3ba   :  { %2801 = vmatpush2.bf16.msra.mxu0 %v12042_v0  ;;  %v12534_v0 = vcombine.high %v3210_v52, %v3218_v53  ;;  %v3370_v52 = vld [vmem:[#allocation18 + $0xf00] sm:$0xff] }
 0x3bb   :  { %2842 = vmatpush2.bf16.msra.mxu1 %v12170_v2  ;;  %2802 = vmatprep.subr.bf16.mxu0 %v12035_v4  ;;  %v3194_v2 = vld [vmem:[#allocation18 + $0x980] sm:$0xff] }
 0x3bc   :  { %2843 = vmatprep.subr.bf16.mxu1 %v12163_v5  ;;  %v3202_v4 = vld [vmem:[#allocation18 + $0x9c0] sm:$0xff] }
 0x3bd   :  { %v12517_v17 = vcombine.low %v3194_v2, %v3202_v4  ;;  %v3378_v53 = vld [vmem:[#allocation18 + $0xf40] sm:$0xff] }
 0x3be   :  { %2803 = vmatpush2.bf16.msra.mxu0 %v12034_v10  ;;  %v2922_v10 = vld [vmem:[#allocation18 + $0x100] sm:$0xff] }
 0x3bf   :  { %2844 = vmatpush2.bf16.msra.mxu1 %v12162_v11  ;;  %2804 = vmatprep.subr.bf16.mxu0 %v12027_v12  ;;  %v2930_v11 = vld [vmem:[#allocation18 + $0x140] sm:$0xff]  ;;  %v12518_v12 = vcombine.high %v3194_v2, %v3202_v4 }
 0x3c0   :  { %2845 = vmatprep.subr.bf16.mxu1 %v12155_v13  ;;  %v3178_v13 = vld [vmem:[#allocation18 + $0x900] sm:$0xff]  ;;  %v12246_v16 = vcombine.high %v2922_v10, %v2930_v11 }
 0x3c1   :  { %v12501_v25 = vcombine.low %v3178_v13, %v3186_v14  ;;  %v3082_v2 = vld [vmem:[#allocation18 + $0x600] sm:$0xff] }
 0x3c2   :  { %2805 = vmatpush2.bf16.msra.mxu0 %v12026_v18  ;;  %v2906_v18 = vld [vmem:[#allocation18 + $0x80] sm:$0xff] }
 0x3c3   :  { %2846 = vmatpush2.bf16.msra.mxu1 %v12154_v19  ;;  %9118 = vmatprep.subr.bf16.mxu0 %v12326_v20  ;;  %v2914_v19 = vld [vmem:[#allocation18 + $0xc0] sm:$0xff]  ;;  %v12502_v20 = vcombine.high %v3178_v13, %v3186_v14 }
 0x3c4   :  { %9159 = vmatprep.subr.bf16.mxu1 %v12582_v23  ;;  %v12245_v23 = vcombine.low %v2922_v10, %v2930_v11  ;;  %v12230_v24 = vcombine.high %v2906_v18, %v2914_v19  ;;  %v12229_v32 = vcombine.low %v2906_v18, %v2914_v19  ;;  %v3090_v4 = vld [vmem:[#allocation18 + $0x640] sm:$0xff] }
 0x3c5   :  { %2807 = vmatmul.mubr.bf16.vlgmr.msra.gmra.mxu0 %v14292_v34  ;;  %v14319_v37 = vpop.f32.mrf.mxu0  ;;  %v2962_v34 = vld [vmem:[#allocation18 + $0x240] sm:$0xff]  ;;  %v12406_v10 = vcombine.high %v3082_v2, %v3090_v4 }
 0x3c6   :  { %2848 = vmatmul.mubr.bf16.vlgmr.msra.gmra.mxu1 %v14296_v36  ;;  %v14322_v39 = vpop.f32.mrf.mxu1  ;;  %9119 = vmatpush1.bf16.msra.mxu0 %v12325_v26  ;;  %v12278_v58 = vcombine.high %v2954_v49, %v2962_v34  ;;  %v12277_v6 = vcombine.low %v2954_v49, %v2962_v34  ;;  %v2890_v26 = vld [vmem:[#allocation18] sm:$0xff] }
 0x3c7   :  { %v2564_v44 = vpop.f32.mrf.mxu0  ;;  %9120 = vmatprep.subr.bf16.mxu0 %v12310_v28  ;;  %9160 = vmatpush1.bf16.msra.mxu1 %v12581_v29  ;;  %v2898_v28 = vld [vmem:[#allocation18 + $0x40] sm:$0xff]  ;;  %v12486_v29 = vcombine.high %v3162_v21, %v3170_v22 }
 0x3c8   :  { %v2565_v47 = vadd.f32 %v2564_v44, %v1215_v31  ;;  %v2605_v48 = vpop.f32.mrf.mxu1  ;;  %9161 = vmatprep.subr.bf16.mxu1 %v12566_v33  ;;  %v3146_v31 = vld [vmem:[#allocation18 + $0x800] sm:$0xff]  ;;  %v12214_v33 = vcombine.high %v2890_v26, %v2898_v28 }
 0x3c9   :  { %v2566_v51 = vpop.f32.mrf.mxu0  ;;  %v12470_v44 = vcombine.high %v3146_v31, %v3154_v30  ;;  %v12469_v49 = vcombine.low %v3146_v31, %v3154_v30  ;;  %v3114_v34 = vld [vmem:[#allocation18 + $0x700] sm:$0xff] }
 0x3ca   :  { %v2606_v36 = vadd.f32 %v2605_v48, %v2565_v47  ;;  %v2607_v54 = vpop.f32.mrf.mxu1  ;;  %9121 = vmatpush1.bf16.msra.mxu0 %v12309_v42  ;;  %v3138_v42 = vld [vmem:[#allocation18 + $0x7c0] sm:$0xff]  ;;  %v12213_v47 = vcombine.low %v2890_v26, %v2898_v28 }
 0x3cb   :  { %v2567_v57 = vpop.f32.mrf.mxu0  ;;  %9122 = vmatprep.subr.bf16.mxu0 %v12294_v45  ;;  %9162 = vmatpush1.bf16.msra.mxu1 %v12565_v46  ;;  %v3386_v45 = vld [vmem:[#allocation18 + $0xf80] sm:$0xff]  ;;  %v12454_v48 = vcombine.high %v3130_v35, %v3138_v42 }
 0x3cc   :  { %vm2858_vm9 = vcmp.gt.f32.partialorder %v2606_v36, 0.0  ;;  %v2867_v60 = vmul.f32 %v14325_v56, %v2606_v36  ;;  %v2608_v61 = vpop.f32.mrf.mxu1  ;;  %9163 = vmatprep.subr.bf16.mxu1 %v12550_v50  ;;  %v3394_v46 = vld [vmem:[#allocation18 + $0xfc0] sm:$0xff] }
 0x3cd   :  { %v3122_v50 = vld [vmem:[#allocation18 + $0x740] sm:$0xff]  ;;  %v12710_v51 = vcombine.high %v3386_v45, %v3394_v46 }
 0x3ce   :  { %v2875_v5 = vsel %vm2858_vm9, %v2606_v36, %v2867_v60  ;;  %9123 = vmatpush1.bf16.msra.mxu0 %v12293_v55  ;;  %v12453_v36 = vcombine.low %v3130_v35, %v3138_v42  ;;  %v12438_v54 = vcombine.high %v3114_v34, %v3122_v50  ;;  %v12709_v55 = vcombine.low %v3386_v45, %v3394_v46  ;;  %v3098_v57 = vld [vmem:[#allocation18 + $0x680] sm:$0xff] }
 0x3cf   :  { %v14328_v7 = vpack.c.bf16 %v2875_v5, %v2875_v5  ;;  %9124 = vmatprep.subr.bf16.mxu0 %v12278_v58  ;;  %9164 = vmatpush1.bf16.msra.mxu1 %v12549_v59  ;;  %v3106_v58 = vld [vmem:[#allocation18 + $0x6c0] sm:$0xff]  ;;  %v12694_v59 = vcombine.high %v3370_v52, %v3378_v53  ;;  %v12437_v62 = vcombine.low %v3114_v34, %v3122_v50 }
 0x3d0   :  { %9165 = vmatprep.subr.bf16.mxu1 %v12534_v0  ;;  %v3354_v60 = vld [vmem:[#allocation18 + $0xe80] sm:$0xff]  ;;  %v12422_v63 = vcombine.high %v3098_v57, %v3106_v58  ;;  %v12693_v0 = vcombine.low %v3370_v52, %v3378_v53 }
 0x3d1   :  { %9150 = vmatprep.mubr.bf16.mxu0 %v14328_v7  ;;  %v3362_v61 = vld [vmem:[#allocation18 + $0xec0] sm:$0xff] }
 0x3d2   :  { %9125 = vmatpush1.bf16.msra.mxu0 %v12277_v6  ;;  %v12678_v5 = vcombine.high %v3354_v60, %v3362_v61  ;;  %v3338_v6 = vld [vmem:[#allocation18 + $0xe00] sm:$0xff]  ;;  %v12677_v11 = vcombine.low %v3354_v60, %v3362_v61 }
 0x3d3   :  { %9126 = vmatprep.subr.bf16.mxu0 %v12262_v8  ;;  %9166 = vmatpush1.bf16.msra.mxu1 %v12533_v9  ;;  %v3346_v8 = vld [vmem:[#allocation18 + $0xe40] sm:$0xff]  ;;  %v12421_v9 = vcombine.low %v3098_v57, %v3106_v58 }
 0x3d4   :  { %9167 = vmatprep.subr.bf16.mxu1 %v12518_v12  ;;  %v3066_v12 = vld [vmem:[#allocation18 + $0x580] sm:$0xff]  ;;  %v12662_v14 = vcombine.high %v3338_v6, %v3346_v8  ;;  %v12661_v19 = vcombine.low %v3338_v6, %v3346_v8  ;;  %v1223_v8 = vrot.slane %v14312_v27, %v14284_v3 }
 0x3d5   :  { %v3074_v13 = vld [vmem:[#allocation18 + $0x5c0] sm:$0xff] }
 0x3d6   :  { %9127 = vmatpush1.bf16.msra.mxu0 %v12261_v15  ;;  %v3322_v15 = vld [vmem:[#allocation18 + $0xd80] sm:$0xff]  ;;  %v12390_v18 = vcombine.high %v3066_v12, %v3074_v13  ;;  %v12389_v26 = vcombine.low %v3066_v12, %v3074_v13 }
 0x3d7   :  { %9128 = vmatprep.subr.bf16.mxu0 %v12246_v16  ;;  %9168 = vmatpush1.bf16.msra.mxu1 %v12517_v17  ;;  %v3330_v16 = vld [vmem:[#allocation18 + $0xdc0] sm:$0xff]  ;;  %v12405_v17 = vcombine.low %v3082_v2, %v3090_v4  ;;  %v1219_v2 = vrot.slane %v14312_v27, %v14281_v1 }
 0x3d8   :  { %9169 = vmatprep.subr.bf16.mxu1 %v12502_v20  ;;  %v1211_v20 = vrot.slane %v14312_v27, %v14273_v41  ;;  %v3050_v21 = vld [vmem:[#allocation18 + $0x500] sm:$0xff] }
 0x3d9   :  { %v3058_v22 = vld [vmem:[#allocation18 + $0x540] sm:$0xff] }
 0x3da   :  { %9129 = vmatpush1.bf16.msra.mxu0 %v12245_v23  ;;  %v12646_v23 = vcombine.high %v3322_v15, %v3330_v16  ;;  %v12374_v28 = vcombine.high %v3050_v21, %v3058_v22  ;;  %v2563_v31 = vadd.f32 %v14319_v37, %v1211_v20  ;;  %v3034_v30 = vld [vmem:[#allocation18 + $0x480] sm:$0xff]  ;;  %v12373_v42 = vcombine.low %v3050_v21, %v3058_v22 }
 0x3db   :  { %9130 = vmatprep.subr.bf16.mxu0 %v12230_v24  ;;  %9170 = vmatpush1.bf16.msra.mxu1 %v12501_v25  ;;  %v3306_v24 = vld [vmem:[#allocation18 + $0xd00] sm:$0xff] }
 0x3dc   :  { %9171 = vmatprep.subr.bf16.mxu1 %v12486_v29  ;;  %v3314_v25 = vld [vmem:[#allocation18 + $0xd40] sm:$0xff]  ;;  %v12645_v29 = vcombine.low %v3322_v15, %v3330_v16  ;;  %v2604_v46 = vadd.f32 %v14322_v39, %v2563_v31 }
 0x3dd   :  { %v3298_v35 = vld [vmem:[#allocation18 + $0xcc0] sm:$0xff]  ;;  %v12629_v45 = vcombine.low %v3306_v24, %v3314_v25 }
 0x3de   :  { %9131 = vmatpush1.bf16.msra.mxu0 %v12229_v32  ;;  %v3042_v32 = vld [vmem:[#allocation18 + $0x4c0] sm:$0xff]  ;;  %v2866_v53 = vmul.f32 %v14325_v56, %v2604_v46  ;;  %vm2857_vm10 = vcmp.gt.f32.partialorder %v2604_v46, 0.0 }
 0x3df   :  { %9132 = vmatprep.subr.bf16.mxu0 %v12214_v33  ;;  %9172 = vmatpush1.bf16.msra.mxu1 %v12485_v38  ;;  %v12630_v33 = vcombine.high %v3306_v24, %v3314_v25  ;;  %v3290_v38 = vld [vmem:[#allocation18 + $0xc80] sm:$0xff]  ;;  %v12357_v50 = vcombine.low %v3034_v30, %v3042_v32 }
 0x3e0   :  { %9173 = vmatprep.subr.bf16.mxu1 %v12470_v44  ;;  %v12358_v44 = vcombine.high %v3034_v30, %v3042_v32  ;;  %v3274_v34 = vld [vmem:[#allocation18 + $0xc00] sm:$0xff]  ;;  %v12613_v52 = vcombine.low %v3290_v38, %v3298_v35  ;;  %v2874_v61 = vsel %vm2857_vm10, %v2604_v46, %v2866_v53 }
 0x3e1   :  { %v3282_v37 = vld [vmem:[#allocation18 + $0xc40] sm:$0xff] }
 0x3e2   :  { %9133 = vmatpush1.bf16.msra.mxu0 %v12213_v47  ;;  %v3018_v47 = vld [vmem:[#allocation18 + $0x400] sm:$0xff] }
 0x3e3   :  { %9134 = vmatprep.subr.bf16.mxu0 %v12454_v48  ;;  %9174 = vmatpush1.bf16.msra.mxu1 %v12469_v49  ;;  %v3026_v48 = vld [vmem:[#allocation18 + $0x440] sm:$0xff]  ;;  %v12614_v49 = vcombine.high %v3290_v38, %v3298_v35 }
 0x3e4   :  { %9175 = vmatprep.subr.bf16.mxu1 %v12710_v51  ;;  %v12342_v51 = vcombine.high %v3018_v47, %v3026_v48  ;;  %v14336_v39 = vld [vmem:[#allocation18 + $0x1b80] sm:$0xff]  ;;  %v12341_v58 = vcombine.low %v3018_v47, %v3026_v48 }
 0x3e5   :  { %v14338_v57 = vld [vmem:[#allocation18 + $0x1bc0] sm:$0xff] }
 0x3e6   :  { %9135 = vmatpush2.bf16.msra.mxu0 %v12453_v36  ;;  %v12598_v36 = vcombine.high %v3274_v34, %v3282_v37  ;;  %v3466_v20 = vld [vmem:[#allocation18 + $0x1200] sm:$0xff] }
 0x3e7   :  { %9136 = vmatprep.subr.bf16.mxu0 %v12438_v54  ;;  %9176 = vmatpush2.bf16.msra.mxu1 %v12709_v55  ;;  %v3514_v54 = vld [vmem:[#allocation18 + $0x1380] sm:$0xff] }
 0x3e8   :  { %9177 = vmatprep.subr.bf16.mxu1 %v12694_v59  ;;  %v3522_v55 = vld [vmem:[#allocation18 + $0x13c0] sm:$0xff]  ;;  %v12597_v59 = vcombine.low %v3274_v34, %v3282_v37 }
 0x3e9   :  { %v12838_v60 = vcombine.high %v3514_v54, %v3522_v55  ;;  %v12837_v4 = vcombine.low %v3514_v54, %v3522_v55  ;;  %v3474_v21 = vld [vmem:[#allocation18 + $0x1240] sm:$0xff] }
 0x3ea   :  { %9137 = vmatpush2.bf16.msra.mxu0 %v12437_v62  ;;  %v3498_v62 = vld [vmem:[#allocation18 + $0x1300] sm:$0xff] }
 0x3eb   :  { %9138 = vmatprep.subr.bf16.mxu0 %v12422_v63  ;;  %9178 = vmatpush2.bf16.msra.mxu1 %v12693_v0  ;;  %v3506_v63 = vld [vmem:[#allocation18 + $0x1340] sm:$0xff]  ;;  %v13094_v0 = vcombine.high %v14336_v39, %v14338_v57 }
 0x3ec   :  { %9179 = vmatprep.subr.bf16.mxu1 %v12678_v5  ;;  %v14344_v5 = vpack.c.bf16 %v2874_v61, %v2874_v61  ;;  %v12822_v6 = vcombine.high %v3498_v62, %v3506_v63  ;;  %v3450_v32 = vld [vmem:[#allocation18 + $0x1180] sm:$0xff] }
 0x3ed   :  { %v3754_v35 = vld [vmem:[#allocation18 + $0x1b00] sm:$0xff] }
 0x3ee   :  { %9139 = vmatpush2.bf16.msra.mxu0 %v12421_v9  ;;  %v3482_v9 = vld [vmem:[#allocation18 + $0x1280] sm:$0xff] }
 0x3ef   :  { %9140 = vmatprep.subr.bf16.mxu0 %v12406_v10  ;;  %9180 = vmatpush2.bf16.msra.mxu1 %v12677_v11  ;;  %v3490_v10 = vld [vmem:[#allocation18 + $0x12c0] sm:$0xff] }
 0x3f0   :  { %9181 = vmatprep.subr.bf16.mxu1 %v12662_v14  ;;  %v12821_v14 = vcombine.low %v3498_v62, %v3506_v63  ;;  %v12806_v16 = vcombine.high %v3482_v9, %v3490_v10  ;;  %v3434_v48 = vld [vmem:[#allocation18 + $0x1100] sm:$0xff] }
 0x3f1   :  { %v3442_v37 = vld [vmem:[#allocation18 + $0x1140] sm:$0xff] }
 0x3f2   :  { %9141 = vmatpush2.bf16.msra.mxu0 %v12405_v17  ;;  %v3738_v53 = vld [vmem:[#allocation18 + $0x1a80] sm:$0xff]  ;;  %v12757_v63 = vcombine.low %v3434_v48, %v3442_v37 }
 0x3f3   :  { %9142 = vmatprep.subr.bf16.mxu0 %v12390_v18  ;;  %9182 = vmatpush2.bf16.msra.mxu1 %v12661_v19  ;;  %v3722_v61 = vld [vmem:[#allocation18 + $0x1a00] sm:$0xff] }
 0x3f4   :  { %9183 = vmatprep.subr.bf16.mxu1 %v12646_v23  ;;  %v3730_v62 = vld [vmem:[#allocation18 + $0x1a40] sm:$0xff] }
 0x3f6   :  { %9143 = vmatpush2.bf16.msra.mxu0 %v12389_v26  ;;  %v12805_v26 = vcombine.low %v3482_v9, %v3490_v10  ;;  %v3706_v9 = vld [vmem:[#allocation18 + $0x1980] sm:$0xff] }
 0x3f7   :  { %9144 = vmatprep.subr.bf16.mxu0 %v12374_v28  ;;  %9184 = vmatpush2.bf16.msra.mxu1 %v12645_v29  ;;  %v12790_v29 = vcombine.high %v3466_v20, %v3474_v21  ;;  %v3714_v10 = vld [vmem:[#allocation18 + $0x19c0] sm:$0xff] }
 0x3f8   :  { %9185 = vmatprep.subr.bf16.mxu1 %v12630_v33  ;;  %v3458_v33 = vld [vmem:[#allocation18 + $0x11c0] sm:$0xff] }
 0x3f9   :  { %v12774_v47 = vcombine.high %v3450_v32, %v3458_v33  ;;  %v12773_v54 = vcombine.low %v3450_v32, %v3458_v33  ;;  %v3618_v32 = vld [vmem:[#allocation18 + $0x16c0] sm:$0xff] }
 0x3fa   :  { %9145 = vmatpush2.bf16.msra.mxu0 %v12373_v42  ;;  %v3762_v42 = vld [vmem:[#allocation18 + $0x1b40] sm:$0xff] }
 0x3fb   :  { %9146 = vmatprep.subr.bf16.mxu0 %v12358_v44  ;;  %9186 = vmatpush2.bf16.msra.mxu1 %v12629_v45  ;;  %v12789_v45 = vcombine.low %v3466_v20, %v3474_v21  ;;  %v13029_v21 = vcombine.low %v3706_v9, %v3714_v10 }
 0x3fc   :  { %9187 = vmatprep.subr.bf16.mxu1 %v12614_v49  ;;  %v13093_v49 = vcombine.low %v14336_v39, %v14338_v57  ;;  %v12758_v39 = vcombine.high %v3434_v48, %v3442_v37  ;;  %v13077_v57 = vcombine.low %v3754_v35, %v3762_v42  ;;  %v3602_v48 = vld [vmem:[#allocation18 + $0x1640] sm:$0xff] }
 0x3fd   :  { %v3898_v37 = vld [vmem:[#allocation18 + $0x1f80] sm:$0xff] }
 0x3fe   :  { %9147 = vmatpush2.bf16.msra.mxu0 %v12357_v50  ;;  %v13078_v50 = vcombine.high %v3754_v35, %v3762_v42  ;;  %v3666_v35 = vld [vmem:[#allocation18 + $0x1840] sm:$0xff] }
 0x3ff   :  { %9148 = vmatprep.subr.bf16.mxu0 %v12342_v51  ;;  %9188 = vmatpush2.bf16.msra.mxu1 %v12613_v52  ;;  %v14357_v51 = vld [vmem:[#allocation18 + $0xb88] sm:$0xff] }
 0x400   :  { %9189 = vmatprep.subr.bf16.mxu1 %v12598_v36  ;;  %v14359_v52 = vld [vmem:[#allocation18 + $0xbc8] sm:$0xff]  ;;  %v3746_v36 = vld [vmem:[#allocation18 + $0x1ac0] sm:$0xff] }
 0x401   :  { %v12583_v55 = vcombine.low %v14357_v51, %v14359_v52 }
 0x402   :  { %9149 = vmatpush2.bf16.msra.mxu0 %v12341_v58  ;;  %v3418_v58 = vld [vmem:[#allocation18 + $0x1080] sm:$0xff] }
 0x403   :  { %9190 = vmatpush2.bf16.msra.mxu1 %v12597_v59  ;;  %9200 = vmatprep.subr.bf16.mxu0 %v12838_v60  ;;  %v3426_v59 = vld [vmem:[#allocation18 + $0x10c0] sm:$0xff]  ;;  %v13062_v60 = vcombine.high %v3738_v53, %v3746_v36 }
 0x404   :  { %9241 = vmatprep.subr.bf16.mxu1 %v13094_v0  ;;  %v12742_v0 = vcombine.high %v3418_v58, %v3426_v59 }
 0x405   :  { %v2644_v11 = vpop.f32.mrf.mxu0  ;;  %9151 = vmatmul.mubr.bf16.vlgmr.msra.gmra.mxu0 %v14344_v5 }
 0x406   :  { %v2645_v12 = vadd.f32 %v2644_v11, %v1219_v2  ;;  %v2685_v13 = vpop.f32.mrf.mxu1  ;;  %9201 = vmatpush1.bf16.msra.mxu0 %v12837_v4  ;;  %v13061_v2 = vcombine.low %v3738_v53, %v3746_v36  ;;  %v3402_v4 = vld [vmem:[#allocation18 + $0x1000] sm:$0xff]  ;;  %v12741_v11 = vcombine.low %v3418_v58, %v3426_v59 }
 0x407   :  { %v2646_v15 = vpop.f32.mrf.mxu0  ;;  %9202 = vmatprep.subr.bf16.mxu0 %v12822_v6  ;;  %v3410_v6 = vld [vmem:[#allocation18 + $0x1040] sm:$0xff] }
 0x408   :  { %v2686_v17 = vadd.f32 %v2685_v13, %v2645_v12  ;;  %v2647_v18 = vadd.f32 %v2646_v15, %v1223_v8  ;;  %v2687_v19 = vpop.f32.mrf.mxu1  ;;  %v13046_v8 = vcombine.high %v3722_v61, %v3730_v62  ;;  %v12726_v12 = vcombine.high %v3402_v4, %v3410_v6  ;;  %v3650_v15 = vld [vmem:[#allocation18 + $0x17c0] sm:$0xff] }
 0x409   :  { %v2648_v22 = vpop.f32.mrf.mxu0  ;;  %v13045_v13 = vcombine.low %v3722_v61, %v3730_v62  ;;  %v3882_v59 = vld [vmem:[#allocation18 + $0x1f00] sm:$0xff] }
 0x40a   :  { %vm2859_vm11 = vcmp.gt.f32.partialorder %v2686_v17, 0.0  ;;  %v2868_v23 = vmul.f32 %v14325_v56, %v2686_v17  ;;  %v2688_v24 = vadd.f32 %v2687_v19, %v2647_v18  ;;  %v2689_v25 = vpop.f32.mrf.mxu1  ;;  %9203 = vmatpush1.bf16.msra.mxu0 %v12821_v14  ;;  %v3642_v14 = vld [vmem:[#allocation18 + $0x1780] sm:$0xff]  ;;  %v12725_v19 = vcombine.low %v3402_v4, %v3410_v6 }
 0x40b   :  { %v2649_v28 = vpop.f32.mrf.mxu0  ;;  %9204 = vmatprep.subr.bf16.mxu0 %v12806_v16  ;;  %v13030_v16 = vcombine.high %v3706_v9, %v3714_v10  ;;  %v3698_v18 = vld [vmem:[#allocation18 + $0x1940] sm:$0xff]  ;;  %v12966_v20 = vcombine.high %v3642_v14, %v3650_v15 }
 0x40c   :  { %vm2860_vm12 = vcmp.gt.f32.partialorder %v2688_v24, 0.0  ;;  %v2869_v31 = vmul.f32 %v14325_v56, %v2688_v24  ;;  %v2690_v30 = vpop.f32.mrf.mxu1  ;;  %v2876_v38 = vsel %vm2859_vm11, %v2686_v17, %v2868_v23  ;;  %v3690_v17 = vld [vmem:[#allocation18 + $0x1900] sm:$0xff]  ;;  %v12965_v28 = vcombine.low %v3642_v14, %v3650_v15 }
 0x40d   :  { %v14355_v34 = vpack.c.bf16 %v2876_v38, %v2876_v38  ;;  %v3626_v22 = vld [vmem:[#allocation18 + $0x1700] sm:$0xff] }
 0x40e   :  { %v2877_v44 = vsel %vm2860_vm12, %v2688_v24, %v2869_v31  ;;  %9205 = vmatpush1.bf16.msra.mxu0 %v12805_v26  ;;  %v3634_v23 = vld [vmem:[#allocation18 + $0x1740] sm:$0xff]  ;;  %v13014_v24 = vcombine.high %v3690_v17, %v3698_v18  ;;  %v13013_v31 = vcombine.low %v3690_v17, %v3698_v18 }
 0x40f   :  { %v14351_v46 = vpack.c.bf16 %v2877_v44, %v2877_v44  ;;  %9206 = vmatprep.subr.bf16.mxu0 %v12790_v29  ;;  %v3674_v25 = vld [vmem:[#allocation18 + $0x1880] sm:$0xff]  ;;  %v12950_v29 = vcombine.high %v3626_v22, %v3634_v23  ;;  %v12949_v42 = vcombine.low %v3626_v22, %v3634_v23 }
 0x410   :  { %v3682_v26 = vld [vmem:[#allocation18 + $0x18c0] sm:$0xff] }
 0x411   :  { %9191 = vmatprep.mubr.bf16.mxu1 %v14351_v46  ;;  %v3610_v30 = vld [vmem:[#allocation18 + $0x1680] sm:$0xff]  ;;  %v12998_v33 = vcombine.high %v3674_v25, %v3682_v26 }
 0x412   :  { %9192 = vmatmul.mubr.bf16.vlgmr.msra.gmra.mxu1 %v14355_v34  ;;  %9207 = vmatpush1.bf16.msra.mxu0 %v12789_v45  ;;  %v3658_v38 = vld [vmem:[#allocation18 + $0x1800] sm:$0xff]  ;;  %v12934_v44 = vcombine.high %v3610_v30, %v3618_v32  ;;  %v12997_v45 = vcombine.low %v3674_v25, %v3682_v26  ;;  %v12933_v53 = vcombine.low %v3610_v30, %v3618_v32 }
 0x413   :  { %9208 = vmatprep.subr.bf16.mxu0 %v12774_v47  ;;  %9242 = vmatpush1.bf16.msra.mxu1 %v13093_v49  ;;  %v3594_v47 = vld [vmem:[#allocation18 + $0x1600] sm:$0xff]  ;;  %v12982_v49 = vcombine.high %v3658_v38, %v3666_v35 }
 0x414   :  { %9243 = vmatprep.subr.bf16.mxu1 %v13078_v50  ;;  %v3906_v50 = vld [vmem:[#allocation18 + $0x1fc0] sm:$0xff]  ;;  %v12918_v36 = vcombine.high %v3594_v47, %v3602_v48  ;;  %v12917_v61 = vcombine.low %v3594_v47, %v3602_v48 }
 0x415   :  { %v13222_v58 = vcombine.high %v3898_v37, %v3906_v50  ;;  %v3866_v6 = vld [vmem:[#allocation18 + $0x1e80] sm:$0xff] }
 0x416   :  { %9209 = vmatpush1.bf16.msra.mxu0 %v12773_v54  ;;  %v12981_v54 = vcombine.low %v3658_v38, %v3666_v35  ;;  %v3850_v15 = vld [vmem:[#allocation18 + $0x1e00] sm:$0xff]  ;;  %v14370_v38 = vsub.s32 4, %v14270_v40 }
 0x417   :  { %9210 = vmatprep.subr.bf16.mxu0 %v12758_v39  ;;  %9244 = vmatpush1.bf16.msra.mxu1 %v13077_v57  ;;  %v3578_v39 = vld [vmem:[#allocation18 + $0x1580] sm:$0xff] }
 0x418   :  { %9245 = vmatprep.subr.bf16.mxu1 %v13062_v60  ;;  %v3586_v57 = vld [vmem:[#allocation18 + $0x15c0] sm:$0xff] }
 0x419   :  { %v3890_v60 = vld [vmem:[#allocation18 + $0x1f40] sm:$0xff]  ;;  %v12902_v62 = vcombine.high %v3578_v39, %v3586_v57  ;;  %v12901_v9 = vcombine.low %v3578_v39, %v3586_v57 }
 0x41a   :  { %9211 = vmatpush1.bf16.msra.mxu0 %v12757_v63  ;;  %v13221_v63 = vcombine.low %v3898_v37, %v3906_v50  ;;  %v13206_v4 = vcombine.high %v3882_v59, %v3890_v60  ;;  %v3834_v23 = vld [vmem:[#allocation18 + $0x1d80] sm:$0xff]  ;;  %v1227_v37 = vrot.slane %v14312_v27, %v14370_v38 }
 0x41b   :  { %9212 = vmatprep.subr.bf16.mxu0 %v12742_v0  ;;  %9246 = vmatpush1.bf16.msra.mxu1 %v13061_v2  ;;  %v3562_v0 = vld [vmem:[#allocation18 + $0x1500] sm:$0xff] }
 0x41c   :  { %9247 = vmatprep.subr.bf16.mxu1 %v13046_v8  ;;  %v3570_v2 = vld [vmem:[#allocation18 + $0x1540] sm:$0xff] }
 0x41d   :  { %v3874_v8 = vld [vmem:[#allocation18 + $0x1ec0] sm:$0xff]  ;;  %v12886_v10 = vcombine.high %v3562_v0, %v3570_v2  ;;  %v12885_v17 = vcombine.low %v3562_v0, %v3570_v2 }
 0x41e   :  { %9213 = vmatpush1.bf16.msra.mxu0 %v12741_v11  ;;  %v13205_v11 = vcombine.low %v3882_v59, %v3890_v60  ;;  %v13190_v14 = vcombine.high %v3866_v6, %v3874_v8  ;;  %v3818_v32 = vld [vmem:[#allocation18 + $0x1d00] sm:$0xff] }
 0x41f   :  { %9214 = vmatprep.subr.bf16.mxu0 %v12726_v12  ;;  %9248 = vmatpush1.bf16.msra.mxu1 %v13045_v13  ;;  %v3546_v12 = vld [vmem:[#allocation18 + $0x1480] sm:$0xff] }
 0x420   :  { %9249 = vmatprep.subr.bf16.mxu1 %v13030_v16  ;;  %v3554_v13 = vld [vmem:[#allocation18 + $0x14c0] sm:$0xff] }
 0x421   :  { %v3858_v16 = vld [vmem:[#allocation18 + $0x1e40] sm:$0xff]  ;;  %v12870_v18 = vcombine.high %v3546_v12, %v3554_v13  ;;  %v12869_v25 = vcombine.low %v3546_v12, %v3554_v13  ;;  %v12584_v13 = vcombine.high %v14357_v51, %v14359_v52 }
 0x422   :  { %9215 = vmatpush1.bf16.msra.mxu0 %v12725_v19  ;;  %v13189_v19 = vcombine.low %v3866_v6, %v3874_v8  ;;  %v13174_v22 = vcombine.high %v3850_v15, %v3858_v16  ;;  %v3802_v48 = vld [vmem:[#allocation18 + $0x1c80] sm:$0xff] }
 0x423   :  { %9216 = vmatprep.subr.bf16.mxu0 %v12966_v20  ;;  %9250 = vmatpush1.bf16.msra.mxu1 %v13029_v21  ;;  %v3530_v20 = vld [vmem:[#allocation18 + $0x1400] sm:$0xff] }
 0x424   :  { %9251 = vmatprep.subr.bf16.mxu1 %v13014_v24  ;;  %v3538_v21 = vld [vmem:[#allocation18 + $0x1440] sm:$0xff] }
 0x425   :  { %v3842_v24 = vld [vmem:[#allocation18 + $0x1dc0] sm:$0xff]  ;;  %v12854_v26 = vcombine.high %v3530_v20, %v3538_v21  ;;  %v12853_v35 = vcombine.low %v3530_v20, %v3538_v21 }
 0x426   :  { %9217 = vmatpush2.bf16.msra.mxu0 %v12965_v28  ;;  %v13173_v28 = vcombine.low %v3850_v15, %v3858_v16  ;;  %v13158_v30 = vcombine.high %v3834_v23, %v3842_v24  ;;  %v3786_v39 = vld [vmem:[#allocation18 + $0x1c00] sm:$0xff]  ;;  %v2987_v15 = vld [vmem:[#allocation18 + $0x308] sm:$0xff] }
 0x427   :  { %9218 = vmatprep.subr.bf16.mxu0 %v12950_v29  ;;  %9252 = vmatpush1.bf16.msra.mxu1 %v13013_v31  ;;  %v14365_v29 = vld [vmem:[#allocation18 + $0x388] sm:$0xff]  ;;  %v3794_v57 = vld [vmem:[#allocation18 + $0x1c40] sm:$0xff] }
 0x428   :  { %9253 = vmatprep.subr.bf16.mxu1 %v12998_v33  ;;  %v14367_v31 = vld [vmem:[#allocation18 + $0x3c8] sm:$0xff]  ;;  %v3826_v33 = vld [vmem:[#allocation18 + $0x1d40] sm:$0xff]  ;;  %v13110_v2 = vcombine.high %v3786_v39, %v3794_v57 }
 0x429   :  { %v13142_v47 = vcombine.high %v3818_v32, %v3826_v33  ;;  %v13141_v50 = vcombine.low %v3818_v32, %v3826_v33  ;;  %v2995_v16 = vld [vmem:[#allocation18 + $0x348] sm:$0xff] }
 0x42a   :  { %9219 = vmatpush2.bf16.msra.mxu0 %v12949_v42  ;;  %v12328_v42 = vcombine.high %v14365_v29, %v14367_v31  ;;  %v12312_v21 = vcombine.high %v2987_v15, %v2995_v16  ;;  %v2947_v32 = vld [vmem:[#allocation18 + $0x1c8] sm:$0xff] }
 0x42b   :  { %9220 = vmatprep.subr.bf16.mxu0 %v12934_v44  ;;  %9254 = vmatpush1.bf16.msra.mxu1 %v12997_v45  ;;  %v13157_v44 = vcombine.low %v3834_v23, %v3842_v24  ;;  %v14375_v45 = vsub.s32 5, %v14270_v40  ;;  %v2979_v23 = vld [vmem:[#allocation18 + $0x2c8] sm:$0xff]  ;;  %v12311_v24 = vcombine.low %v2987_v15, %v2995_v16 }
 0x42c   :  { %9255 = vmatprep.subr.bf16.mxu1 %v12982_v49  ;;  %v3810_v49 = vld [vmem:[#allocation18 + $0x1cc0] sm:$0xff] }
 0x42e   :  { %9221 = vmatpush2.bf16.msra.mxu0 %v12933_v53  ;;  %v1231_v53 = vrot.slane %v14312_v27, %v14375_v45 }
 0x42f   :  { %9222 = vmatprep.subr.bf16.mxu0 %v12918_v36  ;;  %9256 = vmatpush1.bf16.msra.mxu1 %v12981_v54  ;;  %v13126_v36 = vcombine.high %v3802_v48, %v3810_v49 }
 0x430   :  { %9257 = vmatprep.subr.bf16.mxu1 %v13222_v58 }
 0x432   :  { %9223 = vmatpush2.bf16.msra.mxu0 %v12917_v61  ;;  %v13125_v61 = vcombine.low %v3802_v48, %v3810_v49  ;;  %v2907_v49 = vld [vmem:[#allocation18 + $0x88] sm:$0xff] }
 0x433   :  { %9224 = vmatprep.subr.bf16.mxu0 %v12902_v62  ;;  %9258 = vmatpush2.bf16.msra.mxu1 %v13221_v63 }
 0x434   :  { %9259 = vmatprep.subr.bf16.mxu1 %v13206_v4 }
 0x436   :  { %9225 = vmatpush2.bf16.msra.mxu0 %v12901_v9 }
 0x437   :  { %9226 = vmatprep.subr.bf16.mxu0 %v12886_v10  ;;  %9260 = vmatpush2.bf16.msra.mxu1 %v13205_v11  ;;  %v13109_v10 = vcombine.low %v3786_v39, %v3794_v57 }
 0x438   :  { %9261 = vmatprep.subr.bf16.mxu1 %v13190_v14 }
 0x43a   :  { %9227 = vmatpush2.bf16.msra.mxu0 %v12885_v17 }
 0x43b   :  { %9228 = vmatprep.subr.bf16.mxu0 %v12870_v18  ;;  %9262 = vmatpush2.bf16.msra.mxu1 %v13189_v19  ;;  %v12327_v19 = vcombine.low %v14365_v29, %v14367_v31 }
 0x43c   :  { %9263 = vmatprep.subr.bf16.mxu1 %v13174_v22  ;;  %v2971_v22 = vld [vmem:[#allocation18 + $0x288] sm:$0xff] }
 0x43d   :  { %v12295_v29 = vcombine.low %v2971_v22, %v2979_v23 }
 0x43e   :  { %9229 = vmatpush2.bf16.msra.mxu0 %v12869_v25  ;;  %v12296_v25 = vcombine.high %v2971_v22, %v2979_v23 }
 0x43f   :  { %9230 = vmatprep.subr.bf16.mxu0 %v12854_v26  ;;  %9264 = vmatpush2.bf16.msra.mxu1 %v13173_v28  ;;  %v2955_v26 = vld [vmem:[#allocation18 + $0x208] sm:$0xff] }
 0x440   :  { %9265 = vmatprep.subr.bf16.mxu1 %v13158_v30  ;;  %v2963_v28 = vld [vmem:[#allocation18 + $0x248] sm:$0xff] }
 0x441   :  { %v12280_v31 = vcombine.high %v2955_v26, %v2963_v28  ;;  %v2939_v30 = vld [vmem:[#allocation18 + $0x188] sm:$0xff]  ;;  %v12279_v33 = vcombine.low %v2955_v26, %v2963_v28  ;;  %v13830_v28 = vld [vmem:[#allocation16] sm:$0xff] }
 0x442   :  { %9231 = vmatpush2.bf16.msra.mxu0 %v12853_v35  ;;  %v12264_v35 = vcombine.high %v2939_v30, %v2947_v32  ;;  %v3043_v26 = vld [vmem:[#allocation18 + $0x4c8] sm:$0xff] }
 0x443   :  { %9282 = vmatprep.subr.bf16.mxu0 %v12328_v42  ;;  %9266 = vmatpush2.bf16.msra.mxu1 %v13157_v44  ;;  %v2923_v42 = vld [vmem:[#allocation18 + $0x108] sm:$0xff] }
 0x444   :  { %9267 = vmatprep.subr.bf16.mxu1 %v13142_v47  ;;  %v2931_v44 = vld [vmem:[#allocation18 + $0x148] sm:$0xff]  ;;  %v12263_v47 = vcombine.low %v2939_v30, %v2947_v32 }
 0x445   :  { %v2726_v54 = vpop.f32.mrf.mxu0  ;;  %v12248_v48 = vcombine.high %v2923_v42, %v2931_v44 }
 0x446   :  { %v2727_v58 = vadd.f32 %v2726_v54, %v1227_v37  ;;  %v2767_v59 = vpop.f32.mrf.mxu1  ;;  %v2915_v37 = vld [vmem:[#allocation18 + $0xc8] sm:$0xff] }
 0x447   :  { %v2728_v60 = vpop.f32.mrf.mxu0  ;;  %9268 = vmatpush2.bf16.msra.mxu1 %v13141_v50  ;;  %v12247_v50 = vcombine.low %v2923_v42, %v2931_v44  ;;  %v2899_v54 = vld [vmem:[#allocation18 + $0x48] sm:$0xff]  ;;  %v12231_v39 = vcombine.low %v2907_v49, %v2915_v37 }
 0x448   :  { %v2768_v62 = vadd.f32 %v2767_v59, %v2727_v58  ;;  %v2729_v63 = vadd.f32 %v2728_v60, %v1231_v53  ;;  %v2769_v0 = vpop.f32.mrf.mxu1  ;;  %9269 = vmatprep.subr.bf16.mxu1 %v13126_v36  ;;  %v12232_v53 = vcombine.high %v2907_v49, %v2915_v37  ;;  %v2891_v36 = vld [vmem:[#allocation18 + $0x8] sm:$0xff] }
 0x449   :  { %v2730_v4 = vpop.f32.mrf.mxu0  ;;  %v12216_v57 = vcombine.high %v2891_v36, %v2899_v54  ;;  %v3131_v58 = vld [vmem:[#allocation18 + $0x788] sm:$0xff]  ;;  %v12215_v60 = vcombine.low %v2891_v36, %v2899_v54 }
 0x44a   :  { %vm2861_vm13 = vcmp.gt.f32.partialorder %v2768_v62, 0.0  ;;  %v2870_v6 = vmul.f32 %v14325_v56, %v2768_v62  ;;  %v2770_v27 = vadd.f32 %v2769_v0, %v2729_v63  ;;  %v2771_v8 = vpop.f32.mrf.mxu1  ;;  %v3139_v59 = vld [vmem:[#allocation18 + $0x7c8] sm:$0xff] }
 0x44b   :  { %v2731_v9 = vpop.f32.mrf.mxu0  ;;  %9270 = vmatpush2.bf16.msra.mxu1 %v13125_v61  ;;  %v12456_v61 = vcombine.high %v3131_v58, %v3139_v59  ;;  %v3123_v63 = vld [vmem:[#allocation18 + $0x748] sm:$0xff]  ;;  %v12455_v0 = vcombine.low %v3131_v58, %v3139_v59 }
 0x44c   :  { %vm2862_vm14 = vcmp.gt.f32.partialorder %v2770_v27, 0.0  ;;  %v2871_v11 = vmul.f32 %v14325_v56, %v2770_v27  ;;  %v2772_v12 = vpop.f32.mrf.mxu1  ;;  %9271 = vmatprep.subr.bf16.mxu1 %v13110_v2  ;;  %v2878_v14 = vsel %vm2861_vm13, %v2768_v62, %v2870_v6  ;;  %v3115_v62 = vld [vmem:[#allocation18 + $0x708] sm:$0xff] }
 0x44d   :  { %v14389_v20 = vpack.c.bf16 %v2878_v14, %v2878_v14  ;;  %v12440_v2 = vcombine.high %v3115_v62, %v3123_v63  ;;  %v3099_v4 = vld [vmem:[#allocation18 + $0x688] sm:$0xff] }
 0x44e   :  { %v2879_v17 = vsel %vm2862_vm14, %v2770_v27, %v2871_v11  ;;  %v3107_v6 = vld [vmem:[#allocation18 + $0x6c8] sm:$0xff]  ;;  %v12439_v27 = vcombine.low %v3115_v62, %v3123_v63 }
 0x44f   :  { %v14385_v18 = vpack.c.bf16 %v2879_v17, %v2879_v17  ;;  %9272 = vmatpush2.bf16.msra.mxu1 %v13109_v10  ;;  %v12424_v8 = vcombine.high %v3099_v4, %v3107_v6  ;;  %v3083_v9 = vld [vmem:[#allocation18 + $0x608] sm:$0xff]  ;;  %v12423_v11 = vcombine.low %v3099_v4, %v3107_v6 }
 0x450   :  { %9323 = vmatprep.subr.bf16.mxu1 %v12584_v13  ;;  %v3091_v10 = vld [vmem:[#allocation18 + $0x648] sm:$0xff] }
 0x451   :  { %9232 = vmatprep.mubr.bf16.mxu0 %v14385_v18  ;;  %v12408_v12 = vcombine.high %v3083_v9, %v3091_v10  ;;  %v3067_v13 = vld [vmem:[#allocation18 + $0x588] sm:$0xff]  ;;  %v12407_v15 = vcombine.low %v3083_v9, %v3091_v10 }
 0x452   :  { %9233 = vmatmul.mubr.bf16.vlgmr.msra.gmra.mxu0 %v14389_v20  ;;  %v3075_v14 = vld [vmem:[#allocation18 + $0x5c8] sm:$0xff] }
 0x453   :  { %9283 = vmatpush1.bf16.msra.mxu0 %v12327_v19  ;;  %9314 = vmatprep.mubr.bf16.mxu0 %v14328_v7  ;;  %v12392_v16 = vcombine.high %v3067_v13, %v3075_v14  ;;  %v3051_v17 = vld [vmem:[#allocation18 + $0x508] sm:$0xff]  ;;  %v12391_v22 = vcombine.low %v3067_v13, %v3075_v14 }
 0x454   :  { %9284 = vmatprep.subr.bf16.mxu0 %v12312_v21  ;;  %v3059_v19 = vld [vmem:[#allocation18 + $0x548] sm:$0xff]  ;;  %v14395_v21 = vsub.s32 6, %v14270_v40 }
 0x455   :  { %v12376_v23 = vcombine.high %v3051_v17, %v3059_v19  ;;  %v3027_v42 = vld [vmem:[#allocation18 + $0x448] sm:$0xff] }
 0x456   :  { %v3515_v54 = vld [vmem:[#allocation18 + $0x1388] sm:$0xff] }
 0x457   :  { %9285 = vmatpush1.bf16.msra.mxu0 %v12311_v24  ;;  %v14398_v24 = vsub.s32 7, %v14270_v40  ;;  %v3243_v4 = vld [vmem:[#allocation18 + $0xb08] sm:$0xff] }
 0x458   :  { %9286 = vmatprep.subr.bf16.mxu0 %v12296_v25  ;;  %v3035_v25 = vld [vmem:[#allocation18 + $0x488] sm:$0xff] }
 0x459   :  { %v1239_v30 = vrot.slane %v13830_v28, %v14398_v24  ;;  %v12360_v32 = vcombine.high %v3035_v25, %v3043_v26  ;;  %v12359_v40 = vcombine.low %v3035_v25, %v3043_v26  ;;  %v3507_v9 = vld [vmem:[#allocation18 + $0x1348] sm:$0xff] }
 0x45a   :  { %v3227_v13 = vld [vmem:[#allocation18 + $0xa88] sm:$0xff] }
 0x45b   :  { %9287 = vmatpush1.bf16.msra.mxu0 %v12295_v29  ;;  %v1235_v29 = vrot.slane %v13830_v28, %v14395_v21  ;;  %v3211_v26 = vld [vmem:[#allocation18 + $0xa08] sm:$0xff] }
 0x45c   :  { %9288 = vmatprep.subr.bf16.mxu0 %v12280_v31  ;;  %v12375_v31 = vcombine.low %v3051_v17, %v3059_v19  ;;  %v3491_v17 = vld [vmem:[#allocation18 + $0x12c8] sm:$0xff] }
 0x45d   :  { %v3219_v28 = vld [vmem:[#allocation18 + $0xa48] sm:$0xff] }
 0x45e   :  { %v12536_v52 = vcombine.high %v3211_v26, %v3219_v28 }
 0x45f   :  { %9289 = vmatpush1.bf16.msra.mxu0 %v12279_v33 }
 0x460   :  { %9290 = vmatprep.subr.bf16.mxu0 %v12264_v35  ;;  %v3019_v35 = vld [vmem:[#allocation18 + $0x408] sm:$0xff] }
 0x463   :  { %9291 = vmatpush1.bf16.msra.mxu0 %v12263_v47 }
 0x464   :  { %9292 = vmatprep.subr.bf16.mxu0 %v12248_v48 }
 0x467   :  { %9293 = vmatpush1.bf16.msra.mxu0 %v12247_v50 }
 0x468   :  { %9294 = vmatprep.subr.bf16.mxu0 %v12232_v53  ;;  %v12344_v53 = vcombine.high %v3019_v35, %v3027_v42 }
 0x46b   :  { %9295 = vmatpush1.bf16.msra.mxu0 %v12231_v39  ;;  %v3523_v39 = vld [vmem:[#allocation18 + $0x13c8] sm:$0xff] }
 0x46c   :  { %9296 = vmatprep.subr.bf16.mxu0 %v12216_v57 }
 0x46f   :  { %9297 = vmatpush1.bf16.msra.mxu0 %v12215_v60 }
 0x470   :  { %9298 = vmatprep.subr.bf16.mxu0 %v12456_v61  ;;  %v12343_v61 = vcombine.low %v3019_v35, %v3027_v42  ;;  %v3451_v35 = vld [vmem:[#allocation18 + $0x1188] sm:$0xff] }
 0x471   :  { %v3459_v42 = vld [vmem:[#allocation18 + $0x11c8] sm:$0xff] }
 0x473   :  { %9299 = vmatpush2.bf16.msra.mxu0 %v12455_v0  ;;  %v12840_v0 = vcombine.high %v3515_v54, %v3523_v39 }
 0x474   :  { %9300 = vmatprep.subr.bf16.mxu0 %v12440_v2 }
 0x477   :  { %9301 = vmatpush2.bf16.msra.mxu0 %v12439_v27  ;;  %v3251_v27 = vld [vmem:[#allocation18 + $0xb48] sm:$0xff] }
 0x478   :  { %9302 = vmatprep.subr.bf16.mxu0 %v12424_v8  ;;  %v3499_v8 = vld [vmem:[#allocation18 + $0x1308] sm:$0xff]  ;;  %v12567_v19 = vcombine.low %v3243_v4, %v3251_v27 }
 0x479   :  { %v12824_v14 = vcombine.high %v3499_v8, %v3507_v9 }
 0x47b   :  { %9303 = vmatpush2.bf16.msra.mxu0 %v12423_v11  ;;  %v12839_v11 = vcombine.low %v3515_v54, %v3523_v39  ;;  %v12775_v54 = vcombine.low %v3451_v35, %v3459_v42 }
 0x47c   :  { %9304 = vmatprep.subr.bf16.mxu0 %v12408_v12 }
 0x47f   :  { %9305 = vmatpush2.bf16.msra.mxu0 %v12407_v15  ;;  %v3235_v15 = vld [vmem:[#allocation18 + $0xac8] sm:$0xff] }
 0x480   :  { %9306 = vmatprep.subr.bf16.mxu0 %v12392_v16  ;;  %v3483_v16 = vld [vmem:[#allocation18 + $0x1288] sm:$0xff] }
 0x481   :  { %v12808_v25 = vcombine.high %v3483_v16, %v3491_v17  ;;  %v12807_v51 = vcombine.low %v3483_v16, %v3491_v17  ;;  %v3643_v16 = vld [vmem:[#allocation18 + $0x1788] sm:$0xff] }
 0x482   :  { %v3651_v17 = vld [vmem:[#allocation18 + $0x17c8] sm:$0xff] }
 0x483   :  { %9307 = vmatpush2.bf16.msra.mxu0 %v12391_v22  ;;  %v12823_v22 = vcombine.low %v3499_v8, %v3507_v9  ;;  %v3411_v8 = vld [vmem:[#allocation18 + $0x1048] sm:$0xff] }
 0x484   :  { %9308 = vmatprep.subr.bf16.mxu0 %v12376_v23  ;;  %v12552_v23 = vcombine.high %v3227_v13, %v3235_v15 }
 0x485   :  { %v2808_v33 = vpop.f32.mrf.mxu0 }
 0x486   :  { %v2809_v44 = vadd.f32 %v2808_v33, %v1235_v29  ;;  %v2849_v47 = vpop.f32.mrf.mxu1  ;;  %v3467_v29 = vld [vmem:[#allocation18 + $0x1208] sm:$0xff] }
 0x487   :  { %9309 = vmatpush2.bf16.msra.mxu0 %v12375_v31  ;;  %v2810_v48 = vpop.f32.mrf.mxu0  ;;  %v3475_v31 = vld [vmem:[#allocation18 + $0x1248] sm:$0xff] }
 0x488   :  { %v2850_v49 = vadd.f32 %v2849_v47, %v2809_v44  ;;  %v2811_v37 = vadd.f32 %v2810_v48, %v1239_v30  ;;  %v2851_v50 = vpop.f32.mrf.mxu1  ;;  %9310 = vmatprep.subr.bf16.mxu0 %v12360_v32  ;;  %v12551_v30 = vcombine.low %v3227_v13, %v3235_v15  ;;  %v3195_v32 = vld [vmem:[#allocation18 + $0x988] sm:$0xff]  ;;  %v12535_v44 = vcombine.low %v3211_v26, %v3219_v28 }
 0x489   :  { %v2812_v36 = vpop.f32.mrf.mxu0  ;;  %v3203_v33 = vld [vmem:[#allocation18 + $0x9c8] sm:$0xff]  ;;  %v12791_v47 = vcombine.low %v3467_v29, %v3475_v31 }
 0x48a   :  { %vm2863_vm15 = vcmp.gt.f32.partialorder %v2850_v49, 0.0  ;;  %v2872_v57 = vmul.f32 %v14325_v56, %v2850_v49  ;;  %v2852_v58 = vadd.f32 %v2851_v50, %v2811_v37  ;;  %v2853_v59 = vpop.f32.mrf.mxu1  ;;  %v12520_v48 = vcombine.high %v3195_v32, %v3203_v33  ;;  %v3187_v37 = vld [vmem:[#allocation18 + $0x948] sm:$0xff] }
 0x48b   :  { %9311 = vmatpush2.bf16.msra.mxu0 %v12359_v40  ;;  %v2813_v60 = vpop.f32.mrf.mxu0  ;;  %v12776_v40 = vcombine.high %v3451_v35, %v3459_v42  ;;  %v3435_v50 = vld [vmem:[#allocation18 + $0x1108] sm:$0xff]  ;;  %v12519_v36 = vcombine.low %v3195_v32, %v3203_v33 }
 0x48c   :  { %vm2864_vm0 = vcmp.gt.f32.partialorder %v2852_v58, 0.0  ;;  %v2873_v62 = vmul.f32 %v14325_v56, %v2852_v58  ;;  %v2854_v63 = vpop.f32.mrf.mxu1  ;;  %9312 = vmatprep.subr.bf16.mxu0 %v12344_v53  ;;  %v2880_v2 = vsel %vm2863_vm15, %v2850_v49, %v2872_v57  ;;  %v12568_v56 = vcombine.high %v3243_v4, %v3251_v27  ;;  %v3179_v49 = vld [vmem:[#allocation18 + $0x908] sm:$0xff] }
 0x48d   :  { %v14406_v12 = vpack.c.bf16 %v2880_v2, %v2880_v2  ;;  %v3443_v53 = vld [vmem:[#allocation18 + $0x1148] sm:$0xff]  ;;  %v12504_v39 = vcombine.high %v3179_v49, %v3187_v37 }
 0x48e   :  { %v2881_v6 = vsel %vm2864_vm0, %v2852_v58, %v2873_v62  ;;  %v12760_v57 = vcombine.high %v3435_v50, %v3443_v53  ;;  %v3163_v58 = vld [vmem:[#allocation18 + $0x888] sm:$0xff]  ;;  %v12503_v62 = vcombine.low %v3179_v49, %v3187_v37  ;;  %v12759_v63 = vcombine.low %v3435_v50, %v3443_v53 }
 0x48f   :  { %v14404_v10 = vpack.c.bf16 %v2881_v6, %v2881_v6  ;;  %9313 = vmatpush2.bf16.msra.mxu0 %v12343_v61  ;;  %v3171_v59 = vld [vmem:[#allocation18 + $0x8c8] sm:$0xff] }
 0x490   :  { %9364 = vmatprep.subr.bf16.mxu0 %v12840_v0  ;;  %v3419_v60 = vld [vmem:[#allocation18 + $0x1088] sm:$0xff]  ;;  %v12488_v0 = vcombine.high %v3163_v58, %v3171_v59  ;;  %v12487_v9 = vcombine.low %v3163_v58, %v3171_v59 }
 0x491   :  { %9273 = vmatprep.mubr.bf16.mxu1 %v14404_v10  ;;  %v3427_v61 = vld [vmem:[#allocation18 + $0x10c8] sm:$0xff] }
 0x492   :  { %9315 = vmatmul.mubr.bf16.vlgmr.msra.gmra.mxu0 %v14344_v5  ;;  %9274 = vmatmul.mubr.bf16.vlgmr.msra.gmra.mxu1 %v14406_v12  ;;  %v12744_v2 = vcombine.high %v3419_v60, %v3427_v61  ;;  %v3147_v4 = vld [vmem:[#allocation18 + $0x808] sm:$0xff] }
 0x493   :  { %9324 = vmatpush1.bf16.msra.mxu1 %v12583_v55  ;;  %9365 = vmatpush1.bf16.msra.mxu0 %v12839_v11  ;;  %v12792_v55 = vcombine.high %v3467_v29, %v3475_v31  ;;  %v3155_v6 = vld [vmem:[#allocation18 + $0x848] sm:$0xff]  ;;  %v12743_v11 = vcombine.low %v3419_v60, %v3427_v61 }
 0x494   :  { %9396 = vmatprep.mubr.bf16.mxu0 %v14385_v18  ;;  %9355 = vmatprep.mubr.bf16.mxu1 %v14351_v46  ;;  %v3403_v27 = vld [vmem:[#allocation18 + $0x1008] sm:$0xff]  ;;  %v12472_v13 = vcombine.high %v3147_v4, %v3155_v6 }
 0x495   :  { %9325 = vmatprep.subr.bf16.mxu1 %v12568_v56  ;;  %9366 = vmatprep.subr.bf16.mxu0 %v12824_v14  ;;  %v12728_v56 = vcombine.high %v3403_v27, %v3411_v8  ;;  %v3387_v14 = vld [vmem:[#allocation18 + $0xf88] sm:$0xff] }
 0x496   :  { %v3395_v15 = vld [vmem:[#allocation18 + $0xfc8] sm:$0xff] }
 0x497   :  { %9326 = vmatpush1.bf16.msra.mxu1 %v12567_v19  ;;  %9367 = vmatpush1.bf16.msra.mxu0 %v12823_v22  ;;  %v12471_v19 = vcombine.low %v3147_v4, %v3155_v6  ;;  %v12727_v22 = vcombine.low %v3403_v27, %v3411_v8  ;;  %v3371_v26 = vld [vmem:[#allocation18 + $0xf08] sm:$0xff] }
 0x498   :  { %9327 = vmatprep.subr.bf16.mxu1 %v12552_v23  ;;  %9368 = vmatprep.subr.bf16.mxu0 %v12808_v25  ;;  %v12712_v23 = vcombine.high %v3387_v14, %v3395_v15  ;;  %v12968_v25 = vcombine.high %v3643_v16, %v3651_v17  ;;  %v3379_v28 = vld [vmem:[#allocation18 + $0xf48] sm:$0xff] }
 0x499   :  { %v3627_v29 = vld [vmem:[#allocation18 + $0x1708] sm:$0xff] }
 0x49a   :  { %v3635_v31 = vld [vmem:[#allocation18 + $0x1748] sm:$0xff] }
 0x49b   :  { %9328 = vmatpush1.bf16.msra.mxu1 %v12551_v30  ;;  %9369 = vmatpush1.bf16.msra.mxu0 %v12807_v51  ;;  %v12711_v30 = vcombine.low %v3387_v14, %v3395_v15  ;;  %v12967_v51 = vcombine.low %v3643_v16, %v3651_v17  ;;  %v3355_v32 = vld [vmem:[#allocation18 + $0xe88] sm:$0xff] }
 0x49c   :  { %9329 = vmatprep.subr.bf16.mxu1 %v12536_v52  ;;  %9370 = vmatprep.subr.bf16.mxu0 %v12792_v55  ;;  %v12696_v52 = vcombine.high %v3371_v26, %v3379_v28  ;;  %v12952_v55 = vcombine.high %v3627_v29, %v3635_v31  ;;  %v3363_v33 = vld [vmem:[#allocation18 + $0xec8] sm:$0xff] }
 0x49d   :  { %v3611_v35 = vld [vmem:[#allocation18 + $0x1688] sm:$0xff] }
 0x49e   :  { %v3619_v42 = vld [vmem:[#allocation18 + $0x16c8] sm:$0xff] }
 0x49f   :  { %9330 = vmatpush1.bf16.msra.mxu1 %v12535_v44  ;;  %9371 = vmatpush1.bf16.msra.mxu0 %v12791_v47  ;;  %v12695_v44 = vcombine.low %v3371_v26, %v3379_v28  ;;  %v12951_v47 = vcombine.low %v3627_v29, %v3635_v31  ;;  %v3339_v49 = vld [vmem:[#allocation18 + $0xe08] sm:$0xff] }
 0x4a0   :  { %9331 = vmatprep.subr.bf16.mxu1 %v12520_v48  ;;  %9372 = vmatprep.subr.bf16.mxu0 %v12776_v40  ;;  %v12680_v48 = vcombine.high %v3355_v32, %v3363_v33  ;;  %v12936_v40 = vcombine.high %v3611_v35, %v3619_v42  ;;  %v3347_v37 = vld [vmem:[#allocation18 + $0xe48] sm:$0xff] }
 0x4a1   :  { %v3595_v50 = vld [vmem:[#allocation18 + $0x1608] sm:$0xff] }
 0x4a2   :  { %v3603_v53 = vld [vmem:[#allocation18 + $0x1648] sm:$0xff] }
 0x4a3   :  { %9332 = vmatpush1.bf16.msra.mxu1 %v12519_v36  ;;  %9373 = vmatpush1.bf16.msra.mxu0 %v12775_v54  ;;  %v12679_v36 = vcombine.low %v3355_v32, %v3363_v33  ;;  %v12935_v54 = vcombine.low %v3611_v35, %v3619_v42  ;;  %v3323_v58 = vld [vmem:[#allocation18 + $0xd88] sm:$0xff] }
 0x4a4   :  { %9333 = vmatprep.subr.bf16.mxu1 %v12504_v39  ;;  %9374 = vmatprep.subr.bf16.mxu0 %v12760_v57  ;;  %v12664_v39 = vcombine.high %v3339_v49, %v3347_v37  ;;  %v12920_v57 = vcombine.high %v3595_v50, %v3603_v53  ;;  %v3331_v59 = vld [vmem:[#allocation18 + $0xdc8] sm:$0xff] }
 0x4a5   :  { %v3579_v60 = vld [vmem:[#allocation18 + $0x1588] sm:$0xff] }
 0x4a6   :  { %v3587_v61 = vld [vmem:[#allocation18 + $0x15c8] sm:$0xff] }
 0x4a7   :  { %9334 = vmatpush1.bf16.msra.mxu1 %v12503_v62  ;;  %9375 = vmatpush1.bf16.msra.mxu0 %v12759_v63  ;;  %v12663_v62 = vcombine.low %v3339_v49, %v3347_v37  ;;  %v12919_v63 = vcombine.low %v3595_v50, %v3603_v53  ;;  %v3307_v4 = vld [vmem:[#allocation18 + $0xd08] sm:$0xff] }
 0x4a8   :  { %9335 = vmatprep.subr.bf16.mxu1 %v12488_v0  ;;  %9376 = vmatprep.subr.bf16.mxu0 %v12744_v2  ;;  %v12648_v0 = vcombine.high %v3323_v58, %v3331_v59  ;;  %v12904_v2 = vcombine.high %v3579_v60, %v3587_v61  ;;  %v3315_v6 = vld [vmem:[#allocation18 + $0xd48] sm:$0xff] }
 0x4a9   :  { %v3563_v27 = vld [vmem:[#allocation18 + $0x1508] sm:$0xff] }
 0x4aa   :  { %v3571_v8 = vld [vmem:[#allocation18 + $0x1548] sm:$0xff] }
 0x4ab   :  { %9336 = vmatpush1.bf16.msra.mxu1 %v12487_v9  ;;  %9377 = vmatpush1.bf16.msra.mxu0 %v12743_v11  ;;  %v12647_v9 = vcombine.low %v3323_v58, %v3331_v59  ;;  %v12903_v11 = vcombine.low %v3579_v60, %v3587_v61  ;;  %v3291_v14 = vld [vmem:[#allocation18 + $0xc88] sm:$0xff]  ;;  %v2988_v58 = vld [vmem:[#allocation18 + $0x310] sm:$0xff] }
 0x4ac   :  { %9337 = vmatprep.subr.bf16.mxu1 %v12472_v13  ;;  %9378 = vmatprep.subr.bf16.mxu0 %v12728_v56  ;;  %v12632_v13 = vcombine.high %v3307_v4, %v3315_v6  ;;  %v12888_v56 = vcombine.high %v3563_v27, %v3571_v8  ;;  %v3299_v15 = vld [vmem:[#allocation18 + $0xcc8] sm:$0xff]  ;;  %v2996_v59 = vld [vmem:[#allocation18 + $0x350] sm:$0xff] }
 0x4ad   :  { %v3547_v16 = vld [vmem:[#allocation18 + $0x1488] sm:$0xff] }
 0x4ae   :  { %v3555_v17 = vld [vmem:[#allocation18 + $0x14c8] sm:$0xff] }
 0x4af   :  { %9338 = vmatpush1.bf16.msra.mxu1 %v12471_v19  ;;  %9379 = vmatpush1.bf16.msra.mxu0 %v12727_v22  ;;  %v12631_v19 = vcombine.low %v3307_v4, %v3315_v6  ;;  %v12887_v22 = vcombine.low %v3563_v27, %v3571_v8  ;;  %v3275_v26 = vld [vmem:[#allocation18 + $0xc08] sm:$0xff]  ;;  %v2972_v8 = vld [vmem:[#allocation18 + $0x290] sm:$0xff] }
 0x4b0   :  { %9339 = vmatprep.subr.bf16.mxu1 %v12712_v23  ;;  %9380 = vmatprep.subr.bf16.mxu0 %v12968_v25  ;;  %v12616_v23 = vcombine.high %v3291_v14, %v3299_v15  ;;  %v12872_v25 = vcombine.high %v3547_v16, %v3555_v17  ;;  %v3283_v29 = vld [vmem:[#allocation18 + $0xc48] sm:$0xff] }
 0x4b1   :  { %v3531_v31 = vld [vmem:[#allocation18 + $0x1408] sm:$0xff]  ;;  %v12600_v32 = vcombine.high %v3275_v26, %v3283_v29  ;;  %v12599_v37 = vcombine.low %v3275_v26, %v3283_v29  ;;  %v2956_v26 = vld [vmem:[#allocation18 + $0x210] sm:$0xff] }
 0x4b2   :  { %v3771_v35 = vld [vmem:[#allocation18 + $0x1b88] sm:$0xff] }
 0x4b3   :  { %9340 = vmatpush2.bf16.msra.mxu1 %v12711_v30  ;;  %9381 = vmatpush2.bf16.msra.mxu0 %v12967_v51  ;;  %v3539_v30 = vld [vmem:[#allocation18 + $0x1448] sm:$0xff] }
 0x4b4   :  { %9341 = vmatprep.subr.bf16.mxu1 %v12696_v52  ;;  %9382 = vmatprep.subr.bf16.mxu0 %v12952_v55  ;;  %v12615_v52 = vcombine.low %v3291_v14, %v3299_v15  ;;  %v12871_v55 = vcombine.low %v3547_v16, %v3555_v17  ;;  %v12856_v33 = vcombine.high %v3531_v31, %v3539_v30  ;;  %v3739_v4 = vld [vmem:[#allocation18 + $0x1a88] sm:$0xff] }
 0x4b5   :  { %v12855_v50 = vcombine.low %v3531_v31, %v3539_v30  ;;  %v3747_v6 = vld [vmem:[#allocation18 + $0x1ac8] sm:$0xff]  ;;  %v12313_v15 = vcombine.low %v2988_v58, %v2996_v59 }
 0x4b6   :  { %v13064_v16 = vcombine.high %v3739_v4, %v3747_v6  ;;  %v13063_v29 = vcombine.low %v3739_v4, %v3747_v6  ;;  %v3667_v4 = vld [vmem:[#allocation18 + $0x1848] sm:$0xff]  ;;  %v2892_v6 = vld [vmem:[#allocation18 + $0x10] sm:$0xff] }
 0x4b7   :  { %9342 = vmatpush2.bf16.msra.mxu1 %v12695_v44  ;;  %9383 = vmatpush2.bf16.msra.mxu0 %v12951_v47  ;;  %v3779_v44 = vld [vmem:[#allocation18 + $0x1bc8] sm:$0xff]  ;;  %v3004_v47 = vld [vmem:[#allocation18 + $0x390] sm:$0xff] }
 0x4b8   :  { %9343 = vmatprep.subr.bf16.mxu1 %v12680_v48  ;;  %9384 = vmatprep.subr.bf16.mxu0 %v12936_v40  ;;  %v3012_v48 = vld [vmem:[#allocation18 + $0x3d0] sm:$0xff]  ;;  %v3914_v40 = vld [vmem:[#allocation19] sm:$0xff]  ;;  %v13096_v53 = vcombine.high %v3771_v35, %v3779_v44  ;;  %v13095_v61 = vcombine.low %v3771_v35, %v3779_v44 }
 0x4b9   :  { %v3925_v60 = vrot.slane %v3914_v40, %v14276_v43  ;;  %v2948_v35 = vld [vmem:[#allocation18 + $0x1d0] sm:$0xff] }
 0x4bb   :  { %9344 = vmatpush2.bf16.msra.mxu1 %v12679_v36  ;;  %9385 = vmatpush2.bf16.msra.mxu0 %v12935_v54  ;;  %v12330_v36 = vcombine.high %v3004_v47, %v3012_v48  ;;  %v3921_v54 = vrot.slane %v3914_v40, %v14273_v41  ;;  %v3691_v40 = vld [vmem:[#allocation18 + $0x1908] sm:$0xff] }
 0x4bc   :  { %9345 = vmatprep.subr.bf16.mxu1 %v12664_v39  ;;  %9386 = vmatprep.subr.bf16.mxu0 %v12920_v57  ;;  %v3755_v39 = vld [vmem:[#allocation18 + $0x1b08] sm:$0xff] }
 0x4bd   :  { %v3763_v57 = vld [vmem:[#allocation18 + $0x1b48] sm:$0xff] }
 0x4bf   :  { %9346 = vmatpush2.bf16.msra.mxu1 %v12663_v62  ;;  %9387 = vmatpush2.bf16.msra.mxu0 %v12919_v63  ;;  %v12329_v62 = vcombine.low %v3004_v47, %v3012_v48 }
 0x4c0   :  { %9347 = vmatprep.subr.bf16.mxu1 %v12648_v0  ;;  %9388 = vmatprep.subr.bf16.mxu0 %v12904_v2  ;;  %v13080_v0 = vcombine.high %v3755_v39, %v3763_v57  ;;  %v12314_v2 = vcombine.high %v2988_v58, %v2996_v59  ;;  %v3683_v58 = vld [vmem:[#allocation18 + $0x18c8] sm:$0xff]  ;;  %v2908_v59 = vld [vmem:[#allocation18 + $0x90] sm:$0xff] }
 0x4c3   :  { %9348 = vmatpush2.bf16.msra.mxu1 %v12647_v9  ;;  %9389 = vmatpush2.bf16.msra.mxu0 %v12903_v11  ;;  %v2980_v9 = vld [vmem:[#allocation18 + $0x2d0] sm:$0xff] }
 0x4c4   :  { %9349 = vmatprep.subr.bf16.mxu1 %v12632_v13  ;;  %9390 = vmatprep.subr.bf16.mxu0 %v12888_v56  ;;  %v13079_v56 = vcombine.low %v3755_v39, %v3763_v57  ;;  %v12297_v30 = vcombine.low %v2972_v8, %v2980_v9  ;;  %v3675_v57 = vld [vmem:[#allocation18 + $0x1888] sm:$0xff] }
 0x4c5   :  { %v9152_v28 = vpop.f32.mrf.mxu0 }
 0x4c6   :  { %v9153_v63 = vadd.f32 %v9152_v28, %v3921_v54  ;;  %v2964_v28 = vld [vmem:[#allocation18 + $0x250] sm:$0xff] }
 0x4c7   :  { %9350 = vmatpush2.bf16.msra.mxu1 %v12631_v19  ;;  %9391 = vmatpush2.bf16.msra.mxu0 %v12887_v22  ;;  %v9154_v51 = vpop.f32.mrf.mxu0  ;;  %v12298_v19 = vcombine.high %v2972_v8, %v2980_v9  ;;  %v3723_v22 = vld [vmem:[#allocation18 + $0x1a08] sm:$0xff]  ;;  %v12281_v44 = vcombine.low %v2956_v26, %v2964_v28  ;;  %v12999_v8 = vcombine.low %v3675_v57, %v3683_v58 }
 0x4c8   :  { %9351 = vmatprep.subr.bf16.mxu1 %v12616_v23  ;;  %9392 = vmatprep.subr.bf16.mxu0 %v12872_v25  ;;  %v9155_v11 = vadd.f32 %v9154_v51, %v3925_v60  ;;  %v3731_v23 = vld [vmem:[#allocation18 + $0x1a48] sm:$0xff]  ;;  %v2916_v60 = vld [vmem:[#allocation18 + $0xd0] sm:$0xff] }
 0x4c9   :  { %v9156_v42 = vpop.f32.mrf.mxu0  ;;  %v13048_v51 = vcombine.high %v3723_v22, %v3731_v23  ;;  %v12233_v9 = vcombine.low %v2908_v59, %v2916_v60 }
 0x4ca   :  { %v13047_v42 = vcombine.low %v3723_v22, %v3731_v23 }
 0x4cb   :  { %9352 = vmatpush2.bf16.msra.mxu1 %v12615_v52  ;;  %9393 = vmatpush2.bf16.msra.mxu0 %v12871_v55  ;;  %v9157_v49 = vpop.f32.mrf.mxu0  ;;  %v12282_v52 = vcombine.high %v2956_v26, %v2964_v28  ;;  %v3707_v55 = vld [vmem:[#allocation18 + $0x1988] sm:$0xff] }
 0x4cc   :  { %9353 = vmatprep.subr.bf16.mxu1 %v12600_v32  ;;  %9394 = vmatprep.subr.bf16.mxu0 %v12856_v33  ;;  %v3715_v32 = vld [vmem:[#allocation18 + $0x19c8] sm:$0xff]  ;;  %v2940_v33 = vld [vmem:[#allocation18 + $0x190] sm:$0xff] }
 0x4cd   :  { %v13032_v47 = vcombine.high %v3707_v55, %v3715_v32  ;;  %v12266_v48 = vcombine.high %v2940_v33, %v2948_v35  ;;  %v3699_v49 = vld [vmem:[#allocation18 + $0x1948] sm:$0xff] }
 0x4ce   :  { %v13016_v54 = vcombine.high %v3691_v40, %v3699_v49  ;;  %v3883_v28 = vld [vmem:[#allocation18 + $0x1f08] sm:$0xff] }
 0x4cf   :  { %9354 = vmatpush2.bf16.msra.mxu1 %v12599_v37  ;;  %9395 = vmatpush2.bf16.msra.mxu0 %v12855_v50  ;;  %v2924_v37 = vld [vmem:[#allocation18 + $0x110] sm:$0xff] }
 0x4d0   :  { %9405 = vmatprep.subr.bf16.mxu1 %v13096_v53  ;;  %9446 = vmatprep.subr.bf16.mxu0 %v12330_v36  ;;  %v2932_v50 = vld [vmem:[#allocation18 + $0x150] sm:$0xff]  ;;  %v13031_v53 = vcombine.low %v3707_v55, %v3715_v32  ;;  %v12265_v36 = vcombine.low %v2940_v33, %v2948_v35  ;;  %v3867_v33 = vld [vmem:[#allocation18 + $0x1e88] sm:$0xff] }
 0x4d1   :  { %v12250_v39 = vcombine.high %v2924_v37, %v2932_v50  ;;  %v3875_v35 = vld [vmem:[#allocation18 + $0x1ec8] sm:$0xff] }
 0x4d2   :  { %9356 = vmatmul.mubr.bf16.vlgmr.msra.gmra.mxu1 %v14355_v34  ;;  %9397 = vmatmul.mubr.bf16.vlgmr.msra.gmra.mxu0 %v14389_v20  ;;  %v9193_v27 = vpop.f32.mrf.mxu1 }
 0x4d3   :  { %v14420_v13 = vadd.f32 %v9193_v27, %v9153_v63  ;;  %9406 = vmatpush1.bf16.msra.mxu1 %v13095_v61  ;;  %9437 = vmatprep.mubr.bf16.mxu1 %v14404_v10  ;;  %v13015_v61 = vcombine.low %v3691_v40, %v3699_v49  ;;  %v13000_v63 = vcombine.high %v3675_v57, %v3683_v58  ;;  %v2900_v27 = vld [vmem:[#allocation18 + $0x50] sm:$0xff] }
 0x4d4   :  { %9447 = vmatpush1.bf16.msra.mxu0 %v12329_v62  ;;  %9478 = vmatprep.mubr.bf16.mxu0 %v14328_v7  ;;  %v9195_v14 = vpop.f32.mrf.mxu1  ;;  %v12249_v62 = vcombine.low %v2924_v37, %v2932_v50  ;;  %v12217_v23 = vcombine.low %v2892_v6, %v2900_v27  ;;  %v13192_v40 = vcombine.high %v3867_v33, %v3875_v35  ;;  %v3851_v37 = vld [vmem:[#allocation18 + $0x1e08] sm:$0xff] }
 0x4d5   :  { %v14424_v17 = vadd.f32 %v9195_v14, %v9155_v11  ;;  %9407 = vmatprep.subr.bf16.mxu1 %v13080_v0  ;;  %9448 = vmatprep.subr.bf16.mxu0 %v12314_v2  ;;  %v12234_v0 = vcombine.high %v2908_v59, %v2916_v60  ;;  %v3659_v2 = vld [vmem:[#allocation18 + $0x1808] sm:$0xff] }
 0x4d6   :  { %v9197_v25 = vpop.f32.mrf.mxu1  ;;  %v12984_v11 = vcombine.high %v3659_v2, %v3667_v4  ;;  %v3899_v14 = vld [vmem:[#allocation18 + $0x1f88] sm:$0xff]  ;;  %v12983_v22 = vcombine.low %v3659_v2, %v3667_v4 }
 0x4d7   :  { %9408 = vmatpush1.bf16.msra.mxu1 %v13079_v56  ;;  %v12218_v56 = vcombine.high %v2892_v6, %v2900_v27  ;;  %v3859_v50 = vld [vmem:[#allocation18 + $0x1e48] sm:$0xff] }
 0x4d8   :  { %9449 = vmatpush1.bf16.msra.mxu0 %v12313_v15  ;;  %v9198_v31 = vpop.f32.mrf.mxu1  ;;  %9409 = vmatprep.subr.bf16.mxu1 %v13064_v16  ;;  %v3907_v15 = vld [vmem:[#allocation18 + $0x1fc8] sm:$0xff]  ;;  %v3132_v16 = vld [vmem:[#allocation18 + $0x790] sm:$0xff]  ;;  %v13176_v57 = vcombine.high %v3851_v37, %v3859_v50 }
 0x4d9   :  { %9450 = vmatprep.subr.bf16.mxu0 %v12298_v19  ;;  %v3140_v19 = vld [vmem:[#allocation18 + $0x7d0] sm:$0xff]  ;;  %v13224_v25 = vcombine.high %v3899_v14, %v3907_v15  ;;  %v3835_v59 = vld [vmem:[#allocation18 + $0x1d88] sm:$0xff] }
 0x4da   :  { %v12458_v26 = vcombine.high %v3132_v16, %v3140_v19  ;;  %v3116_v31 = vld [vmem:[#allocation18 + $0x710] sm:$0xff]  ;;  %v3843_v60 = vld [vmem:[#allocation18 + $0x1dc8] sm:$0xff] }
 0x4db   :  { %9410 = vmatpush1.bf16.msra.mxu1 %v13063_v29  ;;  %v3891_v29 = vld [vmem:[#allocation18 + $0x1f48] sm:$0xff]  ;;  %v13160_v2 = vcombine.high %v3835_v59, %v3843_v60 }
 0x4dc   :  { %9451 = vmatpush1.bf16.msra.mxu0 %v12297_v30  ;;  %9411 = vmatprep.subr.bf16.mxu1 %v13048_v51  ;;  %v3124_v30 = vld [vmem:[#allocation18 + $0x750] sm:$0xff]  ;;  %v13223_v51 = vcombine.low %v3899_v14, %v3907_v15  ;;  %v13208_v55 = vcombine.high %v3883_v28, %v3891_v29  ;;  %v3819_v6 = vld [vmem:[#allocation18 + $0x1d08] sm:$0xff] }
 0x4dd   :  { %9452 = vmatprep.subr.bf16.mxu0 %v12282_v52  ;;  %v12457_v52 = vcombine.low %v3132_v16, %v3140_v19  ;;  %v12442_v32 = vcombine.high %v3116_v31, %v3124_v30  ;;  %v3827_v27 = vld [vmem:[#allocation18 + $0x1d48] sm:$0xff] }
 0x4de   :  { %v13144_v14 = vcombine.high %v3819_v6, %v3827_v27  ;;  %v3803_v16 = vld [vmem:[#allocation18 + $0x1c88] sm:$0xff] }
 0x4df   :  { %9412 = vmatpush1.bf16.msra.mxu1 %v13047_v42  ;;  %v3100_v42 = vld [vmem:[#allocation18 + $0x690] sm:$0xff]  ;;  %v3811_v19 = vld [vmem:[#allocation18 + $0x1cc8] sm:$0xff] }
 0x4e0   :  { %9453 = vmatpush1.bf16.msra.mxu0 %v12281_v44  ;;  %9413 = vmatprep.subr.bf16.mxu1 %v13032_v47  ;;  %v3108_v44 = vld [vmem:[#allocation18 + $0x6d0] sm:$0xff]  ;;  %v13207_v47 = vcombine.low %v3883_v28, %v3891_v29  ;;  %v13128_v28 = vcombine.high %v3803_v16, %v3811_v19 }
 0x4e1   :  { %9454 = vmatprep.subr.bf16.mxu0 %v12266_v48  ;;  %v12441_v48 = vcombine.low %v3116_v31, %v3124_v30  ;;  %v12426_v49 = vcombine.high %v3100_v42, %v3108_v44  ;;  %v3787_v31 = vld [vmem:[#allocation18 + $0x1c08] sm:$0xff] }
 0x4e2   :  { %v3795_v30 = vld [vmem:[#allocation18 + $0x1c48] sm:$0xff] }
 0x4e3   :  { %9414 = vmatpush1.bf16.msra.mxu1 %v13031_v53  ;;  %v3084_v53 = vld [vmem:[#allocation18 + $0x610] sm:$0xff] }
 0x4e4   :  { %9455 = vmatpush1.bf16.msra.mxu0 %v12265_v36  ;;  %9415 = vmatprep.subr.bf16.mxu1 %v13016_v54  ;;  %v3092_v36 = vld [vmem:[#allocation18 + $0x650] sm:$0xff]  ;;  %v13191_v54 = vcombine.low %v3867_v33, %v3875_v35  ;;  %v13112_v33 = vcombine.high %v3787_v31, %v3795_v30 }
 0x4e5   :  { %9456 = vmatprep.subr.bf16.mxu0 %v12250_v39  ;;  %v12425_v39 = vcombine.low %v3100_v42, %v3108_v44  ;;  %v12410_v58 = vcombine.high %v3084_v53, %v3092_v36  ;;  %v3260_v42 = vld [vmem:[#allocation18 + $0xb90] sm:$0xff] }
 0x4e6   :  { %v3268_v44 = vld [vmem:[#allocation18 + $0xbd0] sm:$0xff] }
 0x4e7   :  { %9416 = vmatpush1.bf16.msra.mxu1 %v13015_v61  ;;  %v3068_v61 = vld [vmem:[#allocation18 + $0x590] sm:$0xff] }
 0x4e8   :  { %9457 = vmatpush1.bf16.msra.mxu0 %v12249_v62  ;;  %9417 = vmatprep.subr.bf16.mxu1 %v13000_v63  ;;  %v3076_v62 = vld [vmem:[#allocation18 + $0x5d0] sm:$0xff]  ;;  %v13175_v63 = vcombine.low %v3851_v37, %v3859_v50  ;;  %v12586_v37 = vcombine.high %v3260_v42, %v3268_v44 }
 0x4e9   :  { %9458 = vmatprep.subr.bf16.mxu0 %v12234_v0  ;;  %v12409_v0 = vcombine.low %v3084_v53, %v3092_v36  ;;  %v12394_v4 = vcombine.high %v3068_v61, %v3076_v62  ;;  %v3244_v53 = vld [vmem:[#allocation18 + $0xb10] sm:$0xff] }
 0x4ea   :  { %v3252_v36 = vld [vmem:[#allocation18 + $0xb50] sm:$0xff] }
 0x4eb   :  { %9418 = vmatpush1.bf16.msra.mxu1 %v12999_v8  ;;  %v3052_v8 = vld [vmem:[#allocation18 + $0x510] sm:$0xff] }
 0x4ec   :  { %9459 = vmatpush1.bf16.msra.mxu0 %v12233_v9  ;;  %9419 = vmatprep.subr.bf16.mxu1 %v12984_v11  ;;  %v3060_v9 = vld [vmem:[#allocation18 + $0x550] sm:$0xff]  ;;  %v13159_v11 = vcombine.low %v3835_v59, %v3843_v60  ;;  %v12570_v59 = vcombine.high %v3244_v53, %v3252_v36 }
 0x4ed   :  { %9460 = vmatprep.subr.bf16.mxu0 %v12218_v56  ;;  %v12393_v56 = vcombine.low %v3068_v61, %v3076_v62  ;;  %v12378_v15 = vcombine.high %v3052_v8, %v3060_v9  ;;  %v3228_v60 = vld [vmem:[#allocation18 + $0xa90] sm:$0xff] }
 0x4ee   :  { %v3236_v61 = vld [vmem:[#allocation18 + $0xad0] sm:$0xff] }
 0x4ef   :  { %9420 = vmatpush1.bf16.msra.mxu1 %v12983_v22  ;;  %v3036_v22 = vld [vmem:[#allocation18 + $0x490] sm:$0xff] }
 0x4f0   :  { %9461 = vmatpush1.bf16.msra.mxu0 %v12217_v23  ;;  %9421 = vmatprep.subr.bf16.mxu1 %v13224_v25  ;;  %v3044_v23 = vld [vmem:[#allocation18 + $0x4d0] sm:$0xff]  ;;  %v13143_v25 = vcombine.low %v3819_v6, %v3827_v27  ;;  %v12569_v6 = vcombine.low %v3244_v53, %v3252_v36 }
 0x4f1   :  { %9462 = vmatprep.subr.bf16.mxu0 %v12458_v26  ;;  %v12377_v26 = vcombine.low %v3052_v8, %v3060_v9  ;;  %v12362_v29 = vcombine.high %v3036_v22, %v3044_v23  ;;  %v12554_v9 = vcombine.high %v3228_v60, %v3236_v61  ;;  %v3420_v53 = vld [vmem:[#allocation18 + $0x1090] sm:$0xff] }
 0x4f2   :  { %v3428_v36 = vld [vmem:[#allocation18 + $0x10d0] sm:$0xff] }
 0x4f3   :  { %9422 = vmatpush2.bf16.msra.mxu1 %v13223_v51  ;;  %v3020_v51 = vld [vmem:[#allocation18 + $0x410] sm:$0xff] }
 0x4f4   :  { %9463 = vmatpush2.bf16.msra.mxu0 %v12457_v52  ;;  %9423 = vmatprep.subr.bf16.mxu1 %v13208_v55  ;;  %v3028_v52 = vld [vmem:[#allocation18 + $0x450] sm:$0xff]  ;;  %v13127_v55 = vcombine.low %v3803_v16, %v3811_v19 }
 0x4f5   :  { %9464 = vmatprep.subr.bf16.mxu0 %v12442_v32  ;;  %v12361_v32 = vcombine.low %v3036_v22, %v3044_v23  ;;  %v12346_v35 = vcombine.high %v3020_v51, %v3028_v52  ;;  %v3468_v16 = vld [vmem:[#allocation18 + $0x1210] sm:$0xff]  ;;  %v12553_v22 = vcombine.low %v3228_v60, %v3236_v61 }
 0x4f6   :  { %v3476_v19 = vld [vmem:[#allocation18 + $0x1250] sm:$0xff] }
 0x4f7   :  { %9424 = vmatpush2.bf16.msra.mxu1 %v13207_v47  ;;  %v3516_v47 = vld [vmem:[#allocation18 + $0x1390] sm:$0xff] }
 0x4f8   :  { %9465 = vmatpush2.bf16.msra.mxu0 %v12441_v48  ;;  %9425 = vmatprep.subr.bf16.mxu1 %v13192_v40  ;;  %v3524_v48 = vld [vmem:[#allocation18 + $0x13d0] sm:$0xff]  ;;  %v13111_v40 = vcombine.low %v3787_v31, %v3795_v30 }
 0x4f9   :  { %9466 = vmatprep.subr.bf16.mxu0 %v12426_v49  ;;  %v12345_v49 = vcombine.low %v3020_v51, %v3028_v52  ;;  %v12842_v50 = vcombine.high %v3516_v47, %v3524_v48  ;;  %v3452_v31 = vld [vmem:[#allocation18 + $0x1190] sm:$0xff]  ;;  %v12793_v52 = vcombine.low %v3468_v16, %v3476_v19 }
 0x4fa   :  { %v3460_v30 = vld [vmem:[#allocation18 + $0x11d0] sm:$0xff] }
 0x4fb   :  { %9426 = vmatpush2.bf16.msra.mxu1 %v13191_v54  ;;  %v12585_v54 = vcombine.low %v3260_v42, %v3268_v44  ;;  %v3436_v42 = vld [vmem:[#allocation18 + $0x1110] sm:$0xff] }
 0x4fc   :  { %9467 = vmatpush2.bf16.msra.mxu0 %v12425_v39  ;;  %9427 = vmatprep.subr.bf16.mxu1 %v13176_v57  ;;  %v3500_v39 = vld [vmem:[#allocation18 + $0x1310] sm:$0xff] }
 0x4fd   :  { %9468 = vmatprep.subr.bf16.mxu0 %v12410_v58  ;;  %v3508_v57 = vld [vmem:[#allocation18 + $0x1350] sm:$0xff]  ;;  %v12841_v58 = vcombine.low %v3516_v47, %v3524_v48  ;;  %v12777_v48 = vcombine.low %v3452_v31, %v3460_v30 }
 0x4fe   :  { %v12825_v8 = vcombine.low %v3500_v39, %v3508_v57  ;;  %v3444_v44 = vld [vmem:[#allocation18 + $0x1150] sm:$0xff] }
 0x4ff   :  { %9428 = vmatpush2.bf16.msra.mxu1 %v13175_v63  ;;  %v12826_v63 = vcombine.high %v3500_v39, %v3508_v57  ;;  %v12761_v39 = vcombine.low %v3436_v42, %v3444_v44  ;;  %v3156_v60 = vld [vmem:[#allocation18 + $0x850] sm:$0xff] }
 0x500   :  { %9469 = vmatpush2.bf16.msra.mxu0 %v12409_v0  ;;  %9429 = vmatprep.subr.bf16.mxu1 %v13160_v2  ;;  %v3484_v0 = vld [vmem:[#allocation18 + $0x1290] sm:$0xff] }
 0x501   :  { %9470 = vmatprep.subr.bf16.mxu0 %v12394_v4  ;;  %v3492_v2 = vld [vmem:[#allocation18 + $0x12d0] sm:$0xff] }
 0x502   :  { %v3404_v61 = vld [vmem:[#allocation18 + $0x1010] sm:$0xff] }
 0x503   :  { %9430 = vmatpush2.bf16.msra.mxu1 %v13159_v11 }
 0x504   :  { %9471 = vmatpush2.bf16.msra.mxu0 %v12393_v56  ;;  %9431 = vmatprep.subr.bf16.mxu1 %v13144_v14  ;;  %v12810_v56 = vcombine.high %v3484_v0, %v3492_v2  ;;  %v3212_v14 = vld [vmem:[#allocation18 + $0xa10] sm:$0xff] }
 0x505   :  { %9472 = vmatprep.subr.bf16.mxu0 %v12378_v15  ;;  %v3220_v15 = vld [vmem:[#allocation18 + $0xa50] sm:$0xff] }
 0x506   :  { %v12537_v51 = vcombine.low %v3212_v14, %v3220_v15 }
 0x507   :  { %9432 = vmatpush2.bf16.msra.mxu1 %v13143_v25  ;;  %v12809_v25 = vcombine.low %v3484_v0, %v3492_v2  ;;  %v12745_v0 = vcombine.low %v3420_v53, %v3428_v36 }
 0x508   :  { %9473 = vmatpush2.bf16.msra.mxu0 %v12377_v26  ;;  %9433 = vmatprep.subr.bf16.mxu1 %v13128_v28  ;;  %v12538_v26 = vcombine.high %v3212_v14, %v3220_v15  ;;  %v12794_v28 = vcombine.high %v3468_v16, %v3476_v19  ;;  %v3372_v19 = vld [vmem:[#allocation18 + $0xf10] sm:$0xff] }
 0x509   :  { %9474 = vmatprep.subr.bf16.mxu0 %v12362_v29  ;;  %v3196_v29 = vld [vmem:[#allocation18 + $0x990] sm:$0xff] }
 0x50b   :  { %9434 = vmatpush2.bf16.msra.mxu1 %v13127_v55 }
 0x50c   :  { %9475 = vmatpush2.bf16.msra.mxu0 %v12361_v32  ;;  %9435 = vmatprep.subr.bf16.mxu1 %v13112_v33  ;;  %v12778_v32 = vcombine.high %v3452_v31, %v3460_v30  ;;  %v3180_v33 = vld [vmem:[#allocation18 + $0x910] sm:$0xff] }
 0x50d   :  { %9476 = vmatprep.subr.bf16.mxu0 %v12346_v35  ;;  %v3188_v35 = vld [vmem:[#allocation18 + $0x950] sm:$0xff] }
 0x50e   :  { %v3356_v31 = vld [vmem:[#allocation18 + $0xe90] sm:$0xff] }
 0x50f   :  { %9436 = vmatpush2.bf16.msra.mxu1 %v13111_v40  ;;  %v12506_v40 = vcombine.high %v3180_v33, %v3188_v35  ;;  %v3364_v30 = vld [vmem:[#allocation18 + $0xed0] sm:$0xff] }
 0x510   :  { %9477 = vmatpush2.bf16.msra.mxu0 %v12345_v49  ;;  %9487 = vmatprep.subr.bf16.mxu1 %v12586_v37  ;;  %v12762_v49 = vcombine.high %v3436_v42, %v3444_v44  ;;  %v3164_v37 = vld [vmem:[#allocation18 + $0x890] sm:$0xff] }
 0x511   :  { %9528 = vmatprep.subr.bf16.mxu0 %v12842_v50  ;;  %v3172_v50 = vld [vmem:[#allocation18 + $0x8d0] sm:$0xff] }
 0x512   :  { %9438 = vmatmul.mubr.bf16.vlgmr.msra.gmra.mxu1 %v14406_v12  ;;  %v9234_v62 = vpop.f32.mrf.mxu0  ;;  %v12490_v57 = vcombine.high %v3164_v37, %v3172_v50  ;;  %v3340_v42 = vld [vmem:[#allocation18 + $0xe10] sm:$0xff] }
 0x513   :  { %9479 = vmatmul.mubr.bf16.vlgmr.msra.gmra.mxu0 %v14344_v5  ;;  %v14429_v4 = vadd.f32 %v9234_v62, %v14420_v13  ;;  %9488 = vmatpush1.bf16.msra.mxu1 %v12585_v54  ;;  %v12505_v54 = vcombine.low %v3180_v33, %v3188_v35  ;;  %v3412_v62 = vld [vmem:[#allocation18 + $0x1050] sm:$0xff]  ;;  %v12682_v33 = vcombine.high %v3356_v31, %v3364_v30 }
 0x514   :  { %9519 = vmatprep.mubr.bf16.mxu1 %v14351_v46  ;;  %9529 = vmatpush1.bf16.msra.mxu0 %v12841_v58  ;;  %v9236_v27 = vpop.f32.mrf.mxu0  ;;  %v12746_v58 = vcombine.high %v3420_v53, %v3428_v36  ;;  %v12729_v15 = vcombine.low %v3404_v61, %v3412_v62  ;;  %v3348_v44 = vld [vmem:[#allocation18 + $0xe50] sm:$0xff] }
 0x515   :  { %9560 = vmatprep.mubr.bf16.mxu0 %v14385_v18  ;;  %v14434_v11 = vadd.f32 %v9236_v27, %v14424_v17  ;;  %9489 = vmatprep.subr.bf16.mxu1 %v12570_v59  ;;  %v3204_v17 = vld [vmem:[#allocation18 + $0x9d0] sm:$0xff] }
 0x516   :  { %9530 = vmatprep.subr.bf16.mxu0 %v12826_v63  ;;  %v9238_v13 = vpop.f32.mrf.mxu0  ;;  %v12522_v55 = vcombine.high %v3196_v29, %v3204_v17  ;;  %v12521_v47 = vcombine.low %v3196_v29, %v3204_v17  ;;  %v3148_v59 = vld [vmem:[#allocation18 + $0x810] sm:$0xff]  ;;  %v12489_v63 = vcombine.low %v3164_v37, %v3172_v50  ;;  %v12666_v37 = vcombine.high %v3340_v42, %v3348_v44 }
 0x517   :  { %9490 = vmatpush1.bf16.msra.mxu1 %v12569_v6  ;;  %v12474_v2 = vcombine.high %v3148_v59, %v3156_v60  ;;  %v12730_v6 = vcombine.high %v3404_v61, %v3412_v62  ;;  %v3388_v27 = vld [vmem:[#allocation18 + $0xf90] sm:$0xff]  ;;  %v12473_v14 = vcombine.low %v3148_v59, %v3156_v60 }
 0x518   :  { %9531 = vmatpush1.bf16.msra.mxu0 %v12825_v8  ;;  %v9239_v23 = vpop.f32.mrf.mxu0  ;;  %9491 = vmatprep.subr.bf16.mxu1 %v12554_v9  ;;  %v3396_v8 = vld [vmem:[#allocation18 + $0xfd0] sm:$0xff] }
 0x519   :  { %9532 = vmatprep.subr.bf16.mxu0 %v12810_v56  ;;  %v3644_v9 = vld [vmem:[#allocation18 + $0x1790] sm:$0xff]  ;;  %v12714_v13 = vcombine.high %v3388_v27, %v3396_v8 }
 0x51a   :  { %v3652_v56 = vld [vmem:[#allocation18 + $0x17d0] sm:$0xff] }
 0x51b   :  { %9492 = vmatpush1.bf16.msra.mxu1 %v12553_v22  ;;  %v12970_v16 = vcombine.high %v3644_v9, %v3652_v56  ;;  %v3380_v22 = vld [vmem:[#allocation18 + $0xf50] sm:$0xff] }
 0x51c   :  { %9533 = vmatpush1.bf16.msra.mxu0 %v12809_v25  ;;  %9493 = vmatprep.subr.bf16.mxu1 %v12538_v26  ;;  %v3628_v23 = vld [vmem:[#allocation18 + $0x1710] sm:$0xff]  ;;  %v12713_v26 = vcombine.low %v3388_v27, %v3396_v8  ;;  %v12698_v29 = vcombine.high %v3372_v19, %v3380_v22 }
 0x51d   :  { %9534 = vmatprep.subr.bf16.mxu0 %v12794_v28  ;;  %v3636_v25 = vld [vmem:[#allocation18 + $0x1750] sm:$0xff]  ;;  %v12969_v28 = vcombine.low %v3644_v9, %v3652_v56 }
 0x51e   :  { %v12954_v17 = vcombine.high %v3628_v23, %v3636_v25  ;;  %v3324_v53 = vld [vmem:[#allocation18 + $0xd90] sm:$0xff] }
 0x51f   :  { %9494 = vmatpush1.bf16.msra.mxu1 %v12537_v51  ;;  %v3612_v51 = vld [vmem:[#allocation18 + $0x1690] sm:$0xff] }
 0x520   :  { %9535 = vmatpush1.bf16.msra.mxu0 %v12793_v52  ;;  %9495 = vmatprep.subr.bf16.mxu1 %v12522_v55  ;;  %v3620_v52 = vld [vmem:[#allocation18 + $0x16d0] sm:$0xff]  ;;  %v12697_v55 = vcombine.low %v3372_v19, %v3380_v22 }
 0x521   :  { %9536 = vmatprep.subr.bf16.mxu0 %v12778_v32  ;;  %v12953_v32 = vcombine.low %v3628_v23, %v3636_v25  ;;  %v12938_v35 = vcombine.high %v3612_v51, %v3620_v52  ;;  %v3332_v36 = vld [vmem:[#allocation18 + $0xdd0] sm:$0xff] }
 0x522   :  { %v12650_v59 = vcombine.high %v3324_v53, %v3332_v36  ;;  %v3308_v61 = vld [vmem:[#allocation18 + $0xd10] sm:$0xff] }
 0x523   :  { %9496 = vmatpush1.bf16.msra.mxu1 %v12521_v47  ;;  %v3596_v47 = vld [vmem:[#allocation18 + $0x1610] sm:$0xff] }
 0x524   :  { %9537 = vmatpush1.bf16.msra.mxu0 %v12777_v48  ;;  %9497 = vmatprep.subr.bf16.mxu1 %v12506_v40  ;;  %v3604_v48 = vld [vmem:[#allocation18 + $0x1650] sm:$0xff]  ;;  %v12681_v40 = vcombine.low %v3356_v31, %v3364_v30 }
 0x525   :  { %9538 = vmatprep.subr.bf16.mxu0 %v12762_v49  ;;  %v12937_v49 = vcombine.low %v3612_v51, %v3620_v52  ;;  %v12922_v50 = vcombine.high %v3596_v47, %v3604_v48  ;;  %v3316_v62 = vld [vmem:[#allocation18 + $0xd50] sm:$0xff] }
 0x526   :  { %v12634_v27 = vcombine.high %v3308_v61, %v3316_v62  ;;  %v3292_v9 = vld [vmem:[#allocation18 + $0xc90] sm:$0xff] }
 0x527   :  { %9498 = vmatpush1.bf16.msra.mxu1 %v12505_v54  ;;  %v3580_v54 = vld [vmem:[#allocation18 + $0x1590] sm:$0xff] }
 0x528   :  { %9539 = vmatpush1.bf16.msra.mxu0 %v12761_v39  ;;  %9499 = vmatprep.subr.bf16.mxu1 %v12490_v57  ;;  %v3588_v39 = vld [vmem:[#allocation18 + $0x15d0] sm:$0xff]  ;;  %v12665_v57 = vcombine.low %v3340_v42, %v3348_v44 }
 0x529   :  { %9540 = vmatprep.subr.bf16.mxu0 %v12746_v58  ;;  %v12921_v58 = vcombine.low %v3596_v47, %v3604_v48  ;;  %v12906_v60 = vcombine.high %v3580_v54, %v3588_v39  ;;  %v3300_v56 = vld [vmem:[#allocation18 + $0xcd0] sm:$0xff] }
 0x52a   :  { %v12618_v19 = vcombine.high %v3292_v9, %v3300_v56  ;;  %v3276_v23 = vld [vmem:[#allocation18 + $0xc10] sm:$0xff] }
 0x52b   :  { %9500 = vmatpush1.bf16.msra.mxu1 %v12489_v63  ;;  %v3564_v63 = vld [vmem:[#allocation18 + $0x1510] sm:$0xff] }
 0x52c   :  { %9541 = vmatpush1.bf16.msra.mxu0 %v12745_v0  ;;  %9501 = vmatprep.subr.bf16.mxu1 %v12474_v2  ;;  %v3572_v0 = vld [vmem:[#allocation18 + $0x1550] sm:$0xff]  ;;  %v12649_v2 = vcombine.low %v3324_v53, %v3332_v36 }
 0x52d   :  { %9542 = vmatprep.subr.bf16.mxu0 %v12730_v6  ;;  %v12905_v6 = vcombine.low %v3580_v54, %v3588_v39  ;;  %v12890_v8 = vcombine.high %v3564_v63, %v3572_v0  ;;  %v3284_v25 = vld [vmem:[#allocation18 + $0xc50] sm:$0xff] }
 0x52e   :  { %v12602_v31 = vcombine.high %v3276_v23, %v3284_v25  ;;  %v3772_v51 = vld [vmem:[#allocation18 + $0x1b90] sm:$0xff] }
 0x52f   :  { %9502 = vmatpush1.bf16.msra.mxu1 %v12473_v14  ;;  %v3548_v14 = vld [vmem:[#allocation18 + $0x1490] sm:$0xff] }
 0x530   :  { %9543 = vmatpush1.bf16.msra.mxu0 %v12729_v15  ;;  %9503 = vmatprep.subr.bf16.mxu1 %v12714_v13  ;;  %v3556_v15 = vld [vmem:[#allocation18 + $0x14d0] sm:$0xff]  ;;  %v12633_v13 = vcombine.low %v3308_v61, %v3316_v62 }
 0x531   :  { %9544 = vmatprep.subr.bf16.mxu0 %v12970_v16  ;;  %v12889_v16 = vcombine.low %v3564_v63, %v3572_v0  ;;  %v12874_v22 = vcombine.high %v3548_v14, %v3556_v15  ;;  %v3780_v52 = vld [vmem:[#allocation18 + $0x1bd0] sm:$0xff] }
 0x532   :  { %v13098_v42 = vcombine.high %v3772_v51, %v3780_v52  ;;  %v3756_v47 = vld [vmem:[#allocation18 + $0x1b10] sm:$0xff] }
 0x533   :  { %9504 = vmatpush2.bf16.msra.mxu1 %v12713_v26  ;;  %v3532_v26 = vld [vmem:[#allocation18 + $0x1410] sm:$0xff] }
 0x534   :  { %9545 = vmatpush2.bf16.msra.mxu0 %v12969_v28  ;;  %9505 = vmatprep.subr.bf16.mxu1 %v12698_v29  ;;  %v3540_v28 = vld [vmem:[#allocation18 + $0x1450] sm:$0xff]  ;;  %v12617_v29 = vcombine.low %v3292_v9, %v3300_v56 }
 0x535   :  { %9546 = vmatprep.subr.bf16.mxu0 %v12954_v17  ;;  %v12873_v17 = vcombine.low %v3548_v14, %v3556_v15  ;;  %v12858_v30 = vcombine.high %v3532_v26, %v3540_v28  ;;  %v3764_v48 = vld [vmem:[#allocation18 + $0x1b50] sm:$0xff]  ;;  %v2957_v15 = vld [vmem:[#allocation18 + $0x218] sm:$0xff] }
 0x536   :  { %v13082_v53 = vcombine.high %v3756_v47, %v3764_v48  ;;  %v3740_v36 = vld [vmem:[#allocation18 + $0x1a90] sm:$0xff]  ;;  %v13081_v62 = vcombine.low %v3756_v47, %v3764_v48 }
 0x537   :  { %9506 = vmatpush2.bf16.msra.mxu1 %v12697_v55  ;;  %v3005_v55 = vld [vmem:[#allocation18 + $0x398] sm:$0xff]  ;;  %v3748_v54 = vld [vmem:[#allocation18 + $0x1ad0] sm:$0xff] }
 0x538   :  { %9547 = vmatpush2.bf16.msra.mxu0 %v12953_v32  ;;  %9507 = vmatprep.subr.bf16.mxu1 %v12682_v33  ;;  %v3013_v32 = vld [vmem:[#allocation18 + $0x3d8] sm:$0xff]  ;;  %v12601_v33 = vcombine.low %v3276_v23, %v3284_v25  ;;  %v3724_v9 = vld [vmem:[#allocation18 + $0x1a10] sm:$0xff] }
 0x539   :  { %9548 = vmatprep.subr.bf16.mxu0 %v12938_v35  ;;  %v12857_v35 = vcombine.low %v3532_v26, %v3540_v28  ;;  %v12332_v44 = vcombine.high %v3005_v55, %v3013_v32  ;;  %v3708_v26 = vld [vmem:[#allocation18 + $0x1990] sm:$0xff] }
 0x53a   :  { %v3716_v28 = vld [vmem:[#allocation18 + $0x19d0] sm:$0xff] }
 0x53b   :  { %9508 = vmatpush2.bf16.msra.mxu1 %v12681_v40  ;;  %v13097_v40 = vcombine.low %v3772_v51, %v3780_v52  ;;  %v13034_v51 = vcombine.high %v3708_v26, %v3716_v28 }
 0x53c   :  { %9549 = vmatpush2.bf16.msra.mxu0 %v12937_v49  ;;  %9509 = vmatprep.subr.bf16.mxu1 %v12666_v37  ;;  %v2989_v49 = vld [vmem:[#allocation18 + $0x318] sm:$0xff] }
 0x53d   :  { %9550 = vmatprep.subr.bf16.mxu0 %v12922_v50  ;;  %v2997_v37 = vld [vmem:[#allocation18 + $0x358] sm:$0xff]  ;;  %v12331_v50 = vcombine.low %v3005_v55, %v3013_v32  ;;  %v3692_v55 = vld [vmem:[#allocation18 + $0x1910] sm:$0xff] }
 0x53e   :  { %v3700_v32 = vld [vmem:[#allocation18 + $0x1950] sm:$0xff] }
 0x53f   :  { %9510 = vmatpush2.bf16.msra.mxu1 %v12665_v57  ;;  %v13018_v47 = vcombine.high %v3692_v55, %v3700_v32 }
 0x540   :  { %9551 = vmatpush2.bf16.msra.mxu0 %v12921_v58  ;;  %9511 = vmatprep.subr.bf16.mxu1 %v12650_v59  ;;  %v12316_v58 = vcombine.high %v2989_v49, %v2997_v37  ;;  %v2973_v59 = vld [vmem:[#allocation18 + $0x298] sm:$0xff] }
 0x541   :  { %9552 = vmatprep.subr.bf16.mxu0 %v12906_v60  ;;  %v2981_v60 = vld [vmem:[#allocation18 + $0x2d8] sm:$0xff] }
 0x542   :  { %v12299_v23 = vcombine.low %v2973_v59, %v2981_v60 }
 0x543   :  { %9512 = vmatpush2.bf16.msra.mxu1 %v12649_v2  ;;  %v12315_v2 = vcombine.low %v2989_v49, %v2997_v37  ;;  %v3684_v49 = vld [vmem:[#allocation18 + $0x18d0] sm:$0xff]  ;;  %v2909_v37 = vld [vmem:[#allocation18 + $0x98] sm:$0xff] }
 0x544   :  { %9553 = vmatpush2.bf16.msra.mxu0 %v12905_v6  ;;  %9513 = vmatprep.subr.bf16.mxu1 %v12634_v27  ;;  %v13066_v6 = vcombine.high %v3740_v36, %v3748_v54 }
 0x545   :  { %9554 = vmatprep.subr.bf16.mxu0 %v12890_v8  ;;  %v12300_v8 = vcombine.high %v2973_v59, %v2981_v60  ;;  %v3668_v59 = vld [vmem:[#allocation18 + $0x1850] sm:$0xff]  ;;  %v2893_v60 = vld [vmem:[#allocation18 + $0x18] sm:$0xff] }
 0x547   :  { %9514 = vmatpush2.bf16.msra.mxu1 %v12633_v13  ;;  %v2965_v13 = vld [vmem:[#allocation18 + $0x258] sm:$0xff] }
 0x548   :  { %9555 = vmatpush2.bf16.msra.mxu0 %v12889_v16  ;;  %9515 = vmatprep.subr.bf16.mxu1 %v12618_v19  ;;  %v13065_v16 = vcombine.low %v3740_v36, %v3748_v54 }
 0x549   :  { %9556 = vmatprep.subr.bf16.mxu0 %v12874_v22 }
 0x54b   :  { %9516 = vmatpush2.bf16.msra.mxu1 %v12617_v29  ;;  %v2941_v29 = vld [vmem:[#allocation18 + $0x198] sm:$0xff] }
 0x54c   :  { %9557 = vmatpush2.bf16.msra.mxu0 %v12873_v17  ;;  %9517 = vmatprep.subr.bf16.mxu1 %v12602_v31  ;;  %v2949_v17 = vld [vmem:[#allocation18 + $0x1d8] sm:$0xff] }
 0x54d   :  { %9558 = vmatprep.subr.bf16.mxu0 %v12858_v30  ;;  %v12283_v30 = vcombine.low %v2957_v15, %v2965_v13  ;;  %v12268_v52 = vcombine.high %v2941_v29, %v2949_v17 }
 0x54f   :  { %9518 = vmatpush2.bf16.msra.mxu1 %v12601_v33  ;;  %v2925_v33 = vld [vmem:[#allocation18 + $0x118] sm:$0xff] }
 0x550   :  { %9559 = vmatpush2.bf16.msra.mxu0 %v12857_v35  ;;  %9569 = vmatprep.subr.bf16.mxu1 %v13098_v42  ;;  %v2933_v35 = vld [vmem:[#allocation18 + $0x158] sm:$0xff]  ;;  %v13033_v42 = vcombine.low %v3708_v26, %v3716_v28 }
 0x551   :  { %9610 = vmatprep.subr.bf16.mxu0 %v12332_v44  ;;  %v12267_v44 = vcombine.low %v2941_v29, %v2949_v17  ;;  %v12252_v48 = vcombine.high %v2925_v33, %v2933_v35  ;;  %v12251_v36 = vcombine.low %v2925_v33, %v2933_v35 }
 0x552   :  { %v14436_v39 = vpop.f32.mrf.mxu0  ;;  %9520 = vmatmul.mubr.bf16.vlgmr.msra.gmra.mxu1 %v14355_v34  ;;  %v9275_v57 = vpop.f32.mrf.mxu1 }
 0x553   :  { %9561 = vmatmul.mubr.bf16.vlgmr.msra.gmra.mxu0 %v14389_v20  ;;  %v14441_v61 = vadd.f32 %v9275_v57, %v14429_v4  ;;  %9570 = vmatpush1.bf16.msra.mxu1 %v13097_v40  ;;  %v3732_v4 = vld [vmem:[#allocation18 + $0x1a50] sm:$0xff] }
 0x554   :  { %9601 = vmatprep.mubr.bf16.mxu1 %v14404_v10  ;;  %9611 = vmatpush1.bf16.msra.mxu0 %v12331_v50  ;;  %v14444_v63 = vpop.f32.mrf.mxu0  ;;  %v9277_v0 = vpop.f32.mrf.mxu1  ;;  %v13050_v25 = vcombine.high %v3724_v9, %v3732_v4  ;;  %v13049_v31 = vcombine.low %v3724_v9, %v3732_v4  ;;  %v3676_v40 = vld [vmem:[#allocation18 + $0x1890] sm:$0xff]  ;;  %v2917_v50 = vld [vmem:[#allocation18 + $0xd8] sm:$0xff] }
 0x555   :  { %9642 = vmatprep.mubr.bf16.mxu0 %v14328_v7  ;;  %v14448_v27 = vadd.f32 %v9277_v0, %v14434_v11  ;;  %9571 = vmatprep.subr.bf16.mxu1 %v13082_v53  ;;  %v12284_v11 = vcombine.high %v2957_v15, %v2965_v13  ;;  %v13017_v53 = vcombine.low %v3692_v55, %v3700_v32  ;;  %v3900_v9 = vld [vmem:[#allocation18 + $0x1f90] sm:$0xff]  ;;  %vm10431_vm2 = vcmp.gt.f32.partialorder %v14441_v61, 0.0 }
 0x556   :  { %v9320_v56 = vpop.f32.mrf.mxu0  ;;  %9612 = vmatprep.subr.bf16.mxu0 %v12316_v58  ;;  %v9279_v14 = vpop.f32.mrf.mxu1  ;;  %v13002_v54 = vcombine.high %v3676_v40, %v3684_v49  ;;  %v12236_v57 = vcombine.high %v2909_v37, %v2917_v50  ;;  %v3660_v58 = vld [vmem:[#allocation18 + $0x1810] sm:$0xff]  ;;  %v13001_v0 = vcombine.low %v3676_v40, %v3684_v49 }
 0x557   :  { %9572 = vmatpush1.bf16.msra.mxu1 %v13081_v62  ;;  %v2901_v62 = vld [vmem:[#allocation18 + $0x58] sm:$0xff]  ;;  %v3908_v4 = vld [vmem:[#allocation18 + $0x1fd0] sm:$0xff]  ;;  %v12985_v15 = vcombine.low %v3660_v58, %v3668_v59  ;;  %vm10432_vm1 = vcmp.gt.f32.partialorder %v14448_v27, 0.0 }
 0x558   :  { %9613 = vmatpush1.bf16.msra.mxu0 %v12315_v2  ;;  %v9321_v19 = vpop.f32.mrf.mxu0  ;;  %v9280_v22 = vpop.f32.mrf.mxu1  ;;  %9573 = vmatprep.subr.bf16.mxu1 %v13066_v6  ;;  %v12235_v2 = vcombine.low %v2909_v37, %v2917_v50  ;;  %v12986_v6 = vcombine.high %v3660_v58, %v3668_v59  ;;  %v3133_v56 = vld [vmem:[#allocation18 + $0x798] sm:$0xff]  ;;  %v12219_v13 = vcombine.low %v2893_v60, %v2901_v62 }
 0x559   :  { %9614 = vmatprep.subr.bf16.mxu0 %v12300_v8  ;;  %v12220_v8 = vcombine.high %v2893_v60, %v2901_v62  ;;  %v3141_v14 = vld [vmem:[#allocation18 + $0x7d8] sm:$0xff]  ;;  %v3884_v22 = vld [vmem:[#allocation18 + $0x1f10] sm:$0xff]  ;;  %v13225_v26 = vcombine.low %v3900_v9, %v3908_v4 }
 0x55a   :  { %v12460_v19 = vcombine.high %v3133_v56, %v3141_v14  ;;  %v12459_v28 = vcombine.low %v3133_v56, %v3141_v14 }
 0x55b   :  { %9574 = vmatpush1.bf16.msra.mxu1 %v13065_v16  ;;  %v13226_v16 = vcombine.high %v3900_v9, %v3908_v4 }
 0x55c   :  { %9615 = vmatpush1.bf16.msra.mxu0 %v12299_v23  ;;  %9575 = vmatprep.subr.bf16.mxu1 %v13050_v25  ;;  %v3892_v23 = vld [vmem:[#allocation18 + $0x1f50] sm:$0xff]  ;;  %v3117_v25 = vld [vmem:[#allocation18 + $0x718] sm:$0xff] }
 0x55d   :  { %9616 = vmatprep.subr.bf16.mxu0 %v12284_v11  ;;  %v3125_v11 = vld [vmem:[#allocation18 + $0x758] sm:$0xff]  ;;  %v13210_v29 = vcombine.high %v3884_v22, %v3892_v23  ;;  %v13209_v55 = vcombine.low %v3884_v22, %v3892_v23 }
 0x55e   :  { %v12444_v17 = vcombine.high %v3117_v25, %v3125_v11  ;;  %v12443_v32 = vcombine.low %v3117_v25, %v3125_v11 }
 0x55f   :  { %9576 = vmatpush1.bf16.msra.mxu1 %v13049_v31  ;;  %v3868_v31 = vld [vmem:[#allocation18 + $0x1e90] sm:$0xff] }
 0x560   :  { %9617 = vmatpush1.bf16.msra.mxu0 %v12283_v30  ;;  %9577 = vmatprep.subr.bf16.mxu1 %v13034_v51  ;;  %v3876_v30 = vld [vmem:[#allocation18 + $0x1ed0] sm:$0xff]  ;;  %v3101_v51 = vld [vmem:[#allocation18 + $0x698] sm:$0xff] }
 0x561   :  { %9618 = vmatprep.subr.bf16.mxu0 %v12268_v52  ;;  %v3109_v52 = vld [vmem:[#allocation18 + $0x6d8] sm:$0xff]  ;;  %v13194_v33 = vcombine.high %v3868_v31, %v3876_v30  ;;  %v13193_v40 = vcombine.low %v3868_v31, %v3876_v30 }
 0x562   :  { %v12428_v35 = vcombine.high %v3101_v51, %v3109_v52  ;;  %v12427_v49 = vcombine.low %v3101_v51, %v3109_v52 }
 0x563   :  { %9578 = vmatpush1.bf16.msra.mxu1 %v13033_v42  ;;  %v3852_v42 = vld [vmem:[#allocation18 + $0x1e10] sm:$0xff] }
 0x564   :  { %9619 = vmatpush1.bf16.msra.mxu0 %v12267_v44  ;;  %9579 = vmatprep.subr.bf16.mxu1 %v13018_v47  ;;  %v3860_v44 = vld [vmem:[#allocation18 + $0x1e50] sm:$0xff]  ;;  %v3085_v47 = vld [vmem:[#allocation18 + $0x618] sm:$0xff] }
 0x565   :  { %9620 = vmatprep.subr.bf16.mxu0 %v12252_v48  ;;  %v3093_v48 = vld [vmem:[#allocation18 + $0x658] sm:$0xff]  ;;  %v13178_v37 = vcombine.high %v3852_v42, %v3860_v44  ;;  %v13177_v58 = vcombine.low %v3852_v42, %v3860_v44 }
 0x566   :  { %v12412_v50 = vcombine.high %v3085_v47, %v3093_v48  ;;  %v12411_v59 = vcombine.low %v3085_v47, %v3093_v48  ;;  %v14450_v48 = vld [vmem:[#allocation19] sm:$0xff] }
 0x567   :  { %9580 = vmatpush1.bf16.msra.mxu1 %v13017_v53  ;;  %v3836_v53 = vld [vmem:[#allocation18 + $0x1d90] sm:$0xff] }
 0x568   :  { %9621 = vmatpush1.bf16.msra.mxu0 %v12251_v36  ;;  %9581 = vmatprep.subr.bf16.mxu1 %v13002_v54  ;;  %v3844_v36 = vld [vmem:[#allocation18 + $0x1dd0] sm:$0xff]  ;;  %v3069_v54 = vld [vmem:[#allocation18 + $0x598] sm:$0xff] }
 0x569   :  { %9622 = vmatprep.subr.bf16.mxu0 %v12236_v57  ;;  %v3077_v57 = vld [vmem:[#allocation18 + $0x5d8] sm:$0xff]  ;;  %v13162_v60 = vcombine.high %v3836_v53, %v3844_v36  ;;  %v13161_v9 = vcombine.low %v3836_v53, %v3844_v36  ;;  %v3933_v53 = vrot.slane %v14450_v48, %v14284_v3 }
 0x56a   :  { %v12396_v62 = vcombine.high %v3069_v54, %v3077_v57  ;;  %v12395_v4 = vcombine.low %v3069_v54, %v3077_v57  ;;  %v3501_v54 = vld [vmem:[#allocation18 + $0x1318] sm:$0xff] }
 0x56b   :  { %9582 = vmatpush1.bf16.msra.mxu1 %v13001_v0  ;;  %v3820_v0 = vld [vmem:[#allocation18 + $0x1d10] sm:$0xff]  ;;  %v3509_v57 = vld [vmem:[#allocation18 + $0x1358] sm:$0xff] }
 0x56c   :  { %9623 = vmatpush1.bf16.msra.mxu0 %v12235_v2  ;;  %9583 = vmatprep.subr.bf16.mxu1 %v12986_v6  ;;  %v3828_v2 = vld [vmem:[#allocation18 + $0x1d50] sm:$0xff]  ;;  %v3053_v6 = vld [vmem:[#allocation18 + $0x518] sm:$0xff] }
 0x56d   :  { %9624 = vmatprep.subr.bf16.mxu0 %v12220_v8  ;;  %v3061_v8 = vld [vmem:[#allocation18 + $0x558] sm:$0xff]  ;;  %v13146_v56 = vcombine.high %v3820_v0, %v3828_v2  ;;  %v13145_v22 = vcombine.low %v3820_v0, %v3828_v2 }
 0x56e   :  { %v12380_v14 = vcombine.high %v3053_v6, %v3061_v8  ;;  %v12379_v23 = vcombine.low %v3053_v6, %v3061_v8  ;;  %v3237_v0 = vld [vmem:[#allocation18 + $0xad8] sm:$0xff]  ;;  %v12828_v8 = vcombine.high %v3501_v54, %v3509_v57 }
 0x56f   :  { %9584 = vmatpush1.bf16.msra.mxu1 %v12985_v15  ;;  %v3804_v15 = vld [vmem:[#allocation18 + $0x1c90] sm:$0xff] }
 0x570   :  { %9625 = vmatpush1.bf16.msra.mxu0 %v12219_v13  ;;  %9585 = vmatprep.subr.bf16.mxu1 %v13226_v16  ;;  %v3812_v13 = vld [vmem:[#allocation18 + $0x1cd0] sm:$0xff]  ;;  %v3037_v16 = vld [vmem:[#allocation18 + $0x498] sm:$0xff] }
 0x571   :  { %9626 = vmatprep.subr.bf16.mxu0 %v12460_v19  ;;  %v3045_v19 = vld [vmem:[#allocation18 + $0x4d8] sm:$0xff]  ;;  %v13130_v25 = vcombine.high %v3804_v15, %v3812_v13  ;;  %v13129_v31 = vcombine.low %v3804_v15, %v3812_v13 }
 0x572   :  { %v12364_v11 = vcombine.high %v3037_v16, %v3045_v19  ;;  %v12363_v30 = vcombine.low %v3037_v16, %v3045_v19  ;;  %v12827_v16 = vcombine.low %v3501_v54, %v3509_v57  ;;  %v3437_v54 = vld [vmem:[#allocation18 + $0x1118] sm:$0xff] }
 0x573   :  { %9586 = vmatpush2.bf16.msra.mxu1 %v13225_v26  ;;  %v3788_v26 = vld [vmem:[#allocation18 + $0x1c10] sm:$0xff]  ;;  %v3445_v57 = vld [vmem:[#allocation18 + $0x1158] sm:$0xff] }
 0x574   :  { %9627 = vmatpush2.bf16.msra.mxu0 %v12459_v28  ;;  %9587 = vmatprep.subr.bf16.mxu1 %v13210_v29  ;;  %v3796_v28 = vld [vmem:[#allocation18 + $0x1c50] sm:$0xff]  ;;  %v3021_v29 = vld [vmem:[#allocation18 + $0x418] sm:$0xff] }
 0x575   :  { %9628 = vmatprep.subr.bf16.mxu0 %v12444_v17  ;;  %v3029_v17 = vld [vmem:[#allocation18 + $0x458] sm:$0xff]  ;;  %v13114_v51 = vcombine.high %v3788_v26, %v3796_v28  ;;  %v13113_v42 = vcombine.low %v3788_v26, %v3796_v28 }
 0x576   :  { %v12348_v52 = vcombine.high %v3021_v29, %v3029_v17  ;;  %v12347_v44 = vcombine.low %v3021_v29, %v3029_v17  ;;  %v3469_v29 = vld [vmem:[#allocation18 + $0x1218] sm:$0xff] }
 0x577   :  { %9588 = vmatpush2.bf16.msra.mxu1 %v13209_v55  ;;  %v3261_v55 = vld [vmem:[#allocation18 + $0xb98] sm:$0xff] }
 0x578   :  { %9629 = vmatpush2.bf16.msra.mxu0 %v12443_v32  ;;  %9589 = vmatprep.subr.bf16.mxu1 %v13194_v33  ;;  %v3269_v32 = vld [vmem:[#allocation18 + $0xbd8] sm:$0xff] }
 0x579   :  { %9630 = vmatprep.subr.bf16.mxu0 %v12428_v35  ;;  %v3517_v33 = vld [vmem:[#allocation18 + $0x1398] sm:$0xff]  ;;  %v12588_v47 = vcombine.high %v3261_v55, %v3269_v32  ;;  %v12587_v36 = vcombine.low %v3261_v55, %v3269_v32 }
 0x57a   :  { %v3525_v35 = vld [vmem:[#allocation18 + $0x13d8] sm:$0xff] }
 0x57b   :  { %9590 = vmatpush2.bf16.msra.mxu1 %v13193_v40  ;;  %v3929_v40 = vrot.slane %v14450_v48, %v14281_v1  ;;  %v3477_v17 = vld [vmem:[#allocation18 + $0x1258] sm:$0xff] }
 0x57c   :  { %9631 = vmatpush2.bf16.msra.mxu0 %v12427_v49  ;;  %9591 = vmatprep.subr.bf16.mxu1 %v13178_v37  ;;  %v12844_v49 = vcombine.high %v3517_v33, %v3525_v35  ;;  %v3245_v37 = vld [vmem:[#allocation18 + $0xb18] sm:$0xff] }
 0x57d   :  { %9632 = vmatprep.subr.bf16.mxu0 %v12412_v50  ;;  %v3253_v50 = vld [vmem:[#allocation18 + $0xb58] sm:$0xff] }
 0x57e   :  { %v12571_v15 = vcombine.low %v3245_v37, %v3253_v50 }
 0x57f   :  { %9592 = vmatpush2.bf16.msra.mxu1 %v13177_v58  ;;  %v12843_v58 = vcombine.low %v3517_v33, %v3525_v35  ;;  %v12796_v33 = vcombine.high %v3469_v29, %v3477_v17  ;;  %v3197_v35 = vld [vmem:[#allocation18 + $0x998] sm:$0xff] }
 0x580   :  { %9633 = vmatpush2.bf16.msra.mxu0 %v12411_v59  ;;  %9593 = vmatprep.subr.bf16.mxu1 %v13162_v60  ;;  %v9317_v59 = vadd.f32 %v14436_v39, %v3929_v40  ;;  %v12572_v60 = vcombine.high %v3245_v37, %v3253_v50 }
 0x581   :  { %9634 = vmatprep.subr.bf16.mxu0 %v12396_v62  ;;  %v3229_v62 = vld [vmem:[#allocation18 + $0xa98] sm:$0xff] }
 0x582   :  { %v12556_v19 = vcombine.high %v3229_v62, %v3237_v0 }
 0x583   :  { %9594 = vmatpush2.bf16.msra.mxu1 %v13161_v9  ;;  %v3485_v9 = vld [vmem:[#allocation18 + $0x1298] sm:$0xff] }
 0x584   :  { %9635 = vmatpush2.bf16.msra.mxu0 %v12395_v4  ;;  %9595 = vmatprep.subr.bf16.mxu1 %v13146_v56  ;;  %v3493_v4 = vld [vmem:[#allocation18 + $0x12d8] sm:$0xff]  ;;  %v9319_v56 = vadd.f32 %v14444_v63, %v3933_v53 }
 0x585   :  { %9636 = vmatprep.subr.bf16.mxu0 %v12380_v14  ;;  %v3213_v63 = vld [vmem:[#allocation18 + $0xa18] sm:$0xff]  ;;  %v12811_v55 = vcombine.low %v3485_v9, %v3493_v4 }
 0x586   :  { %v3181_v53 = vld [vmem:[#allocation18 + $0x918] sm:$0xff] }
 0x587   :  { %9596 = vmatpush2.bf16.msra.mxu1 %v13145_v22 }
 0x588   :  { %9637 = vmatpush2.bf16.msra.mxu0 %v12379_v23  ;;  %9597 = vmatprep.subr.bf16.mxu1 %v13130_v25  ;;  %v12812_v25 = vcombine.high %v3485_v9, %v3493_v4  ;;  %v12763_v4 = vcombine.low %v3437_v54, %v3445_v57 }
 0x589   :  { %9638 = vmatprep.subr.bf16.mxu0 %v12364_v11  ;;  %v3221_v11 = vld [vmem:[#allocation18 + $0xa58] sm:$0xff] }
 0x58a   :  { %v12540_v32 = vcombine.high %v3213_v63, %v3221_v11  ;;  %v12539_v40 = vcombine.low %v3213_v63, %v3221_v11  ;;  %v3389_v11 = vld [vmem:[#allocation18 + $0xf98] sm:$0xff] }
 0x58b   :  { %9598 = vmatpush2.bf16.msra.mxu1 %v13129_v31 }
 0x58c   :  { %9639 = vmatpush2.bf16.msra.mxu0 %v12363_v30  ;;  %9599 = vmatprep.subr.bf16.mxu1 %v13114_v51  ;;  %v12555_v30 = vcombine.low %v3229_v62, %v3237_v0  ;;  %v12764_v62 = vcombine.high %v3437_v54, %v3445_v57  ;;  %v3165_v0 = vld [vmem:[#allocation18 + $0x898] sm:$0xff] }
 0x58d   :  { %9640 = vmatprep.subr.bf16.mxu0 %v12348_v52 }
 0x58f   :  { %9600 = vmatpush2.bf16.msra.mxu1 %v13113_v42  ;;  %v3205_v42 = vld [vmem:[#allocation18 + $0x9d8] sm:$0xff] }
 0x590   :  { %9641 = vmatpush2.bf16.msra.mxu0 %v12347_v44  ;;  %9651 = vmatprep.subr.bf16.mxu1 %v12588_v47  ;;  %v3453_v44 = vld [vmem:[#allocation18 + $0x1198] sm:$0xff]  ;;  %v12524_v37 = vcombine.high %v3197_v35, %v3205_v42 }
 0x591   :  { %9692 = vmatprep.subr.bf16.mxu0 %v12844_v49  ;;  %v3461_v47 = vld [vmem:[#allocation18 + $0x11d8] sm:$0xff]  ;;  %v12795_v49 = vcombine.low %v3469_v29, %v3477_v17 }
 0x592   :  { %v9357_v2 = vpop.f32.mrf.mxu1  ;;  %v9398_v6 = vpop.f32.mrf.mxu0  ;;  %9602 = vmatmul.mubr.bf16.vlgmr.msra.gmra.mxu1 %v14406_v12  ;;  %v12780_v50 = vcombine.high %v3453_v44, %v3461_v47  ;;  %v3653_v29 = vld [vmem:[#allocation18 + $0x17d8] sm:$0xff] }
 0x593   :  { %v9358_v14 = vadd.f32 %v9357_v2, %v9317_v59  ;;  %9643 = vmatmul.mubr.bf16.vlgmr.msra.gmra.mxu0 %v14344_v5  ;;  %9652 = vmatpush1.bf16.msra.mxu1 %v12587_v36  ;;  %v3189_v36 = vld [vmem:[#allocation18 + $0x958] sm:$0xff]  ;;  %v12779_v59 = vcombine.low %v3453_v44, %v3461_v47 }
 0x594   :  { %9683 = vmatprep.mubr.bf16.mxu1 %v14351_v46  ;;  %9693 = vmatpush1.bf16.msra.mxu0 %v12843_v58  ;;  %v9359_v39 = vpop.f32.mrf.mxu1  ;;  %v9400_v13 = vpop.f32.mrf.mxu0  ;;  %v12523_v58 = vcombine.low %v3197_v35, %v3205_v42  ;;  %v3173_v2 = vld [vmem:[#allocation18 + $0x8d8] sm:$0xff]  ;;  %v12507_v9 = vcombine.low %v3181_v53, %v3189_v36 }
 0x595   :  { %v14461_v22 = vadd.f32 %v9398_v6, %v9358_v14  ;;  %9724 = vmatprep.mubr.bf16.mxu0 %v14385_v18  ;;  %v9360_v23 = vadd.f32 %v9359_v39, %v9319_v56  ;;  %9653 = vmatprep.subr.bf16.mxu1 %v12572_v60  ;;  %v12508_v60 = vcombine.high %v3181_v53, %v3189_v36  ;;  %v3421_v6 = vld [vmem:[#allocation18 + $0x1098] sm:$0xff] }
 0x596   :  { %v9361_v26 = vpop.f32.mrf.mxu1  ;;  %v9402_v28 = vpop.f32.mrf.mxu0  ;;  %9694 = vmatprep.subr.bf16.mxu0 %v12828_v8  ;;  %v3429_v8 = vld [vmem:[#allocation18 + $0x10d8] sm:$0xff]  ;;  %v12492_v56 = vcombine.high %v3165_v0, %v3173_v2 }
 0x597   :  { %v14464_v31 = vadd.f32 %v9400_v13, %v9360_v23  ;;  %9654 = vmatpush1.bf16.msra.mxu1 %v12571_v15  ;;  %v12748_v14 = vcombine.high %v3421_v6, %v3429_v8  ;;  %v3149_v15 = vld [vmem:[#allocation18 + $0x818] sm:$0xff]  ;;  %v12747_v23 = vcombine.low %v3421_v6, %v3429_v8 }
 0x598   :  { %9695 = vmatpush1.bf16.msra.mxu0 %v12827_v16  ;;  %v9362_v51 = vpop.f32.mrf.mxu1  ;;  %v9403_v52 = vpop.f32.mrf.mxu0  ;;  %9655 = vmatprep.subr.bf16.mxu1 %v12556_v19  ;;  %v3157_v39 = vld [vmem:[#allocation18 + $0x858] sm:$0xff]  ;;  %v12491_v19 = vcombine.low %v3165_v0, %v3173_v2 }
 0x599   :  { %9696 = vmatprep.subr.bf16.mxu0 %v12812_v25  ;;  %v3405_v13 = vld [vmem:[#allocation18 + $0x1018] sm:$0xff]  ;;  %v12476_v25 = vcombine.high %v3149_v15, %v3157_v39  ;;  %v12475_v17 = vcombine.low %v3149_v15, %v3157_v39 }
 0x59a   :  { %v3413_v16 = vld [vmem:[#allocation18 + $0x1058] sm:$0xff] }
 0x59b   :  { %9656 = vmatpush1.bf16.msra.mxu1 %v12555_v30  ;;  %v12732_v63 = vcombine.high %v3405_v13, %v3413_v16  ;;  %v3397_v26 = vld [vmem:[#allocation18 + $0xfd8] sm:$0xff]  ;;  %v12731_v30 = vcombine.low %v3405_v13, %v3413_v16 }
 0x59c   :  { %9697 = vmatpush1.bf16.msra.mxu0 %v12811_v55  ;;  %9657 = vmatprep.subr.bf16.mxu1 %v12540_v32  ;;  %v3645_v28 = vld [vmem:[#allocation18 + $0x1798] sm:$0xff]  ;;  %v12716_v51 = vcombine.high %v3389_v11, %v3397_v26  ;;  %v12715_v42 = vcombine.low %v3389_v11, %v3397_v26 }
 0x59d   :  { %9698 = vmatprep.subr.bf16.mxu0 %v12796_v33  ;;  %v12972_v52 = vcombine.high %v3645_v28, %v3653_v29  ;;  %v3373_v55 = vld [vmem:[#allocation18 + $0xf18] sm:$0xff]  ;;  %v12971_v44 = vcombine.low %v3645_v28, %v3653_v29 }
 0x59e   :  { %v3381_v32 = vld [vmem:[#allocation18 + $0xf58] sm:$0xff] }
 0x59f   :  { %9658 = vmatpush1.bf16.msra.mxu1 %v12539_v40  ;;  %v3629_v33 = vld [vmem:[#allocation18 + $0x1718] sm:$0xff]  ;;  %v12700_v47 = vcombine.high %v3373_v55, %v3381_v32  ;;  %v12699_v36 = vcombine.low %v3373_v55, %v3381_v32 }
 0x5a0   :  { %9699 = vmatpush1.bf16.msra.mxu0 %v12795_v49  ;;  %9659 = vmatprep.subr.bf16.mxu1 %v12524_v37  ;;  %v3637_v35 = vld [vmem:[#allocation18 + $0x1758] sm:$0xff] }
 0x5a1   :  { %9700 = vmatprep.subr.bf16.mxu0 %v12780_v50  ;;  %v12956_v40 = vcombine.high %v3629_v33, %v3637_v35  ;;  %v3357_v49 = vld [vmem:[#allocation18 + $0xe98] sm:$0xff]  ;;  %v12955_v54 = vcombine.low %v3629_v33, %v3637_v35 }
 0x5a2   :  { %v3365_v37 = vld [vmem:[#allocation18 + $0xed8] sm:$0xff] }
 0x5a3   :  { %9660 = vmatpush1.bf16.msra.mxu1 %v12523_v58  ;;  %v3613_v50 = vld [vmem:[#allocation18 + $0x1698] sm:$0xff]  ;;  %v12684_v57 = vcombine.high %v3357_v49, %v3365_v37  ;;  %v12683_v2 = vcombine.low %v3357_v49, %v3365_v37 }
 0x5a4   :  { %9701 = vmatpush1.bf16.msra.mxu0 %v12779_v59  ;;  %9661 = vmatprep.subr.bf16.mxu1 %v12508_v60  ;;  %v3621_v53 = vld [vmem:[#allocation18 + $0x16d8] sm:$0xff] }
 0x5a5   :  { %9702 = vmatprep.subr.bf16.mxu0 %v12764_v62  ;;  %v12940_v58 = vcombine.high %v3613_v50, %v3621_v53  ;;  %v3341_v59 = vld [vmem:[#allocation18 + $0xe18] sm:$0xff]  ;;  %v12939_v6 = vcombine.low %v3613_v50, %v3621_v53 }
 0x5a6   :  { %v3349_v60 = vld [vmem:[#allocation18 + $0xe58] sm:$0xff] }
 0x5a7   :  { %9662 = vmatpush1.bf16.msra.mxu1 %v12507_v9  ;;  %v3597_v62 = vld [vmem:[#allocation18 + $0x1618] sm:$0xff]  ;;  %v12668_v8 = vcombine.high %v3341_v59, %v3349_v60  ;;  %v12667_v39 = vcombine.low %v3341_v59, %v3349_v60  ;;  %v3014_v59 = vld [vmem:[#allocation18 + $0x3e0] sm:$0xff] }
 0x5a8   :  { %9703 = vmatpush1.bf16.msra.mxu0 %v12763_v4  ;;  %9663 = vmatprep.subr.bf16.mxu1 %v12492_v56  ;;  %v3605_v0 = vld [vmem:[#allocation18 + $0x1658] sm:$0xff] }
 0x5a9   :  { %9704 = vmatprep.subr.bf16.mxu0 %v12748_v14  ;;  %v12924_v9 = vcombine.high %v3597_v62, %v3605_v0  ;;  %v3325_v4 = vld [vmem:[#allocation18 + $0xd98] sm:$0xff]  ;;  %v12923_v13 = vcombine.low %v3597_v62, %v3605_v0 }
 0x5aa   :  { %v3333_v56 = vld [vmem:[#allocation18 + $0xdd8] sm:$0xff] }
 0x5ab   :  { %9664 = vmatpush1.bf16.msra.mxu1 %v12491_v19  ;;  %v3581_v14 = vld [vmem:[#allocation18 + $0x1598] sm:$0xff]  ;;  %v12652_v16 = vcombine.high %v3325_v4, %v3333_v56  ;;  %v12651_v26 = vcombine.low %v3325_v4, %v3333_v56  ;;  %v2990_v4 = vld [vmem:[#allocation18 + $0x320] sm:$0xff] }
 0x5ac   :  { %9705 = vmatpush1.bf16.msra.mxu0 %v12747_v23  ;;  %9665 = vmatprep.subr.bf16.mxu1 %v12476_v25  ;;  %v3589_v15 = vld [vmem:[#allocation18 + $0x15d8] sm:$0xff]  ;;  %v2998_v56 = vld [vmem:[#allocation18 + $0x360] sm:$0xff] }
 0x5ad   :  { %9706 = vmatprep.subr.bf16.mxu0 %v12732_v63  ;;  %v12908_v19 = vcombine.high %v3581_v14, %v3589_v15  ;;  %v3309_v23 = vld [vmem:[#allocation18 + $0xd18] sm:$0xff]  ;;  %v12907_v28 = vcombine.low %v3581_v14, %v3589_v15 }
 0x5ae   :  { %v3317_v25 = vld [vmem:[#allocation18 + $0xd58] sm:$0xff] }
 0x5af   :  { %9666 = vmatpush1.bf16.msra.mxu1 %v12475_v17  ;;  %v3565_v63 = vld [vmem:[#allocation18 + $0x1518] sm:$0xff]  ;;  %v12636_v29 = vcombine.high %v3309_v23, %v3317_v25  ;;  %v12635_v32 = vcombine.low %v3309_v23, %v3317_v25  ;;  %v2974_v23 = vld [vmem:[#allocation18 + $0x2a0] sm:$0xff] }
 0x5b0   :  { %9707 = vmatpush1.bf16.msra.mxu0 %v12731_v30  ;;  %9667 = vmatprep.subr.bf16.mxu1 %v12716_v51  ;;  %v3573_v11 = vld [vmem:[#allocation18 + $0x1558] sm:$0xff]  ;;  %v2982_v25 = vld [vmem:[#allocation18 + $0x2e0] sm:$0xff] }
 0x5b1   :  { %9708 = vmatprep.subr.bf16.mxu0 %v12972_v52  ;;  %v12892_v17 = vcombine.high %v3565_v63, %v3573_v11  ;;  %v3293_v30 = vld [vmem:[#allocation18 + $0xc98] sm:$0xff]  ;;  %v12891_v33 = vcombine.low %v3565_v63, %v3573_v11 }
 0x5b2   :  { %v3301_v51 = vld [vmem:[#allocation18 + $0xcd8] sm:$0xff] }
 0x5b3   :  { %9668 = vmatpush2.bf16.msra.mxu1 %v12715_v42  ;;  %v3549_v52 = vld [vmem:[#allocation18 + $0x1498] sm:$0xff]  ;;  %v12620_v35 = vcombine.high %v3293_v30, %v3301_v51  ;;  %v12619_v37 = vcombine.low %v3293_v30, %v3301_v51 }
 0x5b4   :  { %9709 = vmatpush2.bf16.msra.mxu0 %v12971_v44  ;;  %9669 = vmatprep.subr.bf16.mxu1 %v12700_v47  ;;  %v3557_v55 = vld [vmem:[#allocation18 + $0x14d8] sm:$0xff] }
 0x5b5   :  { %9710 = vmatprep.subr.bf16.mxu0 %v12956_v40  ;;  %v12876_v42 = vcombine.high %v3549_v52, %v3557_v55  ;;  %v3277_v44 = vld [vmem:[#allocation18 + $0xc18] sm:$0xff]  ;;  %v12875_v50 = vcombine.low %v3549_v52, %v3557_v55 }
 0x5b6   :  { %v3285_v47 = vld [vmem:[#allocation18 + $0xc58] sm:$0xff] }
 0x5b7   :  { %9670 = vmatpush2.bf16.msra.mxu1 %v12699_v36  ;;  %v3533_v40 = vld [vmem:[#allocation18 + $0x1418] sm:$0xff]  ;;  %v12604_v53 = vcombine.high %v3277_v44, %v3285_v47  ;;  %v12603_v60 = vcombine.low %v3277_v44, %v3285_v47 }
 0x5b8   :  { %9711 = vmatpush2.bf16.msra.mxu0 %v12955_v54  ;;  %9671 = vmatprep.subr.bf16.mxu1 %v12684_v57  ;;  %v3541_v49 = vld [vmem:[#allocation18 + $0x1458] sm:$0xff] }
 0x5b9   :  { %9712 = vmatprep.subr.bf16.mxu0 %v12940_v58  ;;  %v12860_v36 = vcombine.high %v3533_v40, %v3541_v49  ;;  %v3773_v54 = vld [vmem:[#allocation18 + $0x1b98] sm:$0xff]  ;;  %v3006_v58 = vld [vmem:[#allocation18 + $0x3a0] sm:$0xff]  ;;  %v12859_v62 = vcombine.low %v3533_v40, %v3541_v49  ;;  %v12301_v40 = vcombine.low %v2974_v23, %v2982_v25 }
 0x5ba   :  { %v3781_v57 = vld [vmem:[#allocation18 + $0x1bd8] sm:$0xff]  ;;  %v12333_v14 = vcombine.low %v3006_v58, %v3014_v59 }
 0x5bb   :  { %9672 = vmatpush2.bf16.msra.mxu1 %v12683_v2  ;;  %v13100_v0 = vcombine.high %v3773_v54, %v3781_v57  ;;  %v12334_v2 = vcombine.high %v3006_v58, %v3014_v59  ;;  %v3725_v52 = vld [vmem:[#allocation18 + $0x1a18] sm:$0xff] }
 0x5bc   :  { %9713 = vmatpush2.bf16.msra.mxu0 %v12939_v6  ;;  %9673 = vmatprep.subr.bf16.mxu1 %v12668_v8  ;;  %v3757_v6 = vld [vmem:[#allocation18 + $0x1b18] sm:$0xff] }
 0x5bd   :  { %9714 = vmatprep.subr.bf16.mxu0 %v12924_v9  ;;  %v3765_v8 = vld [vmem:[#allocation18 + $0x1b58] sm:$0xff]  ;;  %v13099_v9 = vcombine.low %v3773_v54, %v3781_v57  ;;  %v2950_v54 = vld [vmem:[#allocation18 + $0x1e0] sm:$0xff] }
 0x5be   :  { %v13084_v15 = vcombine.high %v3757_v6, %v3765_v8  ;;  %v3733_v55 = vld [vmem:[#allocation18 + $0x1a58] sm:$0xff] }
 0x5bf   :  { %9674 = vmatpush2.bf16.msra.mxu1 %v12667_v39  ;;  %v3741_v39 = vld [vmem:[#allocation18 + $0x1a98] sm:$0xff]  ;;  %v13052_v49 = vcombine.high %v3725_v52, %v3733_v55  ;;  %v13051_v57 = vcombine.low %v3725_v52, %v3733_v55 }
 0x5c0   :  { %9715 = vmatpush2.bf16.msra.mxu0 %v12923_v13  ;;  %9675 = vmatprep.subr.bf16.mxu1 %v12652_v16  ;;  %v3749_v13 = vld [vmem:[#allocation18 + $0x1ad8] sm:$0xff] }
 0x5c1   :  { %9716 = vmatprep.subr.bf16.mxu0 %v12908_v19  ;;  %v12318_v19 = vcombine.high %v2990_v4, %v2998_v56  ;;  %v13067_v44 = vcombine.low %v3741_v39, %v3749_v13 }
 0x5c3   :  { %9676 = vmatpush2.bf16.msra.mxu1 %v12651_v26  ;;  %v13083_v26 = vcombine.low %v3757_v6, %v3765_v8  ;;  %v2934_v6 = vld [vmem:[#allocation18 + $0x160] sm:$0xff] }
 0x5c4   :  { %9717 = vmatpush2.bf16.msra.mxu0 %v12907_v28  ;;  %9677 = vmatprep.subr.bf16.mxu1 %v12636_v29  ;;  %v12317_v29 = vcombine.low %v2990_v4, %v2998_v56 }
 0x5c5   :  { %9718 = vmatprep.subr.bf16.mxu0 %v12892_v17  ;;  %v13068_v17 = vcombine.high %v3741_v39, %v3749_v13  ;;  %v2910_v39 = vld [vmem:[#allocation18 + $0xa0] sm:$0xff] }
 0x5c6   :  { %v2918_v13 = vld [vmem:[#allocation18 + $0xe0] sm:$0xff] }
 0x5c7   :  { %9678 = vmatpush2.bf16.msra.mxu1 %v12635_v32  ;;  %v12237_v52 = vcombine.low %v2910_v39, %v2918_v13 }
 0x5c8   :  { %9719 = vmatpush2.bf16.msra.mxu0 %v12891_v33  ;;  %9679 = vmatprep.subr.bf16.mxu1 %v12620_v35  ;;  %v2958_v33 = vld [vmem:[#allocation18 + $0x220] sm:$0xff] }
 0x5c9   :  { %9720 = vmatprep.subr.bf16.mxu0 %v12876_v42  ;;  %v2966_v35 = vld [vmem:[#allocation18 + $0x260] sm:$0xff] }
 0x5ca   :  { %v12285_v58 = vcombine.low %v2958_v33, %v2966_v35 }
 0x5cb   :  { %9680 = vmatpush2.bf16.msra.mxu1 %v12619_v37  ;;  %v12286_v37 = vcombine.high %v2958_v33, %v2966_v35  ;;  %v3901_v33 = vld [vmem:[#allocation18 + $0x1f98] sm:$0xff] }
 0x5cc   :  { %9721 = vmatpush2.bf16.msra.mxu0 %v12875_v50  ;;  %9681 = vmatprep.subr.bf16.mxu1 %v12604_v53  ;;  %v3709_v50 = vld [vmem:[#allocation18 + $0x1998] sm:$0xff] }
 0x5cd   :  { %9722 = vmatprep.subr.bf16.mxu0 %v12860_v36  ;;  %v3717_v53 = vld [vmem:[#allocation18 + $0x19d8] sm:$0xff]  ;;  %v2942_v36 = vld [vmem:[#allocation18 + $0x1a0] sm:$0xff] }
 0x5ce   :  { %v13036_v59 = vcombine.high %v3709_v50, %v3717_v53  ;;  %v13035_v8 = vcombine.low %v3709_v50, %v3717_v53  ;;  %v3909_v35 = vld [vmem:[#allocation18 + $0x1fd8] sm:$0xff]  ;;  %v3118_v53 = vld [vmem:[#allocation18 + $0x720] sm:$0xff] }
 0x5cf   :  { %9682 = vmatpush2.bf16.msra.mxu1 %v12603_v60  ;;  %v12270_v60 = vcombine.high %v2942_v36, %v2950_v54  ;;  %v3893_v50 = vld [vmem:[#allocation18 + $0x1f58] sm:$0xff] }
 0x5d0   :  { %9723 = vmatpush2.bf16.msra.mxu0 %v12859_v62  ;;  %9733 = vmatprep.subr.bf16.mxu1 %v13100_v0  ;;  %v3693_v62 = vld [vmem:[#allocation18 + $0x1918] sm:$0xff] }
 0x5d1   :  { %9774 = vmatprep.subr.bf16.mxu0 %v12334_v2  ;;  %v3701_v0 = vld [vmem:[#allocation18 + $0x1958] sm:$0xff]  ;;  %v2926_v2 = vld [vmem:[#allocation18 + $0x120] sm:$0xff] }
 0x5d2   :  { %v9439_v16 = vpop.f32.mrf.mxu1  ;;  %9684 = vmatmul.mubr.bf16.vlgmr.msra.gmra.mxu1 %v14355_v34  ;;  %v13020_v4 = vcombine.high %v3693_v62, %v3701_v0  ;;  %v12254_v56 = vcombine.high %v2926_v2, %v2934_v6 }
 0x5d3   :  { %v14468_v63 = vadd.f32 %v9439_v16, %v14461_v22  ;;  %v14470_v11 = vpop.f32.mrf.mxu0  ;;  %9725 = vmatmul.mubr.bf16.vlgmr.msra.gmra.mxu0 %v14389_v20  ;;  %9734 = vmatpush1.bf16.msra.mxu1 %v13099_v9  ;;  %v12302_v22 = vcombine.high %v2974_v23, %v2982_v25  ;;  %v12269_v9 = vcombine.low %v2942_v36, %v2950_v54  ;;  %v3126_v36 = vld [vmem:[#allocation18 + $0x760] sm:$0xff] }
 0x5d4   :  { %9765 = vmatprep.mubr.bf16.mxu1 %v14404_v10  ;;  %9775 = vmatpush1.bf16.msra.mxu0 %v12333_v14  ;;  %v9441_v28 = vpop.f32.mrf.mxu1  ;;  %v3677_v14 = vld [vmem:[#allocation18 + $0x1898] sm:$0xff]  ;;  %v13019_v16 = vcombine.low %v3693_v62, %v3701_v0  ;;  %v12238_v25 = vcombine.high %v2910_v39, %v2918_v13  ;;  %v13227_v54 = vcombine.low %v3901_v33, %v3909_v35  ;;  %v3102_v0 = vld [vmem:[#allocation18 + $0x6a0] sm:$0xff] }
 0x5d5   :  { %9806 = vmatprep.mubr.bf16.mxu0 %v14328_v7  ;;  %v14476_v30 = vadd.f32 %v9441_v28, %v14464_v31  ;;  %v14478_v51 = vpop.f32.mrf.mxu0  ;;  %9735 = vmatprep.subr.bf16.mxu1 %v13084_v15  ;;  %v3685_v15 = vld [vmem:[#allocation18 + $0x18d8] sm:$0xff]  ;;  %v3094_v39 = vld [vmem:[#allocation18 + $0x660] sm:$0xff]  ;;  %vm10433_vm7 = vcmp.gt.f32.partialorder %v14468_v63, 0.0 }
 0x5d6   :  { %v9443_v32 = vpop.f32.mrf.mxu1  ;;  %9776 = vmatprep.subr.bf16.mxu0 %v12318_v19  ;;  %v12253_v19 = vcombine.low %v2926_v2, %v2934_v6  ;;  %v13004_v23 = vcombine.high %v3677_v14, %v3685_v15  ;;  %v3669_v28 = vld [vmem:[#allocation18 + $0x1858] sm:$0xff]  ;;  %v3110_v2 = vld [vmem:[#allocation18 + $0x6e0] sm:$0xff] }
 0x5d7   :  { %v9484_v42 = vpop.f32.mrf.mxu0  ;;  %9736 = vmatpush1.bf16.msra.mxu1 %v13083_v26  ;;  %v3661_v26 = vld [vmem:[#allocation18 + $0x1818] sm:$0xff]  ;;  %vm10434_vm5 = vcmp.gt.f32.partialorder %v14476_v30, 0.0 }
 0x5d8   :  { %9777 = vmatpush1.bf16.msra.mxu0 %v12317_v29  ;;  %v9444_v47 = vpop.f32.mrf.mxu1  ;;  %9737 = vmatprep.subr.bf16.mxu1 %v13068_v17  ;;  %v2894_v29 = vld [vmem:[#allocation18 + $0x20] sm:$0xff]  ;;  %v12988_v55 = vcombine.high %v3661_v26, %v3669_v28  ;;  %v3877_v62 = vld [vmem:[#allocation18 + $0x1ed8] sm:$0xff] }
 0x5d9   :  { %v9485_v31 = vpop.f32.mrf.mxu0  ;;  %9778 = vmatprep.subr.bf16.mxu0 %v12302_v22  ;;  %v2902_v17 = vld [vmem:[#allocation18 + $0x60] sm:$0xff]  ;;  %v13003_v22 = vcombine.low %v3677_v14, %v3685_v15  ;;  %v12987_v47 = vcombine.low %v3661_v26, %v3669_v28  ;;  %v3861_v14 = vld [vmem:[#allocation18 + $0x1e58] sm:$0xff] }
 0x5da   :  { %v12222_v32 = vcombine.high %v2894_v29, %v2902_v17  ;;  %v3134_v42 = vld [vmem:[#allocation18 + $0x7a0] sm:$0xff]  ;;  %v3845_v26 = vld [vmem:[#allocation18 + $0x1dd8] sm:$0xff] }
 0x5db   :  { %9738 = vmatpush1.bf16.msra.mxu1 %v13067_v44  ;;  %v3142_v44 = vld [vmem:[#allocation18 + $0x7e0] sm:$0xff] }
 0x5dc   :  { %9779 = vmatpush1.bf16.msra.mxu0 %v12301_v40  ;;  %9739 = vmatprep.subr.bf16.mxu1 %v13052_v49  ;;  %v12221_v40 = vcombine.low %v2894_v29, %v2902_v17  ;;  %v13228_v49 = vcombine.high %v3901_v33, %v3909_v35  ;;  %v12462_v31 = vcombine.high %v3134_v42, %v3142_v44  ;;  %v3086_v15 = vld [vmem:[#allocation18 + $0x620] sm:$0xff]  ;;  %v3829_v33 = vld [vmem:[#allocation18 + $0x1d58] sm:$0xff] }
 0x5dd   :  { %9780 = vmatprep.subr.bf16.mxu0 %v12286_v37  ;;  %v3885_v37 = vld [vmem:[#allocation18 + $0x1f18] sm:$0xff]  ;;  %v3070_v28 = vld [vmem:[#allocation18 + $0x5a0] sm:$0xff] }
 0x5de   :  { %v13211_v6 = vcombine.low %v3885_v37, %v3893_v50  ;;  %v3078_v29 = vld [vmem:[#allocation18 + $0x5e0] sm:$0xff] }
 0x5df   :  { %9740 = vmatpush1.bf16.msra.mxu1 %v13051_v57  ;;  %v12461_v57 = vcombine.low %v3134_v42, %v3142_v44  ;;  %v3054_v35 = vld [vmem:[#allocation18 + $0x520] sm:$0xff] }
 0x5e0   :  { %9781 = vmatpush1.bf16.msra.mxu0 %v12285_v58  ;;  %9741 = vmatprep.subr.bf16.mxu1 %v13036_v59  ;;  %v13212_v58 = vcombine.high %v3885_v37, %v3893_v50  ;;  %v12446_v59 = vcombine.high %v3118_v53, %v3126_v36  ;;  %v3062_v42 = vld [vmem:[#allocation18 + $0x560] sm:$0xff]  ;;  %v3813_v37 = vld [vmem:[#allocation18 + $0x1cd8] sm:$0xff] }
 0x5e1   :  { %9782 = vmatprep.subr.bf16.mxu0 %v12270_v60  ;;  %v3869_v60 = vld [vmem:[#allocation18 + $0x1e98] sm:$0xff]  ;;  %v3038_v50 = vld [vmem:[#allocation18 + $0x4a0] sm:$0xff] }
 0x5e2   :  { %v13195_v13 = vcombine.low %v3869_v60, %v3877_v62 }
 0x5e3   :  { %9742 = vmatpush1.bf16.msra.mxu1 %v13035_v8  ;;  %v12445_v8 = vcombine.low %v3118_v53, %v3126_v36  ;;  %v3046_v53 = vld [vmem:[#allocation18 + $0x4e0] sm:$0xff] }
 0x5e4   :  { %9783 = vmatpush1.bf16.msra.mxu0 %v12269_v9  ;;  %9743 = vmatprep.subr.bf16.mxu1 %v13020_v4  ;;  %v13196_v9 = vcombine.high %v3869_v60, %v3877_v62  ;;  %v12430_v4 = vcombine.high %v3102_v0, %v3110_v2  ;;  %v3797_v60 = vld [vmem:[#allocation18 + $0x1c58] sm:$0xff]  ;;  %v3022_v62 = vld [vmem:[#allocation18 + $0x420] sm:$0xff] }
 0x5e5   :  { %9784 = vmatprep.subr.bf16.mxu0 %v12254_v56  ;;  %v3853_v56 = vld [vmem:[#allocation18 + $0x1e18] sm:$0xff] }
 0x5e6   :  { %v13179_v17 = vcombine.low %v3853_v56, %v3861_v14 }
 0x5e7   :  { %9744 = vmatpush1.bf16.msra.mxu1 %v13019_v16  ;;  %v12429_v16 = vcombine.low %v3102_v0, %v3110_v2  ;;  %v3030_v0 = vld [vmem:[#allocation18 + $0x460] sm:$0xff] }
 0x5e8   :  { %9785 = vmatpush1.bf16.msra.mxu0 %v12253_v19  ;;  %9745 = vmatprep.subr.bf16.mxu1 %v13004_v23  ;;  %v13180_v19 = vcombine.high %v3853_v56, %v3861_v14  ;;  %v12414_v23 = vcombine.high %v3086_v15, %v3094_v39  ;;  %v3270_v56 = vld [vmem:[#allocation18 + $0xbe0] sm:$0xff] }
 0x5e9   :  { %9786 = vmatprep.subr.bf16.mxu0 %v12238_v25  ;;  %v3837_v25 = vld [vmem:[#allocation18 + $0x1d98] sm:$0xff]  ;;  %v3518_v14 = vld [vmem:[#allocation18 + $0x13a0] sm:$0xff] }
 0x5ea   :  { %v13163_v44 = vcombine.low %v3837_v25, %v3845_v26 }
 0x5eb   :  { %9746 = vmatpush1.bf16.msra.mxu1 %v13003_v22  ;;  %v12413_v22 = vcombine.low %v3086_v15, %v3094_v39  ;;  %v3526_v15 = vld [vmem:[#allocation18 + $0x13e0] sm:$0xff] }
 0x5ec   :  { %9787 = vmatpush1.bf16.msra.mxu0 %v12237_v52  ;;  %9747 = vmatprep.subr.bf16.mxu1 %v12988_v55  ;;  %v13164_v52 = vcombine.high %v3837_v25, %v3845_v26  ;;  %v12398_v55 = vcombine.high %v3070_v28, %v3078_v29  ;;  %v3246_v25 = vld [vmem:[#allocation18 + $0xb20] sm:$0xff] }
 0x5ed   :  { %9788 = vmatprep.subr.bf16.mxu0 %v12222_v32  ;;  %v3821_v32 = vld [vmem:[#allocation18 + $0x1d18] sm:$0xff]  ;;  %v3254_v26 = vld [vmem:[#allocation18 + $0xb60] sm:$0xff] }
 0x5ee   :  { %v13147_v36 = vcombine.low %v3821_v32, %v3829_v33 }
 0x5ef   :  { %9748 = vmatpush1.bf16.msra.mxu1 %v12987_v47  ;;  %v12397_v47 = vcombine.low %v3070_v28, %v3078_v29  ;;  %v3941_v28 = vrot.slane %v14450_v48, %v14375_v45 }
 0x5f0   :  { %9789 = vmatpush1.bf16.msra.mxu0 %v12221_v40  ;;  %9749 = vmatprep.subr.bf16.mxu1 %v13228_v49  ;;  %v13148_v40 = vcombine.high %v3821_v32, %v3829_v33  ;;  %v12382_v49 = vcombine.high %v3054_v35, %v3062_v42  ;;  %v12574_v32 = vcombine.high %v3246_v25, %v3254_v26  ;;  %v3230_v33 = vld [vmem:[#allocation18 + $0xaa0] sm:$0xff] }
 0x5f1   :  { %9790 = vmatprep.subr.bf16.mxu0 %v12462_v31  ;;  %v3805_v31 = vld [vmem:[#allocation18 + $0x1c98] sm:$0xff] }
 0x5f2   :  { %v13131_v2 = vcombine.low %v3805_v31, %v3813_v37 }
 0x5f3   :  { %9750 = vmatpush2.bf16.msra.mxu1 %v13227_v54  ;;  %v12381_v54 = vcombine.low %v3054_v35, %v3062_v42  ;;  %v3238_v35 = vld [vmem:[#allocation18 + $0xae0] sm:$0xff] }
 0x5f4   :  { %9791 = vmatpush2.bf16.msra.mxu0 %v12461_v57  ;;  %9751 = vmatprep.subr.bf16.mxu1 %v13212_v58  ;;  %v13132_v57 = vcombine.high %v3805_v31, %v3813_v37  ;;  %v12366_v58 = vcombine.high %v3038_v50, %v3046_v53  ;;  %v12573_v37 = vcombine.low %v3246_v25, %v3254_v26 }
 0x5f5   :  { %9792 = vmatprep.subr.bf16.mxu0 %v12446_v59  ;;  %v3789_v59 = vld [vmem:[#allocation18 + $0x1c18] sm:$0xff] }
 0x5f6   :  { %v13115_v39 = vcombine.low %v3789_v59, %v3797_v60 }
 0x5f7   :  { %9752 = vmatpush2.bf16.msra.mxu1 %v13211_v6  ;;  %v12365_v6 = vcombine.low %v3038_v50, %v3046_v53  ;;  %v12558_v53 = vcombine.high %v3230_v33, %v3238_v35 }
 0x5f8   :  { %9793 = vmatpush2.bf16.msra.mxu0 %v12445_v8  ;;  %9753 = vmatprep.subr.bf16.mxu1 %v13196_v9  ;;  %v13116_v8 = vcombine.high %v3789_v59, %v3797_v60  ;;  %v12350_v9 = vcombine.high %v3022_v62, %v3030_v0  ;;  %v3222_v59 = vld [vmem:[#allocation18 + $0xa60] sm:$0xff] }
 0x5f9   :  { %9794 = vmatprep.subr.bf16.mxu0 %v12430_v4  ;;  %v3262_v4 = vld [vmem:[#allocation18 + $0xba0] sm:$0xff] }
 0x5fa   :  { %v12589_v29 = vcombine.low %v3262_v4, %v3270_v56 }
 0x5fb   :  { %9754 = vmatpush2.bf16.msra.mxu1 %v13195_v13  ;;  %v12349_v13 = vcombine.low %v3022_v62, %v3030_v0  ;;  %v3470_v62 = vld [vmem:[#allocation18 + $0x1220] sm:$0xff] }
 0x5fc   :  { %9795 = vmatpush2.bf16.msra.mxu0 %v12429_v16  ;;  %9755 = vmatprep.subr.bf16.mxu1 %v13180_v19  ;;  %v12590_v16 = vcombine.high %v3262_v4, %v3270_v56  ;;  %v3937_v19 = vrot.slane %v14450_v48, %v14370_v38  ;;  %v9483_v48 = vadd.f32 %v14478_v51, %v3941_v28  ;;  %v3478_v0 = vld [vmem:[#allocation18 + $0x1260] sm:$0xff] }
 0x5fd   :  { %9796 = vmatprep.subr.bf16.mxu0 %v12414_v23  ;;  %v12846_v23 = vcombine.high %v3518_v14, %v3526_v15  ;;  %v12797_v25 = vcombine.low %v3470_v62, %v3478_v0 }
 0x5ff   :  { %9756 = vmatpush2.bf16.msra.mxu1 %v13179_v17  ;;  %v3502_v17 = vld [vmem:[#allocation18 + $0x1320] sm:$0xff] }
 0x600   :  { %9797 = vmatpush2.bf16.msra.mxu0 %v12413_v22  ;;  %9757 = vmatprep.subr.bf16.mxu1 %v13164_v52  ;;  %v3510_v22 = vld [vmem:[#allocation18 + $0x1360] sm:$0xff]  ;;  %v12845_v52 = vcombine.low %v3518_v14, %v3526_v15  ;;  %v12798_v15 = vcombine.high %v3470_v62, %v3478_v0 }
 0x601   :  { %9798 = vmatprep.subr.bf16.mxu0 %v12398_v55  ;;  %v9481_v55 = vadd.f32 %v14470_v11, %v3937_v19  ;;  %v12829_v50 = vcombine.low %v3502_v17, %v3510_v22  ;;  %v3462_v19 = vld [vmem:[#allocation18 + $0x11e0] sm:$0xff] }
 0x602   :  { %v3398_v62 = vld [vmem:[#allocation18 + $0xfe0] sm:$0xff] }
 0x603   :  { %9758 = vmatpush2.bf16.msra.mxu1 %v13163_v44  ;;  %v12830_v44 = vcombine.high %v3502_v17, %v3510_v22  ;;  %v3190_v17 = vld [vmem:[#allocation18 + $0x960] sm:$0xff] }
 0x604   :  { %9799 = vmatpush2.bf16.msra.mxu0 %v12397_v47  ;;  %9759 = vmatprep.subr.bf16.mxu1 %v13148_v40  ;;  %v3486_v47 = vld [vmem:[#allocation18 + $0x12a0] sm:$0xff] }
 0x605   :  { %9800 = vmatprep.subr.bf16.mxu0 %v12382_v49  ;;  %v3494_v40 = vld [vmem:[#allocation18 + $0x12e0] sm:$0xff] }
 0x606   :  { %v12814_v51 = vcombine.high %v3486_v47, %v3494_v40  ;;  %v12813_v4 = vcombine.low %v3486_v47, %v3494_v40  ;;  %v3438_v22 = vld [vmem:[#allocation18 + $0x1120] sm:$0xff] }
 0x607   :  { %9760 = vmatpush2.bf16.msra.mxu1 %v13147_v36  ;;  %v3422_v47 = vld [vmem:[#allocation18 + $0x10a0] sm:$0xff] }
 0x608   :  { %9801 = vmatpush2.bf16.msra.mxu0 %v12381_v54  ;;  %9761 = vmatprep.subr.bf16.mxu1 %v13132_v57  ;;  %v3430_v40 = vld [vmem:[#allocation18 + $0x10e0] sm:$0xff] }
 0x609   :  { %9802 = vmatprep.subr.bf16.mxu0 %v12366_v58  ;;  %v3214_v58 = vld [vmem:[#allocation18 + $0xa20] sm:$0xff] }
 0x60a   :  { %v12542_v56 = vcombine.high %v3214_v58, %v3222_v59  ;;  %v3646_v0 = vld [vmem:[#allocation18 + $0x17a0] sm:$0xff] }
 0x60b   :  { %9762 = vmatpush2.bf16.msra.mxu1 %v13131_v2 }
 0x60c   :  { %9803 = vmatpush2.bf16.msra.mxu0 %v12365_v6  ;;  %9763 = vmatprep.subr.bf16.mxu1 %v13116_v8  ;;  %v12557_v8 = vcombine.low %v3230_v33, %v3238_v35 }
 0x60d   :  { %9804 = vmatprep.subr.bf16.mxu0 %v12350_v9 }
 0x60f   :  { %9764 = vmatpush2.bf16.msra.mxu1 %v13115_v39  ;;  %v3198_v39 = vld [vmem:[#allocation18 + $0x9a0] sm:$0xff] }
 0x610   :  { %9805 = vmatpush2.bf16.msra.mxu0 %v12349_v13  ;;  %9815 = vmatprep.subr.bf16.mxu1 %v12590_v16  ;;  %v3206_v13 = vld [vmem:[#allocation18 + $0x9e0] sm:$0xff] }
 0x611   :  { %9856 = vmatprep.subr.bf16.mxu0 %v12846_v23  ;;  %v3454_v16 = vld [vmem:[#allocation18 + $0x11a0] sm:$0xff]  ;;  %v12541_v23 = vcombine.low %v3214_v58, %v3222_v59  ;;  %v12526_v26 = vcombine.high %v3198_v39, %v3206_v13 }
 0x612   :  { %v9521_v42 = vpop.f32.mrf.mxu1  ;;  %9766 = vmatmul.mubr.bf16.vlgmr.msra.gmra.mxu1 %v14406_v12  ;;  %v12782_v28 = vcombine.high %v3454_v16, %v3462_v19 }
 0x613   :  { %v9522_v49 = vadd.f32 %v9521_v42, %v9481_v55  ;;  %v9562_v31 = vpop.f32.mrf.mxu0  ;;  %9807 = vmatmul.mubr.bf16.vlgmr.msra.gmra.mxu0 %v14344_v5  ;;  %9816 = vmatpush1.bf16.msra.mxu1 %v12589_v29  ;;  %v3182_v29 = vld [vmem:[#allocation18 + $0x920] sm:$0xff]  ;;  %v12525_v55 = vcombine.low %v3198_v39, %v3206_v13 }
 0x614   :  { %9847 = vmatprep.mubr.bf16.mxu1 %v14351_v46  ;;  %9857 = vmatpush1.bf16.msra.mxu0 %v12845_v52  ;;  %v9523_v11 = vpop.f32.mrf.mxu1  ;;  %v3446_v52 = vld [vmem:[#allocation18 + $0x1160] sm:$0xff]  ;;  %v12510_v33 = vcombine.high %v3182_v29, %v3190_v17 }
 0x615   :  { %v14489_v36 = vadd.f32 %v9562_v31, %v9522_v49  ;;  %9888 = vmatprep.mubr.bf16.mxu0 %v14385_v18  ;;  %v9524_v54 = vadd.f32 %v9523_v11, %v9483_v48  ;;  %v9564_v57 = vpop.f32.mrf.mxu0  ;;  %9817 = vmatprep.subr.bf16.mxu1 %v12574_v32  ;;  %v12781_v32 = vcombine.low %v3454_v16, %v3462_v19  ;;  %v3166_v42 = vld [vmem:[#allocation18 + $0x8a0] sm:$0xff] }
 0x616   :  { %v9525_v60 = vpop.f32.mrf.mxu1  ;;  %9858 = vmatprep.subr.bf16.mxu0 %v12830_v44  ;;  %v12766_v35 = vcombine.high %v3438_v22, %v3446_v52  ;;  %v3174_v44 = vld [vmem:[#allocation18 + $0x8e0] sm:$0xff]  ;;  %v12509_v48 = vcombine.low %v3182_v29, %v3190_v17  ;;  %v12765_v49 = vcombine.low %v3438_v22, %v3446_v52 }
 0x617   :  { %v14492_v2 = vadd.f32 %v9564_v57, %v9524_v54  ;;  %v9566_v6 = vpop.f32.mrf.mxu0  ;;  %9818 = vmatpush1.bf16.msra.mxu1 %v12573_v37  ;;  %v12494_v31 = vcombine.high %v3166_v42, %v3174_v44  ;;  %v12750_v37 = vcombine.high %v3422_v47, %v3430_v40  ;;  %v3150_v11 = vld [vmem:[#allocation18 + $0x820] sm:$0xff]  ;;  %v12493_v57 = vcombine.low %v3166_v42, %v3174_v44 }
 0x618   :  { %9859 = vmatpush1.bf16.msra.mxu0 %v12829_v50  ;;  %v9526_v9 = vpop.f32.mrf.mxu1  ;;  %9819 = vmatprep.subr.bf16.mxu1 %v12558_v53  ;;  %v3158_v50 = vld [vmem:[#allocation18 + $0x860] sm:$0xff] }
 0x619   :  { %v9567_v14 = vpop.f32.mrf.mxu0  ;;  %9860 = vmatprep.subr.bf16.mxu0 %v12814_v51  ;;  %v3406_v53 = vld [vmem:[#allocation18 + $0x1020] sm:$0xff]  ;;  %v12749_v51 = vcombine.low %v3422_v47, %v3430_v40  ;;  %v12478_v58 = vcombine.high %v3150_v11, %v3158_v50 }
 0x61a   :  { %v3414_v54 = vld [vmem:[#allocation18 + $0x1060] sm:$0xff] }
 0x61b   :  { %9820 = vmatpush1.bf16.msra.mxu1 %v12557_v8  ;;  %v12734_v59 = vcombine.high %v3406_v53, %v3414_v54  ;;  %v3390_v60 = vld [vmem:[#allocation18 + $0xfa0] sm:$0xff]  ;;  %v12477_v8 = vcombine.low %v3150_v11, %v3158_v50  ;;  %v12733_v9 = vcombine.low %v3406_v53, %v3414_v54 }
 0x61c   :  { %9861 = vmatpush1.bf16.msra.mxu0 %v12813_v4  ;;  %9821 = vmatprep.subr.bf16.mxu1 %v12542_v56  ;;  %v3654_v6 = vld [vmem:[#allocation18 + $0x17e0] sm:$0xff]  ;;  %v12718_v4 = vcombine.high %v3390_v60, %v3398_v62  ;;  %v12717_v16 = vcombine.low %v3390_v60, %v3398_v62 }
 0x61d   :  { %9862 = vmatprep.subr.bf16.mxu0 %v12798_v15  ;;  %v12974_v56 = vcombine.high %v3646_v0, %v3654_v6  ;;  %v3374_v14 = vld [vmem:[#allocation18 + $0xf20] sm:$0xff]  ;;  %v12973_v19 = vcombine.low %v3646_v0, %v3654_v6 }
 0x61e   :  { %v3382_v15 = vld [vmem:[#allocation18 + $0xf60] sm:$0xff] }
 0x61f   :  { %9822 = vmatpush1.bf16.msra.mxu1 %v12541_v23  ;;  %v3630_v39 = vld [vmem:[#allocation18 + $0x1720] sm:$0xff]  ;;  %v12702_v23 = vcombine.high %v3374_v14, %v3382_v15  ;;  %v12701_v22 = vcombine.low %v3374_v14, %v3382_v15 }
 0x620   :  { %9863 = vmatpush1.bf16.msra.mxu0 %v12797_v25  ;;  %9823 = vmatprep.subr.bf16.mxu1 %v12526_v26  ;;  %v3638_v13 = vld [vmem:[#allocation18 + $0x1760] sm:$0xff] }
 0x621   :  { %9864 = vmatprep.subr.bf16.mxu0 %v12782_v28  ;;  %v12958_v25 = vcombine.high %v3630_v39, %v3638_v13  ;;  %v3358_v26 = vld [vmem:[#allocation18 + $0xea0] sm:$0xff]  ;;  %v12957_v52 = vcombine.low %v3630_v39, %v3638_v13 }
 0x622   :  { %v3366_v28 = vld [vmem:[#allocation18 + $0xee0] sm:$0xff] }
 0x623   :  { %9824 = vmatpush1.bf16.msra.mxu1 %v12525_v55  ;;  %v3614_v29 = vld [vmem:[#allocation18 + $0x16a0] sm:$0xff]  ;;  %v12686_v55 = vcombine.high %v3358_v26, %v3366_v28  ;;  %v12685_v47 = vcombine.low %v3358_v26, %v3366_v28 }
 0x624   :  { %9865 = vmatpush1.bf16.msra.mxu0 %v12781_v32  ;;  %9825 = vmatprep.subr.bf16.mxu1 %v12510_v33  ;;  %v3622_v17 = vld [vmem:[#allocation18 + $0x16e0] sm:$0xff] }
 0x625   :  { %9866 = vmatprep.subr.bf16.mxu0 %v12766_v35  ;;  %v12942_v32 = vcombine.high %v3614_v29, %v3622_v17  ;;  %v3342_v33 = vld [vmem:[#allocation18 + $0xe20] sm:$0xff]  ;;  %v12941_v40 = vcombine.low %v3614_v29, %v3622_v17 }
 0x626   :  { %v3350_v35 = vld [vmem:[#allocation18 + $0xe60] sm:$0xff] }
 0x627   :  { %9826 = vmatpush1.bf16.msra.mxu1 %v12509_v48  ;;  %v3598_v42 = vld [vmem:[#allocation18 + $0x1620] sm:$0xff]  ;;  %v12670_v48 = vcombine.high %v3342_v33, %v3350_v35  ;;  %v12669_v53 = vcombine.low %v3342_v33, %v3350_v35  ;;  %v3007_v33 = vld [vmem:[#allocation18 + $0x3a8] sm:$0xff] }
 0x628   :  { %9867 = vmatpush1.bf16.msra.mxu0 %v12765_v49  ;;  %9827 = vmatprep.subr.bf16.mxu1 %v12494_v31  ;;  %v3606_v44 = vld [vmem:[#allocation18 + $0x1660] sm:$0xff]  ;;  %v3015_v35 = vld [vmem:[#allocation18 + $0x3e8] sm:$0xff] }
 0x629   :  { %9868 = vmatprep.subr.bf16.mxu0 %v12750_v37  ;;  %v12926_v49 = vcombine.high %v3598_v42, %v3606_v44  ;;  %v3326_v31 = vld [vmem:[#allocation18 + $0xda0] sm:$0xff]  ;;  %v12925_v54 = vcombine.low %v3598_v42, %v3606_v44 }
 0x62a   :  { %v3334_v37 = vld [vmem:[#allocation18 + $0xde0] sm:$0xff] }
 0x62b   :  { %9828 = vmatpush1.bf16.msra.mxu1 %v12493_v57  ;;  %v3582_v11 = vld [vmem:[#allocation18 + $0x15a0] sm:$0xff]  ;;  %v12654_v57 = vcombine.high %v3326_v31, %v3334_v37  ;;  %v12653_v0 = vcombine.low %v3326_v31, %v3334_v37  ;;  %v2991_v37 = vld [vmem:[#allocation18 + $0x328] sm:$0xff] }
 0x62c   :  { %9869 = vmatpush1.bf16.msra.mxu0 %v12749_v51  ;;  %9829 = vmatprep.subr.bf16.mxu1 %v12478_v58  ;;  %v3590_v50 = vld [vmem:[#allocation18 + $0x15e0] sm:$0xff] }
 0x62d   :  { %9870 = vmatprep.subr.bf16.mxu0 %v12734_v59  ;;  %v12910_v51 = vcombine.high %v3582_v11, %v3590_v50  ;;  %v3310_v58 = vld [vmem:[#allocation18 + $0xd20] sm:$0xff]  ;;  %v12909_v6 = vcombine.low %v3582_v11, %v3590_v50  ;;  %v2999_v11 = vld [vmem:[#allocation18 + $0x368] sm:$0xff]  ;;  %v12335_v50 = vcombine.low %v3007_v33, %v3015_v35 }
 0x62e   :  { %v3318_v59 = vld [vmem:[#allocation18 + $0xd60] sm:$0xff] }
 0x62f   :  { %9830 = vmatpush1.bf16.msra.mxu1 %v12477_v8  ;;  %v3566_v60 = vld [vmem:[#allocation18 + $0x1520] sm:$0xff]  ;;  %v12638_v8 = vcombine.high %v3310_v58, %v3318_v59  ;;  %v12637_v39 = vcombine.low %v3310_v58, %v3318_v59  ;;  %v12320_v58 = vcombine.high %v2991_v37, %v2999_v11  ;;  %v2975_v59 = vld [vmem:[#allocation18 + $0x2a8] sm:$0xff] }
 0x630   :  { %9871 = vmatpush1.bf16.msra.mxu0 %v12733_v9  ;;  %9831 = vmatprep.subr.bf16.mxu1 %v12718_v4  ;;  %v3574_v62 = vld [vmem:[#allocation18 + $0x1560] sm:$0xff] }
 0x631   :  { %9872 = vmatprep.subr.bf16.mxu0 %v12974_v56  ;;  %v12894_v9 = vcombine.high %v3566_v60, %v3574_v62  ;;  %v3294_v4 = vld [vmem:[#allocation18 + $0xca0] sm:$0xff]  ;;  %v12893_v13 = vcombine.low %v3566_v60, %v3574_v62  ;;  %v2983_v60 = vld [vmem:[#allocation18 + $0x2e8] sm:$0xff] }
 0x632   :  { %v3302_v56 = vld [vmem:[#allocation18 + $0xce0] sm:$0xff] }
 0x633   :  { %9832 = vmatpush2.bf16.msra.mxu1 %v12717_v16  ;;  %v3550_v14 = vld [vmem:[#allocation18 + $0x14a0] sm:$0xff]  ;;  %v12622_v16 = vcombine.high %v3294_v4, %v3302_v56  ;;  %v12621_v29 = vcombine.low %v3294_v4, %v3302_v56 }
 0x634   :  { %9873 = vmatpush2.bf16.msra.mxu0 %v12973_v19  ;;  %9833 = vmatprep.subr.bf16.mxu1 %v12702_v23  ;;  %v3558_v15 = vld [vmem:[#allocation18 + $0x14e0] sm:$0xff] }
 0x635   :  { %9874 = vmatprep.subr.bf16.mxu0 %v12958_v25  ;;  %v12878_v19 = vcombine.high %v3550_v14, %v3558_v15  ;;  %v3278_v23 = vld [vmem:[#allocation18 + $0xc20] sm:$0xff]  ;;  %v12877_v17 = vcombine.low %v3550_v14, %v3558_v15 }
 0x636   :  { %v3286_v25 = vld [vmem:[#allocation18 + $0xc60] sm:$0xff] }
 0x637   :  { %9834 = vmatpush2.bf16.msra.mxu1 %v12701_v22  ;;  %v3534_v26 = vld [vmem:[#allocation18 + $0x1420] sm:$0xff]  ;;  %v12606_v22 = vcombine.high %v3278_v23, %v3286_v25  ;;  %v12605_v42 = vcombine.low %v3278_v23, %v3286_v25 }
 0x638   :  { %9875 = vmatpush2.bf16.msra.mxu0 %v12957_v52  ;;  %9835 = vmatprep.subr.bf16.mxu1 %v12686_v55  ;;  %v3542_v28 = vld [vmem:[#allocation18 + $0x1460] sm:$0xff] }
 0x639   :  { %9876 = vmatprep.subr.bf16.mxu0 %v12942_v32  ;;  %v12862_v52 = vcombine.high %v3534_v26, %v3542_v28  ;;  %v3774_v55 = vld [vmem:[#allocation18 + $0x1ba0] sm:$0xff]  ;;  %v12861_v44 = vcombine.low %v3534_v26, %v3542_v28  ;;  %v12303_v28 = vcombine.low %v2975_v59, %v2983_v60 }
 0x63a   :  { %v3782_v32 = vld [vmem:[#allocation18 + $0x1be0] sm:$0xff] }
 0x63b   :  { %9836 = vmatpush2.bf16.msra.mxu1 %v12685_v47  ;;  %v13102_v47 = vcombine.high %v3774_v55, %v3782_v32  ;;  %v13101_v31 = vcombine.low %v3774_v55, %v3782_v32  ;;  %v3726_v15 = vld [vmem:[#allocation18 + $0x1a20] sm:$0xff]  ;;  %v2943_v55 = vld [vmem:[#allocation18 + $0x1a8] sm:$0xff] }
 0x63c   :  { %9877 = vmatpush2.bf16.msra.mxu0 %v12941_v40  ;;  %9837 = vmatprep.subr.bf16.mxu1 %v12670_v48  ;;  %v12336_v40 = vcombine.high %v3007_v33, %v3015_v35  ;;  %v3758_v48 = vld [vmem:[#allocation18 + $0x1b20] sm:$0xff]  ;;  %v2951_v32 = vld [vmem:[#allocation18 + $0x1e8] sm:$0xff] }
 0x63d   :  { %9878 = vmatprep.subr.bf16.mxu0 %v12926_v49  ;;  %v3766_v49 = vld [vmem:[#allocation18 + $0x1b60] sm:$0xff] }
 0x63f   :  { %9838 = vmatpush2.bf16.msra.mxu1 %v12669_v53  ;;  %v13086_v53 = vcombine.high %v3758_v48, %v3766_v49 }
 0x640   :  { %9879 = vmatpush2.bf16.msra.mxu0 %v12925_v54  ;;  %9839 = vmatprep.subr.bf16.mxu1 %v12654_v57  ;;  %v3742_v54 = vld [vmem:[#allocation18 + $0x1aa0] sm:$0xff] }
 0x641   :  { %9880 = vmatprep.subr.bf16.mxu0 %v12910_v51  ;;  %v3750_v57 = vld [vmem:[#allocation18 + $0x1ae0] sm:$0xff] }
 0x642   :  { %v13070_v4 = vcombine.high %v3742_v54, %v3750_v57  ;;  %v13069_v25 = vcombine.low %v3742_v54, %v3750_v57  ;;  %v3686_v54 = vld [vmem:[#allocation18 + $0x18e0] sm:$0xff]  ;;  %v2911_v57 = vld [vmem:[#allocation18 + $0xa8] sm:$0xff] }
 0x643   :  { %9840 = vmatpush2.bf16.msra.mxu1 %v12653_v0 }
 0x644   :  { %9881 = vmatpush2.bf16.msra.mxu0 %v12909_v6  ;;  %9841 = vmatprep.subr.bf16.mxu1 %v12638_v8  ;;  %v13085_v6 = vcombine.low %v3758_v48, %v3766_v49  ;;  %v2927_v48 = vld [vmem:[#allocation18 + $0x128] sm:$0xff] }
 0x645   :  { %9882 = vmatprep.subr.bf16.mxu0 %v12894_v9  ;;  %v12319_v9 = vcombine.low %v2991_v37, %v2999_v11  ;;  %v2935_v49 = vld [vmem:[#allocation18 + $0x168] sm:$0xff]  ;;  %v12271_v37 = vcombine.low %v2943_v55, %v2951_v32 }
 0x647   :  { %9842 = vmatpush2.bf16.msra.mxu1 %v12637_v39  ;;  %v3734_v39 = vld [vmem:[#allocation18 + $0x1a60] sm:$0xff] }
 0x648   :  { %9883 = vmatpush2.bf16.msra.mxu0 %v12893_v13  ;;  %9843 = vmatprep.subr.bf16.mxu1 %v12622_v16  ;;  %v2959_v16 = vld [vmem:[#allocation18 + $0x228] sm:$0xff]  ;;  %v13053_v33 = vcombine.low %v3726_v15, %v3734_v39 }
 0x649   :  { %9884 = vmatprep.subr.bf16.mxu0 %v12878_v19  ;;  %v2967_v19 = vld [vmem:[#allocation18 + $0x268] sm:$0xff] }
 0x64a   :  { %v12287_v35 = vcombine.low %v2959_v16, %v2967_v19 }
 0x64b   :  { %9844 = vmatpush2.bf16.msra.mxu1 %v12621_v29  ;;  %v13054_v29 = vcombine.high %v3726_v15, %v3734_v39 }
 0x64c   :  { %9885 = vmatpush2.bf16.msra.mxu0 %v12877_v17  ;;  %9845 = vmatprep.subr.bf16.mxu1 %v12606_v22  ;;  %v12288_v17 = vcombine.high %v2959_v16, %v2967_v19  ;;  %v3710_v22 = vld [vmem:[#allocation18 + $0x19a0] sm:$0xff] }
 0x64d   :  { %9886 = vmatprep.subr.bf16.mxu0 %v12862_v52  ;;  %v3718_v52 = vld [vmem:[#allocation18 + $0x19e0] sm:$0xff] }
 0x64e   :  { %v3902_v19 = vld [vmem:[#allocation18 + $0x1fa0] sm:$0xff] }
 0x64f   :  { %9846 = vmatpush2.bf16.msra.mxu1 %v12605_v42  ;;  %v13038_v42 = vcombine.high %v3710_v22, %v3718_v52 }
 0x650   :  { %9887 = vmatpush2.bf16.msra.mxu0 %v12861_v44  ;;  %9897 = vmatprep.subr.bf16.mxu1 %v13102_v47  ;;  %v12272_v44 = vcombine.high %v2943_v55, %v2951_v32  ;;  %v3694_v47 = vld [vmem:[#allocation18 + $0x1920] sm:$0xff]  ;;  %v3119_v55 = vld [vmem:[#allocation18 + $0x728] sm:$0xff] }
 0x651   :  { %9938 = vmatprep.subr.bf16.mxu0 %v12336_v40  ;;  %v3702_v40 = vld [vmem:[#allocation18 + $0x1960] sm:$0xff]  ;;  %v3127_v32 = vld [vmem:[#allocation18 + $0x768] sm:$0xff] }
 0x652   :  { %v9603_v51 = vpop.f32.mrf.mxu1  ;;  %9848 = vmatmul.mubr.bf16.vlgmr.msra.gmra.mxu1 %v14355_v34  ;;  %v13022_v11 = vcombine.high %v3694_v47, %v3702_v40 }
 0x653   :  { %v14496_v62 = vadd.f32 %v9603_v51, %v14489_v36  ;;  %v14498_v0 = vpop.f32.mrf.mxu0  ;;  %9889 = vmatmul.mubr.bf16.vlgmr.msra.gmra.mxu0 %v14389_v20  ;;  %9898 = vmatpush1.bf16.msra.mxu1 %v13101_v31  ;;  %v12304_v36 = vcombine.high %v2975_v59, %v2983_v60  ;;  %v13037_v31 = vcombine.low %v3710_v22, %v3718_v52  ;;  %v2919_v51 = vld [vmem:[#allocation18 + $0xe8] sm:$0xff]  ;;  %v3886_v22 = vld [vmem:[#allocation18 + $0x1f20] sm:$0xff] }
 0x654   :  { %9929 = vmatprep.mubr.bf16.mxu1 %v14404_v10  ;;  %9939 = vmatpush1.bf16.msra.mxu0 %v12335_v50  ;;  %v9605_v8 = vpop.f32.mrf.mxu1  ;;  %v12256_v50 = vcombine.high %v2927_v48, %v2935_v49  ;;  %v12255_v59 = vcombine.low %v2927_v48, %v2935_v49  ;;  %v12239_v39 = vcombine.low %v2911_v57, %v2919_v51  ;;  %v3894_v52 = vld [vmem:[#allocation18 + $0x1f60] sm:$0xff]  ;;  %v3103_v48 = vld [vmem:[#allocation18 + $0x6a8] sm:$0xff] }
 0x655   :  { %9970 = vmatprep.mubr.bf16.mxu0 %v14328_v7  ;;  %v14504_v56 = vadd.f32 %v9605_v8, %v14492_v2  ;;  %v14506_v14 = vpop.f32.mrf.mxu0  ;;  %9899 = vmatprep.subr.bf16.mxu1 %v13086_v53  ;;  %v3678_v53 = vld [vmem:[#allocation18 + $0x18a0] sm:$0xff]  ;;  %v3111_v49 = vld [vmem:[#allocation18 + $0x6e8] sm:$0xff]  ;;  %vm10435_vm4 = vcmp.gt.f32.partialorder %v14496_v62, 0.0 }
 0x656   :  { %v9607_v13 = vpop.f32.mrf.mxu1  ;;  %9940 = vmatprep.subr.bf16.mxu0 %v12320_v58  ;;  %v13021_v58 = vcombine.low %v3694_v47, %v3702_v40  ;;  %v13006_v60 = vcombine.high %v3678_v53, %v3686_v54  ;;  %v3662_v8 = vld [vmem:[#allocation18 + $0x1820] sm:$0xff]  ;;  %v13005_v15 = vcombine.low %v3678_v53, %v3686_v54 }
 0x657   :  { %v9648_v23 = vpop.f32.mrf.mxu0  ;;  %9900 = vmatpush1.bf16.msra.mxu1 %v13085_v6  ;;  %v12240_v6 = vcombine.high %v2911_v57, %v2919_v51  ;;  %v3870_v47 = vld [vmem:[#allocation18 + $0x1ea0] sm:$0xff]  ;;  %v3087_v57 = vld [vmem:[#allocation18 + $0x628] sm:$0xff]  ;;  %vm10436_vm3 = vcmp.gt.f32.partialorder %v14504_v56, 0.0 }
 0x658   :  { %9941 = vmatpush1.bf16.msra.mxu0 %v12319_v9  ;;  %v9608_v26 = vpop.f32.mrf.mxu1  ;;  %9901 = vmatprep.subr.bf16.mxu1 %v13070_v4  ;;  %v3670_v9 = vld [vmem:[#allocation18 + $0x1860] sm:$0xff]  ;;  %v2895_v4 = vld [vmem:[#allocation18 + $0x28] sm:$0xff] }
 0x659   :  { %v9649_v2 = vpop.f32.mrf.mxu0  ;;  %9942 = vmatprep.subr.bf16.mxu0 %v12304_v36  ;;  %v2903_v36 = vld [vmem:[#allocation18 + $0x68] sm:$0xff]  ;;  %v12990_v13 = vcombine.high %v3662_v8, %v3670_v9  ;;  %v3910_v23 = vld [vmem:[#allocation18 + $0x1fe0] sm:$0xff] }
 0x65a   :  { %v12224_v16 = vcombine.high %v2895_v4, %v2903_v36  ;;  %v3143_v26 = vld [vmem:[#allocation18 + $0x7e8] sm:$0xff]  ;;  %v13230_v2 = vcombine.high %v3902_v19, %v3910_v23  ;;  %v3878_v40 = vld [vmem:[#allocation18 + $0x1ee0] sm:$0xff] }
 0x65b   :  { %9902 = vmatpush1.bf16.msra.mxu1 %v13069_v25  ;;  %v3135_v25 = vld [vmem:[#allocation18 + $0x7a8] sm:$0xff]  ;;  %v3854_v53 = vld [vmem:[#allocation18 + $0x1e20] sm:$0xff] }
 0x65c   :  { %9943 = vmatpush1.bf16.msra.mxu0 %v12303_v28  ;;  %9903 = vmatprep.subr.bf16.mxu1 %v13054_v29  ;;  %v12989_v28 = vcombine.low %v3662_v8, %v3670_v9  ;;  %v12223_v29 = vcombine.low %v2895_v4, %v2903_v36  ;;  %v3862_v54 = vld [vmem:[#allocation18 + $0x1e60] sm:$0xff]  ;;  %v3095_v51 = vld [vmem:[#allocation18 + $0x668] sm:$0xff] }
 0x65d   :  { %9944 = vmatprep.subr.bf16.mxu0 %v12288_v17  ;;  %v12464_v17 = vcombine.high %v3135_v25, %v3143_v26  ;;  %v3838_v8 = vld [vmem:[#allocation18 + $0x1da0] sm:$0xff]  ;;  %v3071_v4 = vld [vmem:[#allocation18 + $0x5a8] sm:$0xff] }
 0x65e   :  { %v3846_v9 = vld [vmem:[#allocation18 + $0x1de0] sm:$0xff]  ;;  %v3079_v36 = vld [vmem:[#allocation18 + $0x5e8] sm:$0xff] }
 0x65f   :  { %9904 = vmatpush1.bf16.msra.mxu1 %v13053_v33  ;;  %v13229_v33 = vcombine.low %v3902_v19, %v3910_v23  ;;  %v3822_v19 = vld [vmem:[#allocation18 + $0x1d20] sm:$0xff] }
 0x660   :  { %9945 = vmatpush1.bf16.msra.mxu0 %v12287_v35  ;;  %9905 = vmatprep.subr.bf16.mxu1 %v13038_v42  ;;  %v12463_v35 = vcombine.low %v3135_v25, %v3143_v26  ;;  %v13214_v42 = vcombine.high %v3886_v22, %v3894_v52  ;;  %v3830_v23 = vld [vmem:[#allocation18 + $0x1d60] sm:$0xff]  ;;  %v3055_v25 = vld [vmem:[#allocation18 + $0x528] sm:$0xff] }
 0x661   :  { %9946 = vmatprep.subr.bf16.mxu0 %v12272_v44  ;;  %v12448_v44 = vcombine.high %v3119_v55, %v3127_v32  ;;  %v3063_v26 = vld [vmem:[#allocation18 + $0x568] sm:$0xff] }
 0x663   :  { %9906 = vmatpush1.bf16.msra.mxu1 %v13037_v31  ;;  %v13213_v31 = vcombine.low %v3886_v22, %v3894_v52  ;;  %v3806_v22 = vld [vmem:[#allocation18 + $0x1ca0] sm:$0xff] }
 0x664   :  { %9947 = vmatpush1.bf16.msra.mxu0 %v12271_v37  ;;  %9907 = vmatprep.subr.bf16.mxu1 %v13022_v11  ;;  %v12447_v37 = vcombine.low %v3119_v55, %v3127_v32  ;;  %v13198_v11 = vcombine.high %v3870_v47, %v3878_v40  ;;  %v3814_v52 = vld [vmem:[#allocation18 + $0x1ce0] sm:$0xff]  ;;  %v3039_v55 = vld [vmem:[#allocation18 + $0x4a8] sm:$0xff] }
 0x665   :  { %9948 = vmatprep.subr.bf16.mxu0 %v12256_v50  ;;  %v12432_v50 = vcombine.high %v3103_v48, %v3111_v49  ;;  %v3047_v32 = vld [vmem:[#allocation18 + $0x4e8] sm:$0xff] }
 0x667   :  { %9908 = vmatpush1.bf16.msra.mxu1 %v13021_v58  ;;  %v13197_v58 = vcombine.low %v3870_v47, %v3878_v40  ;;  %v3790_v47 = vld [vmem:[#allocation18 + $0x1c20] sm:$0xff] }
 0x668   :  { %9949 = vmatpush1.bf16.msra.mxu0 %v12255_v59  ;;  %9909 = vmatprep.subr.bf16.mxu1 %v13006_v60  ;;  %v12431_v59 = vcombine.low %v3103_v48, %v3111_v49  ;;  %v13182_v60 = vcombine.high %v3854_v53, %v3862_v54  ;;  %v3798_v40 = vld [vmem:[#allocation18 + $0x1c60] sm:$0xff]  ;;  %v3023_v48 = vld [vmem:[#allocation18 + $0x428] sm:$0xff] }
 0x669   :  { %9950 = vmatprep.subr.bf16.mxu0 %v12240_v6  ;;  %v12416_v6 = vcombine.high %v3087_v57, %v3095_v51  ;;  %v3031_v49 = vld [vmem:[#allocation18 + $0x468] sm:$0xff] }
 0x66b   :  { %9910 = vmatpush1.bf16.msra.mxu1 %v13005_v15  ;;  %v13181_v15 = vcombine.low %v3854_v53, %v3862_v54  ;;  %v3263_v53 = vld [vmem:[#allocation18 + $0xba8] sm:$0xff] }
 0x66c   :  { %9951 = vmatpush1.bf16.msra.mxu0 %v12239_v39  ;;  %9911 = vmatprep.subr.bf16.mxu1 %v12990_v13  ;;  %v12415_v39 = vcombine.low %v3087_v57, %v3095_v51  ;;  %v13166_v13 = vcombine.high %v3838_v8, %v3846_v9  ;;  %v3271_v54 = vld [vmem:[#allocation18 + $0xbe8] sm:$0xff] }
 0x66d   :  { %9952 = vmatprep.subr.bf16.mxu0 %v12224_v16  ;;  %v12400_v16 = vcombine.high %v3071_v4, %v3079_v36  ;;  %v3519_v57 = vld [vmem:[#allocation18 + $0x13a8] sm:$0xff] }
 0x66e   :  { %v3527_v51 = vld [vmem:[#allocation18 + $0x13e8] sm:$0xff] }
 0x66f   :  { %9912 = vmatpush1.bf16.msra.mxu1 %v12989_v28  ;;  %v13165_v28 = vcombine.low %v3838_v8, %v3846_v9  ;;  %v12848_v9 = vcombine.high %v3519_v57, %v3527_v51 }
 0x670   :  { %9953 = vmatpush1.bf16.msra.mxu0 %v12223_v29  ;;  %9913 = vmatprep.subr.bf16.mxu1 %v13230_v2  ;;  %v12399_v29 = vcombine.low %v3071_v4, %v3079_v36  ;;  %v13150_v2 = vcombine.high %v3822_v19, %v3830_v23  ;;  %v3247_v4 = vld [vmem:[#allocation18 + $0xb28] sm:$0xff] }
 0x671   :  { %9954 = vmatprep.subr.bf16.mxu0 %v12464_v17  ;;  %v12384_v17 = vcombine.high %v3055_v25, %v3063_v26  ;;  %v3255_v36 = vld [vmem:[#allocation18 + $0xb68] sm:$0xff] }
 0x673   :  { %9914 = vmatpush2.bf16.msra.mxu1 %v13229_v33  ;;  %v13149_v33 = vcombine.low %v3822_v19, %v3830_v23  ;;  %v12847_v19 = vcombine.low %v3519_v57, %v3527_v51 }
 0x674   :  { %9955 = vmatpush2.bf16.msra.mxu0 %v12463_v35  ;;  %9915 = vmatprep.subr.bf16.mxu1 %v13214_v42  ;;  %v12383_v35 = vcombine.low %v3055_v25, %v3063_v26  ;;  %v13134_v42 = vcombine.high %v3806_v22, %v3814_v52  ;;  %v12576_v25 = vcombine.high %v3247_v4, %v3255_v36  ;;  %v3231_v26 = vld [vmem:[#allocation18 + $0xaa8] sm:$0xff] }
 0x675   :  { %9956 = vmatprep.subr.bf16.mxu0 %v12448_v44  ;;  %v12368_v44 = vcombine.high %v3039_v55, %v3047_v32 }
 0x677   :  { %9916 = vmatpush2.bf16.msra.mxu1 %v13213_v31  ;;  %v13133_v31 = vcombine.low %v3806_v22, %v3814_v52  ;;  %v3495_v22 = vld [vmem:[#allocation18 + $0x12e8] sm:$0xff] }
 0x678   :  { %9957 = vmatpush2.bf16.msra.mxu0 %v12447_v37  ;;  %9917 = vmatprep.subr.bf16.mxu1 %v13198_v11  ;;  %v12367_v37 = vcombine.low %v3039_v55, %v3047_v32  ;;  %v13118_v11 = vcombine.high %v3790_v47, %v3798_v40 }
 0x679   :  { %9958 = vmatprep.subr.bf16.mxu0 %v12432_v50  ;;  %v12352_v50 = vcombine.high %v3023_v48, %v3031_v49 }
 0x67b   :  { %9918 = vmatpush2.bf16.msra.mxu1 %v13197_v58  ;;  %v13117_v58 = vcombine.low %v3790_v47, %v3798_v40 }
 0x67c   :  { %9959 = vmatpush2.bf16.msra.mxu0 %v12431_v59  ;;  %9919 = vmatprep.subr.bf16.mxu1 %v13182_v60  ;;  %v12351_v59 = vcombine.low %v3023_v48, %v3031_v49  ;;  %v12592_v60 = vcombine.high %v3263_v53, %v3271_v54  ;;  %v3215_v48 = vld [vmem:[#allocation18 + $0xa28] sm:$0xff] }
 0x67d   :  { %9960 = vmatprep.subr.bf16.mxu0 %v12416_v6  ;;  %v13832_v6 = vld [vmem:[#allocation19] sm:$0xff]  ;;  %v3223_v49 = vld [vmem:[#allocation18 + $0xa68] sm:$0xff] }
 0x67e   :  { %v3945_v8 = vrot.slane %v13832_v6, %v14395_v21 }
 0x67f   :  { %9920 = vmatpush2.bf16.msra.mxu1 %v13181_v15  ;;  %v3949_v15 = vrot.slane %v13832_v6, %v14398_v24  ;;  %v3199_v6 = vld [vmem:[#allocation18 + $0x9a8] sm:$0xff] }
 0x680   :  { %9961 = vmatpush2.bf16.msra.mxu0 %v12415_v39  ;;  %9921 = vmatprep.subr.bf16.mxu1 %v13166_v13  ;;  %v12591_v39 = vcombine.low %v3263_v53, %v3271_v54  ;;  %v3503_v13 = vld [vmem:[#allocation18 + $0x1328] sm:$0xff]  ;;  %v9645_v23 = vadd.f32 %v14498_v0, %v3945_v8 }
 0x681   :  { %9962 = vmatprep.subr.bf16.mxu0 %v12400_v16  ;;  %v3511_v16 = vld [vmem:[#allocation18 + $0x1368] sm:$0xff]  ;;  %v9647_v52 = vadd.f32 %v14506_v14, %v3949_v15 }
 0x682   :  { %v3207_v8 = vld [vmem:[#allocation18 + $0x9e8] sm:$0xff] }
 0x683   :  { %9922 = vmatpush2.bf16.msra.mxu1 %v13165_v28  ;;  %v3239_v28 = vld [vmem:[#allocation18 + $0xae8] sm:$0xff] }
 0x684   :  { %9963 = vmatpush2.bf16.msra.mxu0 %v12399_v29  ;;  %9923 = vmatprep.subr.bf16.mxu1 %v13150_v2  ;;  %v12832_v2 = vcombine.high %v3503_v13, %v3511_v16  ;;  %v12559_v54 = vcombine.low %v3231_v26, %v3239_v28 }
 0x685   :  { %9964 = vmatprep.subr.bf16.mxu0 %v12384_v17  ;;  %v3487_v17 = vld [vmem:[#allocation18 + $0x12a8] sm:$0xff] }
 0x686   :  { %v12816_v14 = vcombine.high %v3487_v17, %v3495_v22  ;;  %v12815_v51 = vcombine.low %v3487_v17, %v3495_v22  ;;  %v3167_v17 = vld [vmem:[#allocation18 + $0x8a8] sm:$0xff] }
 0x687   :  { %9924 = vmatpush2.bf16.msra.mxu1 %v13149_v33  ;;  %v12575_v33 = vcombine.low %v3247_v4, %v3255_v36  ;;  %v3463_v4 = vld [vmem:[#allocation18 + $0x11e8] sm:$0xff]  ;;  %v12543_v36 = vcombine.low %v3215_v48, %v3223_v49 }
 0x688   :  { %9965 = vmatpush2.bf16.msra.mxu0 %v12383_v35  ;;  %9925 = vmatprep.subr.bf16.mxu1 %v13134_v42  ;;  %v12831_v35 = vcombine.low %v3503_v13, %v3511_v16  ;;  %v12560_v42 = vcombine.high %v3231_v26, %v3239_v28  ;;  %v3183_v16 = vld [vmem:[#allocation18 + $0x928] sm:$0xff]  ;;  %v12527_v26 = vcombine.low %v3199_v6, %v3207_v8 }
 0x689   :  { %9966 = vmatprep.subr.bf16.mxu0 %v12368_v44  ;;  %v3175_v22 = vld [vmem:[#allocation18 + $0x8e8] sm:$0xff] }
 0x68b   :  { %9926 = vmatpush2.bf16.msra.mxu1 %v13133_v31 }
 0x68c   :  { %9967 = vmatpush2.bf16.msra.mxu0 %v12367_v37  ;;  %9927 = vmatprep.subr.bf16.mxu1 %v13118_v11  ;;  %v3471_v37 = vld [vmem:[#allocation18 + $0x1228] sm:$0xff] }
 0x68d   :  { %9968 = vmatprep.subr.bf16.mxu0 %v12352_v50  ;;  %v3479_v11 = vld [vmem:[#allocation18 + $0x1268] sm:$0xff] }
 0x68e   :  { %v12799_v15 = vcombine.low %v3471_v37, %v3479_v11 }
 0x68f   :  { %9928 = vmatpush2.bf16.msra.mxu1 %v13117_v58  ;;  %v12544_v58 = vcombine.high %v3215_v48, %v3223_v49  ;;  %v12495_v48 = vcombine.low %v3167_v17, %v3175_v22 }
 0x690   :  { %9969 = vmatpush2.bf16.msra.mxu0 %v12351_v59  ;;  %9979 = vmatprep.subr.bf16.mxu1 %v12592_v60  ;;  %v12800_v60 = vcombine.high %v3471_v37, %v3479_v11  ;;  %v3391_v11 = vld [vmem:[#allocation18 + $0xfa8] sm:$0xff] }
 0x691   :  { %10020 = vmatprep.subr.bf16.mxu0 %v12848_v9  ;;  %v3455_v9 = vld [vmem:[#allocation18 + $0x11a8] sm:$0xff] }
 0x692   :  { %v9685_v29 = vpop.f32.mrf.mxu1  ;;  %9930 = vmatmul.mubr.bf16.vlgmr.msra.gmra.mxu1 %v14406_v12  ;;  %v12784_v13 = vcombine.high %v3455_v9, %v3463_v4  ;;  %v12783_v28 = vcombine.low %v3455_v9, %v3463_v4  ;;  %v3631_v9 = vld [vmem:[#allocation18 + $0x1728] sm:$0xff] }
 0x693   :  { %v9686_v55 = vadd.f32 %v9685_v29, %v9645_v23  ;;  %v9726_v32 = vpop.f32.mrf.mxu0  ;;  %9971 = vmatmul.mubr.bf16.vlgmr.msra.gmra.mxu0 %v14344_v5  ;;  %9980 = vmatpush1.bf16.msra.mxu1 %v12591_v39  ;;  %v12528_v39 = vcombine.high %v3199_v6, %v3207_v8  ;;  %v3439_v23 = vld [vmem:[#allocation18 + $0x1128] sm:$0xff] }
 0x694   :  { %10011 = vmatprep.mubr.bf16.mxu1 %v14351_v46  ;;  %10021 = vmatpush1.bf16.msra.mxu0 %v12847_v19  ;;  %v9687_v0 = vpop.f32.mrf.mxu1  ;;  %v3191_v19 = vld [vmem:[#allocation18 + $0x968] sm:$0xff] }
 0x695   :  { %v14515_v44 = vadd.f32 %v9726_v32, %v9686_v55  ;;  %10052 = vmatprep.mubr.bf16.mxu0 %v14385_v18  ;;  %v9688_v47 = vadd.f32 %v9687_v0, %v9647_v52  ;;  %v9728_v40 = vpop.f32.mrf.mxu0  ;;  %9981 = vmatprep.subr.bf16.mxu1 %v12576_v25  ;;  %v3447_v25 = vld [vmem:[#allocation18 + $0x1168] sm:$0xff]  ;;  %v12512_v29 = vcombine.high %v3183_v16, %v3191_v19 }
 0x696   :  { %v9689_v31 = vpop.f32.mrf.mxu1  ;;  %10022 = vmatprep.subr.bf16.mxu0 %v12832_v2  ;;  %v12768_v2 = vcombine.high %v3439_v23, %v3447_v25  ;;  %v3423_v52 = vld [vmem:[#allocation18 + $0x10a8] sm:$0xff]  ;;  %v12511_v32 = vcombine.low %v3183_v16, %v3191_v19  ;;  %v12496_v0 = vcombine.high %v3167_v17, %v3175_v22 }
 0x697   :  { %v14518_v50 = vadd.f32 %v9728_v40, %v9688_v47  ;;  %v9730_v53 = vpop.f32.mrf.mxu0  ;;  %9982 = vmatpush1.bf16.msra.mxu1 %v12575_v33  ;;  %v3431_v55 = vld [vmem:[#allocation18 + $0x10e8] sm:$0xff]  ;;  %v12767_v33 = vcombine.low %v3439_v23, %v3447_v25 }
 0x698   :  { %10023 = vmatpush1.bf16.msra.mxu0 %v12831_v35  ;;  %v9690_v57 = vpop.f32.mrf.mxu1  ;;  %9983 = vmatprep.subr.bf16.mxu1 %v12560_v42  ;;  %v12752_v35 = vcombine.high %v3423_v52, %v3431_v55  ;;  %v3151_v42 = vld [vmem:[#allocation18 + $0x828] sm:$0xff]  ;;  %v12751_v49 = vcombine.low %v3423_v52, %v3431_v55 }
 0x699   :  { %v9731_v59 = vpop.f32.mrf.mxu0  ;;  %10024 = vmatprep.subr.bf16.mxu0 %v12816_v14  ;;  %v3159_v47 = vld [vmem:[#allocation18 + $0x868] sm:$0xff] }
 0x69a   :  { %v3407_v40 = vld [vmem:[#allocation18 + $0x1028] sm:$0xff]  ;;  %v12480_v31 = vcombine.high %v3151_v42, %v3159_v47 }
 0x69b   :  { %9984 = vmatpush1.bf16.msra.mxu1 %v12559_v54  ;;  %v3415_v14 = vld [vmem:[#allocation18 + $0x1068] sm:$0xff] }
 0x69c   :  { %10025 = vmatpush1.bf16.msra.mxu0 %v12815_v51  ;;  %9985 = vmatprep.subr.bf16.mxu1 %v12544_v58  ;;  %v12736_v37 = vcombine.high %v3407_v40, %v3415_v14  ;;  %v3399_v53 = vld [vmem:[#allocation18 + $0xfe8] sm:$0xff]  ;;  %v12479_v51 = vcombine.low %v3151_v42, %v3159_v47  ;;  %v12735_v58 = vcombine.low %v3407_v40, %v3415_v14 }
 0x69d   :  { %10026 = vmatprep.subr.bf16.mxu0 %v12800_v60  ;;  %v3647_v54 = vld [vmem:[#allocation18 + $0x17a8] sm:$0xff]  ;;  %v12720_v59 = vcombine.high %v3391_v11, %v3399_v53 }
 0x69e   :  { %v3655_v57 = vld [vmem:[#allocation18 + $0x17e8] sm:$0xff] }
 0x69f   :  { %9986 = vmatpush1.bf16.msra.mxu1 %v12543_v36  ;;  %v12976_v60 = vcombine.high %v3647_v54, %v3655_v57  ;;  %v3375_v6 = vld [vmem:[#allocation18 + $0xf28] sm:$0xff]  ;;  %v12719_v36 = vcombine.low %v3391_v11, %v3399_v53 }
 0x6a0   :  { %10027 = vmatpush1.bf16.msra.mxu0 %v12799_v15  ;;  %9987 = vmatprep.subr.bf16.mxu1 %v12528_v39  ;;  %v3383_v8 = vld [vmem:[#allocation18 + $0xf68] sm:$0xff]  ;;  %v12975_v15 = vcombine.low %v3647_v54, %v3655_v57 }
 0x6a1   :  { %10028 = vmatprep.subr.bf16.mxu0 %v12784_v13  ;;  %v3639_v4 = vld [vmem:[#allocation18 + $0x1768] sm:$0xff]  ;;  %v12704_v39 = vcombine.high %v3375_v6, %v3383_v8 }
 0x6a2   :  { %v12960_v13 = vcombine.high %v3631_v9, %v3639_v4  ;;  %v3359_v16 = vld [vmem:[#allocation18 + $0xea8] sm:$0xff] }
 0x6a3   :  { %9988 = vmatpush1.bf16.msra.mxu1 %v12527_v26  ;;  %v3367_v19 = vld [vmem:[#allocation18 + $0xee8] sm:$0xff]  ;;  %v12703_v26 = vcombine.low %v3375_v6, %v3383_v8 }
 0x6a4   :  { %10029 = vmatpush1.bf16.msra.mxu0 %v12783_v28  ;;  %9989 = vmatprep.subr.bf16.mxu1 %v12512_v29  ;;  %v3615_v23 = vld [vmem:[#allocation18 + $0x16a8] sm:$0xff]  ;;  %v12959_v28 = vcombine.low %v3631_v9, %v3639_v4  ;;  %v12688_v29 = vcombine.high %v3359_v16, %v3367_v19 }
 0x6a5   :  { %10030 = vmatprep.subr.bf16.mxu0 %v12768_v2  ;;  %v3623_v25 = vld [vmem:[#allocation18 + $0x16e8] sm:$0xff] }
 0x6a6   :  { %v12944_v2 = vcombine.high %v3615_v23, %v3623_v25  ;;  %v3343_v17 = vld [vmem:[#allocation18 + $0xe28] sm:$0xff] }
 0x6a7   :  { %9990 = vmatpush1.bf16.msra.mxu1 %v12511_v32  ;;  %v3351_v22 = vld [vmem:[#allocation18 + $0xe68] sm:$0xff]  ;;  %v12687_v32 = vcombine.low %v3359_v16, %v3367_v19 }
 0x6a8   :  { %10031 = vmatpush1.bf16.msra.mxu0 %v12767_v33  ;;  %9991 = vmatprep.subr.bf16.mxu1 %v12496_v0  ;;  %v3599_v52 = vld [vmem:[#allocation18 + $0x1628] sm:$0xff]  ;;  %v12943_v33 = vcombine.low %v3615_v23, %v3623_v25  ;;  %v12672_v0 = vcombine.high %v3343_v17, %v3351_v22 }
 0x6a9   :  { %10032 = vmatprep.subr.bf16.mxu0 %v12752_v35  ;;  %v3607_v55 = vld [vmem:[#allocation18 + $0x1668] sm:$0xff] }
 0x6aa   :  { %v12928_v35 = vcombine.high %v3599_v52, %v3607_v55  ;;  %v3327_v42 = vld [vmem:[#allocation18 + $0xda8] sm:$0xff] }
 0x6ab   :  { %9992 = vmatpush1.bf16.msra.mxu1 %v12495_v48  ;;  %v3335_v47 = vld [vmem:[#allocation18 + $0xde8] sm:$0xff]  ;;  %v12671_v48 = vcombine.low %v3343_v17, %v3351_v22 }
 0x6ac   :  { %10033 = vmatpush1.bf16.msra.mxu0 %v12751_v49  ;;  %9993 = vmatprep.subr.bf16.mxu1 %v12480_v31  ;;  %v3583_v40 = vld [vmem:[#allocation18 + $0x15a8] sm:$0xff]  ;;  %v12927_v49 = vcombine.low %v3599_v52, %v3607_v55  ;;  %v12656_v31 = vcombine.high %v3327_v42, %v3335_v47  ;;  %v3008_v52 = vld [vmem:[#allocation18 + $0x3b0] sm:$0xff] }
 0x6ad   :  { %10034 = vmatprep.subr.bf16.mxu0 %v12736_v37  ;;  %v3591_v14 = vld [vmem:[#allocation18 + $0x15e8] sm:$0xff]  ;;  %v3016_v55 = vld [vmem:[#allocation18 + $0x3f0] sm:$0xff] }
 0x6ae   :  { %v12912_v37 = vcombine.high %v3583_v40, %v3591_v14  ;;  %v3311_v11 = vld [vmem:[#allocation18 + $0xd28] sm:$0xff] }
 0x6af   :  { %9994 = vmatpush1.bf16.msra.mxu1 %v12479_v51  ;;  %v3319_v53 = vld [vmem:[#allocation18 + $0xd68] sm:$0xff]  ;;  %v12655_v51 = vcombine.low %v3327_v42, %v3335_v47 }
 0x6b0   :  { %10035 = vmatpush1.bf16.msra.mxu0 %v12735_v58  ;;  %9995 = vmatprep.subr.bf16.mxu1 %v12720_v59  ;;  %v3567_v54 = vld [vmem:[#allocation18 + $0x1528] sm:$0xff]  ;;  %v12911_v58 = vcombine.low %v3583_v40, %v3591_v14  ;;  %v12640_v59 = vcombine.high %v3311_v11, %v3319_v53  ;;  %v2992_v14 = vld [vmem:[#allocation18 + $0x330] sm:$0xff] }
 0x6b1   :  { %10036 = vmatprep.subr.bf16.mxu0 %v12976_v60  ;;  %v3575_v57 = vld [vmem:[#allocation18 + $0x1568] sm:$0xff] }
 0x6b2   :  { %v12896_v60 = vcombine.high %v3567_v54, %v3575_v57  ;;  %v3295_v6 = vld [vmem:[#allocation18 + $0xca8] sm:$0xff] }
 0x6b3   :  { %9996 = vmatpush2.bf16.msra.mxu1 %v12719_v36  ;;  %v3303_v8 = vld [vmem:[#allocation18 + $0xce8] sm:$0xff]  ;;  %v12639_v36 = vcombine.low %v3311_v11, %v3319_v53 }
 0x6b4   :  { %10037 = vmatpush2.bf16.msra.mxu0 %v12975_v15  ;;  %9997 = vmatprep.subr.bf16.mxu1 %v12704_v39  ;;  %v3551_v9 = vld [vmem:[#allocation18 + $0x14a8] sm:$0xff]  ;;  %v12895_v15 = vcombine.low %v3567_v54, %v3575_v57  ;;  %v12624_v39 = vcombine.high %v3295_v6, %v3303_v8  ;;  %v2976_v57 = vld [vmem:[#allocation18 + $0x2b0] sm:$0xff] }
 0x6b5   :  { %10038 = vmatprep.subr.bf16.mxu0 %v12960_v13  ;;  %v3559_v4 = vld [vmem:[#allocation18 + $0x14e8] sm:$0xff] }
 0x6b6   :  { %v12880_v13 = vcombine.high %v3551_v9, %v3559_v4  ;;  %v3279_v16 = vld [vmem:[#allocation18 + $0xc28] sm:$0xff] }
 0x6b7   :  { %9998 = vmatpush2.bf16.msra.mxu1 %v12703_v26  ;;  %v3287_v19 = vld [vmem:[#allocation18 + $0xc68] sm:$0xff]  ;;  %v12623_v26 = vcombine.low %v3295_v6, %v3303_v8 }
 0x6b8   :  { %10039 = vmatpush2.bf16.msra.mxu0 %v12959_v28  ;;  %9999 = vmatprep.subr.bf16.mxu1 %v12688_v29  ;;  %v3535_v23 = vld [vmem:[#allocation18 + $0x1428] sm:$0xff]  ;;  %v12879_v28 = vcombine.low %v3551_v9, %v3559_v4  ;;  %v12608_v29 = vcombine.high %v3279_v16, %v3287_v19 }
 0x6b9   :  { %10040 = vmatprep.subr.bf16.mxu0 %v12944_v2  ;;  %v3543_v25 = vld [vmem:[#allocation18 + $0x1468] sm:$0xff] }
 0x6ba   :  { %v12864_v2 = vcombine.high %v3535_v23, %v3543_v25  ;;  %v3775_v17 = vld [vmem:[#allocation18 + $0x1ba8] sm:$0xff] }
 0x6bb   :  { %10000 = vmatpush2.bf16.msra.mxu1 %v12687_v32  ;;  %v3783_v22 = vld [vmem:[#allocation18 + $0x1be8] sm:$0xff]  ;;  %v12607_v32 = vcombine.low %v3279_v16, %v3287_v19  ;;  %v2960_v16 = vld [vmem:[#allocation18 + $0x230] sm:$0xff] }
 0x6bc   :  { %10041 = vmatpush2.bf16.msra.mxu0 %v12943_v33  ;;  %10001 = vmatprep.subr.bf16.mxu1 %v12672_v0  ;;  %v12863_v33 = vcombine.low %v3535_v23, %v3543_v25  ;;  %v13104_v0 = vcombine.high %v3775_v17, %v3783_v22  ;;  %v3759_v42 = vld [vmem:[#allocation18 + $0x1b28] sm:$0xff]  ;;  %v13103_v40 = vcombine.low %v3775_v17, %v3783_v22  ;;  %v2968_v19 = vld [vmem:[#allocation18 + $0x270] sm:$0xff] }
 0x6bd   :  { %10042 = vmatprep.subr.bf16.mxu0 %v12928_v35  ;;  %v12338_v35 = vcombine.high %v3008_v52, %v3016_v55  ;;  %v3767_v47 = vld [vmem:[#allocation18 + $0x1b68] sm:$0xff] }
 0x6be   :  { %v3751_v11 = vld [vmem:[#allocation18 + $0x1ae8] sm:$0xff] }
 0x6bf   :  { %10002 = vmatpush2.bf16.msra.mxu1 %v12671_v48  ;;  %v3000_v48 = vld [vmem:[#allocation18 + $0x370] sm:$0xff]  ;;  %v3711_v17 = vld [vmem:[#allocation18 + $0x19a8] sm:$0xff] }
 0x6c0   :  { %10043 = vmatpush2.bf16.msra.mxu0 %v12927_v49  ;;  %10003 = vmatprep.subr.bf16.mxu1 %v12656_v31  ;;  %v12337_v49 = vcombine.low %v3008_v52, %v3016_v55  ;;  %v13088_v31 = vcombine.high %v3759_v42, %v3767_v47  ;;  %v12322_v54 = vcombine.high %v2992_v14, %v3000_v48  ;;  %v3719_v22 = vld [vmem:[#allocation18 + $0x19e8] sm:$0xff]  ;;  %v2944_v52 = vld [vmem:[#allocation18 + $0x1b0] sm:$0xff] }
 0x6c1   :  { %10044 = vmatprep.subr.bf16.mxu0 %v12912_v37  ;;  %v3743_v37 = vld [vmem:[#allocation18 + $0x1aa8] sm:$0xff]  ;;  %v12321_v8 = vcombine.low %v2992_v14, %v3000_v48  ;;  %v2952_v55 = vld [vmem:[#allocation18 + $0x1f0] sm:$0xff]  ;;  %v13039_v48 = vcombine.low %v3711_v17, %v3719_v22 }
 0x6c2   :  { %v13072_v9 = vcombine.high %v3743_v37, %v3751_v11  ;;  %v13071_v25 = vcombine.low %v3743_v37, %v3751_v11  ;;  %v2936_v14 = vld [vmem:[#allocation18 + $0x170] sm:$0xff]  ;;  %v3679_v11 = vld [vmem:[#allocation18 + $0x18a8] sm:$0xff] }
 0x6c3   :  { %10004 = vmatpush2.bf16.msra.mxu1 %v12655_v51  ;;  %v2984_v51 = vld [vmem:[#allocation18 + $0x2f0] sm:$0xff] }
 0x6c4   :  { %10045 = vmatpush2.bf16.msra.mxu0 %v12911_v58  ;;  %10005 = vmatprep.subr.bf16.mxu1 %v12640_v59 }
 0x6c5   :  { %10046 = vmatprep.subr.bf16.mxu0 %v12896_v60  ;;  %v13087_v60 = vcombine.low %v3759_v42, %v3767_v47  ;;  %v3695_v42 = vld [vmem:[#allocation18 + $0x1928] sm:$0xff] }
 0x6c6   :  { %v3703_v47 = vld [vmem:[#allocation18 + $0x1968] sm:$0xff] }
 0x6c7   :  { %10006 = vmatpush2.bf16.msra.mxu1 %v12639_v36 }
 0x6c8   :  { %10047 = vmatpush2.bf16.msra.mxu0 %v12895_v15  ;;  %10007 = vmatprep.subr.bf16.mxu1 %v12624_v39  ;;  %v3727_v15 = vld [vmem:[#allocation18 + $0x1a28] sm:$0xff] }
 0x6c9   :  { %10048 = vmatprep.subr.bf16.mxu0 %v12880_v13  ;;  %v3735_v39 = vld [vmem:[#allocation18 + $0x1a68] sm:$0xff] }
 0x6cb   :  { %10008 = vmatpush2.bf16.msra.mxu1 %v12623_v26 }
 0x6cc   :  { %10049 = vmatpush2.bf16.msra.mxu0 %v12879_v28  ;;  %10009 = vmatprep.subr.bf16.mxu1 %v12608_v29  ;;  %v12305_v28 = vcombine.low %v2976_v57, %v2984_v51  ;;  %v13056_v29 = vcombine.high %v3727_v15, %v3735_v39 }
 0x6cd   :  { %10050 = vmatprep.subr.bf16.mxu0 %v12864_v2  ;;  %v12290_v2 = vcombine.high %v2960_v16, %v2968_v19 }
 0x6cf   :  { %10010 = vmatpush2.bf16.msra.mxu1 %v12607_v32  ;;  %v13055_v32 = vcombine.low %v3727_v15, %v3735_v39  ;;  %v2896_v15 = vld [vmem:[#allocation18 + $0x30] sm:$0xff] }
 0x6d0   :  { %10051 = vmatpush2.bf16.msra.mxu0 %v12863_v33  ;;  %10061 = vmatprep.subr.bf16.mxu1 %v13104_v0  ;;  %v12289_v33 = vcombine.low %v2960_v16, %v2968_v19  ;;  %v13040_v0 = vcombine.high %v3711_v17, %v3719_v22  ;;  %v2904_v39 = vld [vmem:[#allocation18 + $0x70] sm:$0xff] }
 0x6d1   :  { %10102 = vmatprep.subr.bf16.mxu0 %v12338_v35  ;;  %v12274_v35 = vcombine.high %v2944_v52, %v2952_v55 }
 0x6d2   :  { %v9767_v53 = vpop.f32.mrf.mxu1  ;;  %10012 = vmatmul.mubr.bf16.vlgmr.msra.gmra.mxu1 %v14355_v34 }
 0x6d3   :  { %v14522_v58 = vadd.f32 %v9767_v53, %v14515_v44  ;;  %v14524_v59 = vpop.f32.mrf.mxu0  ;;  %10053 = vmatmul.mubr.bf16.vlgmr.msra.gmra.mxu0 %v14389_v20  ;;  %10062 = vmatpush1.bf16.msra.mxu1 %v13103_v40  ;;  %v12306_v44 = vcombine.high %v2976_v57, %v2984_v51  ;;  %v2928_v40 = vld [vmem:[#allocation18 + $0x130] sm:$0xff]  ;;  %v3687_v53 = vld [vmem:[#allocation18 + $0x18e8] sm:$0xff]  ;;  %v13023_v51 = vcombine.low %v3695_v42, %v3703_v47 }
 0x6d4   :  { %10093 = vmatprep.mubr.bf16.mxu1 %v14404_v10  ;;  %10103 = vmatpush1.bf16.msra.mxu0 %v12337_v49  ;;  %v9769_v6 = vpop.f32.mrf.mxu1  ;;  %v12273_v49 = vcombine.low %v2944_v52, %v2952_v55  ;;  %v12258_v37 = vcombine.high %v2928_v40, %v2936_v14  ;;  %v2920_v57 = vld [vmem:[#allocation18 + $0xf0] sm:$0xff]  ;;  %v3887_v52 = vld [vmem:[#allocation18 + $0x1f28] sm:$0xff] }
 0x6d5   :  { %10134 = vmatprep.mubr.bf16.mxu0 %v14328_v7  ;;  %v14530_v4 = vadd.f32 %v9769_v6, %v14518_v50  ;;  %v14532_v36 = vpop.f32.mrf.mxu0  ;;  %10063 = vmatprep.subr.bf16.mxu1 %v13088_v31  ;;  %v13024_v31 = vcombine.high %v3695_v42, %v3703_v47  ;;  %v13008_v6 = vcombine.high %v3679_v11, %v3687_v53  ;;  %v3895_v55 = vld [vmem:[#allocation18 + $0x1f68] sm:$0xff]  ;;  %vm10437_vm10 = vcmp.gt.f32.partialorder %v14522_v58, 0.0 }
 0x6d6   :  { %v9771_v13 = vpop.f32.mrf.mxu1  ;;  %10104 = vmatprep.subr.bf16.mxu0 %v12322_v54  ;;  %v2912_v54 = vld [vmem:[#allocation18 + $0xb0] sm:$0xff]  ;;  %v13216_v42 = vcombine.high %v3887_v52, %v3895_v55 }
 0x6d7   :  { %v9812_v23 = vpop.f32.mrf.mxu0  ;;  %10064 = vmatpush1.bf16.msra.mxu1 %v13087_v60  ;;  %v12257_v60 = vcombine.low %v2928_v40, %v2936_v14  ;;  %v13007_v13 = vcombine.low %v3679_v11, %v3687_v53  ;;  %v12241_v16 = vcombine.low %v2912_v54, %v2920_v57  ;;  %v3871_v40 = vld [vmem:[#allocation18 + $0x1ea8] sm:$0xff]  ;;  %vm10438_vm9 = vcmp.gt.f32.partialorder %v14530_v4, 0.0 }
 0x6d8   :  { %10105 = vmatpush1.bf16.msra.mxu0 %v12321_v8  ;;  %v9772_v26 = vpop.f32.mrf.mxu1  ;;  %10065 = vmatprep.subr.bf16.mxu1 %v13072_v9  ;;  %v12242_v8 = vcombine.high %v2912_v54, %v2920_v57  ;;  %v3663_v9 = vld [vmem:[#allocation18 + $0x1828] sm:$0xff]  ;;  %v12226_v23 = vcombine.high %v2896_v15, %v2904_v39 }
 0x6d9   :  { %v9813_v50 = vpop.f32.mrf.mxu0  ;;  %10106 = vmatprep.subr.bf16.mxu0 %v12306_v44  ;;  %v3671_v44 = vld [vmem:[#allocation18 + $0x1868] sm:$0xff] }
 0x6da   :  { %v12992_v19 = vcombine.high %v3663_v9, %v3671_v44  ;;  %v3911_v26 = vld [vmem:[#allocation18 + $0x1fe8] sm:$0xff]  ;;  %v12991_v50 = vcombine.low %v3663_v9, %v3671_v44 }
 0x6db   :  { %10066 = vmatpush1.bf16.msra.mxu1 %v13071_v25  ;;  %v3903_v25 = vld [vmem:[#allocation18 + $0x1fa8] sm:$0xff] }
 0x6dc   :  { %10107 = vmatpush1.bf16.msra.mxu0 %v12305_v28  ;;  %10067 = vmatprep.subr.bf16.mxu1 %v13056_v29  ;;  %v3136_v28 = vld [vmem:[#allocation18 + $0x7b0] sm:$0xff]  ;;  %v13232_v17 = vcombine.high %v3903_v25, %v3911_v26  ;;  %v3879_v14 = vld [vmem:[#allocation18 + $0x1ee8] sm:$0xff] }
 0x6dd   :  { %10108 = vmatprep.subr.bf16.mxu0 %v12290_v2  ;;  %v3144_v29 = vld [vmem:[#allocation18 + $0x7f0] sm:$0xff]  ;;  %v12225_v2 = vcombine.low %v2896_v15, %v2904_v39  ;;  %v13200_v11 = vcombine.high %v3871_v40, %v3879_v14  ;;  %v3855_v54 = vld [vmem:[#allocation18 + $0x1e28] sm:$0xff] }
 0x6de   :  { %v12466_v22 = vcombine.high %v3136_v28, %v3144_v29  ;;  %v3863_v57 = vld [vmem:[#allocation18 + $0x1e68] sm:$0xff] }
 0x6df   :  { %10068 = vmatpush1.bf16.msra.mxu1 %v13055_v32  ;;  %v3120_v32 = vld [vmem:[#allocation18 + $0x730] sm:$0xff]  ;;  %v13184_v9 = vcombine.high %v3855_v54, %v3863_v57  ;;  %v3839_v15 = vld [vmem:[#allocation18 + $0x1da8] sm:$0xff] }
 0x6e0   :  { %10109 = vmatpush1.bf16.msra.mxu0 %v12289_v33  ;;  %10069 = vmatprep.subr.bf16.mxu1 %v13040_v0  ;;  %v3128_v33 = vld [vmem:[#allocation18 + $0x770] sm:$0xff]  ;;  %v13231_v0 = vcombine.low %v3903_v25, %v3911_v26  ;;  %v3847_v39 = vld [vmem:[#allocation18 + $0x1de8] sm:$0xff] }
 0x6e1   :  { %10110 = vmatprep.subr.bf16.mxu0 %v12274_v35  ;;  %v12465_v35 = vcombine.low %v3136_v28, %v3144_v29  ;;  %v12450_v47 = vcombine.high %v3120_v32, %v3128_v33  ;;  %v13168_v25 = vcombine.high %v3839_v15, %v3847_v39  ;;  %v3823_v28 = vld [vmem:[#allocation18 + $0x1d28] sm:$0xff] }
 0x6e2   :  { %v3831_v29 = vld [vmem:[#allocation18 + $0x1d68] sm:$0xff] }
 0x6e3   :  { %10070 = vmatpush1.bf16.msra.mxu1 %v13039_v48  ;;  %v3104_v48 = vld [vmem:[#allocation18 + $0x6b0] sm:$0xff] }
 0x6e4   :  { %10111 = vmatpush1.bf16.msra.mxu0 %v12273_v49  ;;  %10071 = vmatprep.subr.bf16.mxu1 %v13024_v31  ;;  %v3112_v49 = vld [vmem:[#allocation18 + $0x6f0] sm:$0xff]  ;;  %v13215_v31 = vcombine.low %v3887_v52, %v3895_v55  ;;  %v13152_v52 = vcombine.high %v3823_v28, %v3831_v29 }
 0x6e5   :  { %10112 = vmatprep.subr.bf16.mxu0 %v12258_v37  ;;  %v12449_v37 = vcombine.low %v3120_v32, %v3128_v33  ;;  %v12434_v53 = vcombine.high %v3104_v48, %v3112_v49  ;;  %v3807_v32 = vld [vmem:[#allocation18 + $0x1ca8] sm:$0xff] }
 0x6e6   :  { %v3815_v33 = vld [vmem:[#allocation18 + $0x1ce8] sm:$0xff] }
 0x6e7   :  { %10072 = vmatpush1.bf16.msra.mxu1 %v13023_v51  ;;  %v3088_v51 = vld [vmem:[#allocation18 + $0x630] sm:$0xff] }
 0x6e8   :  { %10113 = vmatpush1.bf16.msra.mxu0 %v12257_v60  ;;  %10073 = vmatprep.subr.bf16.mxu1 %v13008_v6  ;;  %v3096_v60 = vld [vmem:[#allocation18 + $0x670] sm:$0xff]  ;;  %v13199_v6 = vcombine.low %v3871_v40, %v3879_v14  ;;  %v13136_v40 = vcombine.high %v3807_v32, %v3815_v33 }
 0x6e9   :  { %10114 = vmatprep.subr.bf16.mxu0 %v12242_v8  ;;  %v12433_v8 = vcombine.low %v3104_v48, %v3112_v49  ;;  %v12418_v44 = vcombine.high %v3088_v51, %v3096_v60  ;;  %v3791_v48 = vld [vmem:[#allocation18 + $0x1c28] sm:$0xff] }
 0x6ea   :  { %v3799_v49 = vld [vmem:[#allocation18 + $0x1c68] sm:$0xff] }
 0x6eb   :  { %10074 = vmatpush1.bf16.msra.mxu1 %v13007_v13  ;;  %v3072_v13 = vld [vmem:[#allocation18 + $0x5b0] sm:$0xff] }
 0x6ec   :  { %10115 = vmatpush1.bf16.msra.mxu0 %v12241_v16  ;;  %10075 = vmatprep.subr.bf16.mxu1 %v12992_v19  ;;  %v3080_v16 = vld [vmem:[#allocation18 + $0x5f0] sm:$0xff]  ;;  %v13183_v19 = vcombine.low %v3855_v54, %v3863_v57  ;;  %v13120_v54 = vcombine.high %v3791_v48, %v3799_v49 }
 0x6ed   :  { %10116 = vmatprep.subr.bf16.mxu0 %v12226_v23  ;;  %v12417_v23 = vcombine.low %v3088_v51, %v3096_v60  ;;  %v12402_v26 = vcombine.high %v3072_v13, %v3080_v16  ;;  %v3264_v51 = vld [vmem:[#allocation18 + $0xbb0] sm:$0xff] }
 0x6ee   :  { %v3272_v60 = vld [vmem:[#allocation18 + $0xbf0] sm:$0xff] }
 0x6ef   :  { %10076 = vmatpush1.bf16.msra.mxu1 %v12991_v50  ;;  %v3056_v50 = vld [vmem:[#allocation18 + $0x530] sm:$0xff] }
 0x6f0   :  { %10117 = vmatpush1.bf16.msra.mxu0 %v12225_v2  ;;  %10077 = vmatprep.subr.bf16.mxu1 %v13232_v17  ;;  %v3064_v2 = vld [vmem:[#allocation18 + $0x570] sm:$0xff]  ;;  %v13167_v17 = vcombine.low %v3839_v15, %v3847_v39  ;;  %v12594_v39 = vcombine.high %v3264_v51, %v3272_v60 }
 0x6f1   :  { %10118 = vmatprep.subr.bf16.mxu0 %v12466_v22  ;;  %v12401_v22 = vcombine.low %v3072_v13, %v3080_v16  ;;  %v12386_v55 = vcombine.high %v3056_v50, %v3064_v2 }
 0x6f3   :  { %10078 = vmatpush2.bf16.msra.mxu1 %v13231_v0  ;;  %v3040_v0 = vld [vmem:[#allocation18 + $0x4b0] sm:$0xff] }
 0x6f4   :  { %10119 = vmatpush2.bf16.msra.mxu0 %v12465_v35  ;;  %10079 = vmatprep.subr.bf16.mxu1 %v13216_v42  ;;  %v3048_v35 = vld [vmem:[#allocation18 + $0x4f0] sm:$0xff]  ;;  %v13151_v42 = vcombine.low %v3823_v28, %v3831_v29 }
 0x6f5   :  { %10120 = vmatprep.subr.bf16.mxu0 %v12450_v47  ;;  %v12385_v47 = vcombine.low %v3056_v50, %v3064_v2  ;;  %v12370_v14 = vcombine.high %v3040_v0, %v3048_v35  ;;  %v3504_v28 = vld [vmem:[#allocation18 + $0x1330] sm:$0xff] }
 0x6f6   :  { %v3512_v29 = vld [vmem:[#allocation18 + $0x1370] sm:$0xff] }
 0x6f7   :  { %10080 = vmatpush2.bf16.msra.mxu1 %v13215_v31  ;;  %v3024_v31 = vld [vmem:[#allocation18 + $0x430] sm:$0xff] }
 0x6f8   :  { %10121 = vmatpush2.bf16.msra.mxu0 %v12449_v37  ;;  %10081 = vmatprep.subr.bf16.mxu1 %v13200_v11  ;;  %v3032_v37 = vld [vmem:[#allocation18 + $0x470] sm:$0xff]  ;;  %v13135_v11 = vcombine.low %v3807_v32, %v3815_v33 }
 0x6f9   :  { %10122 = vmatprep.subr.bf16.mxu0 %v12434_v53  ;;  %v12369_v53 = vcombine.low %v3040_v0, %v3048_v35  ;;  %v12354_v57 = vcombine.high %v3024_v31, %v3032_v37  ;;  %v12353_v15 = vcombine.low %v3024_v31, %v3032_v37  ;;  %v3488_v32 = vld [vmem:[#allocation18 + $0x12b0] sm:$0xff] }
 0x6fa   :  { %v3496_v33 = vld [vmem:[#allocation18 + $0x12f0] sm:$0xff] }
 0x6fb   :  { %10082 = vmatpush2.bf16.msra.mxu1 %v13199_v6  ;;  %v14534_v6 = vld [vmem:[#allocation19 + $0x8] sm:$0xff]  ;;  %v3216_v31 = vld [vmem:[#allocation18 + $0xa30] sm:$0xff] }
 0x6fc   :  { %10123 = vmatpush2.bf16.msra.mxu0 %v12433_v8  ;;  %10083 = vmatprep.subr.bf16.mxu1 %v13184_v9  ;;  %v3520_v8 = vld [vmem:[#allocation18 + $0x13b0] sm:$0xff]  ;;  %v3953_v13 = vrot.slane %v14534_v6, %v14273_v41 }
 0x6fd   :  { %10124 = vmatprep.subr.bf16.mxu0 %v12418_v44  ;;  %v3528_v9 = vld [vmem:[#allocation18 + $0x13f0] sm:$0xff]  ;;  %v13119_v44 = vcombine.low %v3791_v48, %v3799_v49 }
 0x6fe   :  { %v12850_v16 = vcombine.high %v3520_v8, %v3528_v9  ;;  %v12849_v50 = vcombine.low %v3520_v8, %v3528_v9  ;;  %v9809_v2 = vadd.f32 %v14524_v59, %v3953_v13  ;;  %v3240_v41 = vld [vmem:[#allocation18 + $0xaf0] sm:$0xff]  ;;  %v12817_v9 = vcombine.low %v3488_v32, %v3496_v33 }
 0x6ff   :  { %10084 = vmatpush2.bf16.msra.mxu1 %v13183_v19  ;;  %v3248_v19 = vld [vmem:[#allocation18 + $0xb30] sm:$0xff] }
 0x700   :  { %10125 = vmatpush2.bf16.msra.mxu0 %v12417_v23  ;;  %10085 = vmatprep.subr.bf16.mxu1 %v13168_v25  ;;  %v3256_v23 = vld [vmem:[#allocation18 + $0xb70] sm:$0xff]  ;;  %v3957_v25 = vrot.slane %v14534_v6, %v14276_v43 }
 0x701   :  { %10126 = vmatprep.subr.bf16.mxu0 %v12402_v26  ;;  %v12593_v26 = vcombine.low %v3264_v51, %v3272_v60  ;;  %v3224_v37 = vld [vmem:[#allocation18 + $0xa70] sm:$0xff] }
 0x702   :  { %v9811_v43 = vadd.f32 %v14532_v36, %v3957_v25  ;;  %v12818_v36 = vcombine.high %v3488_v32, %v3496_v33  ;;  %v3200_v13 = vld [vmem:[#allocation18 + $0x9b0] sm:$0xff]  ;;  %v12545_v25 = vcombine.low %v3216_v31, %v3224_v37 }
 0x703   :  { %10086 = vmatpush2.bf16.msra.mxu1 %v13167_v17  ;;  %v12578_v17 = vcombine.high %v3248_v19, %v3256_v23  ;;  %v3168_v33 = vld [vmem:[#allocation18 + $0x8b0] sm:$0xff] }
 0x704   :  { %10127 = vmatpush2.bf16.msra.mxu0 %v12401_v22  ;;  %10087 = vmatprep.subr.bf16.mxu1 %v13152_v52  ;;  %v3232_v22 = vld [vmem:[#allocation18 + $0xab0] sm:$0xff] }
 0x705   :  { %10128 = vmatprep.subr.bf16.mxu0 %v12386_v55  ;;  %v12834_v55 = vcombine.high %v3504_v28, %v3512_v29  ;;  %v12561_v60 = vcombine.low %v3232_v22, %v3240_v41 }
 0x707   :  { %10088 = vmatpush2.bf16.msra.mxu1 %v13151_v42  ;;  %v12577_v42 = vcombine.low %v3248_v19, %v3256_v23  ;;  %v3456_v19 = vld [vmem:[#allocation18 + $0x11b0] sm:$0xff] }
 0x708   :  { %10129 = vmatpush2.bf16.msra.mxu0 %v12385_v47  ;;  %10089 = vmatprep.subr.bf16.mxu1 %v13136_v40  ;;  %v12833_v47 = vcombine.low %v3504_v28, %v3512_v29  ;;  %v12562_v40 = vcombine.high %v3232_v22, %v3240_v41  ;;  %v3464_v23 = vld [vmem:[#allocation18 + $0x11f0] sm:$0xff] }
 0x709   :  { %10130 = vmatprep.subr.bf16.mxu0 %v12370_v14  ;;  %v12786_v29 = vcombine.high %v3456_v19, %v3464_v23  ;;  %v3448_v22 = vld [vmem:[#allocation18 + $0x1170] sm:$0xff] }
 0x70b   :  { %10090 = vmatpush2.bf16.msra.mxu1 %v13135_v11 }
 0x70c   :  { %10131 = vmatpush2.bf16.msra.mxu0 %v12369_v53  ;;  %10091 = vmatprep.subr.bf16.mxu1 %v13120_v54  ;;  %v3472_v53 = vld [vmem:[#allocation18 + $0x1230] sm:$0xff] }
 0x70d   :  { %10132 = vmatprep.subr.bf16.mxu0 %v12354_v57  ;;  %v3480_v54 = vld [vmem:[#allocation18 + $0x1270] sm:$0xff] }
 0x70f   :  { %10092 = vmatpush2.bf16.msra.mxu1 %v13119_v44  ;;  %v12546_v44 = vcombine.high %v3216_v31, %v3224_v37  ;;  %v3416_v31 = vld [vmem:[#allocation18 + $0x1070] sm:$0xff] }
 0x710   :  { %10133 = vmatpush2.bf16.msra.mxu0 %v12353_v15  ;;  %10143 = vmatprep.subr.bf16.mxu1 %v12594_v39  ;;  %v12802_v39 = vcombine.high %v3472_v53, %v3480_v54 }
 0x711   :  { %10184 = vmatprep.subr.bf16.mxu0 %v12850_v16  ;;  %v3208_v16 = vld [vmem:[#allocation18 + $0x9f0] sm:$0xff] }
 0x712   :  { %v9849_v52 = vpop.f32.mrf.mxu1  ;;  %10094 = vmatmul.mubr.bf16.vlgmr.msra.gmra.mxu1 %v14406_v12  ;;  %v12530_v28 = vcombine.high %v3200_v13, %v3208_v16  ;;  %v12529_v41 = vcombine.low %v3200_v13, %v3208_v16  ;;  %v3376_v16 = vld [vmem:[#allocation18 + $0xf30] sm:$0xff] }
 0x713   :  { %v9850_v0 = vadd.f32 %v9849_v52, %v9809_v2  ;;  %v9890_v35 = vpop.f32.mrf.mxu0  ;;  %10135 = vmatmul.mubr.bf16.vlgmr.msra.gmra.mxu0 %v14344_v5  ;;  %10144 = vmatpush1.bf16.msra.mxu1 %v12593_v26  ;;  %v12801_v26 = vcombine.low %v3472_v53, %v3480_v54  ;;  %v3192_v2 = vld [vmem:[#allocation18 + $0x970] sm:$0xff]  ;;  %v12785_v52 = vcombine.low %v3456_v19, %v3464_v23 }
 0x714   :  { %10175 = vmatprep.mubr.bf16.mxu1 %v14351_v46  ;;  %10185 = vmatpush1.bf16.msra.mxu0 %v12849_v50  ;;  %v9851_v59 = vpop.f32.mrf.mxu1  ;;  %v3184_v50 = vld [vmem:[#allocation18 + $0x930] sm:$0xff] }
 0x715   :  { %v14545_v14 = vadd.f32 %v9890_v35, %v9850_v0  ;;  %10216 = vmatprep.mubr.bf16.mxu0 %v14385_v18  ;;  %v9852_v48 = vadd.f32 %v9851_v59, %v9811_v43  ;;  %v9892_v49 = vpop.f32.mrf.mxu0  ;;  %10145 = vmatprep.subr.bf16.mxu1 %v12578_v17  ;;  %v3440_v17 = vld [vmem:[#allocation18 + $0x1130] sm:$0xff] }
 0x716   :  { %v9853_v11 = vpop.f32.mrf.mxu1  ;;  %10186 = vmatprep.subr.bf16.mxu0 %v12834_v55  ;;  %v12514_v55 = vcombine.high %v3184_v50, %v3192_v2  ;;  %v12770_v32 = vcombine.high %v3440_v17, %v3448_v22  ;;  %v3176_v43 = vld [vmem:[#allocation18 + $0x8f0] sm:$0xff]  ;;  %v12769_v59 = vcombine.low %v3440_v17, %v3448_v22 }
 0x717   :  { %v14548_v57 = vadd.f32 %v9892_v49, %v9852_v48  ;;  %v9894_v51 = vpop.f32.mrf.mxu0  ;;  %10146 = vmatpush1.bf16.msra.mxu1 %v12577_v42  ;;  %v3424_v0 = vld [vmem:[#allocation18 + $0x10b0] sm:$0xff]  ;;  %v12513_v42 = vcombine.low %v3184_v50, %v3192_v2  ;;  %v12497_v37 = vcombine.low %v3168_v33, %v3176_v43 }
 0x718   :  { %10187 = vmatpush1.bf16.msra.mxu0 %v12833_v47  ;;  %v9854_v8 = vpop.f32.mrf.mxu1  ;;  %10147 = vmatprep.subr.bf16.mxu1 %v12562_v40  ;;  %v3432_v35 = vld [vmem:[#allocation18 + $0x10f0] sm:$0xff]  ;;  %v12498_v47 = vcombine.high %v3168_v33, %v3176_v43 }
 0x719   :  { %v9895_v15 = vpop.f32.mrf.mxu0  ;;  %10188 = vmatprep.subr.bf16.mxu0 %v12818_v36  ;;  %v12754_v40 = vcombine.high %v3424_v0, %v3432_v35  ;;  %v3152_v48 = vld [vmem:[#allocation18 + $0x830] sm:$0xff]  ;;  %v12753_v11 = vcombine.low %v3424_v0, %v3432_v35 }
 0x71a   :  { %v3160_v49 = vld [vmem:[#allocation18 + $0x870] sm:$0xff] }
 0x71b   :  { %10148 = vmatpush1.bf16.msra.mxu1 %v12561_v60  ;;  %v3408_v36 = vld [vmem:[#allocation18 + $0x1030] sm:$0xff]  ;;  %v12482_v53 = vcombine.high %v3152_v48, %v3160_v49 }
 0x71c   :  { %10189 = vmatpush1.bf16.msra.mxu0 %v12817_v9  ;;  %10149 = vmatprep.subr.bf16.mxu1 %v12546_v44  ;;  %v12738_v54 = vcombine.high %v3408_v36, %v3416_v31  ;;  %v3392_v51 = vld [vmem:[#allocation18 + $0xfb0] sm:$0xff]  ;;  %v12481_v44 = vcombine.low %v3152_v48, %v3160_v49  ;;  %v12737_v15 = vcombine.low %v3408_v36, %v3416_v31 }
 0x71d   :  { %10190 = vmatprep.subr.bf16.mxu0 %v12802_v39  ;;  %v3400_v60 = vld [vmem:[#allocation18 + $0xff0] sm:$0xff] }
 0x71e   :  { %v3648_v8 = vld [vmem:[#allocation18 + $0x17b0] sm:$0xff]  ;;  %v12722_v39 = vcombine.high %v3392_v51, %v3400_v60 }
 0x71f   :  { %10150 = vmatpush1.bf16.msra.mxu1 %v12545_v25  ;;  %v3656_v9 = vld [vmem:[#allocation18 + $0x17f0] sm:$0xff] }
 0x720   :  { %10191 = vmatpush1.bf16.msra.mxu0 %v12801_v26  ;;  %10151 = vmatprep.subr.bf16.mxu1 %v12530_v28  ;;  %v12978_v13 = vcombine.high %v3648_v8, %v3656_v9  ;;  %v3384_v19 = vld [vmem:[#allocation18 + $0xf70] sm:$0xff]  ;;  %v12721_v26 = vcombine.low %v3392_v51, %v3400_v60  ;;  %v12977_v28 = vcombine.low %v3648_v8, %v3656_v9 }
 0x721   :  { %10192 = vmatprep.subr.bf16.mxu0 %v12786_v29  ;;  %v3632_v23 = vld [vmem:[#allocation18 + $0x1730] sm:$0xff]  ;;  %v12706_v29 = vcombine.high %v3376_v16, %v3384_v19 }
 0x722   :  { %v3640_v25 = vld [vmem:[#allocation18 + $0x1770] sm:$0xff] }
 0x723   :  { %10152 = vmatpush1.bf16.msra.mxu1 %v12529_v41  ;;  %v12962_v50 = vcombine.high %v3632_v23, %v3640_v25  ;;  %v3360_v2 = vld [vmem:[#allocation18 + $0xeb0] sm:$0xff] }
 0x724   :  { %10193 = vmatpush1.bf16.msra.mxu0 %v12785_v52  ;;  %10153 = vmatprep.subr.bf16.mxu1 %v12514_v55  ;;  %v3368_v17 = vld [vmem:[#allocation18 + $0xef0] sm:$0xff]  ;;  %v12705_v52 = vcombine.low %v3376_v16, %v3384_v19  ;;  %v12961_v55 = vcombine.low %v3632_v23, %v3640_v25 }
 0x725   :  { %10194 = vmatprep.subr.bf16.mxu0 %v12770_v32  ;;  %v3616_v22 = vld [vmem:[#allocation18 + $0x16b0] sm:$0xff]  ;;  %v12690_v32 = vcombine.high %v3360_v2, %v3368_v17 }
 0x726   :  { %v3624_v41 = vld [vmem:[#allocation18 + $0x16f0] sm:$0xff] }
 0x727   :  { %10154 = vmatpush1.bf16.msra.mxu1 %v12513_v42  ;;  %v12946_v33 = vcombine.high %v3616_v22, %v3624_v41  ;;  %v3344_v43 = vld [vmem:[#allocation18 + $0xe30] sm:$0xff] }
 0x728   :  { %10195 = vmatpush1.bf16.msra.mxu0 %v12769_v59  ;;  %10155 = vmatprep.subr.bf16.mxu1 %v12498_v47  ;;  %v3352_v0 = vld [vmem:[#allocation18 + $0xe70] sm:$0xff]  ;;  %v12689_v59 = vcombine.low %v3360_v2, %v3368_v17  ;;  %v12945_v47 = vcombine.low %v3616_v22, %v3624_v41 }
 0x729   :  { %10196 = vmatprep.subr.bf16.mxu0 %v12754_v40  ;;  %v3600_v35 = vld [vmem:[#allocation18 + $0x1630] sm:$0xff]  ;;  %v12674_v40 = vcombine.high %v3344_v43, %v3352_v0 }
 0x72a   :  { %v3608_v42 = vld [vmem:[#allocation18 + $0x1670] sm:$0xff] }
 0x72b   :  { %10156 = vmatpush1.bf16.msra.mxu1 %v12497_v37  ;;  %v12930_v48 = vcombine.high %v3600_v35, %v3608_v42  ;;  %v3328_v49 = vld [vmem:[#allocation18 + $0xdb0] sm:$0xff] }
 0x72c   :  { %10197 = vmatpush1.bf16.msra.mxu0 %v12753_v11  ;;  %10157 = vmatprep.subr.bf16.mxu1 %v12482_v53  ;;  %v3336_v36 = vld [vmem:[#allocation18 + $0xdf0] sm:$0xff]  ;;  %v12673_v11 = vcombine.low %v3344_v43, %v3352_v0  ;;  %v12929_v53 = vcombine.low %v3600_v35, %v3608_v42  ;;  %v3009_v42 = vld [vmem:[#allocation18 + $0x3b8] sm:$0xff] }
 0x72d   :  { %10198 = vmatprep.subr.bf16.mxu0 %v12738_v54  ;;  %v3584_v31 = vld [vmem:[#allocation18 + $0x15b0] sm:$0xff]  ;;  %v12658_v54 = vcombine.high %v3328_v49, %v3336_v36 }
 0x72e   :  { %v3592_v37 = vld [vmem:[#allocation18 + $0x15f0] sm:$0xff] }
 0x72f   :  { %10158 = vmatpush1.bf16.msra.mxu1 %v12481_v44  ;;  %v12914_v51 = vcombine.high %v3584_v31, %v3592_v37  ;;  %v3312_v60 = vld [vmem:[#allocation18 + $0xd30] sm:$0xff] }
 0x730   :  { %10199 = vmatpush1.bf16.msra.mxu0 %v12737_v15  ;;  %10159 = vmatprep.subr.bf16.mxu1 %v12722_v39  ;;  %v3320_v8 = vld [vmem:[#allocation18 + $0xd70] sm:$0xff]  ;;  %v12657_v15 = vcombine.low %v3328_v49, %v3336_v36  ;;  %v12913_v39 = vcombine.low %v3584_v31, %v3592_v37 }
 0x731   :  { %10200 = vmatprep.subr.bf16.mxu0 %v12978_v13  ;;  %v3568_v9 = vld [vmem:[#allocation18 + $0x1530] sm:$0xff]  ;;  %v12642_v13 = vcombine.high %v3312_v60, %v3320_v8 }
 0x732   :  { %v3576_v44 = vld [vmem:[#allocation18 + $0x1570] sm:$0xff] }
 0x733   :  { %10160 = vmatpush2.bf16.msra.mxu1 %v12721_v26  ;;  %v12898_v16 = vcombine.high %v3568_v9, %v3576_v44  ;;  %v3296_v19 = vld [vmem:[#allocation18 + $0xcb0] sm:$0xff] }
 0x734   :  { %10201 = vmatpush2.bf16.msra.mxu0 %v12977_v28  ;;  %10161 = vmatprep.subr.bf16.mxu1 %v12706_v29  ;;  %v3304_v23 = vld [vmem:[#allocation18 + $0xcf0] sm:$0xff]  ;;  %v12641_v28 = vcombine.low %v3312_v60, %v3320_v8  ;;  %v12897_v29 = vcombine.low %v3568_v9, %v3576_v44 }
 0x735   :  { %10202 = vmatprep.subr.bf16.mxu0 %v12962_v50  ;;  %v3552_v25 = vld [vmem:[#allocation18 + $0x14b0] sm:$0xff]  ;;  %v12626_v50 = vcombine.high %v3296_v19, %v3304_v23 }
 0x736   :  { %v3560_v26 = vld [vmem:[#allocation18 + $0x14f0] sm:$0xff] }
 0x737   :  { %10162 = vmatpush2.bf16.msra.mxu1 %v12705_v52  ;;  %v12882_v2 = vcombine.high %v3552_v25, %v3560_v26  ;;  %v3280_v17 = vld [vmem:[#allocation18 + $0xc30] sm:$0xff] }
 0x738   :  { %10203 = vmatpush2.bf16.msra.mxu0 %v12961_v55  ;;  %10163 = vmatprep.subr.bf16.mxu1 %v12690_v32  ;;  %v3288_v22 = vld [vmem:[#allocation18 + $0xc70] sm:$0xff]  ;;  %v12625_v55 = vcombine.low %v3296_v19, %v3304_v23  ;;  %v12881_v32 = vcombine.low %v3552_v25, %v3560_v26 }
 0x739   :  { %10204 = vmatprep.subr.bf16.mxu0 %v12946_v33  ;;  %v3536_v41 = vld [vmem:[#allocation18 + $0x1430] sm:$0xff]  ;;  %v12610_v33 = vcombine.high %v3280_v17, %v3288_v22 }
 0x73a   :  { %v3544_v52 = vld [vmem:[#allocation18 + $0x1470] sm:$0xff] }
 0x73b   :  { %10164 = vmatpush2.bf16.msra.mxu1 %v12689_v59  ;;  %v12866_v43 = vcombine.high %v3536_v41, %v3544_v52  ;;  %v3776_v0 = vld [vmem:[#allocation18 + $0x1bb0] sm:$0xff]  ;;  %v3017_v59 = vld [vmem:[#allocation18 + $0x3f8] sm:$0xff] }
 0x73c   :  { %10205 = vmatpush2.bf16.msra.mxu0 %v12945_v47  ;;  %10165 = vmatprep.subr.bf16.mxu1 %v12674_v40  ;;  %v3784_v35 = vld [vmem:[#allocation18 + $0x1bf0] sm:$0xff]  ;;  %v12609_v47 = vcombine.low %v3280_v17, %v3288_v22  ;;  %v12865_v40 = vcombine.low %v3536_v41, %v3544_v52  ;;  %v12340_v49 = vcombine.high %v3009_v42, %v3017_v59  ;;  %v2961_v22 = vld [vmem:[#allocation18 + $0x238] sm:$0xff] }
 0x73d   :  { %10206 = vmatprep.subr.bf16.mxu0 %v12930_v48  ;;  %v13106_v48 = vcombine.high %v3776_v0, %v3784_v35  ;;  %v3760_v36 = vld [vmem:[#allocation18 + $0x1b30] sm:$0xff]  ;;  %v13105_v37 = vcombine.low %v3776_v0, %v3784_v35  ;;  %v2969_v41 = vld [vmem:[#allocation18 + $0x278] sm:$0xff] }
 0x73e   :  { %v3768_v31 = vld [vmem:[#allocation18 + $0x1b70] sm:$0xff] }
 0x73f   :  { %10166 = vmatpush2.bf16.msra.mxu1 %v12673_v11  ;;  %v2993_v11 = vld [vmem:[#allocation18 + $0x338] sm:$0xff]  ;;  %v3744_v60 = vld [vmem:[#allocation18 + $0x1ab0] sm:$0xff]  ;;  %v13089_v19 = vcombine.low %v3760_v36, %v3768_v31 }
 0x740   :  { %10207 = vmatpush2.bf16.msra.mxu0 %v12929_v53  ;;  %10167 = vmatprep.subr.bf16.mxu1 %v12658_v54  ;;  %v3001_v53 = vld [vmem:[#allocation18 + $0x378] sm:$0xff]  ;;  %v12339_v54 = vcombine.low %v3009_v42, %v3017_v59  ;;  %v3752_v8 = vld [vmem:[#allocation18 + $0x1af0] sm:$0xff] }
 0x741   :  { %10208 = vmatprep.subr.bf16.mxu0 %v12914_v51  ;;  %v13090_v51 = vcombine.high %v3760_v36, %v3768_v31  ;;  %v12324_v44 = vcombine.high %v2993_v11, %v3001_v53  ;;  %v12323_v25 = vcombine.low %v2993_v11, %v3001_v53  ;;  %v13074_v26 = vcombine.high %v3744_v60, %v3752_v8  ;;  %v3712_v0 = vld [vmem:[#allocation18 + $0x19b0] sm:$0xff]  ;;  %v2945_v42 = vld [vmem:[#allocation18 + $0x1b8] sm:$0xff] }
 0x742   :  { %v3720_v35 = vld [vmem:[#allocation18 + $0x19f0] sm:$0xff]  ;;  %v2953_v59 = vld [vmem:[#allocation18 + $0x1f8] sm:$0xff] }
 0x743   :  { %10168 = vmatpush2.bf16.msra.mxu1 %v12657_v15  ;;  %v2977_v15 = vld [vmem:[#allocation18 + $0x2b8] sm:$0xff]  ;;  %v3696_v36 = vld [vmem:[#allocation18 + $0x1930] sm:$0xff]  ;;  %v13041_v53 = vcombine.low %v3712_v0, %v3720_v35 }
 0x744   :  { %10209 = vmatpush2.bf16.msra.mxu0 %v12913_v39  ;;  %10169 = vmatprep.subr.bf16.mxu1 %v12642_v13  ;;  %v2985_v39 = vld [vmem:[#allocation18 + $0x2f8] sm:$0xff]  ;;  %v3704_v31 = vld [vmem:[#allocation18 + $0x1970] sm:$0xff] }
 0x745   :  { %10210 = vmatprep.subr.bf16.mxu0 %v12898_v16  ;;  %v2937_v11 = vld [vmem:[#allocation18 + $0x178] sm:$0xff] }
 0x747   :  { %10170 = vmatpush2.bf16.msra.mxu1 %v12641_v28 }
 0x748   :  { %10211 = vmatpush2.bf16.msra.mxu0 %v12897_v29  ;;  %10171 = vmatprep.subr.bf16.mxu1 %v12626_v50  ;;  %v3728_v50 = vld [vmem:[#allocation18 + $0x1a30] sm:$0xff] }
 0x749   :  { %10212 = vmatprep.subr.bf16.mxu0 %v12882_v2  ;;  %v3736_v2 = vld [vmem:[#allocation18 + $0x1a70] sm:$0xff] }
 0x74b   :  { %10172 = vmatpush2.bf16.msra.mxu1 %v12625_v55  ;;  %v13073_v55 = vcombine.low %v3744_v60, %v3752_v8  ;;  %v3680_v8 = vld [vmem:[#allocation18 + $0x18b0] sm:$0xff] }
 0x74c   :  { %10213 = vmatpush2.bf16.msra.mxu0 %v12881_v32  ;;  %10173 = vmatprep.subr.bf16.mxu1 %v12610_v33  ;;  %v13058_v33 = vcombine.high %v3728_v50, %v3736_v2 }
 0x74d   :  { %10214 = vmatprep.subr.bf16.mxu0 %v12866_v43  ;;  %v12292_v43 = vcombine.high %v2961_v22, %v2969_v41 }
 0x74f   :  { %10174 = vmatpush2.bf16.msra.mxu1 %v12609_v47  ;;  %v13057_v47 = vcombine.low %v3728_v50, %v3736_v2  ;;  %v2897_v50 = vld [vmem:[#allocation18 + $0x38] sm:$0xff] }
 0x750   :  { %10215 = vmatpush2.bf16.msra.mxu0 %v12865_v40  ;;  %10225 = vmatprep.subr.bf16.mxu1 %v13106_v48  ;;  %v12291_v40 = vcombine.low %v2961_v22, %v2969_v41  ;;  %v13042_v48 = vcombine.high %v3712_v0, %v3720_v35  ;;  %v2905_v2 = vld [vmem:[#allocation18 + $0x78] sm:$0xff] }
 0x751   :  { %10266 = vmatprep.subr.bf16.mxu0 %v12340_v49  ;;  %v12276_v49 = vcombine.high %v2945_v42, %v2953_v59 }
 0x752   :  { %v9931_v9 = vpop.f32.mrf.mxu1  ;;  %10176 = vmatmul.mubr.bf16.vlgmr.msra.gmra.mxu1 %v14355_v34 }
 0x753   :  { %v14552_v13 = vadd.f32 %v9931_v9, %v14545_v14  ;;  %v14554_v16 = vpop.f32.mrf.mxu0  ;;  %10217 = vmatmul.mubr.bf16.vlgmr.msra.gmra.mxu0 %v14389_v20  ;;  %10226 = vmatpush1.bf16.msra.mxu1 %v13105_v37  ;;  %v12308_v14 = vcombine.high %v2977_v15, %v2985_v39  ;;  %v2929_v37 = vld [vmem:[#allocation18 + $0x138] sm:$0xff]  ;;  %v3688_v9 = vld [vmem:[#allocation18 + $0x18f0] sm:$0xff] }
 0x754   :  { %10257 = vmatprep.mubr.bf16.mxu1 %v14404_v10  ;;  %10267 = vmatpush1.bf16.msra.mxu0 %v12339_v54  ;;  %v9933_v23 = vpop.f32.mrf.mxu1  ;;  %v12275_v54 = vcombine.low %v2945_v42, %v2953_v59  ;;  %v12260_v60 = vcombine.high %v2929_v37, %v2937_v11  ;;  %v3888_v42 = vld [vmem:[#allocation18 + $0x1f30] sm:$0xff] }
 0x755   :  { %10298 = vmatprep.mubr.bf16.mxu0 %v14328_v7  ;;  %v14560_v28 = vadd.f32 %v9933_v23, %v14548_v57  ;;  %v14562_v29 = vpop.f32.mrf.mxu0  ;;  %10227 = vmatprep.subr.bf16.mxu1 %v13090_v51  ;;  %v12307_v7 = vcombine.low %v2977_v15, %v2985_v39  ;;  %v13026_v51 = vcombine.high %v3696_v36, %v3704_v31  ;;  %v2921_v15 = vld [vmem:[#allocation18 + $0xf8] sm:$0xff]  ;;  %v3896_v59 = vld [vmem:[#allocation18 + $0x1f70] sm:$0xff]  ;;  %vm10439_vm8 = vcmp.gt.f32.partialorder %v14552_v13, 0.0 }
 0x756   :  { %v9935_v17 = vpop.f32.mrf.mxu1  ;;  %10268 = vmatprep.subr.bf16.mxu0 %v12324_v44  ;;  %v2913_v44 = vld [vmem:[#allocation18 + $0xb8] sm:$0xff]  ;;  %v13025_v39 = vcombine.low %v3696_v36, %v3704_v31  ;;  %v13010_v23 = vcombine.high %v3680_v8, %v3688_v9  ;;  %v13218_v36 = vcombine.high %v3888_v42, %v3896_v59 }
 0x757   :  { %v9976_v52 = vpop.f32.mrf.mxu0  ;;  %10228 = vmatpush1.bf16.msra.mxu1 %v13089_v19  ;;  %v12259_v19 = vcombine.low %v2929_v37, %v2937_v11  ;;  %v13009_v17 = vcombine.low %v3680_v8, %v3688_v9  ;;  %v12243_v22 = vcombine.low %v2913_v44, %v2921_v15  ;;  %v3872_v37 = vld [vmem:[#allocation18 + $0x1eb0] sm:$0xff]  ;;  %vm10440_vm6 = vcmp.gt.f32.partialorder %v14560_v28, 0.0 }
 0x758   :  { %10269 = vmatpush1.bf16.msra.mxu0 %v12323_v25  ;;  %v9936_v32 = vpop.f32.mrf.mxu1  ;;  %10229 = vmatprep.subr.bf16.mxu1 %v13074_v26  ;;  %v12244_v25 = vcombine.high %v2913_v44, %v2921_v15  ;;  %v3664_v26 = vld [vmem:[#allocation18 + $0x1830] sm:$0xff]  ;;  %v12228_v52 = vcombine.high %v2897_v50, %v2905_v2 }
 0x759   :  { %v9977_v57 = vpop.f32.mrf.mxu0  ;;  %10270 = vmatprep.subr.bf16.mxu0 %v12308_v14  ;;  %v3672_v14 = vld [vmem:[#allocation18 + $0x1870] sm:$0xff] }
 0x75a   :  { %v12994_v41 = vcombine.high %v3664_v26, %v3672_v14  ;;  %v3912_v32 = vld [vmem:[#allocation18 + $0x1ff0] sm:$0xff]  ;;  %v12993_v57 = vcombine.low %v3664_v26, %v3672_v14 }
 0x75b   :  { %10230 = vmatpush1.bf16.msra.mxu1 %v13073_v55  ;;  %v3904_v55 = vld [vmem:[#allocation18 + $0x1fb0] sm:$0xff] }
 0x75c   :  { %10271 = vmatpush1.bf16.msra.mxu0 %v12307_v7  ;;  %10231 = vmatprep.subr.bf16.mxu1 %v13058_v33  ;;  %v3137_v7 = vld [vmem:[#allocation18 + $0x7b8] sm:$0xff]  ;;  %v13234_v0 = vcombine.high %v3904_v55, %v3912_v32  ;;  %v3880_v11 = vld [vmem:[#allocation18 + $0x1ef0] sm:$0xff] }
 0x75d   :  { %10272 = vmatprep.subr.bf16.mxu0 %v12292_v43  ;;  %v3145_v33 = vld [vmem:[#allocation18 + $0x7f8] sm:$0xff]  ;;  %v12227_v43 = vcombine.low %v2897_v50, %v2905_v2  ;;  %v13202_v8 = vcombine.high %v3872_v37, %v3880_v11  ;;  %v3856_v44 = vld [vmem:[#allocation18 + $0x1e30] sm:$0xff] }
 0x75e   :  { %v12468_v35 = vcombine.high %v3137_v7, %v3145_v33  ;;  %v3864_v15 = vld [vmem:[#allocation18 + $0x1e70] sm:$0xff] }
 0x75f   :  { %10232 = vmatpush1.bf16.msra.mxu1 %v13057_v47  ;;  %v3121_v47 = vld [vmem:[#allocation18 + $0x738] sm:$0xff]  ;;  %v13186_v26 = vcombine.high %v3856_v44, %v3864_v15  ;;  %v3840_v50 = vld [vmem:[#allocation18 + $0x1db0] sm:$0xff] }
 0x760   :  { %10273 = vmatpush1.bf16.msra.mxu0 %v12291_v40  ;;  %10233 = vmatprep.subr.bf16.mxu1 %v13042_v48  ;;  %v3129_v40 = vld [vmem:[#allocation18 + $0x778] sm:$0xff]  ;;  %v13233_v48 = vcombine.low %v3904_v55, %v3912_v32  ;;  %v3848_v2 = vld [vmem:[#allocation18 + $0x1df0] sm:$0xff] }
 0x761   :  { %10274 = vmatprep.subr.bf16.mxu0 %v12276_v49  ;;  %v12467_v49 = vcombine.low %v3137_v7, %v3145_v33  ;;  %v12452_v31 = vcombine.high %v3121_v47, %v3129_v40  ;;  %v13170_v55 = vcombine.high %v3840_v50, %v3848_v2  ;;  %v3824_v7 = vld [vmem:[#allocation18 + $0x1d30] sm:$0xff] }
 0x762   :  { %v3832_v33 = vld [vmem:[#allocation18 + $0x1d70] sm:$0xff] }
 0x763   :  { %10234 = vmatpush1.bf16.msra.mxu1 %v13041_v53  ;;  %v3105_v53 = vld [vmem:[#allocation18 + $0x6b8] sm:$0xff] }
 0x764   :  { %10275 = vmatpush1.bf16.msra.mxu0 %v12275_v54  ;;  %10235 = vmatprep.subr.bf16.mxu1 %v13026_v51  ;;  %v3113_v54 = vld [vmem:[#allocation18 + $0x6f8] sm:$0xff]  ;;  %v13217_v51 = vcombine.low %v3888_v42, %v3896_v59  ;;  %v13154_v42 = vcombine.high %v3824_v7, %v3832_v33 }
 0x765   :  { %10276 = vmatprep.subr.bf16.mxu0 %v12260_v60  ;;  %v12451_v60 = vcombine.low %v3121_v47, %v3129_v40  ;;  %v12436_v9 = vcombine.high %v3105_v53, %v3113_v54  ;;  %v3808_v47 = vld [vmem:[#allocation18 + $0x1cb0] sm:$0xff] }
 0x766   :  { %v3816_v40 = vld [vmem:[#allocation18 + $0x1cf0] sm:$0xff] }
 0x767   :  { %10236 = vmatpush1.bf16.msra.mxu1 %v13025_v39  ;;  %v3089_v39 = vld [vmem:[#allocation18 + $0x638] sm:$0xff] }
 0x768   :  { %10277 = vmatpush1.bf16.msra.mxu0 %v12259_v19  ;;  %10237 = vmatprep.subr.bf16.mxu1 %v13010_v23  ;;  %v3097_v19 = vld [vmem:[#allocation18 + $0x678] sm:$0xff]  ;;  %v13201_v23 = vcombine.low %v3872_v37, %v3880_v11  ;;  %v13138_v37 = vcombine.high %v3808_v47, %v3816_v40 }
 0x769   :  { %10278 = vmatprep.subr.bf16.mxu0 %v12244_v25  ;;  %v12435_v25 = vcombine.low %v3105_v53, %v3113_v54  ;;  %v12420_v14 = vcombine.high %v3089_v39, %v3097_v19  ;;  %v3792_v53 = vld [vmem:[#allocation18 + $0x1c30] sm:$0xff] }
 0x76a   :  { %v3800_v54 = vld [vmem:[#allocation18 + $0x1c70] sm:$0xff] }
 0x76b   :  { %10238 = vmatpush1.bf16.msra.mxu1 %v13009_v17  ;;  %v3073_v17 = vld [vmem:[#allocation18 + $0x5b8] sm:$0xff] }
 0x76c   :  { %10279 = vmatpush1.bf16.msra.mxu0 %v12243_v22  ;;  %10239 = vmatprep.subr.bf16.mxu1 %v12994_v41  ;;  %v3081_v22 = vld [vmem:[#allocation18 + $0x5f8] sm:$0xff]  ;;  %v13185_v41 = vcombine.low %v3856_v44, %v3864_v15  ;;  %v13122_v44 = vcombine.high %v3792_v53, %v3800_v54 }
 0x76d   :  { %10280 = vmatprep.subr.bf16.mxu0 %v12228_v52  ;;  %v12419_v52 = vcombine.low %v3089_v39, %v3097_v19  ;;  %v12404_v32 = vcombine.high %v3073_v17, %v3081_v22  ;;  %v3265_v39 = vld [vmem:[#allocation18 + $0xbb8] sm:$0xff] }
 0x76e   :  { %v3273_v19 = vld [vmem:[#allocation18 + $0xbf8] sm:$0xff] }
 0x76f   :  { %10240 = vmatpush1.bf16.msra.mxu1 %v12993_v57  ;;  %v3057_v57 = vld [vmem:[#allocation18 + $0x538] sm:$0xff] }
 0x770   :  { %10281 = vmatpush1.bf16.msra.mxu0 %v12227_v43  ;;  %10241 = vmatprep.subr.bf16.mxu1 %v13234_v0  ;;  %v3065_v43 = vld [vmem:[#allocation18 + $0x578] sm:$0xff]  ;;  %v13169_v0 = vcombine.low %v3840_v50, %v3848_v2  ;;  %v12596_v50 = vcombine.high %v3265_v39, %v3273_v19  ;;  %v3961_v2 = vrot.slane %v14534_v6, %v14281_v1 }
 0x771   :  { %10282 = vmatprep.subr.bf16.mxu0 %v12468_v35  ;;  %v12403_v35 = vcombine.low %v3073_v17, %v3081_v22  ;;  %v12388_v59 = vcombine.high %v3057_v57, %v3065_v43  ;;  %v3249_v22 = vld [vmem:[#allocation18 + $0xb38] sm:$0xff] }
 0x772   :  { %v3241_v1 = vld [vmem:[#allocation18 + $0xaf8] sm:$0xff] }
 0x773   :  { %10242 = vmatpush2.bf16.msra.mxu1 %v13233_v48  ;;  %v3041_v48 = vld [vmem:[#allocation18 + $0x4b8] sm:$0xff] }
 0x774   :  { %10283 = vmatpush2.bf16.msra.mxu0 %v12467_v49  ;;  %10243 = vmatprep.subr.bf16.mxu1 %v13218_v36  ;;  %v3049_v49 = vld [vmem:[#allocation18 + $0x4f8] sm:$0xff]  ;;  %v13153_v36 = vcombine.low %v3824_v7, %v3832_v33 }
 0x775   :  { %10284 = vmatprep.subr.bf16.mxu0 %v12452_v31  ;;  %v12387_v31 = vcombine.low %v3057_v57, %v3065_v43  ;;  %v12372_v11 = vcombine.high %v3041_v48, %v3049_v49  ;;  %v3513_v7 = vld [vmem:[#allocation18 + $0x1378] sm:$0xff]  ;;  %v9973_v57 = vadd.f32 %v14554_v16, %v3961_v2 }
 0x777   :  { %10244 = vmatpush2.bf16.msra.mxu1 %v13217_v51  ;;  %v3025_v51 = vld [vmem:[#allocation18 + $0x438] sm:$0xff] }
 0x778   :  { %10285 = vmatpush2.bf16.msra.mxu0 %v12451_v60  ;;  %10245 = vmatprep.subr.bf16.mxu1 %v13202_v8  ;;  %v3033_v60 = vld [vmem:[#allocation18 + $0x478] sm:$0xff]  ;;  %v13137_v8 = vcombine.low %v3808_v47, %v3816_v40 }
 0x779   :  { %10286 = vmatprep.subr.bf16.mxu0 %v12436_v9  ;;  %v12371_v9 = vcombine.low %v3041_v48, %v3049_v49  ;;  %v12356_v15 = vcombine.high %v3025_v51, %v3033_v60  ;;  %v3497_v47 = vld [vmem:[#allocation18 + $0x12f8] sm:$0xff] }
 0x77b   :  { %10246 = vmatpush2.bf16.msra.mxu1 %v13201_v23  ;;  %v3521_v23 = vld [vmem:[#allocation18 + $0x13b8] sm:$0xff] }
 0x77c   :  { %10287 = vmatpush2.bf16.msra.mxu0 %v12435_v25  ;;  %10247 = vmatprep.subr.bf16.mxu1 %v13186_v26  ;;  %v3529_v25 = vld [vmem:[#allocation18 + $0x13f8] sm:$0xff]  ;;  %v13121_v26 = vcombine.low %v3792_v53, %v3800_v54 }
 0x77d   :  { %10288 = vmatprep.subr.bf16.mxu0 %v12420_v14  ;;  %v12355_v14 = vcombine.low %v3025_v51, %v3033_v60  ;;  %v12852_v17 = vcombine.high %v3521_v23, %v3529_v25  ;;  %v12851_v33 = vcombine.low %v3521_v23, %v3529_v25  ;;  %v3217_v53 = vld [vmem:[#allocation18 + $0xa38] sm:$0xff] }
 0x77e   :  { %v3225_v54 = vld [vmem:[#allocation18 + $0xa78] sm:$0xff] }
 0x77f   :  { %10248 = vmatpush2.bf16.msra.mxu1 %v13185_v41  ;;  %v3257_v41 = vld [vmem:[#allocation18 + $0xb78] sm:$0xff] }
 0x780   :  { %10289 = vmatpush2.bf16.msra.mxu0 %v12419_v52  ;;  %10249 = vmatprep.subr.bf16.mxu1 %v13170_v55  ;;  %v3965_v52 = vrot.slane %v14534_v6, %v14284_v3  ;;  %v12595_v55 = vcombine.low %v3265_v39, %v3273_v19  ;;  %v12580_v43 = vcombine.high %v3249_v22, %v3257_v41  ;;  %v3481_v60 = vld [vmem:[#allocation18 + $0x1278] sm:$0xff] }
 0x781   :  { %10290 = vmatprep.subr.bf16.mxu0 %v12404_v32  ;;  %v3505_v32 = vld [vmem:[#allocation18 + $0x1338] sm:$0xff]  ;;  %v12579_v48 = vcombine.low %v3249_v22, %v3257_v41 }
 0x782   :  { %v9975_v3 = vadd.f32 %v14562_v29, %v3965_v52  ;;  %v12835_v49 = vcombine.low %v3505_v32, %v3513_v7  ;;  %v3201_v23 = vld [vmem:[#allocation18 + $0x9b8] sm:$0xff] }
 0x783   :  { %10250 = vmatpush2.bf16.msra.mxu1 %v13169_v0  ;;  %v3233_v0 = vld [vmem:[#allocation18 + $0xab8] sm:$0xff] }
 0x784   :  { %10291 = vmatpush2.bf16.msra.mxu0 %v12403_v35  ;;  %10251 = vmatprep.subr.bf16.mxu1 %v13154_v42  ;;  %v12836_v42 = vcombine.high %v3505_v32, %v3513_v7  ;;  %v3209_v25 = vld [vmem:[#allocation18 + $0x9f8] sm:$0xff] }
 0x785   :  { %10292 = vmatprep.subr.bf16.mxu0 %v12388_v59  ;;  %v3489_v59 = vld [vmem:[#allocation18 + $0x12b8] sm:$0xff]  ;;  %v12531_v7 = vcombine.low %v3201_v23, %v3209_v25 }
 0x786   :  { %v12820_v29 = vcombine.high %v3489_v59, %v3497_v47  ;;  %v3185_v41 = vld [vmem:[#allocation18 + $0x938] sm:$0xff] }
 0x787   :  { %10252 = vmatpush2.bf16.msra.mxu1 %v13153_v36  ;;  %v12564_v36 = vcombine.high %v3233_v0, %v3241_v1  ;;  %v3193_v52 = vld [vmem:[#allocation18 + $0x978] sm:$0xff] }
 0x788   :  { %10293 = vmatpush2.bf16.msra.mxu0 %v12387_v31  ;;  %10253 = vmatprep.subr.bf16.mxu1 %v13138_v37  ;;  %v3449_v32 = vld [vmem:[#allocation18 + $0x1178] sm:$0xff] }
 0x789   :  { %10294 = vmatprep.subr.bf16.mxu0 %v12372_v11 }
 0x78b   :  { %10254 = vmatpush2.bf16.msra.mxu1 %v13137_v8 }
 0x78c   :  { %10295 = vmatpush2.bf16.msra.mxu0 %v12371_v9  ;;  %10255 = vmatprep.subr.bf16.mxu1 %v13122_v44  ;;  %v12563_v9 = vcombine.low %v3233_v0, %v3241_v1  ;;  %v3169_v0 = vld [vmem:[#allocation18 + $0x8b8] sm:$0xff] }
 0x78d   :  { %10296 = vmatprep.subr.bf16.mxu0 %v12356_v15  ;;  %v12819_v15 = vcombine.low %v3489_v59, %v3497_v47  ;;  %v3177_v1 = vld [vmem:[#allocation18 + $0x8f8] sm:$0xff]  ;;  %v12515_v59 = vcombine.low %v3185_v41, %v3193_v52 }
 0x78f   :  { %10256 = vmatpush2.bf16.msra.mxu1 %v13121_v26  ;;  %v3457_v26 = vld [vmem:[#allocation18 + $0x11b8] sm:$0xff] }
 0x790   :  { %10297 = vmatpush2.bf16.msra.mxu0 %v12355_v14  ;;  %10307 = vmatprep.subr.bf16.mxu1 %v12596_v50  ;;  %v3465_v14 = vld [vmem:[#allocation18 + $0x11f8] sm:$0xff]  ;;  %v12547_v50 = vcombine.low %v3217_v53, %v3225_v54 }
 0x791   :  { %10348 = vmatprep.subr.bf16.mxu0 %v12852_v17  ;;  %v12532_v17 = vcombine.high %v3201_v23, %v3209_v25  ;;  %v12788_v22 = vcombine.high %v3457_v26, %v3465_v14 }
 0x792   :  { %v10013_v35 = vpop.f32.mrf.mxu1  ;;  %10258 = vmatmul.mubr.bf16.vlgmr.msra.gmra.mxu1 %v14406_v12 }
 0x793   :  { %v10014_v6 = vadd.f32 %v10013_v35, %v9973_v57  ;;  %v10054_v40 = vpop.f32.mrf.mxu0  ;;  %10299 = vmatmul.mubr.bf16.vlgmr.msra.gmra.mxu0 %v14344_v5  ;;  %10308 = vmatpush1.bf16.msra.mxu1 %v12595_v55  ;;  %v3473_v5 = vld [vmem:[#allocation18 + $0x1238] sm:$0xff]  ;;  %v12516_v57 = vcombine.high %v3185_v41, %v3193_v52 }
 0x794   :  { %10339 = vmatprep.mubr.bf16.mxu1 %v14351_v46  ;;  %10349 = vmatpush1.bf16.msra.mxu0 %v12851_v33  ;;  %v10015_v16 = vpop.f32.mrf.mxu1  ;;  %v12804_v19 = vcombine.high %v3473_v5, %v3481_v60  ;;  %v12803_v2 = vcombine.low %v3473_v5, %v3481_v60  ;;  %v3441_v55 = vld [vmem:[#allocation18 + $0x1138] sm:$0xff]  ;;  %v12787_v33 = vcombine.low %v3457_v26, %v3465_v14 }
 0x795   :  { %v14573_v31 = vadd.f32 %v10054_v40, %v10014_v6  ;;  %10380 = vmatprep.mubr.bf16.mxu0 %v14385_v18  ;;  %v10016_v37 = vadd.f32 %v10015_v16, %v9975_v3  ;;  %v10056_v11 = vpop.f32.mrf.mxu0  ;;  %10309 = vmatprep.subr.bf16.mxu1 %v12580_v43  ;;  %v12548_v18 = vcombine.high %v3217_v53, %v3225_v54  ;;  %v3425_v35 = vld [vmem:[#allocation18 + $0x10b8] sm:$0xff] }
 0x796   :  { %v10017_v51 = vpop.f32.mrf.mxu1  ;;  %10350 = vmatprep.subr.bf16.mxu0 %v12836_v42  ;;  %v12772_v43 = vcombine.high %v3441_v55, %v3449_v32  ;;  %v3433_v42 = vld [vmem:[#allocation18 + $0x10f8] sm:$0xff]  ;;  %v12771_v47 = vcombine.low %v3441_v55, %v3449_v32  ;;  %v12500_v3 = vcombine.high %v3169_v0, %v3177_v1 }
 0x797   :  { %v14576_v8 = vadd.f32 %v10056_v11, %v10016_v37  ;;  %v10058_v46 = vpop.f32.mrf.mxu0  ;;  %10310 = vmatpush1.bf16.msra.mxu1 %v12579_v48  ;;  %v12756_v6 = vcombine.high %v3425_v35, %v3433_v42  ;;  %v3153_v40 = vld [vmem:[#allocation18 + $0x838] sm:$0xff]  ;;  %v12755_v37 = vcombine.low %v3425_v35, %v3433_v42 }
 0x798   :  { %10351 = vmatpush1.bf16.msra.mxu0 %v12835_v49  ;;  %v10018_v44 = vpop.f32.mrf.mxu1  ;;  %10311 = vmatprep.subr.bf16.mxu1 %v12564_v36  ;;  %v3161_v48 = vld [vmem:[#allocation18 + $0x878] sm:$0xff]  ;;  %v12499_v36 = vcombine.low %v3169_v0, %v3177_v1 }
 0x799   :  { %v10059_v39 = vpop.f32.mrf.mxu0  ;;  %10352 = vmatprep.subr.bf16.mxu0 %v12820_v29  ;;  %v3409_v16 = vld [vmem:[#allocation18 + $0x1038] sm:$0xff]  ;;  %v12484_v11 = vcombine.high %v3153_v40, %v3161_v48  ;;  %v12483_v60 = vcombine.low %v3153_v40, %v3161_v48 }
 0x79a   :  { %v3417_v49 = vld [vmem:[#allocation18 + $0x1078] sm:$0xff] }
 0x79b   :  { %10312 = vmatpush1.bf16.msra.mxu1 %v12563_v9  ;;  %v12740_v29 = vcombine.high %v3409_v16, %v3417_v49  ;;  %v3393_v53 = vld [vmem:[#allocation18 + $0xfb8] sm:$0xff]  ;;  %v12739_v46 = vcombine.low %v3409_v16, %v3417_v49 }
 0x79c   :  { %10353 = vmatpush1.bf16.msra.mxu0 %v12819_v15  ;;  %10313 = vmatprep.subr.bf16.mxu1 %v12548_v18  ;;  %v3401_v54 = vld [vmem:[#allocation18 + $0xff8] sm:$0xff] }
 0x79d   :  { %10354 = vmatprep.subr.bf16.mxu0 %v12804_v19  ;;  %v3649_v51 = vld [vmem:[#allocation18 + $0x17b8] sm:$0xff]  ;;  %v12724_v9 = vcombine.high %v3393_v53, %v3401_v54  ;;  %v12723_v23 = vcombine.low %v3393_v53, %v3401_v54 }
 0x79e   :  { %v3657_v5 = vld [vmem:[#allocation18 + $0x17f8] sm:$0xff] }
 0x79f   :  { %10314 = vmatpush1.bf16.msra.mxu1 %v12547_v50  ;;  %v12980_v44 = vcombine.high %v3649_v51, %v3657_v5  ;;  %v3377_v15 = vld [vmem:[#allocation18 + $0xf38] sm:$0xff]  ;;  %v12979_v25 = vcombine.low %v3649_v51, %v3657_v5 }
 0x7a0   :  { %10355 = vmatpush1.bf16.msra.mxu0 %v12803_v2  ;;  %10315 = vmatprep.subr.bf16.mxu1 %v12532_v17  ;;  %v3385_v18 = vld [vmem:[#allocation18 + $0xf78] sm:$0xff] }
 0x7a1   :  { %10356 = vmatprep.subr.bf16.mxu0 %v12788_v22  ;;  %v3633_v39 = vld [vmem:[#allocation18 + $0x1738] sm:$0xff]  ;;  %v12708_v26 = vcombine.high %v3377_v15, %v3385_v18  ;;  %v12707_v41 = vcombine.low %v3377_v15, %v3385_v18 }
 0x7a2   :  { %v3641_v19 = vld [vmem:[#allocation18 + $0x1778] sm:$0xff] }
 0x7a3   :  { %10316 = vmatpush1.bf16.msra.mxu1 %v12531_v7  ;;  %v12964_v14 = vcombine.high %v3633_v39, %v3641_v19  ;;  %v3361_v50 = vld [vmem:[#allocation18 + $0xeb8] sm:$0xff]  ;;  %v12963_v52 = vcombine.low %v3633_v39, %v3641_v19 }
 0x7a4   :  { %10357 = vmatpush1.bf16.msra.mxu0 %v12787_v33  ;;  %10317 = vmatprep.subr.bf16.mxu1 %v12516_v57  ;;  %v3369_v2 = vld [vmem:[#allocation18 + $0xef8] sm:$0xff] }
 0x7a5   :  { %10358 = vmatprep.subr.bf16.mxu0 %v12772_v43  ;;  %v3617_v17 = vld [vmem:[#allocation18 + $0x16b8] sm:$0xff]  ;;  %v12692_v55 = vcombine.high %v3361_v50, %v3369_v2  ;;  %v12691_v0 = vcombine.low %v3361_v50, %v3369_v2 }
 0x7a6   :  { %v3625_v22 = vld [vmem:[#allocation18 + $0x16f8] sm:$0xff] }
 0x7a7   :  { %10318 = vmatpush1.bf16.msra.mxu1 %v12515_v59  ;;  %v12948_v32 = vcombine.high %v3617_v17, %v3625_v22  ;;  %v3345_v7 = vld [vmem:[#allocation18 + $0xe38] sm:$0xff]  ;;  %v12947_v1 = vcombine.low %v3617_v17, %v3625_v22 }
 0x7a8   :  { %10359 = vmatpush1.bf16.msra.mxu0 %v12771_v47  ;;  %10319 = vmatprep.subr.bf16.mxu1 %v12500_v3  ;;  %v3353_v33 = vld [vmem:[#allocation18 + $0xe78] sm:$0xff] }
 0x7a9   :  { %10360 = vmatprep.subr.bf16.mxu0 %v12756_v6  ;;  %v3601_v57 = vld [vmem:[#allocation18 + $0x1638] sm:$0xff]  ;;  %v12676_v35 = vcombine.high %v3345_v7, %v3353_v33  ;;  %v12675_v40 = vcombine.low %v3345_v7, %v3353_v33 }
 0x7aa   :  { %v3609_v43 = vld [vmem:[#allocation18 + $0x1678] sm:$0xff] }
 0x7ab   :  { %10320 = vmatpush1.bf16.msra.mxu1 %v12499_v36  ;;  %v12932_v42 = vcombine.high %v3601_v57, %v3609_v43  ;;  %v3329_v59 = vld [vmem:[#allocation18 + $0xdb8] sm:$0xff]  ;;  %v12931_v48 = vcombine.low %v3601_v57, %v3609_v43  ;;  %v13702_v43 = vld [vmem:[#allocation21 + $0x78] sm:$0xff]  }
 0x7ac   :  { %10361 = vmatpush1.bf16.msra.mxu0 %v12755_v37  ;;  %10321 = vmatprep.subr.bf16.mxu1 %v12484_v11  ;;  %v3337_v47 = vld [vmem:[#allocation18 + $0xdf8] sm:$0xff] }
 0x7ad   :  { %10362 = vmatprep.subr.bf16.mxu0 %v12740_v29  ;;  %v3585_v3 = vld [vmem:[#allocation18 + $0x15b8] sm:$0xff]  ;;  %v12660_v16 = vcombine.high %v3329_v59, %v3337_v47  ;;  %v12659_v53 = vcombine.low %v3329_v59, %v3337_v47 }
 0x7ae   :  { %v3593_v6 = vld [vmem:[#allocation18 + $0x15f8] sm:$0xff] }
 0x7af   :  { %10322 = vmatpush1.bf16.msra.mxu1 %v12483_v60  ;;  %v12916_v49 = vcombine.high %v3585_v3, %v3593_v6  ;;  %v3313_v36 = vld [vmem:[#allocation18 + $0xd38] sm:$0xff]  ;;  %v12915_v54 = vcombine.low %v3585_v3, %v3593_v6 }
 0x7b0   :  { %10363 = vmatpush1.bf16.msra.mxu0 %v12739_v46  ;;  %10323 = vmatprep.subr.bf16.mxu1 %v12724_v9  ;;  %v3321_v37 = vld [vmem:[#allocation18 + $0xd78] sm:$0xff] }
 0x7b1   :  { %10364 = vmatprep.subr.bf16.mxu0 %v12980_v44  ;;  %v3569_v11 = vld [vmem:[#allocation18 + $0x1538] sm:$0xff]  ;;  %v12644_v51 = vcombine.high %v3313_v36, %v3321_v37  ;;  %v12643_v15 = vcombine.low %v3313_v36, %v3321_v37 }
 0x7b2   :  { %v3577_v29 = vld [vmem:[#allocation18 + $0x1578] sm:$0xff] }
 0x7b3   :  { %10324 = vmatpush2.bf16.msra.mxu1 %v12723_v23  ;;  %v12900_v5 = vcombine.high %v3569_v11, %v3577_v29  ;;  %v3297_v60 = vld [vmem:[#allocation18 + $0xcb8] sm:$0xff]  ;;  %v12899_v18 = vcombine.low %v3569_v11, %v3577_v29  ;;  %v13705_v11 = vld [vmem:[#allocation21 + $0x30] sm:$0xff]  }
 0x7b4   :  { %10365 = vmatpush2.bf16.msra.mxu0 %v12979_v25  ;;  %10325 = vmatprep.subr.bf16.mxu1 %v12708_v26  ;;  %v3305_v46 = vld [vmem:[#allocation18 + $0xcf8] sm:$0xff] }
 0x7b5   :  { %10366 = vmatprep.subr.bf16.mxu0 %v12964_v14  ;;  %v3553_v9 = vld [vmem:[#allocation18 + $0x14b8] sm:$0xff]  ;;  %v12628_v39 = vcombine.high %v3297_v60, %v3305_v46  ;;  %v12627_v50 = vcombine.low %v3297_v60, %v3305_v46 }
 0x7b6   :  { %v3561_v44 = vld [vmem:[#allocation18 + $0x14f8] sm:$0xff] }
 0x7b7   :  { %10326 = vmatpush2.bf16.msra.mxu1 %v12707_v41  ;;  %v12884_v19 = vcombine.high %v3553_v9, %v3561_v44  ;;  %v3281_v23 = vld [vmem:[#allocation18 + $0xc38] sm:$0xff]  ;;  %v12883_v2 = vcombine.low %v3553_v9, %v3561_v44 }
 0x7b8   :  { %10367 = vmatpush2.bf16.msra.mxu0 %v12963_v52  ;;  %10327 = vmatprep.subr.bf16.mxu1 %v12692_v55  ;;  %v3289_v25 = vld [vmem:[#allocation18 + $0xc78] sm:$0xff]  ;;  %v14578_v55 = vstv %s13237_s21 }
 0x7b9   :  { %10368 = vmatprep.subr.bf16.mxu0 %v12948_v32  ;;  %v3537_v26 = vld [vmem:[#allocation18 + $0x1438] sm:$0xff]  ;;  %v12612_v17 = vcombine.high %v3281_v23, %v3289_v25  ;;  %v12611_v32 = vcombine.low %v3281_v23, %v3289_v25  ;;  %v10449_v7 = vmul.f32 %v14578_v55, %v14448_v27  ;;  %v13710_v25 = vld [vmem:[#allocation21 + $0x58] sm:$0xff]  }
 0x7ba   :  { %v3545_v14 = vld [vmem:[#allocation18 + $0x1478] sm:$0xff] }
 0x7bb   :  { %10328 = vmatpush2.bf16.msra.mxu1 %v12691_v0  ;;  %v12868_v22 = vcombine.high %v3537_v26, %v3545_v14  ;;  %v3777_v41 = vld [vmem:[#allocation18 + $0x1bb8] sm:$0xff]  ;;  %v12867_v33 = vcombine.low %v3537_v26, %v3545_v14  ;;  %v10465_v59 = vsel %vm10432_vm1, %v14448_v27, %v10449_v7  ;;  %v13713_v7 = vld [vmem:[#allocation21 + $0x10] sm:$0xff]  }
 0x7bc   :  { %10369 = vmatpush2.bf16.msra.mxu0 %v12947_v1  ;;  %10329 = vmatprep.subr.bf16.mxu1 %v12676_v35  ;;  %v3785_v52 = vld [vmem:[#allocation18 + $0x1bf8] sm:$0xff]  ;;  %v10481_v36 = vpack.c.bf16 %v10465_v59, %v10465_v59  ;;  %v13716_v59 = vld [vmem:[#allocation21 + $0x40] sm:$0xff]  }
 0x7bd   :  { %10370 = vmatprep.subr.bf16.mxu0 %v12932_v42  ;;  %v13108_v57 = vcombine.high %v3777_v41, %v3785_v52  ;;  %v3761_v0 = vld [vmem:[#allocation18 + $0x1b38] sm:$0xff]  ;;  %v13107_v35 = vcombine.low %v3777_v41, %v3785_v52  ;;  %v13703_v42 = vld [vmem:[#allocation21 + $0x38] sm:$0xff]  }
 0x7be   :  { %v3769_v1 = vld [vmem:[#allocation18 + $0x1b78] sm:$0xff] }
 0x7bf   :  { %10330 = vmatpush2.bf16.msra.mxu1 %v12675_v40  ;;  %v13092_v47 = vcombine.high %v3761_v0, %v3769_v1  ;;  %v3745_v3 = vld [vmem:[#allocation18 + $0x1ab8] sm:$0xff]  ;;  %v13091_v37 = vcombine.low %v3761_v0, %v3769_v1 }
 0x7c0   :  { %10371 = vmatpush2.bf16.msra.mxu0 %v12931_v48  ;;  %10331 = vmatprep.subr.bf16.mxu1 %v12660_v16  ;;  %v3753_v6 = vld [vmem:[#allocation18 + $0x1af8] sm:$0xff]  ;;  %v13704_v48 = vld [vmem:[#allocation21 + $0x70] sm:$0xff]  }
 0x7c1   :  { %10372 = vmatprep.subr.bf16.mxu0 %v12916_v49  ;;  %v13076_v29 = vcombine.high %v3745_v3, %v3753_v6  ;;  %v13075_v60 = vcombine.low %v3745_v3, %v3753_v6  ;;  %v13707_v46 = vld [vmem:[#allocation21 + $0x28] sm:$0xff]   ;;  %v10448_v6 = vmul.f32 %v14578_v55, %v14441_v61 }
 0x7c2   :  { %v3697_v26 = vld [vmem:[#allocation18 + $0x1938] sm:$0xff] }
 0x7c3   :  { %10332 = vmatpush2.bf16.msra.mxu1 %v12659_v53  ;;  %v3705_v14 = vld [vmem:[#allocation18 + $0x1978] sm:$0xff] }
 0x7c4   :  { %10373 = vmatpush2.bf16.msra.mxu0 %v12915_v54  ;;  %10333 = vmatprep.subr.bf16.mxu1 %v12644_v51  ;;  %v3729_v54 = vld [vmem:[#allocation18 + $0x1a38] sm:$0xff] }
 0x7c5   :  { %10374 = vmatprep.subr.bf16.mxu0 %v12900_v5  ;;  %v3737_v51 = vld [vmem:[#allocation18 + $0x1a78] sm:$0xff] }
 0x7c6   :  { %v13060_v9 = vcombine.high %v3729_v54, %v3737_v51  ;;  %v3681_v41 = vld [vmem:[#allocation18 + $0x18b8] sm:$0xff] }
 0x7c7   :  { %10334 = vmatpush2.bf16.msra.mxu1 %v12643_v15  ;;  %v3713_v15 = vld [vmem:[#allocation18 + $0x19b8] sm:$0xff] }
 0x7c8   :  { %10375 = vmatpush2.bf16.msra.mxu0 %v12899_v18  ;;  %10335 = vmatprep.subr.bf16.mxu1 %v12628_v39  ;;  %v3721_v18 = vld [vmem:[#allocation18 + $0x19f8] sm:$0xff]  ;;  %v13059_v39 = vcombine.low %v3729_v54, %v3737_v51 }
 0x7c9   :  { %10376 = vmatprep.subr.bf16.mxu0 %v12884_v19  ;;  %v13709_v19 = vld [vmem:[#allocation21 + $0x20] sm:$0xff]   ;;  %v13044_v23 = vcombine.high %v3713_v15, %v3721_v18  ;;  %v3689_v52 = vld [vmem:[#allocation18 + $0x18f8] sm:$0xff] }
 0x7ca   :  { %v3673_v0 = vld [vmem:[#allocation18 + $0x1878] sm:$0xff]  ;;  %v13011_v1 = vcombine.low %v3681_v41, %v3689_v52 }
 0x7cb   :  { %10336 = vmatpush2.bf16.msra.mxu1 %v12627_v50  ;;  %v13043_v50 = vcombine.low %v3713_v15, %v3721_v18  ;;  %v3913_v3 = vld [vmem:[#allocation18 + $0x1ff8] sm:$0xff] }
 0x7cc   :  { %10377 = vmatpush2.bf16.msra.mxu0 %v12883_v2  ;;  %10337 = vmatprep.subr.bf16.mxu1 %v12612_v17  ;;  %v13711_v2 = vld [vmem:[#allocation21 + $0x18] sm:$0xff]   ;;  %v13028_v17 = vcombine.high %v3697_v26, %v3705_v14  ;;  %v3857_v18 = vld [vmem:[#allocation18 + $0x1e38] sm:$0xff] }
 0x7cd   :  { %10378 = vmatprep.subr.bf16.mxu0 %v12868_v22  ;;  %v13712_v22 = vld [vmem:[#allocation21 + $0x50] sm:$0xff]  }
 0x7cf   :  { %10338 = vmatpush2.bf16.msra.mxu1 %v12611_v32  ;;  %v13027_v32 = vcombine.low %v3697_v26, %v3705_v14  ;;  %v13724_v26 = vld [vmem:[#allocation21 + $0x160] sm:$0xff]   ;;  %v3841_v14 = vld [vmem:[#allocation18 + $0x1db8] sm:$0xff] }
 0x7d0   :  { %10379 = vmatpush2.bf16.msra.mxu0 %v12867_v33  ;;  %10389 = vmatprep.subr.bf16.mxu1 %v13108_v57  ;;  %v13012_v33 = vcombine.high %v3681_v41, %v3689_v52  ;;  %v13714_v57 = vld [vmem:[#allocation21 + $0x48] sm:$0xff]   ;;  %v13726_v41 = vld [vmem:[#allocation21 + $0x158] sm:$0xff]  }
 0x7d1   :  { %13370 = vmatprep.subr.bf16.mxu0 %v13702_v43  ;;  %v3665_v43 = vld [vmem:[#allocation18 + $0x1838] sm:$0xff] }
 0x7d2   :  { %v10095_v40 = vpop.f32.mrf.mxu1  ;;  %10340 = vmatmul.mubr.bf16.vlgmr.msra.gmra.mxu1 %v14355_v34  ;;  %v3825_v52 = vld [vmem:[#allocation18 + $0x1d38] sm:$0xff] }
 0x7d3   :  { %v14586_v16 = vadd.f32 %v10095_v40, %v14573_v31  ;;  %v14588_v49 = vpop.f32.mrf.mxu0  ;;  %10381 = vmatmul.mubr.bf16.vlgmr.msra.gmra.mxu0 %v14389_v20  ;;  %10390 = vmatpush1.bf16.msra.mxu1 %v13107_v35  ;;  %v13706_v31 = vld [vmem:[#allocation21 + $0x68] sm:$0xff]   ;;  %v10453_v40 = vmul.f32 %v14578_v55, %v14504_v56 }
 0x7d4   :  { %10421 = vmatprep.mubr.bf16.mxu1 %v14404_v10  ;;  %13371 = vmatpush3.bf16.msra.mxu0 %v13703_v42  ;;  %v10097_v27 = vpop.f32.mrf.mxu1  ;;  %v13715_v35 = vld [vmem:[#allocation21 + $0x8] sm:$0xff]   ;;  %v12996_v42 = vcombine.high %v3665_v43, %v3673_v0 }
 0x7d5   :  { %11559 = vmatprep.mubr.bf16.mxu0 %v10481_v36  ;;  %v14593_v34 = vadd.f32 %v10097_v27, %v14576_v8  ;;  %v14595_v53 = vpop.f32.mrf.mxu0  ;;  %10391 = vmatprep.subr.bf16.mxu1 %v13092_v47  ;;  %v13708_v8 = vld [vmem:[#allocation21 + $0x60] sm:$0xff]   ;;  %v3905_v47 = vld [vmem:[#allocation18 + $0x1fb8] sm:$0xff]  ;;  %v13718_v27 = vld [vmem:[#allocation21 + $0x178] sm:$0xff]   ;;  %v10469_v51 = vsel %vm10436_vm3, %v14504_v56, %v10453_v40  ;;  %vm10441_vm14 = vcmp.gt.f32.partialorder %v14586_v16, 0.0 }
 0x7d6   :  { %v10099_v20 = vpop.f32.mrf.mxu1  ;;  %13372 = vmatprep.subr.bf16.mxu0 %v13704_v48  ;;  %v12995_v48 = vcombine.low %v3665_v43, %v3673_v0  ;;  %v13717_v36 = vld [vmem:[#allocation21] sm:$0xff]   ;;  %v13235_v54 = vcombine.low %v3905_v47, %v3913_v3  ;;  %v13722_v56 = vld [vmem:[#allocation21 + $0x168] sm:$0xff]   ;;  %v13728_v43 = vld [vmem:[#allocation21 + $0x150] sm:$0xff]  }
 0x7d7   :  { %v10140_v5 = vpop.f32.mrf.mxu0  ;;  %10392 = vmatpush1.bf16.msra.mxu1 %v13091_v37  ;;  %v13236_v37 = vcombine.high %v3905_v47, %v3913_v3  ;;  %v13719_v20 = vld [vmem:[#allocation21 + $0x138] sm:$0xff]   ;;  %v3809_v0 = vld [vmem:[#allocation18 + $0x1cb8] sm:$0xff]  ;;  %vm10442_vm11 = vcmp.gt.f32.partialorder %v14593_v34, 0.0 }
 0x7d8   :  { %13373 = vmatpush3.bf16.msra.mxu0 %v13705_v11  ;;  %v10100_v10 = vpop.f32.mrf.mxu1  ;;  %10393 = vmatprep.subr.bf16.mxu1 %v13076_v29  ;;  %v10464_v11 = vsel %vm10431_vm2, %v14441_v61, %v10448_v6  ;;  %v3889_v29 = vld [vmem:[#allocation18 + $0x1f38] sm:$0xff]  ;;  %v13721_v61 = vld [vmem:[#allocation21 + $0x130] sm:$0xff]  }
 0x7d9   :  { %v10141_v44 = vpop.f32.mrf.mxu0  ;;  %13374 = vmatprep.subr.bf16.mxu0 %v13706_v31  ;;  %v3897_v31 = vld [vmem:[#allocation18 + $0x1f78] sm:$0xff]  ;;  %v10480_v5 = vpack.c.bf16 %v10464_v11, %v10464_v11  ;;  %v13720_v10 = vld [vmem:[#allocation21 + $0x170] sm:$0xff]   ;;  %v10451_v11 = vmul.f32 %v14578_v55, %v14476_v30 }
 0x7da   :  { %v10485_v44 = vpack.c.bf16 %v10469_v51, %v10469_v51  ;;  %v13730_v47 = vld [vmem:[#allocation21 + $0x148] sm:$0xff]   ;;  %v13734_v51 = vld [vmem:[#allocation21 + $0xf8] sm:$0xff]  }
 0x7db   :  { %10394 = vmatpush1.bf16.msra.mxu1 %v13075_v60  ;;  %v13220_v60 = vcombine.high %v3889_v29, %v3897_v31  ;;  %v3793_v3 = vld [vmem:[#allocation18 + $0x1c38] sm:$0xff] }
 0x7dc   :  { %13375 = vmatpush3.bf16.msra.mxu0 %v13707_v46  ;;  %10395 = vmatprep.subr.bf16.mxu1 %v13060_v9  ;;  %v3873_v46 = vld [vmem:[#allocation18 + $0x1eb8] sm:$0xff] }
 0x7dd   :  { %13376 = vmatprep.subr.bf16.mxu0 %v13708_v8  ;;  %v3881_v9 = vld [vmem:[#allocation18 + $0x1ef8] sm:$0xff]  ;;  %v13219_v8 = vcombine.low %v3889_v29, %v3897_v31  ;;  %v10457_v31 = vmul.f32 %v14578_v55, %v14560_v28 }
 0x7de   :  { %v13204_v15 = vcombine.high %v3873_v46, %v3881_v9  ;;  %v3801_v6 = vld [vmem:[#allocation18 + $0x1c78] sm:$0xff] }
 0x7df   :  { %10396 = vmatpush1.bf16.msra.mxu1 %v13059_v39  ;;  %v3865_v39 = vld [vmem:[#allocation18 + $0x1e78] sm:$0xff]  ;;  %v13123_v29 = vcombine.low %v3793_v3, %v3801_v6 }
 0x7e0   :  { %13377 = vmatpush3.bf16.msra.mxu0 %v13709_v19  ;;  %10397 = vmatprep.subr.bf16.mxu1 %v13044_v23  ;;  %v13203_v19 = vcombine.low %v3873_v46, %v3881_v9  ;;  %v13723_v23 = vld [vmem:[#allocation21 + $0x128] sm:$0xff]   ;;  %v13736_v46 = vld [vmem:[#allocation21 + $0xb8] sm:$0xff]   ;;  %v10467_v9 = vsel %vm10434_vm5, %v14476_v30, %v10451_v11  ;;  %v13763_v11 = vld [vmem:[#allocation21 + $0x240] sm:$0xff]  }
 0x7e1   :  { %13378 = vmatprep.subr.bf16.mxu0 %v13710_v25  ;;  %v13188_v25 = vcombine.high %v3857_v18, %v3865_v39 }
 0x7e3   :  { %10398 = vmatpush1.bf16.msra.mxu1 %v13043_v50  ;;  %v3849_v50 = vld [vmem:[#allocation18 + $0x1df8] sm:$0xff] }
 0x7e4   :  { %13379 = vmatpush3.bf16.msra.mxu0 %v13711_v2  ;;  %10399 = vmatprep.subr.bf16.mxu1 %v13028_v17  ;;  %v13187_v2 = vcombine.low %v3857_v18, %v3865_v39  ;;  %v13725_v17 = vld [vmem:[#allocation21 + $0x120] sm:$0xff]   ;;  %v13739_v39 = vld [vmem:[#allocation21 + $0x270] sm:$0xff]  }
 0x7e5   :  { %13380 = vmatprep.subr.bf16.mxu0 %v13712_v22  ;;  %v13172_v22 = vcombine.high %v3841_v14, %v3849_v50 }
 0x7e7   :  { %10400 = vmatpush1.bf16.msra.mxu1 %v13027_v32  ;;  %v3833_v32 = vld [vmem:[#allocation18 + $0x1d78] sm:$0xff] }
 0x7e8   :  { %13381 = vmatpush3.bf16.msra.mxu0 %v13713_v7  ;;  %10401 = vmatprep.subr.bf16.mxu1 %v13012_v33  ;;  %v13171_v7 = vcombine.low %v3841_v14, %v3849_v50  ;;  %v13727_v33 = vld [vmem:[#allocation21 + $0x118] sm:$0xff]  }
 0x7e9   :  { %13382 = vmatprep.subr.bf16.mxu0 %v13714_v57  ;;  %v13156_v57 = vcombine.high %v3825_v52, %v3833_v32 }
 0x7eb   :  { %10402 = vmatpush1.bf16.msra.mxu1 %v13011_v1  ;;  %v3817_v1 = vld [vmem:[#allocation18 + $0x1cf8] sm:$0xff] }
 0x7ec   :  { %13383 = vmatpush3.bf16.msra.mxu0 %v13715_v35  ;;  %10403 = vmatprep.subr.bf16.mxu1 %v12996_v42  ;;  %v13155_v35 = vcombine.low %v3825_v52, %v3833_v32  ;;  %v13729_v42 = vld [vmem:[#allocation21 + $0x110] sm:$0xff]   ;;  %v13139_v40 = vcombine.low %v3809_v0, %v3817_v1  ;;  %v13746_v52 = vld [vmem:[#allocation21 + $0xe0] sm:$0xff]  }
 0x7ed   :  { %13384 = vmatprep.subr.bf16.mxu0 %v13716_v59  ;;  %v13140_v59 = vcombine.high %v3809_v0, %v3817_v1  ;;  %v13751_v0 = vld [vmem:[#allocation21 + $0x258] sm:$0xff]  }
 0x7ee   :  { %v13752_v1 = vld [vmem:[#allocation21 + $0x98] sm:$0xff]  }
 0x7ef   :  { %10404 = vmatpush1.bf16.msra.mxu1 %v12995_v48  ;;  %v13731_v48 = vld [vmem:[#allocation21 + $0x108] sm:$0xff]  }
 0x7f0   :  { %13385 = vmatpush3.bf16.msra.mxu0 %v13717_v36  ;;  %10405 = vmatprep.subr.bf16.mxu1 %v13236_v37  ;;  %v13124_v36 = vcombine.high %v3793_v3, %v3801_v6  ;;  %v13732_v37 = vld [vmem:[#allocation21 + $0x140] sm:$0xff]   ;;  %v13757_v3 = vld [vmem:[#allocation21 + $0x210] sm:$0xff]   ;;  %v13758_v6 = vld [vmem:[#allocation21 + $0xc8] sm:$0xff]  }
 0x7f1   :  { %13414 = vmatprep.subr.bf16.mxu0 %v13718_v27  ;;  %v10452_v27 = vmul.f32 %v14578_v55, %v14496_v62 }
 0x7f3   :  { %11560 = vmatmul.mubr.bf16.vlgmr.msra.gmra.mxu0 %v10480_v5  ;;  %10406 = vmatpush2.bf16.msra.mxu1 %v13235_v54  ;;  %v13733_v54 = vld [vmem:[#allocation21 + $0x100] sm:$0xff]  }
 0x7f4   :  { %13415 = vmatpush3.bf16.msra.mxu0 %v13719_v20  ;;  %11639 = vmatprep.mubr.bf16.mxu0 %v10485_v44  ;;  %v14614_v20 = vld [vmem:[#allocation19 + $0x8] sm:$0xff] }
 0x7f5   :  { %10407 = vmatprep.subr.bf16.mxu1 %v13220_v60  ;;  %13416 = vmatprep.subr.bf16.mxu0 %v13720_v10  ;;  %v3969_v5 = vrot.slane %v14614_v20, %v14370_v38  ;;  %v13735_v60 = vld [vmem:[#allocation21 + $0x278] sm:$0xff]   ;;  %v10468_v10 = vsel %vm10435_vm4, %v14496_v62, %v10452_v27  ;;  %v10483_v38 = vpack.c.bf16 %v10467_v9, %v10467_v9 }
 0x7f6   :  { %v13737_v44 = vld [vmem:[#allocation21 + $0x238] sm:$0xff]   ;;  %v10450_v27 = vmul.f32 %v14578_v55, %v14468_v63 }
 0x7f7   :  { %10408 = vmatpush2.bf16.msra.mxu1 %v13219_v8  ;;  %v10473_v8 = vsel %vm10440_vm6, %v14560_v28, %v10457_v31  ;;  %v13741_v28 = vld [vmem:[#allocation21 + $0x230] sm:$0xff]   ;;  %v10455_v31 = vmul.f32 %v14578_v55, %v14530_v4  ;;  %v13767_v9 = vld [vmem:[#allocation21 + $0x1b8] sm:$0xff]  }
 0x7f8   :  { %13417 = vmatpush3.bf16.msra.mxu0 %v13721_v61  ;;  %10409 = vmatprep.subr.bf16.mxu1 %v13204_v15  ;;  %v10484_v61 = vpack.c.bf16 %v10468_v10, %v10468_v10  ;;  %v10137_v15 = vadd.f32 %v14588_v49, %v3969_v5  ;;  %v10489_v30 = vpack.c.bf16 %v10473_v8, %v10473_v8  ;;  %v13766_v5 = vld [vmem:[#allocation21 + $0x1f8] sm:$0xff]  }
 0x7f9   :  { %13418 = vmatprep.subr.bf16.mxu0 %v13722_v56  ;;  %v13738_v56 = vld [vmem:[#allocation21 + $0xf0] sm:$0xff]   ;;  %v13772_v10 = vld [vmem:[#allocation21 + $0x378] sm:$0xff]  }
 0x7fb   :  { %10410 = vmatpush2.bf16.msra.mxu1 %v13203_v19 }
 0x7fc   :  { %13419 = vmatpush3.bf16.msra.mxu0 %v13723_v23  ;;  %10411 = vmatprep.subr.bf16.mxu1 %v13188_v25  ;;  %v13740_v23 = vld [vmem:[#allocation21 + $0xb0] sm:$0xff]  }
 0x7fd   :  { %13420 = vmatprep.subr.bf16.mxu0 %v13724_v26  ;;  %v13742_v26 = vld [vmem:[#allocation21 + $0xe8] sm:$0xff]  }
 0x7ff   :  { %10412 = vmatpush2.bf16.msra.mxu1 %v13187_v2 }
 0x800   :  { %13421 = vmatpush3.bf16.msra.mxu0 %v13725_v17  ;;  %10413 = vmatprep.subr.bf16.mxu1 %v13172_v22  ;;  %v13744_v17 = vld [vmem:[#allocation21 + $0xa8] sm:$0xff]  }
 0x801   :  { %13422 = vmatprep.subr.bf16.mxu0 %v13726_v41  ;;  %v13745_v41 = vld [vmem:[#allocation21 + $0x228] sm:$0xff]  }
 0x803   :  { %10414 = vmatpush2.bf16.msra.mxu1 %v13171_v7  ;;  %v13747_v7 = vld [vmem:[#allocation21 + $0x260] sm:$0xff]  }
 0x804   :  { %13423 = vmatpush3.bf16.msra.mxu0 %v13727_v33  ;;  %10415 = vmatprep.subr.bf16.mxu1 %v13156_v57  ;;  %v13748_v33 = vld [vmem:[#allocation21 + $0xa0] sm:$0xff]  }
 0x805   :  { %13424 = vmatprep.subr.bf16.mxu0 %v13728_v43  ;;  %v13749_v57 = vld [vmem:[#allocation21 + $0x220] sm:$0xff]   ;;  %v13750_v43 = vld [vmem:[#allocation21 + $0xd8] sm:$0xff]  }
 0x807   :  { %10416 = vmatpush2.bf16.msra.mxu1 %v13155_v35  ;;  %v13753_v35 = vld [vmem:[#allocation21 + $0x218] sm:$0xff]  }
 0x808   :  { %13425 = vmatpush3.bf16.msra.mxu0 %v13729_v42  ;;  %10417 = vmatprep.subr.bf16.mxu1 %v13140_v59  ;;  %v13754_v42 = vld [vmem:[#allocation21 + $0xd0] sm:$0xff]  }
 0x809   :  { %13426 = vmatprep.subr.bf16.mxu0 %v13730_v47  ;;  %v13755_v59 = vld [vmem:[#allocation21 + $0x250] sm:$0xff]  }
 0x80a   :  { %v13756_v47 = vld [vmem:[#allocation21 + $0x90] sm:$0xff]  }
 0x80b   :  { %10418 = vmatpush2.bf16.msra.mxu1 %v13139_v40  ;;  %v13759_v40 = vld [vmem:[#allocation21 + $0x248] sm:$0xff]  }
 0x80c   :  { %13427 = vmatpush3.bf16.msra.mxu0 %v13731_v48  ;;  %10419 = vmatprep.subr.bf16.mxu1 %v13124_v36  ;;  %v13760_v48 = vld [vmem:[#allocation21 + $0x88] sm:$0xff]  }
 0x80d   :  { %13428 = vmatprep.subr.bf16.mxu0 %v13732_v37  ;;  %v13761_v36 = vld [vmem:[#allocation21 + $0x208] sm:$0xff]   ;;  %v13762_v37 = vld [vmem:[#allocation21 + $0xc0] sm:$0xff]  }
 0x80f   :  { %10420 = vmatpush2.bf16.msra.mxu1 %v13123_v29  ;;  %v10456_v29 = vmul.f32 %v14578_v55, %v14552_v13 }
 0x810   :  { %13429 = vmatpush3.bf16.msra.mxu0 %v13733_v54  ;;  %13392 = vmatprep.subr.bf16.mxu1 %v13734_v51  ;;  %v13764_v54 = vld [vmem:[#allocation21 + $0x80] sm:$0xff]  }
 0x811   :  { %13458 = vmatprep.subr.bf16.mxu0 %v13735_v60  ;;  %v13765_v51 = vld [vmem:[#allocation21 + $0x200] sm:$0xff]   ;;  %v10466_v60 = vsel %vm10433_vm7, %v14468_v63, %v10450_v27  ;;  %v13769_v63 = vld [vmem:[#allocation21 + $0x1b0] sm:$0xff]  }
 0x812   :  { %v10177_v18 = vpop.f32.mrf.mxu1  ;;  %10422 = vmatmul.mubr.bf16.vlgmr.msra.gmra.mxu1 %v14406_v12  ;;  %v13743_v12 = vld [vmem:[#allocation21 + $0x268] sm:$0xff]   ;;  %v10482_v8 = vpack.c.bf16 %v10466_v60, %v10466_v60 }
 0x813   :  { %v10178_v62 = vadd.f32 %v10177_v18, %v10137_v15  ;;  %v10218_v19 = vpop.f32.mrf.mxu0  ;;  %11640 = vmatmul.mubr.bf16.vlgmr.msra.gmra.mxu0 %v10484_v61  ;;  %13393 = vmatpush3.bf16.msra.mxu1 %v13736_v46  ;;  %v10472_v46 = vsel %vm10439_vm8, %v14552_v13, %v10456_v29  ;;  %v13768_v61 = vld [vmem:[#allocation21 + $0x1f0] sm:$0xff]   ;;  %v13770_v13 = vld [vmem:[#allocation21 + $0x1e8] sm:$0xff]  }
 0x814   :  { %11599 = vmatprep.mubr.bf16.mxu1 %v10483_v38  ;;  %13459 = vmatpush3.bf16.msra.mxu0 %v13737_v44  ;;  %v14623_v25 = vpop.f32.mrf.mxu1  ;;  %v10471_v44 = vsel %vm10438_vm9, %v14530_v4, %v10455_v31  ;;  %v10488_v15 = vpack.c.bf16 %v10472_v46, %v10472_v46  ;;  %v13776_v38 = vld [vmem:[#allocation21 + $0x370] sm:$0xff]   ;;  %v13780_v4 = vld [vmem:[#allocation21 + $0x368] sm:$0xff]  }
 0x815   :  { %v14625_v49 = vadd.f32 %v10218_v19, %v10178_v62  ;;  %11719 = vmatprep.mubr.bf16.mxu0 %v10489_v30  ;;  %v14627_v14 = vpop.f32.mrf.mxu0  ;;  %13394 = vmatprep.subr.bf16.mxu1 %v13738_v56  ;;  %v13774_v56 = vld [vmem:[#allocation21 + $0x338] sm:$0xff]   ;;  %v10487_v18 = vpack.c.bf16 %v10471_v44, %v10471_v44  ;;  %v13771_v62 = vld [vmem:[#allocation21 + $0x1a8] sm:$0xff]   ;;  %v13773_v19 = vld [vmem:[#allocation21 + $0x1e0] sm:$0xff]  }
 0x816   :  { %v10181_v50 = vpop.f32.mrf.mxu1  ;;  %13460 = vmatprep.subr.bf16.mxu0 %v13739_v39  ;;  %v13778_v39 = vld [vmem:[#allocation21 + $0x330] sm:$0xff]   ;;  %v13782_v30 = vld [vmem:[#allocation21 + $0x328] sm:$0xff]  }
 0x817   :  { %v10222_v2 = vpop.f32.mrf.mxu0  ;;  %13395 = vmatpush3.bf16.msra.mxu1 %v13740_v23  ;;  %v13784_v23 = vld [vmem:[#allocation21 + $0x360] sm:$0xff]   ;;  %v13788_v50 = vld [vmem:[#allocation21 + $0x358] sm:$0xff]  }
 0x818   :  { %13461 = vmatpush3.bf16.msra.mxu0 %v13741_v28  ;;  %v10182_v22 = vpop.f32.mrf.mxu1  ;;  %13396 = vmatprep.subr.bf16.mxu1 %v13742_v26  ;;  %v13775_v28 = vld [vmem:[#allocation21 + $0x1a0] sm:$0xff]   ;;  %v13777_v26 = vld [vmem:[#allocation21 + $0x1d8] sm:$0xff]  }
 0x819   :  { %v10223_v32 = vpop.f32.mrf.mxu0  ;;  %13462 = vmatprep.subr.bf16.mxu0 %v13743_v12  ;;  %v13786_v12 = vld [vmem:[#allocation21 + $0x320] sm:$0xff]   ;;  %v13779_v2 = vld [vmem:[#allocation21 + $0x198] sm:$0xff]  }
 0x81a   :  { %v13790_v22 = vld [vmem:[#allocation21 + $0x318] sm:$0xff]   ;;  %v13785_v32 = vld [vmem:[#allocation21 + $0x1c8] sm:$0xff]  }
 0x81b   :  { %13397 = vmatpush3.bf16.msra.mxu1 %v13744_v17  ;;  %v13781_v17 = vld [vmem:[#allocation21 + $0x1d0] sm:$0xff]  }
 0x81c   :  { %13463 = vmatpush3.bf16.msra.mxu0 %v13745_v41  ;;  %13398 = vmatprep.subr.bf16.mxu1 %v13746_v52  ;;  %v13792_v41 = vld [vmem:[#allocation21 + $0x350] sm:$0xff]  }
 0x81d   :  { %13464 = vmatprep.subr.bf16.mxu0 %v13747_v7  ;;  %v13783_v52 = vld [vmem:[#allocation21 + $0x190] sm:$0xff]  }
 0x81e   :  { %v13794_v7 = vld [vmem:[#allocation21 + $0x310] sm:$0xff]  }
 0x81f   :  { %13399 = vmatpush3.bf16.msra.mxu1 %v13748_v33  ;;  %v13796_v33 = vld [vmem:[#allocation21 + $0x348] sm:$0xff]  }
 0x820   :  { %13465 = vmatpush3.bf16.msra.mxu0 %v13749_v57  ;;  %13400 = vmatprep.subr.bf16.mxu1 %v13750_v43  ;;  %v13787_v57 = vld [vmem:[#allocation21 + $0x188] sm:$0xff]   ;;  %v13789_v43 = vld [vmem:[#allocation21 + $0x1c0] sm:$0xff]  }
 0x821   :  { %13466 = vmatprep.subr.bf16.mxu0 %v13751_v0  ;;  %v10454_v0 = vmul.f32 %v14578_v55, %v14522_v58 }
 0x823   :  { %13401 = vmatpush3.bf16.msra.mxu1 %v13752_v1  ;;  %v3973_v1 = vrot.slane %v14614_v20, %v14375_v45  ;;  %v13802_v45 = vld [vmem:[#allocation21 + $0x300] sm:$0xff]  }
 0x824   :  { %13467 = vmatpush3.bf16.msra.mxu0 %v13753_v35  ;;  %13402 = vmatprep.subr.bf16.mxu1 %v13754_v42  ;;  %v13798_v35 = vld [vmem:[#allocation21 + $0x308] sm:$0xff]   ;;  %v10459_v42 = vmul.f32 %v14578_v55, %v14593_v34 }
 0x825   :  { %13468 = vmatprep.subr.bf16.mxu0 %v13755_v59  ;;  %v13800_v59 = vld [vmem:[#allocation21 + $0x340] sm:$0xff]  }
 0x827   :  { %13403 = vmatpush3.bf16.msra.mxu1 %v13756_v47  ;;  %v13791_v47 = vld [vmem:[#allocation21 + $0x180] sm:$0xff]  }
 0x828   :  { %13469 = vmatpush3.bf16.msra.mxu0 %v13757_v3  ;;  %13404 = vmatprep.subr.bf16.mxu1 %v13758_v6  ;;  %v13793_v3 = vld [vmem:[#allocation21 + $0x2f8] sm:$0xff]   ;;  %v10470_v6 = vsel %vm10437_vm10, %v14522_v58, %v10454_v0  ;;  %v13825_v0 = vld [vmem:[#allocation21 + $0x390] sm:$0xff]  }
 0x829   :  { %13470 = vmatprep.subr.bf16.mxu0 %v13759_v40  ;;  %v10139_v40 = vadd.f32 %v14595_v53, %v3973_v1  ;;  %v10486_v27 = vpack.c.bf16 %v10470_v6, %v10470_v6  ;;  %v13826_v1 = vld [vmem:[#allocation21 + $0x3c8] sm:$0xff]  }
 0x82b   :  { %13405 = vmatpush3.bf16.msra.mxu1 %v13760_v48  ;;  %v10475_v48 = vsel %vm10442_vm11, %v14593_v34, %v10459_v42  ;;  %v13799_v34 = vld [vmem:[#allocation21 + $0x2b0] sm:$0xff]   ;;  %v13828_v42 = vld [vmem:[#allocation21 + $0x3c0] sm:$0xff]  }
 0x82c   :  { %13471 = vmatpush3.bf16.msra.mxu0 %v13761_v36  ;;  %13406 = vmatprep.subr.bf16.mxu1 %v13762_v37  ;;  %v10180_v36 = vadd.f32 %v14623_v25, %v10139_v40  ;;  %v13795_v37 = vld [vmem:[#allocation21 + $0x2b8] sm:$0xff]   ;;  %v10491_v29 = vpack.c.bf16 %v10475_v48, %v10475_v48  ;;  %v13801_v25 = vld [vmem:[#allocation21 + $0x2e8] sm:$0xff]  }
 0x82d   :  { %13472 = vmatprep.subr.bf16.mxu0 %v13763_v11  ;;  %v13797_v11 = vld [vmem:[#allocation21 + $0x2f0] sm:$0xff]  }
 0x82e   :  { %v10221_v58 = vadd.f32 %v14627_v14, %v10180_v36 }
 0x82f   :  { %13407 = vmatpush3.bf16.msra.mxu1 %v13764_v54 }
 0x830   :  { %13473 = vmatpush3.bf16.msra.mxu0 %v13765_v51  ;;  %13436 = vmatprep.subr.bf16.mxu1 %v13766_v5 }
 0x831   :  { %13502 = vmatprep.subr.bf16.mxu0 %v13772_v10 }
 0x832   :  { %11600 = vmatmul.mubr.bf16.vlgmr.msra.gmra.mxu1 %v10482_v8 }
 0x833   :  { %11720 = vmatmul.mubr.bf16.vlgmr.msra.gmra.mxu0 %v10488_v15  ;;  %13437 = vmatpush3.bf16.msra.mxu1 %v13767_v9 }
 0x834   :  { %11679 = vmatprep.mubr.bf16.mxu1 %v10487_v18  ;;  %13438 = vmatprep.subr.bf16.mxu1 %v13768_v61  ;;  %v13804_v61 = vld [vmem:[#allocation21 + $0x2e0] sm:$0xff]  }
 0x835   :  { %13503 = vmatpush3.bf16.msra.mxu0 %v13774_v56 }
 0x836   :  { %13504 = vmatprep.subr.bf16.mxu0 %v13776_v38 }
 0x837   :  { %13439 = vmatpush3.bf16.msra.mxu1 %v13769_v63  ;;  %v13805_v63 = vld [vmem:[#allocation21 + $0x2a0] sm:$0xff]  }
 0x838   :  { %13440 = vmatprep.subr.bf16.mxu1 %v13770_v13  ;;  %v13806_v13 = vld [vmem:[#allocation21 + $0x2d8] sm:$0xff]  }
 0x839   :  { %13505 = vmatpush3.bf16.msra.mxu0 %v13778_v39  ;;  %v13807_v39 = vld [vmem:[#allocation21 + $0x298] sm:$0xff]  }
 0x83a   :  { %13506 = vmatprep.subr.bf16.mxu0 %v13780_v4  ;;  %v13808_v4 = vld [vmem:[#allocation21 + $0x2d0] sm:$0xff]  }
 0x83b   :  { %13441 = vmatpush3.bf16.msra.mxu1 %v13771_v62  ;;  %v13809_v62 = vld [vmem:[#allocation21 + $0x290] sm:$0xff]  }
 0x83c   :  { %13442 = vmatprep.subr.bf16.mxu1 %v13773_v19  ;;  %v13810_v19 = vld [vmem:[#allocation21 + $0x2c8] sm:$0xff]  }
 0x83d   :  { %13507 = vmatpush3.bf16.msra.mxu0 %v13782_v30  ;;  %v13811_v30 = vld [vmem:[#allocation21 + $0x288] sm:$0xff]  }
 0x83e   :  { %13508 = vmatprep.subr.bf16.mxu0 %v13784_v23  ;;  %v13812_v23 = vld [vmem:[#allocation21 + $0x2c0] sm:$0xff]  }
 0x83f   :  { %13443 = vmatpush3.bf16.msra.mxu1 %v13775_v28  ;;  %v10458_v28 = vmul.f32 %v14578_v55, %v14586_v16 }
 0x840   :  { %13444 = vmatprep.subr.bf16.mxu1 %v13777_v26  ;;  %v13813_v26 = vld [vmem:[#allocation21 + $0x280] sm:$0xff]  }
 0x841   :  { %13509 = vmatpush3.bf16.msra.mxu0 %v13786_v12  ;;  %v13814_v12 = vld [vmem:[#allocation21 + $0x3f8] sm:$0xff]  }
 0x842   :  { %13510 = vmatprep.subr.bf16.mxu0 %v13788_v50  ;;  %v10474_v50 = vsel %vm10441_vm14, %v14586_v16, %v10458_v28  ;;  %v13823_v16 = vld [vmem:[#allocation21 + $0x398] sm:$0xff]  }
 0x843   :  { %13445 = vmatpush3.bf16.msra.mxu1 %v13779_v2  ;;  %v13815_v2 = vld [vmem:[#allocation21 + $0x3b8] sm:$0xff]  }
 0x844   :  { %13446 = vmatprep.subr.bf16.mxu1 %v13781_v17  ;;  %v10490_v17 = vpack.c.bf16 %v10474_v50, %v10474_v50 }
 0x845   :  { %13511 = vmatpush3.bf16.msra.mxu0 %v13790_v22  ;;  %v13816_v22 = vld [vmem:[#allocation21 + $0x3f0] sm:$0xff]  }
 0x846   :  { %13512 = vmatprep.subr.bf16.mxu0 %v13792_v41  ;;  %v13817_v41 = vld [vmem:[#allocation21 + $0x3b0] sm:$0xff]  }
 0x847   :  { %13447 = vmatpush3.bf16.msra.mxu1 %v13783_v52  ;;  %v13818_v52 = vld [vmem:[#allocation21 + $0x3e8] sm:$0xff]  }
 0x848   :  { %13448 = vmatprep.subr.bf16.mxu1 %v13785_v32  ;;  %v13819_v32 = vld [vmem:[#allocation21 + $0x3a8] sm:$0xff]  }
 0x849   :  { %13513 = vmatpush3.bf16.msra.mxu0 %v13794_v7  ;;  %v13820_v7 = vld [vmem:[#allocation21 + $0x3e0] sm:$0xff]  }
 0x84a   :  { %13514 = vmatprep.subr.bf16.mxu0 %v13796_v33  ;;  %v13821_v33 = vld [vmem:[#allocation21 + $0x3a0] sm:$0xff]  }
 0x84b   :  { %13449 = vmatpush3.bf16.msra.mxu1 %v13787_v57  ;;  %v13822_v57 = vld [vmem:[#allocation21 + $0x3d8] sm:$0xff]  }
 0x84c   :  { %13450 = vmatprep.subr.bf16.mxu1 %v13789_v43  ;;  %v13824_v43 = vld [vmem:[#allocation21 + $0x3d0] sm:$0xff]  }
 0x84d   :  { %13515 = vmatpush3.bf16.msra.mxu0 %v13798_v35  ;;  %v13827_v35 = vld [vmem:[#allocation21 + $0x388] sm:$0xff]  }
 0x84e   :  { %13516 = vmatprep.subr.bf16.mxu0 %v13800_v59  ;;  %v13829_v59 = vld [vmem:[#allocation21 + $0x380] sm:$0xff]  }
 0x84f   :  { %13451 = vmatpush3.bf16.msra.mxu1 %v13791_v47  ;;  %v3977_v47 = vrot.slane %v14614_v20, %v14395_v21  ;;  %v3981_v21 = vrot.slane %v14614_v20, %v14398_v24 }
 0x850   :  { %13480 = vmatprep.subr.bf16.mxu1 %v13793_v3 }
 0x851   :  { %13517 = vmatpush3.bf16.msra.mxu0 %v13802_v45 }
 0x852   :  { %v10259_v31 = vpop.f32.mrf.mxu1  ;;  %11680 = vmatmul.mubr.bf16.vlgmr.msra.gmra.mxu1 %v10486_v27 }
 0x853   :  { %v10260_v53 = vadd.f32 %v10259_v31, %v14625_v49  ;;  %v14655_v54 = vpop.f32.mrf.mxu0  ;;  %13481 = vmatpush3.bf16.msra.mxu1 %v13795_v37  ;;  %11759 = vmatprep.mubr.bf16.mxu1 %v10491_v29  ;;  %v13803_v49 = vld [vmem:[#allocation21 + $0x2a8] sm:$0xff]  }
 0x854   :  { %v10261_v51 = vpop.f32.mrf.mxu1  ;;  %13482 = vmatprep.subr.bf16.mxu1 %v13797_v11  ;;  %v10301_v3 = vadd.f32 %v14655_v54, %v3977_v47 }
 0x855   :  { %vm10443_vm12 = vcmp.gt.f32.partialorder %v10260_v53, 0.0  ;;  %v10460_v5 = vmul.f32 %v14578_v55, %v10260_v53  ;;  %v10262_v60 = vadd.f32 %v10261_v51, %v10221_v58  ;;  %v14658_v10 = vpop.f32.mrf.mxu0 }
 0x856   :  { %v10263_v46 = vpop.f32.mrf.mxu1  ;;  %v10303_v54 = vadd.f32 %v14658_v10, %v3981_v21 }
 0x857   :  { %vm10444_vm13 = vcmp.gt.f32.partialorder %v10262_v60, 0.0  ;;  %v10461_v14 = vmul.f32 %v14578_v55, %v10262_v60  ;;  %v10304_v9 = vpop.f32.mrf.mxu0  ;;  %13483 = vmatpush3.bf16.msra.mxu1 %v13799_v34  ;;  %v10476_v44 = vsel %vm10443_vm12, %v10260_v53, %v10460_v5 }
 0x858   :  { %v10264_v8 = vpop.f32.mrf.mxu1  ;;  %13484 = vmatprep.subr.bf16.mxu1 %v13801_v25  ;;  %v10492_v38 = vpack.c.bf16 %v10476_v44, %v10476_v44 }
 0x859   :  { %v10305_v15 = vpop.f32.mrf.mxu0  ;;  %v10477_v56 = vsel %vm10444_vm13, %v10262_v60, %v10461_v14 }
 0x85a   :  { %v10493_v18 = vpack.c.bf16 %v10477_v56, %v10477_v56 }
 0x85b   :  { %13485 = vmatpush3.bf16.msra.mxu1 %v13803_v49 }
 0x85c   :  { %11799 = vmatprep.mubr.bf16.mxu0 %v10493_v18  ;;  %13486 = vmatprep.subr.bf16.mxu1 %v13804_v61 }
 0x85d   :  { %11800 = vmatmul.mubr.bf16.vlgmr.msra.gmra.mxu0 %v10492_v38 }
 0x85f   :  { %13487 = vmatpush3.bf16.msra.mxu1 %v13805_v63 }
 0x860   :  { %13488 = vmatprep.subr.bf16.mxu1 %v13806_v13 }
 0x863   :  { %13489 = vmatpush3.bf16.msra.mxu1 %v13807_v39 }
 0x864   :  { %13490 = vmatprep.subr.bf16.mxu1 %v13808_v4  ;;  %v13238_v4 = vld [vmem:[#allocation22] ss:$0 sm:$0xff] }
 0x867   :  { %13491 = vmatpush3.bf16.msra.mxu1 %v13809_v62 }
 0x868   :  { %13492 = vmatprep.subr.bf16.mxu1 %v13810_v19 }
 0x86b   :  { %13493 = vmatpush3.bf16.msra.mxu1 %v13811_v30 }
 0x86c   :  { %13494 = vmatprep.subr.bf16.mxu1 %v13812_v23 }
 0x86f   :  { %13495 = vmatpush3.bf16.msra.mxu1 %v13813_v26 }
 0x870   :  { %13524 = vmatprep.subr.bf16.mxu1 %v13814_v12 }
 0x872   :  { %11760 = vmatmul.mubr.bf16.vlgmr.msra.gmra.mxu1 %v10490_v17 }
 0x873   :  { %13525 = vmatpush3.bf16.msra.mxu1 %v13815_v2 }
 0x874   :  { %13526 = vmatprep.subr.bf16.mxu1 %v13816_v22 }
 0x877   :  { %13527 = vmatpush3.bf16.msra.mxu1 %v13817_v41 }
 0x878   :  { %13528 = vmatprep.subr.bf16.mxu1 %v13818_v52 }
 0x87b   :  { %13529 = vmatpush3.bf16.msra.mxu1 %v13819_v32 }
 0x87c   :  { %13530 = vmatprep.subr.bf16.mxu1 %v13820_v7 }
 0x87f   :  { %13531 = vmatpush3.bf16.msra.mxu1 %v13821_v33 }
 0x880   :  { %13532 = vmatprep.subr.bf16.mxu1 %v13822_v57 }
 0x883   :  { %13533 = vmatpush3.bf16.msra.mxu1 %v13823_v16 }
 0x884   :  { %13534 = vmatprep.subr.bf16.mxu1 %v13824_v43 }
 0x887   :  { %13535 = vmatpush3.bf16.msra.mxu1 %v13825_v0 }
 0x888   :  { %13536 = vmatprep.subr.bf16.mxu1 %v13826_v1 }
 0x88b   :  { %13537 = vmatpush3.bf16.msra.mxu1 %v13827_v35 }
 0x88c   :  { %13538 = vmatprep.subr.bf16.mxu1 %v13828_v42 }
 0x88f   :  { %13539 = vmatpush3.bf16.msra.mxu1 %v13829_v59 }
 0x892   :  { %v10341_v6 = vpop.f32.mrf.mxu1 }
 0x893   :  { %v10342_v40 = vadd.f32 %v10341_v6, %v10301_v3  ;;  %v10382_v45 = vpop.f32.mrf.mxu0 }
 0x894   :  { %v10343_v48 = vpop.f32.mrf.mxu1 }
 0x895   :  { %v10383_v36 = vadd.f32 %v10382_v45, %v10342_v40  ;;  %v10384_v37 = vpop.f32.mrf.mxu0  ;;  %v10344_v5 = vadd.f32 %v10343_v48, %v10303_v54 }
 0x896   :  { %v10345_v27 = vpop.f32.mrf.mxu1 }
 0x897   :  { %v10386_v11 = vpop.f32.mrf.mxu0  ;;  %v10385_v46 = vadd.f32 %v10384_v37, %v10344_v5 }
 0x898   :  { %v10346_v29 = vpop.f32.mrf.mxu1 }
 0x899   :  { %v10387_v31 = vpop.f32.mrf.mxu0 }
 0x8b3   :  { %v13386_v58 = vpop.f32.mrf.mxu0 }
 0x8b5   :  { %v13387_v53 = vpop.f32.mrf.mxu0 }
 0x8b6   :  { %v13388_v34 = vadd.f32 %v13387_v53, %v13386_v58 }
 0x8b7   :  { %v13389_v51 = vpop.f32.mrf.mxu0 }
 0x8b8   :  { %v11562_v23 = vadd.f32 %v13388_v34, %v13238_v4 }
 0x8b9   :  { %v13390_v25 = vpop.f32.mrf.mxu0 }
 0x8d2   :  { %v10423_v60 = vpop.f32.mrf.mxu1 }
 0x8d3   :  { %v10424_v14 = vadd.f32 %v10423_v60, %v10383_v36  ;;  %v13430_v9 = vpop.f32.mrf.mxu0 }
 0x8d4   :  { %v10425_v49 = vpop.f32.mrf.mxu1 }
 0x8d5   :  { %vm10445_vm15 = vcmp.gt.f32.partialorder %v10424_v14, 0.0  ;;  %v10462_v44 = vmul.f32 %v14578_v55, %v10424_v14  ;;  %v10426_v8 = vadd.f32 %v10425_v49, %v10385_v46  ;;  %v13431_v61 = vpop.f32.mrf.mxu0 }
 0x8d6   :  { %v13432_v15 = vadd.f32 %v13431_v61, %v13430_v9  ;;  %v10427_v56 = vpop.f32.mrf.mxu1 }
 0x8d7   :  { %vm10446_vm0 = vcmp.gt.f32.partialorder %v10426_v8, 0.0  ;;  %v10463_v18 = vmul.f32 %v14578_v55, %v10426_v8  ;;  %v13433_v38 = vpop.f32.mrf.mxu0  ;;  %v10478_v24 = vsel %vm10445_vm15, %v10424_v14, %v10462_v44 }
 0x8d8   :  { %v10428_v20 = vpop.f32.mrf.mxu1  ;;  %v10494_v39 = vpack.c.bf16 %v10478_v24, %v10478_v24 }
 0x8d9   :  { %v13434_v10 = vpop.f32.mrf.mxu0  ;;  %v10479_v63 = vsel %vm10446_vm0, %v10426_v8, %v10463_v18 }
 0x8da   :  { %v10495_v13 = vpack.c.bf16 %v10479_v63, %v10479_v63 }
 0x8dc   :  { %11839 = vmatprep.mubr.bf16.mxu1 %v10495_v13 }
 0x8dd   :  { %11840 = vmatmul.mubr.bf16.vlgmr.msra.gmra.mxu1 %v10494_v39 }
 0x8f2   :  { %v13408_v62 = vpop.f32.mrf.mxu1 }
 0x8f3   :  { %v13474_v19 = vpop.f32.mrf.mxu0 }
 0x8f4   :  { %v13409_v30 = vpop.f32.mrf.mxu1 }
 0x8f5   :  { %v13410_v28 = vadd.f32 %v13409_v30, %v13408_v62  ;;  %v13475_v26 = vpop.f32.mrf.mxu0 }
 0x8f6   :  { %v13476_v12 = vadd.f32 %v13475_v26, %v13474_v19  ;;  %v13411_v50 = vpop.f32.mrf.mxu1 }
 0x8f7   :  { %v11602_v2 = vadd.f32 %v13410_v28, %v11562_v23  ;;  %v13477_v55 = vpop.f32.mrf.mxu0 }
 0x8f8   :  { %v13412_v17 = vpop.f32.mrf.mxu1 }
 0x8f9   :  { %v13478_v22 = vpop.f32.mrf.mxu0  ;;  %v11642_v41 = vadd.f32 %v13432_v15, %v11602_v2 }
 0x912   :  { %v13452_v52 = vpop.f32.mrf.mxu1 }
 0x914   :  { %v13453_v32 = vpop.f32.mrf.mxu1 }
 0x915   :  { %v13454_v7 = vadd.f32 %v13453_v32, %v13452_v52 }
 0x916   :  { %v13455_v33 = vpop.f32.mrf.mxu1 }
 0x917   :  { %v11682_v57 = vadd.f32 %v13454_v7, %v11642_v41 }
 0x918   :  { %v13456_v16 = vpop.f32.mrf.mxu1 }
 0x919   :  { %v11722_v43 = vadd.f32 %v13476_v12, %v11682_v57 }
 0x91d   :  { %v13518_v0 = vpop.f32.mrf.mxu0 }
 0x91f   :  { %v13519_v1 = vpop.f32.mrf.mxu0 }
 0x920   :  { %v13520_v35 = vadd.f32 %v13519_v1, %v13518_v0 }
 0x921   :  { %v13521_v42 = vpop.f32.mrf.mxu0 }
 0x923   :  { %v13522_v59 = vpop.f32.mrf.mxu0 }
 0x932   :  { %v13496_v47 = vpop.f32.mrf.mxu1 }
 0x934   :  { %v13497_v3 = vpop.f32.mrf.mxu1 }
 0x935   :  { %v13498_v6 = vadd.f32 %v13497_v3, %v13496_v47 }
 0x936   :  { %v13499_v40 = vpop.f32.mrf.mxu1 }
 0x937   :  { %v11762_v45 = vadd.f32 %v13498_v6, %v11722_v43 }
 0x938   :  { %v13500_v48 = vpop.f32.mrf.mxu1 }
 0x939   :  { %v11802_v36 = vadd.f32 %v13520_v35, %v11762_v45 }
 0x99d   :  { %v13540_v37 = vpop.f32.mrf.mxu1 }
 0x99f   :  { %v13541_v27 = vpop.f32.mrf.mxu1 }
 0x9a0   :  { %v13542_v11 = vadd.f32 %v13541_v27, %v13540_v37 }
 0x9a1   :  { %v13543_v29 = vpop.f32.mrf.mxu1 }
 0x9a2   :  { %v11842_v31 = vadd.f32 %v13542_v11, %v11802_v36 }
 0x9a3   :  { %v13544_v58 = vpop.f32.mrf.mxu1 }
 0x9a4   :  { %11847 = vst [vmem:[#allocation24] sm:$0xff] %v11842_v31 }
 0x9a5   :  { %14093 = shalt.err (!%p14090_p8)
}
 0x9a6   :  { %11857 = dma.vmem_to_hbm [thread:$0]  %s11855_s4, 128, %s14690_s14, [#allocation4]  }
 0x9a7   :  { %14118 = dma.done.wait [#allocation4], 128  }
 0x9a8   :  { %14119 = vsyncadd [#allocation4], 4294967168 }
 0x9a9   :  { %11861 = vsyncpa [#allocation3], 1 }
 0x9aa   :  { %11862 = vsyncpa [#allocation8], 1 }
 0x9ab   :  { %11863 = vsyncpa [#allocation11], 1 }
 0x9ac   :  { %11864 = vsyncpa [#allocation14], 1 }
 0x9ad   :  { %11865 = vsyncpa [#allocation17], 1 }
 0x9ae   :  { %11866 = vsyncpa [#allocation20], 1 }
 0x9af   :  { %11867 = vsyncpa [#allocation23], 1 }
 0x9b0   :  { %11868 = vsyncpa [#allocation4], 1 }
 0x9b1   :  { %11869 = vsyncpa [#allocation5], 1 }

</bundles_post_ra>
